<compile_context>
chip_gen: v7x
topology: tpu7x:2x2x1
jax: 0.10.0
libtpu: 0.0.40
codegen_flags: <defaults>
</compile_context>

<pallas_src>
import jax
import jax.numpy as jnp
from jax.experimental import pallas as pl
from jax.experimental.pallas import tpu as pltpu

K = 11           # kernel size
P = K // 2       # 'same' padding for stride-1, k=11
CIN = 2          # conv1 in_channels
NEG_SLOPE = 0.2


def _tree_sum(vals):
    """Pairwise (tree) sum to keep the add-dependency chains short."""
    vals = list(vals)
    while len(vals) > 1:
        nxt = [vals[i] + vals[i + 1] for i in range(0, len(vals) - 1, 2)]
        if len(vals) % 2:
            nxt.append(vals[-1])
        vals = nxt
    return vals[0]


def _leaky_relu(x):
    return jnp.where(x >= 0.0, x, NEG_SLOPE * x)


def _make_kernel(H, WL, HS, kx_chunk):
    f32 = jnp.float32

    def lane_shift(v, kx):
        # shifted[c] = v[c + kx - P]  ==  jnp.roll(v, P - kx) along lanes.
        s = (P - kx) % WL
        return v if s == 0 else pltpu.roll(v, s, axis=1)

    def sublane_window(full, ky):
        # full: (HS, WL).  Returns full[ky:ky+H, :] via an XLU sublane roll
        # (rows ky..ky+H-1 never wrap because ky + H - 1 <= H + 2P - 1 < HS).
        if ky == 0:
            return full[0:H, :]
        rolled = pltpu.roll(full, (HS - ky) % HS, axis=0)
        return rolled[0:H, :]

    def conv(num_slabs, get_slab, get_w):
        """sum_{s, kx} get_w(s, kx) * lane_shift(get_slab(s), kx).

        kx is processed in chunks of `kx_chunk` so at most kx_chunk partial
        accumulators (each ceil(H/8)*ceil(WL/128) vregs) are live at once.
        Partials are initialised from the first tap (no zeros+add).
        """
        total = None
        for c0 in range(0, K, kx_chunk):
            kxs = list(range(c0, min(c0 + kx_chunk, K)))
            t = [None] * len(kxs)
            for s in range(num_slabs):
                slab = get_slab(s)
                for j, kx in enumerate(kxs):
                    term = get_w(s, kx) * slab
                    t[j] = term if t[j] is None else t[j] + term
            part = _tree_sum([lane_shift(t[j], kx) for j, kx in enumerate(kxs)])
            total = part if total is None else total + part
        return total

    def kernel(x_ref, mask_ref, w1_ref, b1_ref, w2_ref, b2_ref, o_ref):
        # x_ref   : (CIN, HS, WL)  VMEM  batch packed along lanes, pre-padded
        # mask_ref: (H, WL)        VMEM  1.0 at valid output lanes, else 0.0
        # w1_ref  : (CIN*K*K,)     SMEM  conv1 weights (OIHW flattened, O=1)
        # b1_ref  : (1,)           SMEM
        # w2_ref  : (K*K,)         SMEM
        # b2_ref  : (1,)           SMEM
        # o_ref   : (H, WL)        VMEM  lane-dense packed output

        # ---------------- conv1 (CIN -> 1) + leaky_relu ---------------------
        def slab1(s):
            cin, ky = divmod(s, K)
            return x_ref[cin, ky:ky + H, :]      # one row-block load per (cin, ky)

        def get_w1(s, kx):
            cin, ky = divmod(s, K)
            return w1_ref[cin * K * K + ky * K + kx]

        acc1 = conv(CIN * K, slab1, get_w1) + b1_ref[0]
        # Mask zeroes the inter-image halo lanes and the tail lanes: they are
        # conv2's 'same' zero padding along W (precomputed in the wrapper).
        mid = _leaky_relu(acc1) * mask_ref[...]

        # Zero-row-bordered full-height value: conv2's 'same' padding along H.
        zt = jnp.zeros((P, WL), f32)
        zb = jnp.zeros((HS - P - H, WL), f32)
        mid_full = jnp.concatenate([zt, mid, zb], axis=0)      # (HS, WL)

        # ---------------- conv2 (1 -> 1) + leaky_relu -----------------------
        def slab2(ky):
            return sublane_window(mid_full, ky)   # XLU roll instead of VMEM reload

        def get_w2(ky, kx):
            return w2_ref[ky * K + kx]

        acc2 = conv(K, slab2, get_w2) + b2_ref[0]
        o_ref[...] = _leaky_relu(acc2).astype(o_ref.dtype)   # full-width store

    return kernel


def dummy_model_forward(x, w1, b1, w2, b2):
    """x: (N, 2, H, W) f32; w1: (1, 2, K, K); b1: (1,); w2: (1, 1, K, K); b2: (1,)."""
    N, C, H, W = x.shape
    assert C == CIN
    Hp, Wp = H + 2 * P, W + 2 * P
    HS = ((Hp + 7) // 8) * 8                 # sublane-aligned padded height
    wpk = N * Wp
    WL = ((wpk + 127) // 128) * 128          # lane-dense packed width

    # Pad spatially (plus sublane-align rows), move batch into the lane axis.
    xp = jnp.pad(x.astype(jnp.float32),
                 ((0, 0), (0, 0), (P, P + HS - Hp), (P, P)))
    xp = jnp.transpose(xp, (1, 2, 0, 3)).reshape(CIN, HS, wpk)
    xp = jnp.pad(xp, ((0, 0), (0, 0), (0, WL - wpk)))

    # Validity mask over lanes (1.0 at in-image columns, 0.0 at halos/tail).
    col = jnp.arange(WL)
    w_in = col % Wp
    valid = (col < wpk) & (w_in >= P) & (w_in < P + W)
    mask = jnp.tile(valid.astype(jnp.float32)[None, :], (H, 1))   # (H, WL)

    w1_flat = w1.reshape(-1).astype(jnp.float32)
    w2_flat = w2.reshape(-1).astype(jnp.float32)

    # Accumulator count tied to the 64-vreg budget (review): each (H, WL) f32
    # partial costs ceil(H/8)*ceil(WL/128) vregs; cap live partials at ~40 vregs.
    acc_vregs = ((H + 7) // 8) * ((WL + 127) // 128)
    kx_chunk = max(1, min(K, 40 // max(1, acc_vregs)))

    kernel = _make_kernel(H, WL, HS, kx_chunk)

    out_packed = pl.pallas_call(
        kernel,
        out_shape=jax.ShapeDtypeStruct((H, WL), jnp.float32),
        grid_spec=pltpu.PrefetchScalarGridSpec(
            num_scalar_prefetch=0,
            grid=(1,),                       # whole problem in one serial step
            in_specs=[
                pl.BlockSpec((CIN, HS, WL), lambda n: (0, 0, 0)),
                pl.BlockSpec((H, WL), lambda n: (0, 0)),
                pl.BlockSpec(memory_space=pltpu.MemorySpace.SMEM),
                pl.BlockSpec(memory_space=pltpu.MemorySpace.SMEM),
                pl.BlockSpec(memory_space=pltpu.MemorySpace.SMEM),
                pl.BlockSpec(memory_space=pltpu.MemorySpace.SMEM),
            ],
            out_specs=pl.BlockSpec((H, WL), lambda n: (0, 0)),
        ),
        compiler_params=pltpu.CompilerParams(
            dimension_semantics=("arbitrary",),
            vmem_limit_bytes=16 * 1024 * 1024,   # explicit: portable to v5e's 16 MiB default
        ),
    )(xp, mask, w1_flat, b1.astype(jnp.float32), w2_flat, b2.astype(jnp.float32))

    # Unpack in O(1) ops: lane = i*Wp + w', valid w' in [P, P+W).
    out = out_packed[:, :wpk].reshape(H, N, Wp)[:, :, P:P + W]
    out = jnp.transpose(out, (1, 0, 2))[:, None, :, :]
    return out.astype(x.dtype)


def ref_forward(x, w1, b1, w2, b2):
    dn = ("NCHW", "OIHW", "NCHW")
    y = jax.lax.conv_general_dilated(x, w1, (1, 1), "SAME", dimension_numbers=dn)
    y = y + b1.reshape(1, -1, 1, 1)
    y = jnp.where(y >= 0, y, NEG_SLOPE * y)
    y = jax.lax.conv_general_dilated(y, w2, (1, 1), "SAME", dimension_numbers=dn)
    y = y + b2.reshape(1, -1, 1, 1)
    y = jnp.where(y >= 0, y, NEG_SLOPE * y)
    return y


if __name__ == "__main__":
    key = jax.random.PRNGKey(0)
    kx, k1, kb1, k2, kb2 = jax.random.split(key, 5)

    N, H, W = 2, 16, 16
    x = jax.random.normal(kx, (N, CIN, H, W), dtype=jnp.float32)

    # PyTorch-style uniform(-1/sqrt(fan_in), +1/sqrt(fan_in)) init.
    fan_in1 = CIN * K * K
    fan_in2 = 1 * K * K
    b1_bound = 1.0 / jnp.sqrt(fan_in1)
    b2_bound = 1.0 / jnp.sqrt(fan_in2)
    w1 = jax.random.uniform(k1, (1, CIN, K, K), jnp.float32, -b1_bound, b1_bound)
    b1 = jax.random.uniform(kb1, (1,), jnp.float32, -b1_bound, b1_bound)
    w2 = jax.random.uniform(k2, (1, 1, K, K), jnp.float32, -b2_bound, b2_bound)
    b2 = jax.random.uniform(kb2, (1,), jnp.float32, -b2_bound, b2_bound)

    out = dummy_model_forward(x, w1, b1, w2, b2)
    out = jax.block_until_ready(out)

    ref = jax.block_until_ready(ref_forward(x, w1, b1, w2, b2))
    assert out.shape == (N, 1, H, W)
    assert jnp.allclose(out, ref, atol=1e-4, rtol=1e-4), "mismatch vs lax.conv reference"

    print("KERNEL_OK")
</pallas_src>

<mosaic_0001>
module attributes {stable_mosaic.version = 11 : i64} {
  func.func @kernel(%arg0: i32, %arg1: memref<2x32x128xf32, #tpu.memory_space<vmem>>, %arg2: memref<16x128xf32, #tpu.memory_space<vmem>>, %arg3: memref<242xf32, #tpu.memory_space<smem>>, %arg4: memref<1xf32, #tpu.memory_space<smem>>, %arg5: memref<121xf32, #tpu.memory_space<smem>>, %arg6: memref<1xf32, #tpu.memory_space<smem>>, %arg7: memref<16x128xf32, #tpu.memory_space<vmem>>) attributes {dimension_semantics = [#tpu.dimension_semantics<arbitrary>], iteration_bounds = array<i64: 1>, scalar_prefetch = 0 : i64, scratch_operands = 0 : i64, tpu.core_type = #tpu.core_type<tc>, window_params = [{pipeline_mode = #tpu.pipeline_mode<synchronous>, transform_indices = @transform_0, window_bounds = array<i64: 2, 32, 128>}, {pipeline_mode = #tpu.pipeline_mode<synchronous>, transform_indices = @transform_1, window_bounds = array<i64: 16, 128>}, {transform_indices = @transform_2, window_bounds = array<i64: 242>}, {transform_indices = @transform_3, window_bounds = array<i64: 1>}, {transform_indices = @transform_4, window_bounds = array<i64: 121>}, {transform_indices = @transform_5, window_bounds = array<i64: 1>}, {pipeline_mode = #tpu.pipeline_mode<synchronous>, transform_indices = @transform_6, window_bounds = array<i64: 16, 128>}]} {
    %c0 = arith.constant 0 : index
    %c0_0 = arith.constant 0 : index
    %c0_1 = arith.constant 0 : index
    %0 = vector.load %arg1[%c0, %c0_0, %c0_1] : memref<2x32x128xf32, #tpu.memory_space<vmem>>, vector<1x16x128xf32>
    %1 = vector.shape_cast %0 : vector<1x16x128xf32> to vector<16x128xf32>
    %c0_2 = arith.constant 0 : index
    %2 = memref.load %arg3[%c0_2] : memref<242xf32, #tpu.memory_space<smem>>
    %3 = vector.broadcast %2 : f32 to vector<16x128xf32>
    %4 = arith.mulf %3, %1 : vector<16x128xf32>
    %c1 = arith.constant 1 : index
    %5 = memref.load %arg3[%c1] : memref<242xf32, #tpu.memory_space<smem>>
    %6 = vector.broadcast %5 : f32 to vector<16x128xf32>
    %7 = arith.mulf %6, %1 : vector<16x128xf32>
    %c2 = arith.constant 2 : index
    %8 = memref.load %arg3[%c2] : memref<242xf32, #tpu.memory_space<smem>>
    %9 = vector.broadcast %8 : f32 to vector<16x128xf32>
    %10 = arith.mulf %9, %1 : vector<16x128xf32>
    %c3 = arith.constant 3 : index
    %11 = memref.load %arg3[%c3] : memref<242xf32, #tpu.memory_space<smem>>
    %12 = vector.broadcast %11 : f32 to vector<16x128xf32>
    %13 = arith.mulf %12, %1 : vector<16x128xf32>
    %c4 = arith.constant 4 : index
    %14 = memref.load %arg3[%c4] : memref<242xf32, #tpu.memory_space<smem>>
    %15 = vector.broadcast %14 : f32 to vector<16x128xf32>
    %16 = arith.mulf %15, %1 : vector<16x128xf32>
    %c5 = arith.constant 5 : index
    %17 = memref.load %arg3[%c5] : memref<242xf32, #tpu.memory_space<smem>>
    %18 = vector.broadcast %17 : f32 to vector<16x128xf32>
    %19 = arith.mulf %18, %1 : vector<16x128xf32>
    %c6 = arith.constant 6 : index
    %20 = memref.load %arg3[%c6] : memref<242xf32, #tpu.memory_space<smem>>
    %21 = vector.broadcast %20 : f32 to vector<16x128xf32>
    %22 = arith.mulf %21, %1 : vector<16x128xf32>
    %c7 = arith.constant 7 : index
    %23 = memref.load %arg3[%c7] : memref<242xf32, #tpu.memory_space<smem>>
    %24 = vector.broadcast %23 : f32 to vector<16x128xf32>
    %25 = arith.mulf %24, %1 : vector<16x128xf32>
    %c8 = arith.constant 8 : index
    %26 = memref.load %arg3[%c8] : memref<242xf32, #tpu.memory_space<smem>>
    %27 = vector.broadcast %26 : f32 to vector<16x128xf32>
    %28 = arith.mulf %27, %1 : vector<16x128xf32>
    %c9 = arith.constant 9 : index
    %29 = memref.load %arg3[%c9] : memref<242xf32, #tpu.memory_space<smem>>
    %30 = vector.broadcast %29 : f32 to vector<16x128xf32>
    %31 = arith.mulf %30, %1 : vector<16x128xf32>
    %c10 = arith.constant 10 : index
    %32 = memref.load %arg3[%c10] : memref<242xf32, #tpu.memory_space<smem>>
    %33 = vector.broadcast %32 : f32 to vector<16x128xf32>
    %34 = arith.mulf %33, %1 : vector<16x128xf32>
    %c0_3 = arith.constant 0 : index
    %c1_4 = arith.constant 1 : index
    %c0_5 = arith.constant 0 : index
    %35 = vector.load %arg1[%c0_3, %c1_4, %c0_5] : memref<2x32x128xf32, #tpu.memory_space<vmem>>, vector<1x16x128xf32>
    %36 = vector.shape_cast %35 : vector<1x16x128xf32> to vector<16x128xf32>
    %c11 = arith.constant 11 : index
    %37 = memref.load %arg3[%c11] : memref<242xf32, #tpu.memory_space<smem>>
    %38 = vector.broadcast %37 : f32 to vector<16x128xf32>
    %39 = arith.mulf %38, %36 : vector<16x128xf32>
    %40 = arith.addf %4, %39 : vector<16x128xf32>
    %c12 = arith.constant 12 : index
    %41 = memref.load %arg3[%c12] : memref<242xf32, #tpu.memory_space<smem>>
    %42 = vector.broadcast %41 : f32 to vector<16x128xf32>
    %43 = arith.mulf %42, %36 : vector<16x128xf32>
    %44 = arith.addf %7, %43 : vector<16x128xf32>
    %c13 = arith.constant 13 : index
    %45 = memref.load %arg3[%c13] : memref<242xf32, #tpu.memory_space<smem>>
    %46 = vector.broadcast %45 : f32 to vector<16x128xf32>
    %47 = arith.mulf %46, %36 : vector<16x128xf32>
    %48 = arith.addf %10, %47 : vector<16x128xf32>
    %c14 = arith.constant 14 : index
    %49 = memref.load %arg3[%c14] : memref<242xf32, #tpu.memory_space<smem>>
    %50 = vector.broadcast %49 : f32 to vector<16x128xf32>
    %51 = arith.mulf %50, %36 : vector<16x128xf32>
    %52 = arith.addf %13, %51 : vector<16x128xf32>
    %c15 = arith.constant 15 : index
    %53 = memref.load %arg3[%c15] : memref<242xf32, #tpu.memory_space<smem>>
    %54 = vector.broadcast %53 : f32 to vector<16x128xf32>
    %55 = arith.mulf %54, %36 : vector<16x128xf32>
    %56 = arith.addf %16, %55 : vector<16x128xf32>
    %c16 = arith.constant 16 : index
    %57 = memref.load %arg3[%c16] : memref<242xf32, #tpu.memory_space<smem>>
    %58 = vector.broadcast %57 : f32 to vector<16x128xf32>
    %59 = arith.mulf %58, %36 : vector<16x128xf32>
    %60 = arith.addf %19, %59 : vector<16x128xf32>
    %c17 = arith.constant 17 : index
    %61 = memref.load %arg3[%c17] : memref<242xf32, #tpu.memory_space<smem>>
    %62 = vector.broadcast %61 : f32 to vector<16x128xf32>
    %63 = arith.mulf %62, %36 : vector<16x128xf32>
    %64 = arith.addf %22, %63 : vector<16x128xf32>
    %c18 = arith.constant 18 : index
    %65 = memref.load %arg3[%c18] : memref<242xf32, #tpu.memory_space<smem>>
    %66 = vector.broadcast %65 : f32 to vector<16x128xf32>
    %67 = arith.mulf %66, %36 : vector<16x128xf32>
    %68 = arith.addf %25, %67 : vector<16x128xf32>
    %c19 = arith.constant 19 : index
    %69 = memref.load %arg3[%c19] : memref<242xf32, #tpu.memory_space<smem>>
    %70 = vector.broadcast %69 : f32 to vector<16x128xf32>
    %71 = arith.mulf %70, %36 : vector<16x128xf32>
    %72 = arith.addf %28, %71 : vector<16x128xf32>
    %c20 = arith.constant 20 : index
    %73 = memref.load %arg3[%c20] : memref<242xf32, #tpu.memory_space<smem>>
    %74 = vector.broadcast %73 : f32 to vector<16x128xf32>
    %75 = arith.mulf %74, %36 : vector<16x128xf32>
    %76 = arith.addf %31, %75 : vector<16x128xf32>
    %c21 = arith.constant 21 : index
    %77 = memref.load %arg3[%c21] : memref<242xf32, #tpu.memory_space<smem>>
    %78 = vector.broadcast %77 : f32 to vector<16x128xf32>
    %79 = arith.mulf %78, %36 : vector<16x128xf32>
    %80 = arith.addf %34, %79 : vector<16x128xf32>
    %c0_6 = arith.constant 0 : index
    %c2_7 = arith.constant 2 : index
    %c0_8 = arith.constant 0 : index
    %81 = vector.load %arg1[%c0_6, %c2_7, %c0_8] : memref<2x32x128xf32, #tpu.memory_space<vmem>>, vector<1x16x128xf32>
    %82 = vector.shape_cast %81 : vector<1x16x128xf32> to vector<16x128xf32>
    %c22 = arith.constant 22 : index
    %83 = memref.load %arg3[%c22] : memref<242xf32, #tpu.memory_space<smem>>
    %84 = vector.broadcast %83 : f32 to vector<16x128xf32>
    %85 = arith.mulf %84, %82 : vector<16x128xf32>
    %86 = arith.addf %40, %85 : vector<16x128xf32>
    %c23 = arith.constant 23 : index
    %87 = memref.load %arg3[%c23] : memref<242xf32, #tpu.memory_space<smem>>
    %88 = vector.broadcast %87 : f32 to vector<16x128xf32>
    %89 = arith.mulf %88, %82 : vector<16x128xf32>
    %90 = arith.addf %44, %89 : vector<16x128xf32>
    %c24 = arith.constant 24 : index
    %91 = memref.load %arg3[%c24] : memref<242xf32, #tpu.memory_space<smem>>
    %92 = vector.broadcast %91 : f32 to vector<16x128xf32>
    %93 = arith.mulf %92, %82 : vector<16x128xf32>
    %94 = arith.addf %48, %93 : vector<16x128xf32>
    %c25 = arith.constant 25 : index
    %95 = memref.load %arg3[%c25] : memref<242xf32, #tpu.memory_space<smem>>
    %96 = vector.broadcast %95 : f32 to vector<16x128xf32>
    %97 = arith.mulf %96, %82 : vector<16x128xf32>
    %98 = arith.addf %52, %97 : vector<16x128xf32>
    %c26 = arith.constant 26 : index
    %99 = memref.load %arg3[%c26] : memref<242xf32, #tpu.memory_space<smem>>
    %100 = vector.broadcast %99 : f32 to vector<16x128xf32>
    %101 = arith.mulf %100, %82 : vector<16x128xf32>
    %102 = arith.addf %56, %101 : vector<16x128xf32>
    %c27 = arith.constant 27 : index
    %103 = memref.load %arg3[%c27] : memref<242xf32, #tpu.memory_space<smem>>
    %104 = vector.broadcast %103 : f32 to vector<16x128xf32>
    %105 = arith.mulf %104, %82 : vector<16x128xf32>
    %106 = arith.addf %60, %105 : vector<16x128xf32>
    %c28 = arith.constant 28 : index
    %107 = memref.load %arg3[%c28] : memref<242xf32, #tpu.memory_space<smem>>
    %108 = vector.broadcast %107 : f32 to vector<16x128xf32>
    %109 = arith.mulf %108, %82 : vector<16x128xf32>
    %110 = arith.addf %64, %109 : vector<16x128xf32>
    %c29 = arith.constant 29 : index
    %111 = memref.load %arg3[%c29] : memref<242xf32, #tpu.memory_space<smem>>
    %112 = vector.broadcast %111 : f32 to vector<16x128xf32>
    %113 = arith.mulf %112, %82 : vector<16x128xf32>
    %114 = arith.addf %68, %113 : vector<16x128xf32>
    %c30 = arith.constant 30 : index
    %115 = memref.load %arg3[%c30] : memref<242xf32, #tpu.memory_space<smem>>
    %116 = vector.broadcast %115 : f32 to vector<16x128xf32>
    %117 = arith.mulf %116, %82 : vector<16x128xf32>
    %118 = arith.addf %72, %117 : vector<16x128xf32>
    %c31 = arith.constant 31 : index
    %119 = memref.load %arg3[%c31] : memref<242xf32, #tpu.memory_space<smem>>
    %120 = vector.broadcast %119 : f32 to vector<16x128xf32>
    %121 = arith.mulf %120, %82 : vector<16x128xf32>
    %122 = arith.addf %76, %121 : vector<16x128xf32>
    %c32 = arith.constant 32 : index
    %123 = memref.load %arg3[%c32] : memref<242xf32, #tpu.memory_space<smem>>
    %124 = vector.broadcast %123 : f32 to vector<16x128xf32>
    %125 = arith.mulf %124, %82 : vector<16x128xf32>
    %126 = arith.addf %80, %125 : vector<16x128xf32>
    %c0_9 = arith.constant 0 : index
    %c3_10 = arith.constant 3 : index
    %c0_11 = arith.constant 0 : index
    %127 = vector.load %arg1[%c0_9, %c3_10, %c0_11] : memref<2x32x128xf32, #tpu.memory_space<vmem>>, vector<1x16x128xf32>
    %128 = vector.shape_cast %127 : vector<1x16x128xf32> to vector<16x128xf32>
    %c33 = arith.constant 33 : index
    %129 = memref.load %arg3[%c33] : memref<242xf32, #tpu.memory_space<smem>>
    %130 = vector.broadcast %129 : f32 to vector<16x128xf32>
    %131 = arith.mulf %130, %128 : vector<16x128xf32>
    %132 = arith.addf %86, %131 : vector<16x128xf32>
    %c34 = arith.constant 34 : index
    %133 = memref.load %arg3[%c34] : memref<242xf32, #tpu.memory_space<smem>>
    %134 = vector.broadcast %133 : f32 to vector<16x128xf32>
    %135 = arith.mulf %134, %128 : vector<16x128xf32>
    %136 = arith.addf %90, %135 : vector<16x128xf32>
    %c35 = arith.constant 35 : index
    %137 = memref.load %arg3[%c35] : memref<242xf32, #tpu.memory_space<smem>>
    %138 = vector.broadcast %137 : f32 to vector<16x128xf32>
    %139 = arith.mulf %138, %128 : vector<16x128xf32>
    %140 = arith.addf %94, %139 : vector<16x128xf32>
    %c36 = arith.constant 36 : index
    %141 = memref.load %arg3[%c36] : memref<242xf32, #tpu.memory_space<smem>>
    %142 = vector.broadcast %141 : f32 to vector<16x128xf32>
    %143 = arith.mulf %142, %128 : vector<16x128xf32>
    %144 = arith.addf %98, %143 : vector<16x128xf32>
    %c37 = arith.constant 37 : index
    %145 = memref.load %arg3[%c37] : memref<242xf32, #tpu.memory_space<smem>>
    %146 = vector.broadcast %145 : f32 to vector<16x128xf32>
    %147 = arith.mulf %146, %128 : vector<16x128xf32>
    %148 = arith.addf %102, %147 : vector<16x128xf32>
    %c38 = arith.constant 38 : index
    %149 = memref.load %arg3[%c38] : memref<242xf32, #tpu.memory_space<smem>>
    %150 = vector.broadcast %149 : f32 to vector<16x128xf32>
    %151 = arith.mulf %150, %128 : vector<16x128xf32>
    %152 = arith.addf %106, %151 : vector<16x128xf32>
    %c39 = arith.constant 39 : index
    %153 = memref.load %arg3[%c39] : memref<242xf32, #tpu.memory_space<smem>>
    %154 = vector.broadcast %153 : f32 to vector<16x128xf32>
    %155 = arith.mulf %154, %128 : vector<16x128xf32>
    %156 = arith.addf %110, %155 : vector<16x128xf32>
    %c40 = arith.constant 40 : index
    %157 = memref.load %arg3[%c40] : memref<242xf32, #tpu.memory_space<smem>>
    %158 = vector.broadcast %157 : f32 to vector<16x128xf32>
    %159 = arith.mulf %158, %128 : vector<16x128xf32>
    %160 = arith.addf %114, %159 : vector<16x128xf32>
    %c41 = arith.constant 41 : index
    %161 = memref.load %arg3[%c41] : memref<242xf32, #tpu.memory_space<smem>>
    %162 = vector.broadcast %161 : f32 to vector<16x128xf32>
    %163 = arith.mulf %162, %128 : vector<16x128xf32>
    %164 = arith.addf %118, %163 : vector<16x128xf32>
    %c42 = arith.constant 42 : index
    %165 = memref.load %arg3[%c42] : memref<242xf32, #tpu.memory_space<smem>>
    %166 = vector.broadcast %165 : f32 to vector<16x128xf32>
    %167 = arith.mulf %166, %128 : vector<16x128xf32>
    %168 = arith.addf %122, %167 : vector<16x128xf32>
    %c43 = arith.constant 43 : index
    %169 = memref.load %arg3[%c43] : memref<242xf32, #tpu.memory_space<smem>>
    %170 = vector.broadcast %169 : f32 to vector<16x128xf32>
    %171 = arith.mulf %170, %128 : vector<16x128xf32>
    %172 = arith.addf %126, %171 : vector<16x128xf32>
    %c0_12 = arith.constant 0 : index
    %c4_13 = arith.constant 4 : index
    %c0_14 = arith.constant 0 : index
    %173 = vector.load %arg1[%c0_12, %c4_13, %c0_14] : memref<2x32x128xf32, #tpu.memory_space<vmem>>, vector<1x16x128xf32>
    %174 = vector.shape_cast %173 : vector<1x16x128xf32> to vector<16x128xf32>
    %c44 = arith.constant 44 : index
    %175 = memref.load %arg3[%c44] : memref<242xf32, #tpu.memory_space<smem>>
    %176 = vector.broadcast %175 : f32 to vector<16x128xf32>
    %177 = arith.mulf %176, %174 : vector<16x128xf32>
    %178 = arith.addf %132, %177 : vector<16x128xf32>
    %c45 = arith.constant 45 : index
    %179 = memref.load %arg3[%c45] : memref<242xf32, #tpu.memory_space<smem>>
    %180 = vector.broadcast %179 : f32 to vector<16x128xf32>
    %181 = arith.mulf %180, %174 : vector<16x128xf32>
    %182 = arith.addf %136, %181 : vector<16x128xf32>
    %c46 = arith.constant 46 : index
    %183 = memref.load %arg3[%c46] : memref<242xf32, #tpu.memory_space<smem>>
    %184 = vector.broadcast %183 : f32 to vector<16x128xf32>
    %185 = arith.mulf %184, %174 : vector<16x128xf32>
    %186 = arith.addf %140, %185 : vector<16x128xf32>
    %c47 = arith.constant 47 : index
    %187 = memref.load %arg3[%c47] : memref<242xf32, #tpu.memory_space<smem>>
    %188 = vector.broadcast %187 : f32 to vector<16x128xf32>
    %189 = arith.mulf %188, %174 : vector<16x128xf32>
    %190 = arith.addf %144, %189 : vector<16x128xf32>
    %c48 = arith.constant 48 : index
    %191 = memref.load %arg3[%c48] : memref<242xf32, #tpu.memory_space<smem>>
    %192 = vector.broadcast %191 : f32 to vector<16x128xf32>
    %193 = arith.mulf %192, %174 : vector<16x128xf32>
    %194 = arith.addf %148, %193 : vector<16x128xf32>
    %c49 = arith.constant 49 : index
    %195 = memref.load %arg3[%c49] : memref<242xf32, #tpu.memory_space<smem>>
    %196 = vector.broadcast %195 : f32 to vector<16x128xf32>
    %197 = arith.mulf %196, %174 : vector<16x128xf32>
    %198 = arith.addf %152, %197 : vector<16x128xf32>
    %c50 = arith.constant 50 : index
    %199 = memref.load %arg3[%c50] : memref<242xf32, #tpu.memory_space<smem>>
    %200 = vector.broadcast %199 : f32 to vector<16x128xf32>
    %201 = arith.mulf %200, %174 : vector<16x128xf32>
    %202 = arith.addf %156, %201 : vector<16x128xf32>
    %c51 = arith.constant 51 : index
    %203 = memref.load %arg3[%c51] : memref<242xf32, #tpu.memory_space<smem>>
    %204 = vector.broadcast %203 : f32 to vector<16x128xf32>
    %205 = arith.mulf %204, %174 : vector<16x128xf32>
    %206 = arith.addf %160, %205 : vector<16x128xf32>
    %c52 = arith.constant 52 : index
    %207 = memref.load %arg3[%c52] : memref<242xf32, #tpu.memory_space<smem>>
    %208 = vector.broadcast %207 : f32 to vector<16x128xf32>
    %209 = arith.mulf %208, %174 : vector<16x128xf32>
    %210 = arith.addf %164, %209 : vector<16x128xf32>
    %c53 = arith.constant 53 : index
    %211 = memref.load %arg3[%c53] : memref<242xf32, #tpu.memory_space<smem>>
    %212 = vector.broadcast %211 : f32 to vector<16x128xf32>
    %213 = arith.mulf %212, %174 : vector<16x128xf32>
    %214 = arith.addf %168, %213 : vector<16x128xf32>
    %c54 = arith.constant 54 : index
    %215 = memref.load %arg3[%c54] : memref<242xf32, #tpu.memory_space<smem>>
    %216 = vector.broadcast %215 : f32 to vector<16x128xf32>
    %217 = arith.mulf %216, %174 : vector<16x128xf32>
    %218 = arith.addf %172, %217 : vector<16x128xf32>
    %c0_15 = arith.constant 0 : index
    %c5_16 = arith.constant 5 : index
    %c0_17 = arith.constant 0 : index
    %219 = vector.load %arg1[%c0_15, %c5_16, %c0_17] : memref<2x32x128xf32, #tpu.memory_space<vmem>>, vector<1x16x128xf32>
    %220 = vector.shape_cast %219 : vector<1x16x128xf32> to vector<16x128xf32>
    %c55 = arith.constant 55 : index
    %221 = memref.load %arg3[%c55] : memref<242xf32, #tpu.memory_space<smem>>
    %222 = vector.broadcast %221 : f32 to vector<16x128xf32>
    %223 = arith.mulf %222, %220 : vector<16x128xf32>
    %224 = arith.addf %178, %223 : vector<16x128xf32>
    %c56 = arith.constant 56 : index
    %225 = memref.load %arg3[%c56] : memref<242xf32, #tpu.memory_space<smem>>
    %226 = vector.broadcast %225 : f32 to vector<16x128xf32>
    %227 = arith.mulf %226, %220 : vector<16x128xf32>
    %228 = arith.addf %182, %227 : vector<16x128xf32>
    %c57 = arith.constant 57 : index
    %229 = memref.load %arg3[%c57] : memref<242xf32, #tpu.memory_space<smem>>
    %230 = vector.broadcast %229 : f32 to vector<16x128xf32>
    %231 = arith.mulf %230, %220 : vector<16x128xf32>
    %232 = arith.addf %186, %231 : vector<16x128xf32>
    %c58 = arith.constant 58 : index
    %233 = memref.load %arg3[%c58] : memref<242xf32, #tpu.memory_space<smem>>
    %234 = vector.broadcast %233 : f32 to vector<16x128xf32>
    %235 = arith.mulf %234, %220 : vector<16x128xf32>
    %236 = arith.addf %190, %235 : vector<16x128xf32>
    %c59 = arith.constant 59 : index
    %237 = memref.load %arg3[%c59] : memref<242xf32, #tpu.memory_space<smem>>
    %238 = vector.broadcast %237 : f32 to vector<16x128xf32>
    %239 = arith.mulf %238, %220 : vector<16x128xf32>
    %240 = arith.addf %194, %239 : vector<16x128xf32>
    %c60 = arith.constant 60 : index
    %241 = memref.load %arg3[%c60] : memref<242xf32, #tpu.memory_space<smem>>
    %242 = vector.broadcast %241 : f32 to vector<16x128xf32>
    %243 = arith.mulf %242, %220 : vector<16x128xf32>
    %244 = arith.addf %198, %243 : vector<16x128xf32>
    %c61 = arith.constant 61 : index
    %245 = memref.load %arg3[%c61] : memref<242xf32, #tpu.memory_space<smem>>
    %246 = vector.broadcast %245 : f32 to vector<16x128xf32>
    %247 = arith.mulf %246, %220 : vector<16x128xf32>
    %248 = arith.addf %202, %247 : vector<16x128xf32>
    %c62 = arith.constant 62 : index
    %249 = memref.load %arg3[%c62] : memref<242xf32, #tpu.memory_space<smem>>
    %250 = vector.broadcast %249 : f32 to vector<16x128xf32>
    %251 = arith.mulf %250, %220 : vector<16x128xf32>
    %252 = arith.addf %206, %251 : vector<16x128xf32>
    %c63 = arith.constant 63 : index
    %253 = memref.load %arg3[%c63] : memref<242xf32, #tpu.memory_space<smem>>
    %254 = vector.broadcast %253 : f32 to vector<16x128xf32>
    %255 = arith.mulf %254, %220 : vector<16x128xf32>
    %256 = arith.addf %210, %255 : vector<16x128xf32>
    %c64 = arith.constant 64 : index
    %257 = memref.load %arg3[%c64] : memref<242xf32, #tpu.memory_space<smem>>
    %258 = vector.broadcast %257 : f32 to vector<16x128xf32>
    %259 = arith.mulf %258, %220 : vector<16x128xf32>
    %260 = arith.addf %214, %259 : vector<16x128xf32>
    %c65 = arith.constant 65 : index
    %261 = memref.load %arg3[%c65] : memref<242xf32, #tpu.memory_space<smem>>
    %262 = vector.broadcast %261 : f32 to vector<16x128xf32>
    %263 = arith.mulf %262, %220 : vector<16x128xf32>
    %264 = arith.addf %218, %263 : vector<16x128xf32>
    %c0_18 = arith.constant 0 : index
    %c6_19 = arith.constant 6 : index
    %c0_20 = arith.constant 0 : index
    %265 = vector.load %arg1[%c0_18, %c6_19, %c0_20] : memref<2x32x128xf32, #tpu.memory_space<vmem>>, vector<1x16x128xf32>
    %266 = vector.shape_cast %265 : vector<1x16x128xf32> to vector<16x128xf32>
    %c66 = arith.constant 66 : index
    %267 = memref.load %arg3[%c66] : memref<242xf32, #tpu.memory_space<smem>>
    %268 = vector.broadcast %267 : f32 to vector<16x128xf32>
    %269 = arith.mulf %268, %266 : vector<16x128xf32>
    %270 = arith.addf %224, %269 : vector<16x128xf32>
    %c67 = arith.constant 67 : index
    %271 = memref.load %arg3[%c67] : memref<242xf32, #tpu.memory_space<smem>>
    %272 = vector.broadcast %271 : f32 to vector<16x128xf32>
    %273 = arith.mulf %272, %266 : vector<16x128xf32>
    %274 = arith.addf %228, %273 : vector<16x128xf32>
    %c68 = arith.constant 68 : index
    %275 = memref.load %arg3[%c68] : memref<242xf32, #tpu.memory_space<smem>>
    %276 = vector.broadcast %275 : f32 to vector<16x128xf32>
    %277 = arith.mulf %276, %266 : vector<16x128xf32>
    %278 = arith.addf %232, %277 : vector<16x128xf32>
    %c69 = arith.constant 69 : index
    %279 = memref.load %arg3[%c69] : memref<242xf32, #tpu.memory_space<smem>>
    %280 = vector.broadcast %279 : f32 to vector<16x128xf32>
    %281 = arith.mulf %280, %266 : vector<16x128xf32>
    %282 = arith.addf %236, %281 : vector<16x128xf32>
    %c70 = arith.constant 70 : index
    %283 = memref.load %arg3[%c70] : memref<242xf32, #tpu.memory_space<smem>>
    %284 = vector.broadcast %283 : f32 to vector<16x128xf32>
    %285 = arith.mulf %284, %266 : vector<16x128xf32>
    %286 = arith.addf %240, %285 : vector<16x128xf32>
    %c71 = arith.constant 71 : index
    %287 = memref.load %arg3[%c71] : memref<242xf32, #tpu.memory_space<smem>>
    %288 = vector.broadcast %287 : f32 to vector<16x128xf32>
    %289 = arith.mulf %288, %266 : vector<16x128xf32>
    %290 = arith.addf %244, %289 : vector<16x128xf32>
    %c72 = arith.constant 72 : index
    %291 = memref.load %arg3[%c72] : memref<242xf32, #tpu.memory_space<smem>>
    %292 = vector.broadcast %291 : f32 to vector<16x128xf32>
    %293 = arith.mulf %292, %266 : vector<16x128xf32>
    %294 = arith.addf %248, %293 : vector<16x128xf32>
    %c73 = arith.constant 73 : index
    %295 = memref.load %arg3[%c73] : memref<242xf32, #tpu.memory_space<smem>>
    %296 = vector.broadcast %295 : f32 to vector<16x128xf32>
    %297 = arith.mulf %296, %266 : vector<16x128xf32>
    %298 = arith.addf %252, %297 : vector<16x128xf32>
    %c74 = arith.constant 74 : index
    %299 = memref.load %arg3[%c74] : memref<242xf32, #tpu.memory_space<smem>>
    %300 = vector.broadcast %299 : f32 to vector<16x128xf32>
    %301 = arith.mulf %300, %266 : vector<16x128xf32>
    %302 = arith.addf %256, %301 : vector<16x128xf32>
    %c75 = arith.constant 75 : index
    %303 = memref.load %arg3[%c75] : memref<242xf32, #tpu.memory_space<smem>>
    %304 = vector.broadcast %303 : f32 to vector<16x128xf32>
    %305 = arith.mulf %304, %266 : vector<16x128xf32>
    %306 = arith.addf %260, %305 : vector<16x128xf32>
    %c76 = arith.constant 76 : index
    %307 = memref.load %arg3[%c76] : memref<242xf32, #tpu.memory_space<smem>>
    %308 = vector.broadcast %307 : f32 to vector<16x128xf32>
    %309 = arith.mulf %308, %266 : vector<16x128xf32>
    %310 = arith.addf %264, %309 : vector<16x128xf32>
    %c0_21 = arith.constant 0 : index
    %c7_22 = arith.constant 7 : index
    %c0_23 = arith.constant 0 : index
    %311 = vector.load %arg1[%c0_21, %c7_22, %c0_23] : memref<2x32x128xf32, #tpu.memory_space<vmem>>, vector<1x16x128xf32>
    %312 = vector.shape_cast %311 : vector<1x16x128xf32> to vector<16x128xf32>
    %c77 = arith.constant 77 : index
    %313 = memref.load %arg3[%c77] : memref<242xf32, #tpu.memory_space<smem>>
    %314 = vector.broadcast %313 : f32 to vector<16x128xf32>
    %315 = arith.mulf %314, %312 : vector<16x128xf32>
    %316 = arith.addf %270, %315 : vector<16x128xf32>
    %c78 = arith.constant 78 : index
    %317 = memref.load %arg3[%c78] : memref<242xf32, #tpu.memory_space<smem>>
    %318 = vector.broadcast %317 : f32 to vector<16x128xf32>
    %319 = arith.mulf %318, %312 : vector<16x128xf32>
    %320 = arith.addf %274, %319 : vector<16x128xf32>
    %c79 = arith.constant 79 : index
    %321 = memref.load %arg3[%c79] : memref<242xf32, #tpu.memory_space<smem>>
    %322 = vector.broadcast %321 : f32 to vector<16x128xf32>
    %323 = arith.mulf %322, %312 : vector<16x128xf32>
    %324 = arith.addf %278, %323 : vector<16x128xf32>
    %c80 = arith.constant 80 : index
    %325 = memref.load %arg3[%c80] : memref<242xf32, #tpu.memory_space<smem>>
    %326 = vector.broadcast %325 : f32 to vector<16x128xf32>
    %327 = arith.mulf %326, %312 : vector<16x128xf32>
    %328 = arith.addf %282, %327 : vector<16x128xf32>
    %c81 = arith.constant 81 : index
    %329 = memref.load %arg3[%c81] : memref<242xf32, #tpu.memory_space<smem>>
    %330 = vector.broadcast %329 : f32 to vector<16x128xf32>
    %331 = arith.mulf %330, %312 : vector<16x128xf32>
    %332 = arith.addf %286, %331 : vector<16x128xf32>
    %c82 = arith.constant 82 : index
    %333 = memref.load %arg3[%c82] : memref<242xf32, #tpu.memory_space<smem>>
    %334 = vector.broadcast %333 : f32 to vector<16x128xf32>
    %335 = arith.mulf %334, %312 : vector<16x128xf32>
    %336 = arith.addf %290, %335 : vector<16x128xf32>
    %c83 = arith.constant 83 : index
    %337 = memref.load %arg3[%c83] : memref<242xf32, #tpu.memory_space<smem>>
    %338 = vector.broadcast %337 : f32 to vector<16x128xf32>
    %339 = arith.mulf %338, %312 : vector<16x128xf32>
    %340 = arith.addf %294, %339 : vector<16x128xf32>
    %c84 = arith.constant 84 : index
    %341 = memref.load %arg3[%c84] : memref<242xf32, #tpu.memory_space<smem>>
    %342 = vector.broadcast %341 : f32 to vector<16x128xf32>
    %343 = arith.mulf %342, %312 : vector<16x128xf32>
    %344 = arith.addf %298, %343 : vector<16x128xf32>
    %c85 = arith.constant 85 : index
    %345 = memref.load %arg3[%c85] : memref<242xf32, #tpu.memory_space<smem>>
    %346 = vector.broadcast %345 : f32 to vector<16x128xf32>
    %347 = arith.mulf %346, %312 : vector<16x128xf32>
    %348 = arith.addf %302, %347 : vector<16x128xf32>
    %c86 = arith.constant 86 : index
    %349 = memref.load %arg3[%c86] : memref<242xf32, #tpu.memory_space<smem>>
    %350 = vector.broadcast %349 : f32 to vector<16x128xf32>
    %351 = arith.mulf %350, %312 : vector<16x128xf32>
    %352 = arith.addf %306, %351 : vector<16x128xf32>
    %c87 = arith.constant 87 : index
    %353 = memref.load %arg3[%c87] : memref<242xf32, #tpu.memory_space<smem>>
    %354 = vector.broadcast %353 : f32 to vector<16x128xf32>
    %355 = arith.mulf %354, %312 : vector<16x128xf32>
    %356 = arith.addf %310, %355 : vector<16x128xf32>
    %c0_24 = arith.constant 0 : index
    %c8_25 = arith.constant 8 : index
    %c0_26 = arith.constant 0 : index
    %357 = vector.load %arg1[%c0_24, %c8_25, %c0_26] : memref<2x32x128xf32, #tpu.memory_space<vmem>>, vector<1x16x128xf32>
    %358 = vector.shape_cast %357 : vector<1x16x128xf32> to vector<16x128xf32>
    %c88 = arith.constant 88 : index
    %359 = memref.load %arg3[%c88] : memref<242xf32, #tpu.memory_space<smem>>
    %360 = vector.broadcast %359 : f32 to vector<16x128xf32>
    %361 = arith.mulf %360, %358 : vector<16x128xf32>
    %362 = arith.addf %316, %361 : vector<16x128xf32>
    %c89 = arith.constant 89 : index
    %363 = memref.load %arg3[%c89] : memref<242xf32, #tpu.memory_space<smem>>
    %364 = vector.broadcast %363 : f32 to vector<16x128xf32>
    %365 = arith.mulf %364, %358 : vector<16x128xf32>
    %366 = arith.addf %320, %365 : vector<16x128xf32>
    %c90 = arith.constant 90 : index
    %367 = memref.load %arg3[%c90] : memref<242xf32, #tpu.memory_space<smem>>
    %368 = vector.broadcast %367 : f32 to vector<16x128xf32>
    %369 = arith.mulf %368, %358 : vector<16x128xf32>
    %370 = arith.addf %324, %369 : vector<16x128xf32>
    %c91 = arith.constant 91 : index
    %371 = memref.load %arg3[%c91] : memref<242xf32, #tpu.memory_space<smem>>
    %372 = vector.broadcast %371 : f32 to vector<16x128xf32>
    %373 = arith.mulf %372, %358 : vector<16x128xf32>
    %374 = arith.addf %328, %373 : vector<16x128xf32>
    %c92 = arith.constant 92 : index
    %375 = memref.load %arg3[%c92] : memref<242xf32, #tpu.memory_space<smem>>
    %376 = vector.broadcast %375 : f32 to vector<16x128xf32>
    %377 = arith.mulf %376, %358 : vector<16x128xf32>
    %378 = arith.addf %332, %377 : vector<16x128xf32>
    %c93 = arith.constant 93 : index
    %379 = memref.load %arg3[%c93] : memref<242xf32, #tpu.memory_space<smem>>
    %380 = vector.broadcast %379 : f32 to vector<16x128xf32>
    %381 = arith.mulf %380, %358 : vector<16x128xf32>
    %382 = arith.addf %336, %381 : vector<16x128xf32>
    %c94 = arith.constant 94 : index
    %383 = memref.load %arg3[%c94] : memref<242xf32, #tpu.memory_space<smem>>
    %384 = vector.broadcast %383 : f32 to vector<16x128xf32>
    %385 = arith.mulf %384, %358 : vector<16x128xf32>
    %386 = arith.addf %340, %385 : vector<16x128xf32>
    %c95 = arith.constant 95 : index
    %387 = memref.load %arg3[%c95] : memref<242xf32, #tpu.memory_space<smem>>
    %388 = vector.broadcast %387 : f32 to vector<16x128xf32>
    %389 = arith.mulf %388, %358 : vector<16x128xf32>
    %390 = arith.addf %344, %389 : vector<16x128xf32>
    %c96 = arith.constant 96 : index
    %391 = memref.load %arg3[%c96] : memref<242xf32, #tpu.memory_space<smem>>
    %392 = vector.broadcast %391 : f32 to vector<16x128xf32>
    %393 = arith.mulf %392, %358 : vector<16x128xf32>
    %394 = arith.addf %348, %393 : vector<16x128xf32>
    %c97 = arith.constant 97 : index
    %395 = memref.load %arg3[%c97] : memref<242xf32, #tpu.memory_space<smem>>
    %396 = vector.broadcast %395 : f32 to vector<16x128xf32>
    %397 = arith.mulf %396, %358 : vector<16x128xf32>
    %398 = arith.addf %352, %397 : vector<16x128xf32>
    %c98 = arith.constant 98 : index
    %399 = memref.load %arg3[%c98] : memref<242xf32, #tpu.memory_space<smem>>
    %400 = vector.broadcast %399 : f32 to vector<16x128xf32>
    %401 = arith.mulf %400, %358 : vector<16x128xf32>
    %402 = arith.addf %356, %401 : vector<16x128xf32>
    %c0_27 = arith.constant 0 : index
    %c9_28 = arith.constant 9 : index
    %c0_29 = arith.constant 0 : index
    %403 = vector.load %arg1[%c0_27, %c9_28, %c0_29] : memref<2x32x128xf32, #tpu.memory_space<vmem>>, vector<1x16x128xf32>
    %404 = vector.shape_cast %403 : vector<1x16x128xf32> to vector<16x128xf32>
    %c99 = arith.constant 99 : index
    %405 = memref.load %arg3[%c99] : memref<242xf32, #tpu.memory_space<smem>>
    %406 = vector.broadcast %405 : f32 to vector<16x128xf32>
    %407 = arith.mulf %406, %404 : vector<16x128xf32>
    %408 = arith.addf %362, %407 : vector<16x128xf32>
    %c100 = arith.constant 100 : index
    %409 = memref.load %arg3[%c100] : memref<242xf32, #tpu.memory_space<smem>>
    %410 = vector.broadcast %409 : f32 to vector<16x128xf32>
    %411 = arith.mulf %410, %404 : vector<16x128xf32>
    %412 = arith.addf %366, %411 : vector<16x128xf32>
    %c101 = arith.constant 101 : index
    %413 = memref.load %arg3[%c101] : memref<242xf32, #tpu.memory_space<smem>>
    %414 = vector.broadcast %413 : f32 to vector<16x128xf32>
    %415 = arith.mulf %414, %404 : vector<16x128xf32>
    %416 = arith.addf %370, %415 : vector<16x128xf32>
    %c102 = arith.constant 102 : index
    %417 = memref.load %arg3[%c102] : memref<242xf32, #tpu.memory_space<smem>>
    %418 = vector.broadcast %417 : f32 to vector<16x128xf32>
    %419 = arith.mulf %418, %404 : vector<16x128xf32>
    %420 = arith.addf %374, %419 : vector<16x128xf32>
    %c103 = arith.constant 103 : index
    %421 = memref.load %arg3[%c103] : memref<242xf32, #tpu.memory_space<smem>>
    %422 = vector.broadcast %421 : f32 to vector<16x128xf32>
    %423 = arith.mulf %422, %404 : vector<16x128xf32>
    %424 = arith.addf %378, %423 : vector<16x128xf32>
    %c104 = arith.constant 104 : index
    %425 = memref.load %arg3[%c104] : memref<242xf32, #tpu.memory_space<smem>>
    %426 = vector.broadcast %425 : f32 to vector<16x128xf32>
    %427 = arith.mulf %426, %404 : vector<16x128xf32>
    %428 = arith.addf %382, %427 : vector<16x128xf32>
    %c105 = arith.constant 105 : index
    %429 = memref.load %arg3[%c105] : memref<242xf32, #tpu.memory_space<smem>>
    %430 = vector.broadcast %429 : f32 to vector<16x128xf32>
    %431 = arith.mulf %430, %404 : vector<16x128xf32>
    %432 = arith.addf %386, %431 : vector<16x128xf32>
    %c106 = arith.constant 106 : index
    %433 = memref.load %arg3[%c106] : memref<242xf32, #tpu.memory_space<smem>>
    %434 = vector.broadcast %433 : f32 to vector<16x128xf32>
    %435 = arith.mulf %434, %404 : vector<16x128xf32>
    %436 = arith.addf %390, %435 : vector<16x128xf32>
    %c107 = arith.constant 107 : index
    %437 = memref.load %arg3[%c107] : memref<242xf32, #tpu.memory_space<smem>>
    %438 = vector.broadcast %437 : f32 to vector<16x128xf32>
    %439 = arith.mulf %438, %404 : vector<16x128xf32>
    %440 = arith.addf %394, %439 : vector<16x128xf32>
    %c108 = arith.constant 108 : index
    %441 = memref.load %arg3[%c108] : memref<242xf32, #tpu.memory_space<smem>>
    %442 = vector.broadcast %441 : f32 to vector<16x128xf32>
    %443 = arith.mulf %442, %404 : vector<16x128xf32>
    %444 = arith.addf %398, %443 : vector<16x128xf32>
    %c109 = arith.constant 109 : index
    %445 = memref.load %arg3[%c109] : memref<242xf32, #tpu.memory_space<smem>>
    %446 = vector.broadcast %445 : f32 to vector<16x128xf32>
    %447 = arith.mulf %446, %404 : vector<16x128xf32>
    %448 = arith.addf %402, %447 : vector<16x128xf32>
    %c0_30 = arith.constant 0 : index
    %c10_31 = arith.constant 10 : index
    %c0_32 = arith.constant 0 : index
    %449 = vector.load %arg1[%c0_30, %c10_31, %c0_32] : memref<2x32x128xf32, #tpu.memory_space<vmem>>, vector<1x16x128xf32>
    %450 = vector.shape_cast %449 : vector<1x16x128xf32> to vector<16x128xf32>
    %c110 = arith.constant 110 : index
    %451 = memref.load %arg3[%c110] : memref<242xf32, #tpu.memory_space<smem>>
    %452 = vector.broadcast %451 : f32 to vector<16x128xf32>
    %453 = arith.mulf %452, %450 : vector<16x128xf32>
    %454 = arith.addf %408, %453 : vector<16x128xf32>
    %c111 = arith.constant 111 : index
    %455 = memref.load %arg3[%c111] : memref<242xf32, #tpu.memory_space<smem>>
    %456 = vector.broadcast %455 : f32 to vector<16x128xf32>
    %457 = arith.mulf %456, %450 : vector<16x128xf32>
    %458 = arith.addf %412, %457 : vector<16x128xf32>
    %c112 = arith.constant 112 : index
    %459 = memref.load %arg3[%c112] : memref<242xf32, #tpu.memory_space<smem>>
    %460 = vector.broadcast %459 : f32 to vector<16x128xf32>
    %461 = arith.mulf %460, %450 : vector<16x128xf32>
    %462 = arith.addf %416, %461 : vector<16x128xf32>
    %c113 = arith.constant 113 : index
    %463 = memref.load %arg3[%c113] : memref<242xf32, #tpu.memory_space<smem>>
    %464 = vector.broadcast %463 : f32 to vector<16x128xf32>
    %465 = arith.mulf %464, %450 : vector<16x128xf32>
    %466 = arith.addf %420, %465 : vector<16x128xf32>
    %c114 = arith.constant 114 : index
    %467 = memref.load %arg3[%c114] : memref<242xf32, #tpu.memory_space<smem>>
    %468 = vector.broadcast %467 : f32 to vector<16x128xf32>
    %469 = arith.mulf %468, %450 : vector<16x128xf32>
    %470 = arith.addf %424, %469 : vector<16x128xf32>
    %c115 = arith.constant 115 : index
    %471 = memref.load %arg3[%c115] : memref<242xf32, #tpu.memory_space<smem>>
    %472 = vector.broadcast %471 : f32 to vector<16x128xf32>
    %473 = arith.mulf %472, %450 : vector<16x128xf32>
    %474 = arith.addf %428, %473 : vector<16x128xf32>
    %c116 = arith.constant 116 : index
    %475 = memref.load %arg3[%c116] : memref<242xf32, #tpu.memory_space<smem>>
    %476 = vector.broadcast %475 : f32 to vector<16x128xf32>
    %477 = arith.mulf %476, %450 : vector<16x128xf32>
    %478 = arith.addf %432, %477 : vector<16x128xf32>
    %c117 = arith.constant 117 : index
    %479 = memref.load %arg3[%c117] : memref<242xf32, #tpu.memory_space<smem>>
    %480 = vector.broadcast %479 : f32 to vector<16x128xf32>
    %481 = arith.mulf %480, %450 : vector<16x128xf32>
    %482 = arith.addf %436, %481 : vector<16x128xf32>
    %c118 = arith.constant 118 : index
    %483 = memref.load %arg3[%c118] : memref<242xf32, #tpu.memory_space<smem>>
    %484 = vector.broadcast %483 : f32 to vector<16x128xf32>
    %485 = arith.mulf %484, %450 : vector<16x128xf32>
    %486 = arith.addf %440, %485 : vector<16x128xf32>
    %c119 = arith.constant 119 : index
    %487 = memref.load %arg3[%c119] : memref<242xf32, #tpu.memory_space<smem>>
    %488 = vector.broadcast %487 : f32 to vector<16x128xf32>
    %489 = arith.mulf %488, %450 : vector<16x128xf32>
    %490 = arith.addf %444, %489 : vector<16x128xf32>
    %c120 = arith.constant 120 : index
    %491 = memref.load %arg3[%c120] : memref<242xf32, #tpu.memory_space<smem>>
    %492 = vector.broadcast %491 : f32 to vector<16x128xf32>
    %493 = arith.mulf %492, %450 : vector<16x128xf32>
    %494 = arith.addf %448, %493 : vector<16x128xf32>
    %c1_33 = arith.constant 1 : index
    %c0_34 = arith.constant 0 : index
    %c0_35 = arith.constant 0 : index
    %495 = vector.load %arg1[%c1_33, %c0_34, %c0_35] : memref<2x32x128xf32, #tpu.memory_space<vmem>>, vector<1x16x128xf32>
    %496 = vector.shape_cast %495 : vector<1x16x128xf32> to vector<16x128xf32>
    %c121 = arith.constant 121 : index
    %497 = memref.load %arg3[%c121] : memref<242xf32, #tpu.memory_space<smem>>
    %498 = vector.broadcast %497 : f32 to vector<16x128xf32>
    %499 = arith.mulf %498, %496 : vector<16x128xf32>
    %500 = arith.addf %454, %499 : vector<16x128xf32>
    %c122 = arith.constant 122 : index
    %501 = memref.load %arg3[%c122] : memref<242xf32, #tpu.memory_space<smem>>
    %502 = vector.broadcast %501 : f32 to vector<16x128xf32>
    %503 = arith.mulf %502, %496 : vector<16x128xf32>
    %504 = arith.addf %458, %503 : vector<16x128xf32>
    %c123 = arith.constant 123 : index
    %505 = memref.load %arg3[%c123] : memref<242xf32, #tpu.memory_space<smem>>
    %506 = vector.broadcast %505 : f32 to vector<16x128xf32>
    %507 = arith.mulf %506, %496 : vector<16x128xf32>
    %508 = arith.addf %462, %507 : vector<16x128xf32>
    %c124 = arith.constant 124 : index
    %509 = memref.load %arg3[%c124] : memref<242xf32, #tpu.memory_space<smem>>
    %510 = vector.broadcast %509 : f32 to vector<16x128xf32>
    %511 = arith.mulf %510, %496 : vector<16x128xf32>
    %512 = arith.addf %466, %511 : vector<16x128xf32>
    %c125 = arith.constant 125 : index
    %513 = memref.load %arg3[%c125] : memref<242xf32, #tpu.memory_space<smem>>
    %514 = vector.broadcast %513 : f32 to vector<16x128xf32>
    %515 = arith.mulf %514, %496 : vector<16x128xf32>
    %516 = arith.addf %470, %515 : vector<16x128xf32>
    %c126 = arith.constant 126 : index
    %517 = memref.load %arg3[%c126] : memref<242xf32, #tpu.memory_space<smem>>
    %518 = vector.broadcast %517 : f32 to vector<16x128xf32>
    %519 = arith.mulf %518, %496 : vector<16x128xf32>
    %520 = arith.addf %474, %519 : vector<16x128xf32>
    %c127 = arith.constant 127 : index
    %521 = memref.load %arg3[%c127] : memref<242xf32, #tpu.memory_space<smem>>
    %522 = vector.broadcast %521 : f32 to vector<16x128xf32>
    %523 = arith.mulf %522, %496 : vector<16x128xf32>
    %524 = arith.addf %478, %523 : vector<16x128xf32>
    %c128 = arith.constant 128 : index
    %525 = memref.load %arg3[%c128] : memref<242xf32, #tpu.memory_space<smem>>
    %526 = vector.broadcast %525 : f32 to vector<16x128xf32>
    %527 = arith.mulf %526, %496 : vector<16x128xf32>
    %528 = arith.addf %482, %527 : vector<16x128xf32>
    %c129 = arith.constant 129 : index
    %529 = memref.load %arg3[%c129] : memref<242xf32, #tpu.memory_space<smem>>
    %530 = vector.broadcast %529 : f32 to vector<16x128xf32>
    %531 = arith.mulf %530, %496 : vector<16x128xf32>
    %532 = arith.addf %486, %531 : vector<16x128xf32>
    %c130 = arith.constant 130 : index
    %533 = memref.load %arg3[%c130] : memref<242xf32, #tpu.memory_space<smem>>
    %534 = vector.broadcast %533 : f32 to vector<16x128xf32>
    %535 = arith.mulf %534, %496 : vector<16x128xf32>
    %536 = arith.addf %490, %535 : vector<16x128xf32>
    %c131 = arith.constant 131 : index
    %537 = memref.load %arg3[%c131] : memref<242xf32, #tpu.memory_space<smem>>
    %538 = vector.broadcast %537 : f32 to vector<16x128xf32>
    %539 = arith.mulf %538, %496 : vector<16x128xf32>
    %540 = arith.addf %494, %539 : vector<16x128xf32>
    %c1_36 = arith.constant 1 : index
    %c1_37 = arith.constant 1 : index
    %c0_38 = arith.constant 0 : index
    %541 = vector.load %arg1[%c1_36, %c1_37, %c0_38] : memref<2x32x128xf32, #tpu.memory_space<vmem>>, vector<1x16x128xf32>
    %542 = vector.shape_cast %541 : vector<1x16x128xf32> to vector<16x128xf32>
    %c132 = arith.constant 132 : index
    %543 = memref.load %arg3[%c132] : memref<242xf32, #tpu.memory_space<smem>>
    %544 = vector.broadcast %543 : f32 to vector<16x128xf32>
    %545 = arith.mulf %544, %542 : vector<16x128xf32>
    %546 = arith.addf %500, %545 : vector<16x128xf32>
    %c133 = arith.constant 133 : index
    %547 = memref.load %arg3[%c133] : memref<242xf32, #tpu.memory_space<smem>>
    %548 = vector.broadcast %547 : f32 to vector<16x128xf32>
    %549 = arith.mulf %548, %542 : vector<16x128xf32>
    %550 = arith.addf %504, %549 : vector<16x128xf32>
    %c134 = arith.constant 134 : index
    %551 = memref.load %arg3[%c134] : memref<242xf32, #tpu.memory_space<smem>>
    %552 = vector.broadcast %551 : f32 to vector<16x128xf32>
    %553 = arith.mulf %552, %542 : vector<16x128xf32>
    %554 = arith.addf %508, %553 : vector<16x128xf32>
    %c135 = arith.constant 135 : index
    %555 = memref.load %arg3[%c135] : memref<242xf32, #tpu.memory_space<smem>>
    %556 = vector.broadcast %555 : f32 to vector<16x128xf32>
    %557 = arith.mulf %556, %542 : vector<16x128xf32>
    %558 = arith.addf %512, %557 : vector<16x128xf32>
    %c136 = arith.constant 136 : index
    %559 = memref.load %arg3[%c136] : memref<242xf32, #tpu.memory_space<smem>>
    %560 = vector.broadcast %559 : f32 to vector<16x128xf32>
    %561 = arith.mulf %560, %542 : vector<16x128xf32>
    %562 = arith.addf %516, %561 : vector<16x128xf32>
    %c137 = arith.constant 137 : index
    %563 = memref.load %arg3[%c137] : memref<242xf32, #tpu.memory_space<smem>>
    %564 = vector.broadcast %563 : f32 to vector<16x128xf32>
    %565 = arith.mulf %564, %542 : vector<16x128xf32>
    %566 = arith.addf %520, %565 : vector<16x128xf32>
    %c138 = arith.constant 138 : index
    %567 = memref.load %arg3[%c138] : memref<242xf32, #tpu.memory_space<smem>>
    %568 = vector.broadcast %567 : f32 to vector<16x128xf32>
    %569 = arith.mulf %568, %542 : vector<16x128xf32>
    %570 = arith.addf %524, %569 : vector<16x128xf32>
    %c139 = arith.constant 139 : index
    %571 = memref.load %arg3[%c139] : memref<242xf32, #tpu.memory_space<smem>>
    %572 = vector.broadcast %571 : f32 to vector<16x128xf32>
    %573 = arith.mulf %572, %542 : vector<16x128xf32>
    %574 = arith.addf %528, %573 : vector<16x128xf32>
    %c140 = arith.constant 140 : index
    %575 = memref.load %arg3[%c140] : memref<242xf32, #tpu.memory_space<smem>>
    %576 = vector.broadcast %575 : f32 to vector<16x128xf32>
    %577 = arith.mulf %576, %542 : vector<16x128xf32>
    %578 = arith.addf %532, %577 : vector<16x128xf32>
    %c141 = arith.constant 141 : index
    %579 = memref.load %arg3[%c141] : memref<242xf32, #tpu.memory_space<smem>>
    %580 = vector.broadcast %579 : f32 to vector<16x128xf32>
    %581 = arith.mulf %580, %542 : vector<16x128xf32>
    %582 = arith.addf %536, %581 : vector<16x128xf32>
    %c142 = arith.constant 142 : index
    %583 = memref.load %arg3[%c142] : memref<242xf32, #tpu.memory_space<smem>>
    %584 = vector.broadcast %583 : f32 to vector<16x128xf32>
    %585 = arith.mulf %584, %542 : vector<16x128xf32>
    %586 = arith.addf %540, %585 : vector<16x128xf32>
    %c1_39 = arith.constant 1 : index
    %c2_40 = arith.constant 2 : index
    %c0_41 = arith.constant 0 : index
    %587 = vector.load %arg1[%c1_39, %c2_40, %c0_41] : memref<2x32x128xf32, #tpu.memory_space<vmem>>, vector<1x16x128xf32>
    %588 = vector.shape_cast %587 : vector<1x16x128xf32> to vector<16x128xf32>
    %c143 = arith.constant 143 : index
    %589 = memref.load %arg3[%c143] : memref<242xf32, #tpu.memory_space<smem>>
    %590 = vector.broadcast %589 : f32 to vector<16x128xf32>
    %591 = arith.mulf %590, %588 : vector<16x128xf32>
    %592 = arith.addf %546, %591 : vector<16x128xf32>
    %c144 = arith.constant 144 : index
    %593 = memref.load %arg3[%c144] : memref<242xf32, #tpu.memory_space<smem>>
    %594 = vector.broadcast %593 : f32 to vector<16x128xf32>
    %595 = arith.mulf %594, %588 : vector<16x128xf32>
    %596 = arith.addf %550, %595 : vector<16x128xf32>
    %c145 = arith.constant 145 : index
    %597 = memref.load %arg3[%c145] : memref<242xf32, #tpu.memory_space<smem>>
    %598 = vector.broadcast %597 : f32 to vector<16x128xf32>
    %599 = arith.mulf %598, %588 : vector<16x128xf32>
    %600 = arith.addf %554, %599 : vector<16x128xf32>
    %c146 = arith.constant 146 : index
    %601 = memref.load %arg3[%c146] : memref<242xf32, #tpu.memory_space<smem>>
    %602 = vector.broadcast %601 : f32 to vector<16x128xf32>
    %603 = arith.mulf %602, %588 : vector<16x128xf32>
    %604 = arith.addf %558, %603 : vector<16x128xf32>
    %c147 = arith.constant 147 : index
    %605 = memref.load %arg3[%c147] : memref<242xf32, #tpu.memory_space<smem>>
    %606 = vector.broadcast %605 : f32 to vector<16x128xf32>
    %607 = arith.mulf %606, %588 : vector<16x128xf32>
    %608 = arith.addf %562, %607 : vector<16x128xf32>
    %c148 = arith.constant 148 : index
    %609 = memref.load %arg3[%c148] : memref<242xf32, #tpu.memory_space<smem>>
    %610 = vector.broadcast %609 : f32 to vector<16x128xf32>
    %611 = arith.mulf %610, %588 : vector<16x128xf32>
    %612 = arith.addf %566, %611 : vector<16x128xf32>
    %c149 = arith.constant 149 : index
    %613 = memref.load %arg3[%c149] : memref<242xf32, #tpu.memory_space<smem>>
    %614 = vector.broadcast %613 : f32 to vector<16x128xf32>
    %615 = arith.mulf %614, %588 : vector<16x128xf32>
    %616 = arith.addf %570, %615 : vector<16x128xf32>
    %c150 = arith.constant 150 : index
    %617 = memref.load %arg3[%c150] : memref<242xf32, #tpu.memory_space<smem>>
    %618 = vector.broadcast %617 : f32 to vector<16x128xf32>
    %619 = arith.mulf %618, %588 : vector<16x128xf32>
    %620 = arith.addf %574, %619 : vector<16x128xf32>
    %c151 = arith.constant 151 : index
    %621 = memref.load %arg3[%c151] : memref<242xf32, #tpu.memory_space<smem>>
    %622 = vector.broadcast %621 : f32 to vector<16x128xf32>
    %623 = arith.mulf %622, %588 : vector<16x128xf32>
    %624 = arith.addf %578, %623 : vector<16x128xf32>
    %c152 = arith.constant 152 : index
    %625 = memref.load %arg3[%c152] : memref<242xf32, #tpu.memory_space<smem>>
    %626 = vector.broadcast %625 : f32 to vector<16x128xf32>
    %627 = arith.mulf %626, %588 : vector<16x128xf32>
    %628 = arith.addf %582, %627 : vector<16x128xf32>
    %c153 = arith.constant 153 : index
    %629 = memref.load %arg3[%c153] : memref<242xf32, #tpu.memory_space<smem>>
    %630 = vector.broadcast %629 : f32 to vector<16x128xf32>
    %631 = arith.mulf %630, %588 : vector<16x128xf32>
    %632 = arith.addf %586, %631 : vector<16x128xf32>
    %c1_42 = arith.constant 1 : index
    %c3_43 = arith.constant 3 : index
    %c0_44 = arith.constant 0 : index
    %633 = vector.load %arg1[%c1_42, %c3_43, %c0_44] : memref<2x32x128xf32, #tpu.memory_space<vmem>>, vector<1x16x128xf32>
    %634 = vector.shape_cast %633 : vector<1x16x128xf32> to vector<16x128xf32>
    %c154 = arith.constant 154 : index
    %635 = memref.load %arg3[%c154] : memref<242xf32, #tpu.memory_space<smem>>
    %636 = vector.broadcast %635 : f32 to vector<16x128xf32>
    %637 = arith.mulf %636, %634 : vector<16x128xf32>
    %638 = arith.addf %592, %637 : vector<16x128xf32>
    %c155 = arith.constant 155 : index
    %639 = memref.load %arg3[%c155] : memref<242xf32, #tpu.memory_space<smem>>
    %640 = vector.broadcast %639 : f32 to vector<16x128xf32>
    %641 = arith.mulf %640, %634 : vector<16x128xf32>
    %642 = arith.addf %596, %641 : vector<16x128xf32>
    %c156 = arith.constant 156 : index
    %643 = memref.load %arg3[%c156] : memref<242xf32, #tpu.memory_space<smem>>
    %644 = vector.broadcast %643 : f32 to vector<16x128xf32>
    %645 = arith.mulf %644, %634 : vector<16x128xf32>
    %646 = arith.addf %600, %645 : vector<16x128xf32>
    %c157 = arith.constant 157 : index
    %647 = memref.load %arg3[%c157] : memref<242xf32, #tpu.memory_space<smem>>
    %648 = vector.broadcast %647 : f32 to vector<16x128xf32>
    %649 = arith.mulf %648, %634 : vector<16x128xf32>
    %650 = arith.addf %604, %649 : vector<16x128xf32>
    %c158 = arith.constant 158 : index
    %651 = memref.load %arg3[%c158] : memref<242xf32, #tpu.memory_space<smem>>
    %652 = vector.broadcast %651 : f32 to vector<16x128xf32>
    %653 = arith.mulf %652, %634 : vector<16x128xf32>
    %654 = arith.addf %608, %653 : vector<16x128xf32>
    %c159 = arith.constant 159 : index
    %655 = memref.load %arg3[%c159] : memref<242xf32, #tpu.memory_space<smem>>
    %656 = vector.broadcast %655 : f32 to vector<16x128xf32>
    %657 = arith.mulf %656, %634 : vector<16x128xf32>
    %658 = arith.addf %612, %657 : vector<16x128xf32>
    %c160 = arith.constant 160 : index
    %659 = memref.load %arg3[%c160] : memref<242xf32, #tpu.memory_space<smem>>
    %660 = vector.broadcast %659 : f32 to vector<16x128xf32>
    %661 = arith.mulf %660, %634 : vector<16x128xf32>
    %662 = arith.addf %616, %661 : vector<16x128xf32>
    %c161 = arith.constant 161 : index
    %663 = memref.load %arg3[%c161] : memref<242xf32, #tpu.memory_space<smem>>
    %664 = vector.broadcast %663 : f32 to vector<16x128xf32>
    %665 = arith.mulf %664, %634 : vector<16x128xf32>
    %666 = arith.addf %620, %665 : vector<16x128xf32>
    %c162 = arith.constant 162 : index
    %667 = memref.load %arg3[%c162] : memref<242xf32, #tpu.memory_space<smem>>
    %668 = vector.broadcast %667 : f32 to vector<16x128xf32>
    %669 = arith.mulf %668, %634 : vector<16x128xf32>
    %670 = arith.addf %624, %669 : vector<16x128xf32>
    %c163 = arith.constant 163 : index
    %671 = memref.load %arg3[%c163] : memref<242xf32, #tpu.memory_space<smem>>
    %672 = vector.broadcast %671 : f32 to vector<16x128xf32>
    %673 = arith.mulf %672, %634 : vector<16x128xf32>
    %674 = arith.addf %628, %673 : vector<16x128xf32>
    %c164 = arith.constant 164 : index
    %675 = memref.load %arg3[%c164] : memref<242xf32, #tpu.memory_space<smem>>
    %676 = vector.broadcast %675 : f32 to vector<16x128xf32>
    %677 = arith.mulf %676, %634 : vector<16x128xf32>
    %678 = arith.addf %632, %677 : vector<16x128xf32>
    %c1_45 = arith.constant 1 : index
    %c4_46 = arith.constant 4 : index
    %c0_47 = arith.constant 0 : index
    %679 = vector.load %arg1[%c1_45, %c4_46, %c0_47] : memref<2x32x128xf32, #tpu.memory_space<vmem>>, vector<1x16x128xf32>
    %680 = vector.shape_cast %679 : vector<1x16x128xf32> to vector<16x128xf32>
    %c165 = arith.constant 165 : index
    %681 = memref.load %arg3[%c165] : memref<242xf32, #tpu.memory_space<smem>>
    %682 = vector.broadcast %681 : f32 to vector<16x128xf32>
    %683 = arith.mulf %682, %680 : vector<16x128xf32>
    %684 = arith.addf %638, %683 : vector<16x128xf32>
    %c166 = arith.constant 166 : index
    %685 = memref.load %arg3[%c166] : memref<242xf32, #tpu.memory_space<smem>>
    %686 = vector.broadcast %685 : f32 to vector<16x128xf32>
    %687 = arith.mulf %686, %680 : vector<16x128xf32>
    %688 = arith.addf %642, %687 : vector<16x128xf32>
    %c167 = arith.constant 167 : index
    %689 = memref.load %arg3[%c167] : memref<242xf32, #tpu.memory_space<smem>>
    %690 = vector.broadcast %689 : f32 to vector<16x128xf32>
    %691 = arith.mulf %690, %680 : vector<16x128xf32>
    %692 = arith.addf %646, %691 : vector<16x128xf32>
    %c168 = arith.constant 168 : index
    %693 = memref.load %arg3[%c168] : memref<242xf32, #tpu.memory_space<smem>>
    %694 = vector.broadcast %693 : f32 to vector<16x128xf32>
    %695 = arith.mulf %694, %680 : vector<16x128xf32>
    %696 = arith.addf %650, %695 : vector<16x128xf32>
    %c169 = arith.constant 169 : index
    %697 = memref.load %arg3[%c169] : memref<242xf32, #tpu.memory_space<smem>>
    %698 = vector.broadcast %697 : f32 to vector<16x128xf32>
    %699 = arith.mulf %698, %680 : vector<16x128xf32>
    %700 = arith.addf %654, %699 : vector<16x128xf32>
    %c170 = arith.constant 170 : index
    %701 = memref.load %arg3[%c170] : memref<242xf32, #tpu.memory_space<smem>>
    %702 = vector.broadcast %701 : f32 to vector<16x128xf32>
    %703 = arith.mulf %702, %680 : vector<16x128xf32>
    %704 = arith.addf %658, %703 : vector<16x128xf32>
    %c171 = arith.constant 171 : index
    %705 = memref.load %arg3[%c171] : memref<242xf32, #tpu.memory_space<smem>>
    %706 = vector.broadcast %705 : f32 to vector<16x128xf32>
    %707 = arith.mulf %706, %680 : vector<16x128xf32>
    %708 = arith.addf %662, %707 : vector<16x128xf32>
    %c172 = arith.constant 172 : index
    %709 = memref.load %arg3[%c172] : memref<242xf32, #tpu.memory_space<smem>>
    %710 = vector.broadcast %709 : f32 to vector<16x128xf32>
    %711 = arith.mulf %710, %680 : vector<16x128xf32>
    %712 = arith.addf %666, %711 : vector<16x128xf32>
    %c173 = arith.constant 173 : index
    %713 = memref.load %arg3[%c173] : memref<242xf32, #tpu.memory_space<smem>>
    %714 = vector.broadcast %713 : f32 to vector<16x128xf32>
    %715 = arith.mulf %714, %680 : vector<16x128xf32>
    %716 = arith.addf %670, %715 : vector<16x128xf32>
    %c174 = arith.constant 174 : index
    %717 = memref.load %arg3[%c174] : memref<242xf32, #tpu.memory_space<smem>>
    %718 = vector.broadcast %717 : f32 to vector<16x128xf32>
    %719 = arith.mulf %718, %680 : vector<16x128xf32>
    %720 = arith.addf %674, %719 : vector<16x128xf32>
    %c175 = arith.constant 175 : index
    %721 = memref.load %arg3[%c175] : memref<242xf32, #tpu.memory_space<smem>>
    %722 = vector.broadcast %721 : f32 to vector<16x128xf32>
    %723 = arith.mulf %722, %680 : vector<16x128xf32>
    %724 = arith.addf %678, %723 : vector<16x128xf32>
    %c1_48 = arith.constant 1 : index
    %c5_49 = arith.constant 5 : index
    %c0_50 = arith.constant 0 : index
    %725 = vector.load %arg1[%c1_48, %c5_49, %c0_50] : memref<2x32x128xf32, #tpu.memory_space<vmem>>, vector<1x16x128xf32>
    %726 = vector.shape_cast %725 : vector<1x16x128xf32> to vector<16x128xf32>
    %c176 = arith.constant 176 : index
    %727 = memref.load %arg3[%c176] : memref<242xf32, #tpu.memory_space<smem>>
    %728 = vector.broadcast %727 : f32 to vector<16x128xf32>
    %729 = arith.mulf %728, %726 : vector<16x128xf32>
    %730 = arith.addf %684, %729 : vector<16x128xf32>
    %c177 = arith.constant 177 : index
    %731 = memref.load %arg3[%c177] : memref<242xf32, #tpu.memory_space<smem>>
    %732 = vector.broadcast %731 : f32 to vector<16x128xf32>
    %733 = arith.mulf %732, %726 : vector<16x128xf32>
    %734 = arith.addf %688, %733 : vector<16x128xf32>
    %c178 = arith.constant 178 : index
    %735 = memref.load %arg3[%c178] : memref<242xf32, #tpu.memory_space<smem>>
    %736 = vector.broadcast %735 : f32 to vector<16x128xf32>
    %737 = arith.mulf %736, %726 : vector<16x128xf32>
    %738 = arith.addf %692, %737 : vector<16x128xf32>
    %c179 = arith.constant 179 : index
    %739 = memref.load %arg3[%c179] : memref<242xf32, #tpu.memory_space<smem>>
    %740 = vector.broadcast %739 : f32 to vector<16x128xf32>
    %741 = arith.mulf %740, %726 : vector<16x128xf32>
    %742 = arith.addf %696, %741 : vector<16x128xf32>
    %c180 = arith.constant 180 : index
    %743 = memref.load %arg3[%c180] : memref<242xf32, #tpu.memory_space<smem>>
    %744 = vector.broadcast %743 : f32 to vector<16x128xf32>
    %745 = arith.mulf %744, %726 : vector<16x128xf32>
    %746 = arith.addf %700, %745 : vector<16x128xf32>
    %c181 = arith.constant 181 : index
    %747 = memref.load %arg3[%c181] : memref<242xf32, #tpu.memory_space<smem>>
    %748 = vector.broadcast %747 : f32 to vector<16x128xf32>
    %749 = arith.mulf %748, %726 : vector<16x128xf32>
    %750 = arith.addf %704, %749 : vector<16x128xf32>
    %c182 = arith.constant 182 : index
    %751 = memref.load %arg3[%c182] : memref<242xf32, #tpu.memory_space<smem>>
    %752 = vector.broadcast %751 : f32 to vector<16x128xf32>
    %753 = arith.mulf %752, %726 : vector<16x128xf32>
    %754 = arith.addf %708, %753 : vector<16x128xf32>
    %c183 = arith.constant 183 : index
    %755 = memref.load %arg3[%c183] : memref<242xf32, #tpu.memory_space<smem>>
    %756 = vector.broadcast %755 : f32 to vector<16x128xf32>
    %757 = arith.mulf %756, %726 : vector<16x128xf32>
    %758 = arith.addf %712, %757 : vector<16x128xf32>
    %c184 = arith.constant 184 : index
    %759 = memref.load %arg3[%c184] : memref<242xf32, #tpu.memory_space<smem>>
    %760 = vector.broadcast %759 : f32 to vector<16x128xf32>
    %761 = arith.mulf %760, %726 : vector<16x128xf32>
    %762 = arith.addf %716, %761 : vector<16x128xf32>
    %c185 = arith.constant 185 : index
    %763 = memref.load %arg3[%c185] : memref<242xf32, #tpu.memory_space<smem>>
    %764 = vector.broadcast %763 : f32 to vector<16x128xf32>
    %765 = arith.mulf %764, %726 : vector<16x128xf32>
    %766 = arith.addf %720, %765 : vector<16x128xf32>
    %c186 = arith.constant 186 : index
    %767 = memref.load %arg3[%c186] : memref<242xf32, #tpu.memory_space<smem>>
    %768 = vector.broadcast %767 : f32 to vector<16x128xf32>
    %769 = arith.mulf %768, %726 : vector<16x128xf32>
    %770 = arith.addf %724, %769 : vector<16x128xf32>
    %c1_51 = arith.constant 1 : index
    %c6_52 = arith.constant 6 : index
    %c0_53 = arith.constant 0 : index
    %771 = vector.load %arg1[%c1_51, %c6_52, %c0_53] : memref<2x32x128xf32, #tpu.memory_space<vmem>>, vector<1x16x128xf32>
    %772 = vector.shape_cast %771 : vector<1x16x128xf32> to vector<16x128xf32>
    %c187 = arith.constant 187 : index
    %773 = memref.load %arg3[%c187] : memref<242xf32, #tpu.memory_space<smem>>
    %774 = vector.broadcast %773 : f32 to vector<16x128xf32>
    %775 = arith.mulf %774, %772 : vector<16x128xf32>
    %776 = arith.addf %730, %775 : vector<16x128xf32>
    %c188 = arith.constant 188 : index
    %777 = memref.load %arg3[%c188] : memref<242xf32, #tpu.memory_space<smem>>
    %778 = vector.broadcast %777 : f32 to vector<16x128xf32>
    %779 = arith.mulf %778, %772 : vector<16x128xf32>
    %780 = arith.addf %734, %779 : vector<16x128xf32>
    %c189 = arith.constant 189 : index
    %781 = memref.load %arg3[%c189] : memref<242xf32, #tpu.memory_space<smem>>
    %782 = vector.broadcast %781 : f32 to vector<16x128xf32>
    %783 = arith.mulf %782, %772 : vector<16x128xf32>
    %784 = arith.addf %738, %783 : vector<16x128xf32>
    %c190 = arith.constant 190 : index
    %785 = memref.load %arg3[%c190] : memref<242xf32, #tpu.memory_space<smem>>
    %786 = vector.broadcast %785 : f32 to vector<16x128xf32>
    %787 = arith.mulf %786, %772 : vector<16x128xf32>
    %788 = arith.addf %742, %787 : vector<16x128xf32>
    %c191 = arith.constant 191 : index
    %789 = memref.load %arg3[%c191] : memref<242xf32, #tpu.memory_space<smem>>
    %790 = vector.broadcast %789 : f32 to vector<16x128xf32>
    %791 = arith.mulf %790, %772 : vector<16x128xf32>
    %792 = arith.addf %746, %791 : vector<16x128xf32>
    %c192 = arith.constant 192 : index
    %793 = memref.load %arg3[%c192] : memref<242xf32, #tpu.memory_space<smem>>
    %794 = vector.broadcast %793 : f32 to vector<16x128xf32>
    %795 = arith.mulf %794, %772 : vector<16x128xf32>
    %796 = arith.addf %750, %795 : vector<16x128xf32>
    %c193 = arith.constant 193 : index
    %797 = memref.load %arg3[%c193] : memref<242xf32, #tpu.memory_space<smem>>
    %798 = vector.broadcast %797 : f32 to vector<16x128xf32>
    %799 = arith.mulf %798, %772 : vector<16x128xf32>
    %800 = arith.addf %754, %799 : vector<16x128xf32>
    %c194 = arith.constant 194 : index
    %801 = memref.load %arg3[%c194] : memref<242xf32, #tpu.memory_space<smem>>
    %802 = vector.broadcast %801 : f32 to vector<16x128xf32>
    %803 = arith.mulf %802, %772 : vector<16x128xf32>
    %804 = arith.addf %758, %803 : vector<16x128xf32>
    %c195 = arith.constant 195 : index
    %805 = memref.load %arg3[%c195] : memref<242xf32, #tpu.memory_space<smem>>
    %806 = vector.broadcast %805 : f32 to vector<16x128xf32>
    %807 = arith.mulf %806, %772 : vector<16x128xf32>
    %808 = arith.addf %762, %807 : vector<16x128xf32>
    %c196 = arith.constant 196 : index
    %809 = memref.load %arg3[%c196] : memref<242xf32, #tpu.memory_space<smem>>
    %810 = vector.broadcast %809 : f32 to vector<16x128xf32>
    %811 = arith.mulf %810, %772 : vector<16x128xf32>
    %812 = arith.addf %766, %811 : vector<16x128xf32>
    %c197 = arith.constant 197 : index
    %813 = memref.load %arg3[%c197] : memref<242xf32, #tpu.memory_space<smem>>
    %814 = vector.broadcast %813 : f32 to vector<16x128xf32>
    %815 = arith.mulf %814, %772 : vector<16x128xf32>
    %816 = arith.addf %770, %815 : vector<16x128xf32>
    %c1_54 = arith.constant 1 : index
    %c7_55 = arith.constant 7 : index
    %c0_56 = arith.constant 0 : index
    %817 = vector.load %arg1[%c1_54, %c7_55, %c0_56] : memref<2x32x128xf32, #tpu.memory_space<vmem>>, vector<1x16x128xf32>
    %818 = vector.shape_cast %817 : vector<1x16x128xf32> to vector<16x128xf32>
    %c198 = arith.constant 198 : index
    %819 = memref.load %arg3[%c198] : memref<242xf32, #tpu.memory_space<smem>>
    %820 = vector.broadcast %819 : f32 to vector<16x128xf32>
    %821 = arith.mulf %820, %818 : vector<16x128xf32>
    %822 = arith.addf %776, %821 : vector<16x128xf32>
    %c199 = arith.constant 199 : index
    %823 = memref.load %arg3[%c199] : memref<242xf32, #tpu.memory_space<smem>>
    %824 = vector.broadcast %823 : f32 to vector<16x128xf32>
    %825 = arith.mulf %824, %818 : vector<16x128xf32>
    %826 = arith.addf %780, %825 : vector<16x128xf32>
    %c200 = arith.constant 200 : index
    %827 = memref.load %arg3[%c200] : memref<242xf32, #tpu.memory_space<smem>>
    %828 = vector.broadcast %827 : f32 to vector<16x128xf32>
    %829 = arith.mulf %828, %818 : vector<16x128xf32>
    %830 = arith.addf %784, %829 : vector<16x128xf32>
    %c201 = arith.constant 201 : index
    %831 = memref.load %arg3[%c201] : memref<242xf32, #tpu.memory_space<smem>>
    %832 = vector.broadcast %831 : f32 to vector<16x128xf32>
    %833 = arith.mulf %832, %818 : vector<16x128xf32>
    %834 = arith.addf %788, %833 : vector<16x128xf32>
    %c202 = arith.constant 202 : index
    %835 = memref.load %arg3[%c202] : memref<242xf32, #tpu.memory_space<smem>>
    %836 = vector.broadcast %835 : f32 to vector<16x128xf32>
    %837 = arith.mulf %836, %818 : vector<16x128xf32>
    %838 = arith.addf %792, %837 : vector<16x128xf32>
    %c203 = arith.constant 203 : index
    %839 = memref.load %arg3[%c203] : memref<242xf32, #tpu.memory_space<smem>>
    %840 = vector.broadcast %839 : f32 to vector<16x128xf32>
    %841 = arith.mulf %840, %818 : vector<16x128xf32>
    %842 = arith.addf %796, %841 : vector<16x128xf32>
    %c204 = arith.constant 204 : index
    %843 = memref.load %arg3[%c204] : memref<242xf32, #tpu.memory_space<smem>>
    %844 = vector.broadcast %843 : f32 to vector<16x128xf32>
    %845 = arith.mulf %844, %818 : vector<16x128xf32>
    %846 = arith.addf %800, %845 : vector<16x128xf32>
    %c205 = arith.constant 205 : index
    %847 = memref.load %arg3[%c205] : memref<242xf32, #tpu.memory_space<smem>>
    %848 = vector.broadcast %847 : f32 to vector<16x128xf32>
    %849 = arith.mulf %848, %818 : vector<16x128xf32>
    %850 = arith.addf %804, %849 : vector<16x128xf32>
    %c206 = arith.constant 206 : index
    %851 = memref.load %arg3[%c206] : memref<242xf32, #tpu.memory_space<smem>>
    %852 = vector.broadcast %851 : f32 to vector<16x128xf32>
    %853 = arith.mulf %852, %818 : vector<16x128xf32>
    %854 = arith.addf %808, %853 : vector<16x128xf32>
    %c207 = arith.constant 207 : index
    %855 = memref.load %arg3[%c207] : memref<242xf32, #tpu.memory_space<smem>>
    %856 = vector.broadcast %855 : f32 to vector<16x128xf32>
    %857 = arith.mulf %856, %818 : vector<16x128xf32>
    %858 = arith.addf %812, %857 : vector<16x128xf32>
    %c208 = arith.constant 208 : index
    %859 = memref.load %arg3[%c208] : memref<242xf32, #tpu.memory_space<smem>>
    %860 = vector.broadcast %859 : f32 to vector<16x128xf32>
    %861 = arith.mulf %860, %818 : vector<16x128xf32>
    %862 = arith.addf %816, %861 : vector<16x128xf32>
    %c1_57 = arith.constant 1 : index
    %c8_58 = arith.constant 8 : index
    %c0_59 = arith.constant 0 : index
    %863 = vector.load %arg1[%c1_57, %c8_58, %c0_59] : memref<2x32x128xf32, #tpu.memory_space<vmem>>, vector<1x16x128xf32>
    %864 = vector.shape_cast %863 : vector<1x16x128xf32> to vector<16x128xf32>
    %c209 = arith.constant 209 : index
    %865 = memref.load %arg3[%c209] : memref<242xf32, #tpu.memory_space<smem>>
    %866 = vector.broadcast %865 : f32 to vector<16x128xf32>
    %867 = arith.mulf %866, %864 : vector<16x128xf32>
    %868 = arith.addf %822, %867 : vector<16x128xf32>
    %c210 = arith.constant 210 : index
    %869 = memref.load %arg3[%c210] : memref<242xf32, #tpu.memory_space<smem>>
    %870 = vector.broadcast %869 : f32 to vector<16x128xf32>
    %871 = arith.mulf %870, %864 : vector<16x128xf32>
    %872 = arith.addf %826, %871 : vector<16x128xf32>
    %c211 = arith.constant 211 : index
    %873 = memref.load %arg3[%c211] : memref<242xf32, #tpu.memory_space<smem>>
    %874 = vector.broadcast %873 : f32 to vector<16x128xf32>
    %875 = arith.mulf %874, %864 : vector<16x128xf32>
    %876 = arith.addf %830, %875 : vector<16x128xf32>
    %c212 = arith.constant 212 : index
    %877 = memref.load %arg3[%c212] : memref<242xf32, #tpu.memory_space<smem>>
    %878 = vector.broadcast %877 : f32 to vector<16x128xf32>
    %879 = arith.mulf %878, %864 : vector<16x128xf32>
    %880 = arith.addf %834, %879 : vector<16x128xf32>
    %c213 = arith.constant 213 : index
    %881 = memref.load %arg3[%c213] : memref<242xf32, #tpu.memory_space<smem>>
    %882 = vector.broadcast %881 : f32 to vector<16x128xf32>
    %883 = arith.mulf %882, %864 : vector<16x128xf32>
    %884 = arith.addf %838, %883 : vector<16x128xf32>
    %c214 = arith.constant 214 : index
    %885 = memref.load %arg3[%c214] : memref<242xf32, #tpu.memory_space<smem>>
    %886 = vector.broadcast %885 : f32 to vector<16x128xf32>
    %887 = arith.mulf %886, %864 : vector<16x128xf32>
    %888 = arith.addf %842, %887 : vector<16x128xf32>
    %c215 = arith.constant 215 : index
    %889 = memref.load %arg3[%c215] : memref<242xf32, #tpu.memory_space<smem>>
    %890 = vector.broadcast %889 : f32 to vector<16x128xf32>
    %891 = arith.mulf %890, %864 : vector<16x128xf32>
    %892 = arith.addf %846, %891 : vector<16x128xf32>
    %c216 = arith.constant 216 : index
    %893 = memref.load %arg3[%c216] : memref<242xf32, #tpu.memory_space<smem>>
    %894 = vector.broadcast %893 : f32 to vector<16x128xf32>
    %895 = arith.mulf %894, %864 : vector<16x128xf32>
    %896 = arith.addf %850, %895 : vector<16x128xf32>
    %c217 = arith.constant 217 : index
    %897 = memref.load %arg3[%c217] : memref<242xf32, #tpu.memory_space<smem>>
    %898 = vector.broadcast %897 : f32 to vector<16x128xf32>
    %899 = arith.mulf %898, %864 : vector<16x128xf32>
    %900 = arith.addf %854, %899 : vector<16x128xf32>
    %c218 = arith.constant 218 : index
    %901 = memref.load %arg3[%c218] : memref<242xf32, #tpu.memory_space<smem>>
    %902 = vector.broadcast %901 : f32 to vector<16x128xf32>
    %903 = arith.mulf %902, %864 : vector<16x128xf32>
    %904 = arith.addf %858, %903 : vector<16x128xf32>
    %c219 = arith.constant 219 : index
    %905 = memref.load %arg3[%c219] : memref<242xf32, #tpu.memory_space<smem>>
    %906 = vector.broadcast %905 : f32 to vector<16x128xf32>
    %907 = arith.mulf %906, %864 : vector<16x128xf32>
    %908 = arith.addf %862, %907 : vector<16x128xf32>
    %c1_60 = arith.constant 1 : index
    %c9_61 = arith.constant 9 : index
    %c0_62 = arith.constant 0 : index
    %909 = vector.load %arg1[%c1_60, %c9_61, %c0_62] : memref<2x32x128xf32, #tpu.memory_space<vmem>>, vector<1x16x128xf32>
    %910 = vector.shape_cast %909 : vector<1x16x128xf32> to vector<16x128xf32>
    %c220 = arith.constant 220 : index
    %911 = memref.load %arg3[%c220] : memref<242xf32, #tpu.memory_space<smem>>
    %912 = vector.broadcast %911 : f32 to vector<16x128xf32>
    %913 = arith.mulf %912, %910 : vector<16x128xf32>
    %914 = arith.addf %868, %913 : vector<16x128xf32>
    %c221 = arith.constant 221 : index
    %915 = memref.load %arg3[%c221] : memref<242xf32, #tpu.memory_space<smem>>
    %916 = vector.broadcast %915 : f32 to vector<16x128xf32>
    %917 = arith.mulf %916, %910 : vector<16x128xf32>
    %918 = arith.addf %872, %917 : vector<16x128xf32>
    %c222 = arith.constant 222 : index
    %919 = memref.load %arg3[%c222] : memref<242xf32, #tpu.memory_space<smem>>
    %920 = vector.broadcast %919 : f32 to vector<16x128xf32>
    %921 = arith.mulf %920, %910 : vector<16x128xf32>
    %922 = arith.addf %876, %921 : vector<16x128xf32>
    %c223 = arith.constant 223 : index
    %923 = memref.load %arg3[%c223] : memref<242xf32, #tpu.memory_space<smem>>
    %924 = vector.broadcast %923 : f32 to vector<16x128xf32>
    %925 = arith.mulf %924, %910 : vector<16x128xf32>
    %926 = arith.addf %880, %925 : vector<16x128xf32>
    %c224 = arith.constant 224 : index
    %927 = memref.load %arg3[%c224] : memref<242xf32, #tpu.memory_space<smem>>
    %928 = vector.broadcast %927 : f32 to vector<16x128xf32>
    %929 = arith.mulf %928, %910 : vector<16x128xf32>
    %930 = arith.addf %884, %929 : vector<16x128xf32>
    %c225 = arith.constant 225 : index
    %931 = memref.load %arg3[%c225] : memref<242xf32, #tpu.memory_space<smem>>
    %932 = vector.broadcast %931 : f32 to vector<16x128xf32>
    %933 = arith.mulf %932, %910 : vector<16x128xf32>
    %934 = arith.addf %888, %933 : vector<16x128xf32>
    %c226 = arith.constant 226 : index
    %935 = memref.load %arg3[%c226] : memref<242xf32, #tpu.memory_space<smem>>
    %936 = vector.broadcast %935 : f32 to vector<16x128xf32>
    %937 = arith.mulf %936, %910 : vector<16x128xf32>
    %938 = arith.addf %892, %937 : vector<16x128xf32>
    %c227 = arith.constant 227 : index
    %939 = memref.load %arg3[%c227] : memref<242xf32, #tpu.memory_space<smem>>
    %940 = vector.broadcast %939 : f32 to vector<16x128xf32>
    %941 = arith.mulf %940, %910 : vector<16x128xf32>
    %942 = arith.addf %896, %941 : vector<16x128xf32>
    %c228 = arith.constant 228 : index
    %943 = memref.load %arg3[%c228] : memref<242xf32, #tpu.memory_space<smem>>
    %944 = vector.broadcast %943 : f32 to vector<16x128xf32>
    %945 = arith.mulf %944, %910 : vector<16x128xf32>
    %946 = arith.addf %900, %945 : vector<16x128xf32>
    %c229 = arith.constant 229 : index
    %947 = memref.load %arg3[%c229] : memref<242xf32, #tpu.memory_space<smem>>
    %948 = vector.broadcast %947 : f32 to vector<16x128xf32>
    %949 = arith.mulf %948, %910 : vector<16x128xf32>
    %950 = arith.addf %904, %949 : vector<16x128xf32>
    %c230 = arith.constant 230 : index
    %951 = memref.load %arg3[%c230] : memref<242xf32, #tpu.memory_space<smem>>
    %952 = vector.broadcast %951 : f32 to vector<16x128xf32>
    %953 = arith.mulf %952, %910 : vector<16x128xf32>
    %954 = arith.addf %908, %953 : vector<16x128xf32>
    %c1_63 = arith.constant 1 : index
    %c10_64 = arith.constant 10 : index
    %c0_65 = arith.constant 0 : index
    %955 = vector.load %arg1[%c1_63, %c10_64, %c0_65] : memref<2x32x128xf32, #tpu.memory_space<vmem>>, vector<1x16x128xf32>
    %956 = vector.shape_cast %955 : vector<1x16x128xf32> to vector<16x128xf32>
    %c231 = arith.constant 231 : index
    %957 = memref.load %arg3[%c231] : memref<242xf32, #tpu.memory_space<smem>>
    %958 = vector.broadcast %957 : f32 to vector<16x128xf32>
    %959 = arith.mulf %958, %956 : vector<16x128xf32>
    %960 = arith.addf %914, %959 : vector<16x128xf32>
    %c232 = arith.constant 232 : index
    %961 = memref.load %arg3[%c232] : memref<242xf32, #tpu.memory_space<smem>>
    %962 = vector.broadcast %961 : f32 to vector<16x128xf32>
    %963 = arith.mulf %962, %956 : vector<16x128xf32>
    %964 = arith.addf %918, %963 : vector<16x128xf32>
    %c233 = arith.constant 233 : index
    %965 = memref.load %arg3[%c233] : memref<242xf32, #tpu.memory_space<smem>>
    %966 = vector.broadcast %965 : f32 to vector<16x128xf32>
    %967 = arith.mulf %966, %956 : vector<16x128xf32>
    %968 = arith.addf %922, %967 : vector<16x128xf32>
    %c234 = arith.constant 234 : index
    %969 = memref.load %arg3[%c234] : memref<242xf32, #tpu.memory_space<smem>>
    %970 = vector.broadcast %969 : f32 to vector<16x128xf32>
    %971 = arith.mulf %970, %956 : vector<16x128xf32>
    %972 = arith.addf %926, %971 : vector<16x128xf32>
    %c235 = arith.constant 235 : index
    %973 = memref.load %arg3[%c235] : memref<242xf32, #tpu.memory_space<smem>>
    %974 = vector.broadcast %973 : f32 to vector<16x128xf32>
    %975 = arith.mulf %974, %956 : vector<16x128xf32>
    %976 = arith.addf %930, %975 : vector<16x128xf32>
    %c236 = arith.constant 236 : index
    %977 = memref.load %arg3[%c236] : memref<242xf32, #tpu.memory_space<smem>>
    %978 = vector.broadcast %977 : f32 to vector<16x128xf32>
    %979 = arith.mulf %978, %956 : vector<16x128xf32>
    %980 = arith.addf %934, %979 : vector<16x128xf32>
    %c237 = arith.constant 237 : index
    %981 = memref.load %arg3[%c237] : memref<242xf32, #tpu.memory_space<smem>>
    %982 = vector.broadcast %981 : f32 to vector<16x128xf32>
    %983 = arith.mulf %982, %956 : vector<16x128xf32>
    %984 = arith.addf %938, %983 : vector<16x128xf32>
    %c238 = arith.constant 238 : index
    %985 = memref.load %arg3[%c238] : memref<242xf32, #tpu.memory_space<smem>>
    %986 = vector.broadcast %985 : f32 to vector<16x128xf32>
    %987 = arith.mulf %986, %956 : vector<16x128xf32>
    %988 = arith.addf %942, %987 : vector<16x128xf32>
    %c239 = arith.constant 239 : index
    %989 = memref.load %arg3[%c239] : memref<242xf32, #tpu.memory_space<smem>>
    %990 = vector.broadcast %989 : f32 to vector<16x128xf32>
    %991 = arith.mulf %990, %956 : vector<16x128xf32>
    %992 = arith.addf %946, %991 : vector<16x128xf32>
    %c240 = arith.constant 240 : index
    %993 = memref.load %arg3[%c240] : memref<242xf32, #tpu.memory_space<smem>>
    %994 = vector.broadcast %993 : f32 to vector<16x128xf32>
    %995 = arith.mulf %994, %956 : vector<16x128xf32>
    %996 = arith.addf %950, %995 : vector<16x128xf32>
    %c241 = arith.constant 241 : index
    %997 = memref.load %arg3[%c241] : memref<242xf32, #tpu.memory_space<smem>>
    %998 = vector.broadcast %997 : f32 to vector<16x128xf32>
    %999 = arith.mulf %998, %956 : vector<16x128xf32>
    %1000 = arith.addf %954, %999 : vector<16x128xf32>
    %c5_i32 = arith.constant 5 : i32
    %1001 = tpu.dynamic_rotate %960 by %c5_i32 dim 1 : vector<16x128xf32>, i32 -> vector<16x128xf32>
    %c4_i32 = arith.constant 4 : i32
    %1002 = tpu.dynamic_rotate %964 by %c4_i32 dim 1 : vector<16x128xf32>, i32 -> vector<16x128xf32>
    %c3_i32 = arith.constant 3 : i32
    %1003 = tpu.dynamic_rotate %968 by %c3_i32 dim 1 : vector<16x128xf32>, i32 -> vector<16x128xf32>
    %c2_i32 = arith.constant 2 : i32
    %1004 = tpu.dynamic_rotate %972 by %c2_i32 dim 1 : vector<16x128xf32>, i32 -> vector<16x128xf32>
    %c1_i32 = arith.constant 1 : i32
    %1005 = tpu.dynamic_rotate %976 by %c1_i32 dim 1 : vector<16x128xf32>, i32 -> vector<16x128xf32>
    %c127_i32 = arith.constant 127 : i32
    %1006 = tpu.dynamic_rotate %984 by %c127_i32 dim 1 : vector<16x128xf32>, i32 -> vector<16x128xf32>
    %c126_i32 = arith.constant 126 : i32
    %1007 = tpu.dynamic_rotate %988 by %c126_i32 dim 1 : vector<16x128xf32>, i32 -> vector<16x128xf32>
    %c125_i32 = arith.constant 125 : i32
    %1008 = tpu.dynamic_rotate %992 by %c125_i32 dim 1 : vector<16x128xf32>, i32 -> vector<16x128xf32>
    %c124_i32 = arith.constant 124 : i32
    %1009 = tpu.dynamic_rotate %996 by %c124_i32 dim 1 : vector<16x128xf32>, i32 -> vector<16x128xf32>
    %c123_i32 = arith.constant 123 : i32
    %1010 = tpu.dynamic_rotate %1000 by %c123_i32 dim 1 : vector<16x128xf32>, i32 -> vector<16x128xf32>
    %1011 = arith.addf %1001, %1002 : vector<16x128xf32>
    %1012 = arith.addf %1003, %1004 : vector<16x128xf32>
    %1013 = arith.addf %1005, %980 : vector<16x128xf32>
    %1014 = arith.addf %1006, %1007 : vector<16x128xf32>
    %1015 = arith.addf %1008, %1009 : vector<16x128xf32>
    %1016 = arith.addf %1011, %1012 : vector<16x128xf32>
    %1017 = arith.addf %1013, %1014 : vector<16x128xf32>
    %1018 = arith.addf %1015, %1010 : vector<16x128xf32>
    %1019 = arith.addf %1016, %1017 : vector<16x128xf32>
    %1020 = arith.addf %1019, %1018 : vector<16x128xf32>
    %c0_66 = arith.constant 0 : index
    %1021 = memref.load %arg4[%c0_66] : memref<1xf32, #tpu.memory_space<smem>>
    %1022 = vector.broadcast %1021 : f32 to vector<16x128xf32>
    %1023 = arith.addf %1020, %1022 : vector<16x128xf32>
    %cst = arith.constant 0.000000e+00 : f32
    %1024 = vector.broadcast %cst : f32 to vector<16x128xf32>
    %1025 = arith.cmpf oge, %1023, %1024 : vector<16x128xf32>
    %cst_67 = arith.constant 2.000000e-01 : f32
    %1026 = vector.broadcast %cst_67 : f32 to vector<16x128xf32>
    %1027 = arith.mulf %1026, %1023 : vector<16x128xf32>
    %1028 = arith.select %1025, %1023, %1027 : vector<16x128xi1>, vector<16x128xf32>
    %c0_68 = arith.constant 0 : index
    %c0_69 = arith.constant 0 : index
    %1029 = vector.load %arg2[%c0_68, %c0_69] : memref<16x128xf32, #tpu.memory_space<vmem>>, vector<16x128xf32>
    %1030 = arith.mulf %1028, %1029 : vector<16x128xf32>
    %cst_70 = arith.constant 0.000000e+00 : f32
    %1031 = vector.broadcast %cst_70 : f32 to vector<5x128xf32>
    %cst_71 = arith.constant 0.000000e+00 : f32
    %1032 = vector.broadcast %cst_71 : f32 to vector<11x128xf32>
    %1033 = tpu.concatenate %1031, %1030, %1032 in 0 : vector<5x128xf32>, vector<16x128xf32>, vector<11x128xf32> -> vector<32x128xf32>
    %1034 = vector.extract_strided_slice %1033 {offsets = [0, 0], sizes = [16, 128], strides = [1, 1]} : vector<32x128xf32> to vector<16x128xf32>
    %c0_72 = arith.constant 0 : index
    %1035 = memref.load %arg5[%c0_72] : memref<121xf32, #tpu.memory_space<smem>>
    %1036 = vector.broadcast %1035 : f32 to vector<16x128xf32>
    %1037 = arith.mulf %1036, %1034 : vector<16x128xf32>
    %c1_73 = arith.constant 1 : index
    %1038 = memref.load %arg5[%c1_73] : memref<121xf32, #tpu.memory_space<smem>>
    %1039 = vector.broadcast %1038 : f32 to vector<16x128xf32>
    %1040 = arith.mulf %1039, %1034 : vector<16x128xf32>
    %c2_74 = arith.constant 2 : index
    %1041 = memref.load %arg5[%c2_74] : memref<121xf32, #tpu.memory_space<smem>>
    %1042 = vector.broadcast %1041 : f32 to vector<16x128xf32>
    %1043 = arith.mulf %1042, %1034 : vector<16x128xf32>
    %c3_75 = arith.constant 3 : index
    %1044 = memref.load %arg5[%c3_75] : memref<121xf32, #tpu.memory_space<smem>>
    %1045 = vector.broadcast %1044 : f32 to vector<16x128xf32>
    %1046 = arith.mulf %1045, %1034 : vector<16x128xf32>
    %c4_76 = arith.constant 4 : index
    %1047 = memref.load %arg5[%c4_76] : memref<121xf32, #tpu.memory_space<smem>>
    %1048 = vector.broadcast %1047 : f32 to vector<16x128xf32>
    %1049 = arith.mulf %1048, %1034 : vector<16x128xf32>
    %c5_77 = arith.constant 5 : index
    %1050 = memref.load %arg5[%c5_77] : memref<121xf32, #tpu.memory_space<smem>>
    %1051 = vector.broadcast %1050 : f32 to vector<16x128xf32>
    %1052 = arith.mulf %1051, %1034 : vector<16x128xf32>
    %c6_78 = arith.constant 6 : index
    %1053 = memref.load %arg5[%c6_78] : memref<121xf32, #tpu.memory_space<smem>>
    %1054 = vector.broadcast %1053 : f32 to vector<16x128xf32>
    %1055 = arith.mulf %1054, %1034 : vector<16x128xf32>
    %c7_79 = arith.constant 7 : index
    %1056 = memref.load %arg5[%c7_79] : memref<121xf32, #tpu.memory_space<smem>>
    %1057 = vector.broadcast %1056 : f32 to vector<16x128xf32>
    %1058 = arith.mulf %1057, %1034 : vector<16x128xf32>
    %c8_80 = arith.constant 8 : index
    %1059 = memref.load %arg5[%c8_80] : memref<121xf32, #tpu.memory_space<smem>>
    %1060 = vector.broadcast %1059 : f32 to vector<16x128xf32>
    %1061 = arith.mulf %1060, %1034 : vector<16x128xf32>
    %c9_81 = arith.constant 9 : index
    %1062 = memref.load %arg5[%c9_81] : memref<121xf32, #tpu.memory_space<smem>>
    %1063 = vector.broadcast %1062 : f32 to vector<16x128xf32>
    %1064 = arith.mulf %1063, %1034 : vector<16x128xf32>
    %c10_82 = arith.constant 10 : index
    %1065 = memref.load %arg5[%c10_82] : memref<121xf32, #tpu.memory_space<smem>>
    %1066 = vector.broadcast %1065 : f32 to vector<16x128xf32>
    %1067 = arith.mulf %1066, %1034 : vector<16x128xf32>
    %c31_i32 = arith.constant 31 : i32
    %1068 = tpu.dynamic_rotate %1033 by %c31_i32 dim 0 : vector<32x128xf32>, i32 -> vector<32x128xf32>
    %1069 = vector.extract_strided_slice %1068 {offsets = [0, 0], sizes = [16, 128], strides = [1, 1]} : vector<32x128xf32> to vector<16x128xf32>
    %c11_83 = arith.constant 11 : index
    %1070 = memref.load %arg5[%c11_83] : memref<121xf32, #tpu.memory_space<smem>>
    %1071 = vector.broadcast %1070 : f32 to vector<16x128xf32>
    %1072 = arith.mulf %1071, %1069 : vector<16x128xf32>
    %1073 = arith.addf %1037, %1072 : vector<16x128xf32>
    %c12_84 = arith.constant 12 : index
    %1074 = memref.load %arg5[%c12_84] : memref<121xf32, #tpu.memory_space<smem>>
    %1075 = vector.broadcast %1074 : f32 to vector<16x128xf32>
    %1076 = arith.mulf %1075, %1069 : vector<16x128xf32>
    %1077 = arith.addf %1040, %1076 : vector<16x128xf32>
    %c13_85 = arith.constant 13 : index
    %1078 = memref.load %arg5[%c13_85] : memref<121xf32, #tpu.memory_space<smem>>
    %1079 = vector.broadcast %1078 : f32 to vector<16x128xf32>
    %1080 = arith.mulf %1079, %1069 : vector<16x128xf32>
    %1081 = arith.addf %1043, %1080 : vector<16x128xf32>
    %c14_86 = arith.constant 14 : index
    %1082 = memref.load %arg5[%c14_86] : memref<121xf32, #tpu.memory_space<smem>>
    %1083 = vector.broadcast %1082 : f32 to vector<16x128xf32>
    %1084 = arith.mulf %1083, %1069 : vector<16x128xf32>
    %1085 = arith.addf %1046, %1084 : vector<16x128xf32>
    %c15_87 = arith.constant 15 : index
    %1086 = memref.load %arg5[%c15_87] : memref<121xf32, #tpu.memory_space<smem>>
    %1087 = vector.broadcast %1086 : f32 to vector<16x128xf32>
    %1088 = arith.mulf %1087, %1069 : vector<16x128xf32>
    %1089 = arith.addf %1049, %1088 : vector<16x128xf32>
    %c16_88 = arith.constant 16 : index
    %1090 = memref.load %arg5[%c16_88] : memref<121xf32, #tpu.memory_space<smem>>
    %1091 = vector.broadcast %1090 : f32 to vector<16x128xf32>
    %1092 = arith.mulf %1091, %1069 : vector<16x128xf32>
    %1093 = arith.addf %1052, %1092 : vector<16x128xf32>
    %c17_89 = arith.constant 17 : index
    %1094 = memref.load %arg5[%c17_89] : memref<121xf32, #tpu.memory_space<smem>>
    %1095 = vector.broadcast %1094 : f32 to vector<16x128xf32>
    %1096 = arith.mulf %1095, %1069 : vector<16x128xf32>
    %1097 = arith.addf %1055, %1096 : vector<16x128xf32>
    %c18_90 = arith.constant 18 : index
    %1098 = memref.load %arg5[%c18_90] : memref<121xf32, #tpu.memory_space<smem>>
    %1099 = vector.broadcast %1098 : f32 to vector<16x128xf32>
    %1100 = arith.mulf %1099, %1069 : vector<16x128xf32>
    %1101 = arith.addf %1058, %1100 : vector<16x128xf32>
    %c19_91 = arith.constant 19 : index
    %1102 = memref.load %arg5[%c19_91] : memref<121xf32, #tpu.memory_space<smem>>
    %1103 = vector.broadcast %1102 : f32 to vector<16x128xf32>
    %1104 = arith.mulf %1103, %1069 : vector<16x128xf32>
    %1105 = arith.addf %1061, %1104 : vector<16x128xf32>
    %c20_92 = arith.constant 20 : index
    %1106 = memref.load %arg5[%c20_92] : memref<121xf32, #tpu.memory_space<smem>>
    %1107 = vector.broadcast %1106 : f32 to vector<16x128xf32>
    %1108 = arith.mulf %1107, %1069 : vector<16x128xf32>
    %1109 = arith.addf %1064, %1108 : vector<16x128xf32>
    %c21_93 = arith.constant 21 : index
    %1110 = memref.load %arg5[%c21_93] : memref<121xf32, #tpu.memory_space<smem>>
    %1111 = vector.broadcast %1110 : f32 to vector<16x128xf32>
    %1112 = arith.mulf %1111, %1069 : vector<16x128xf32>
    %1113 = arith.addf %1067, %1112 : vector<16x128xf32>
    %c30_i32 = arith.constant 30 : i32
    %1114 = tpu.dynamic_rotate %1033 by %c30_i32 dim 0 : vector<32x128xf32>, i32 -> vector<32x128xf32>
    %1115 = vector.extract_strided_slice %1114 {offsets = [0, 0], sizes = [16, 128], strides = [1, 1]} : vector<32x128xf32> to vector<16x128xf32>
    %c22_94 = arith.constant 22 : index
    %1116 = memref.load %arg5[%c22_94] : memref<121xf32, #tpu.memory_space<smem>>
    %1117 = vector.broadcast %1116 : f32 to vector<16x128xf32>
    %1118 = arith.mulf %1117, %1115 : vector<16x128xf32>
    %1119 = arith.addf %1073, %1118 : vector<16x128xf32>
    %c23_95 = arith.constant 23 : index
    %1120 = memref.load %arg5[%c23_95] : memref<121xf32, #tpu.memory_space<smem>>
    %1121 = vector.broadcast %1120 : f32 to vector<16x128xf32>
    %1122 = arith.mulf %1121, %1115 : vector<16x128xf32>
    %1123 = arith.addf %1077, %1122 : vector<16x128xf32>
    %c24_96 = arith.constant 24 : index
    %1124 = memref.load %arg5[%c24_96] : memref<121xf32, #tpu.memory_space<smem>>
    %1125 = vector.broadcast %1124 : f32 to vector<16x128xf32>
    %1126 = arith.mulf %1125, %1115 : vector<16x128xf32>
    %1127 = arith.addf %1081, %1126 : vector<16x128xf32>
    %c25_97 = arith.constant 25 : index
    %1128 = memref.load %arg5[%c25_97] : memref<121xf32, #tpu.memory_space<smem>>
    %1129 = vector.broadcast %1128 : f32 to vector<16x128xf32>
    %1130 = arith.mulf %1129, %1115 : vector<16x128xf32>
    %1131 = arith.addf %1085, %1130 : vector<16x128xf32>
    %c26_98 = arith.constant 26 : index
    %1132 = memref.load %arg5[%c26_98] : memref<121xf32, #tpu.memory_space<smem>>
    %1133 = vector.broadcast %1132 : f32 to vector<16x128xf32>
    %1134 = arith.mulf %1133, %1115 : vector<16x128xf32>
    %1135 = arith.addf %1089, %1134 : vector<16x128xf32>
    %c27_99 = arith.constant 27 : index
    %1136 = memref.load %arg5[%c27_99] : memref<121xf32, #tpu.memory_space<smem>>
    %1137 = vector.broadcast %1136 : f32 to vector<16x128xf32>
    %1138 = arith.mulf %1137, %1115 : vector<16x128xf32>
    %1139 = arith.addf %1093, %1138 : vector<16x128xf32>
    %c28_100 = arith.constant 28 : index
    %1140 = memref.load %arg5[%c28_100] : memref<121xf32, #tpu.memory_space<smem>>
    %1141 = vector.broadcast %1140 : f32 to vector<16x128xf32>
    %1142 = arith.mulf %1141, %1115 : vector<16x128xf32>
    %1143 = arith.addf %1097, %1142 : vector<16x128xf32>
    %c29_101 = arith.constant 29 : index
    %1144 = memref.load %arg5[%c29_101] : memref<121xf32, #tpu.memory_space<smem>>
    %1145 = vector.broadcast %1144 : f32 to vector<16x128xf32>
    %1146 = arith.mulf %1145, %1115 : vector<16x128xf32>
    %1147 = arith.addf %1101, %1146 : vector<16x128xf32>
    %c30_102 = arith.constant 30 : index
    %1148 = memref.load %arg5[%c30_102] : memref<121xf32, #tpu.memory_space<smem>>
    %1149 = vector.broadcast %1148 : f32 to vector<16x128xf32>
    %1150 = arith.mulf %1149, %1115 : vector<16x128xf32>
    %1151 = arith.addf %1105, %1150 : vector<16x128xf32>
    %c31_103 = arith.constant 31 : index
    %1152 = memref.load %arg5[%c31_103] : memref<121xf32, #tpu.memory_space<smem>>
    %1153 = vector.broadcast %1152 : f32 to vector<16x128xf32>
    %1154 = arith.mulf %1153, %1115 : vector<16x128xf32>
    %1155 = arith.addf %1109, %1154 : vector<16x128xf32>
    %c32_104 = arith.constant 32 : index
    %1156 = memref.load %arg5[%c32_104] : memref<121xf32, #tpu.memory_space<smem>>
    %1157 = vector.broadcast %1156 : f32 to vector<16x128xf32>
    %1158 = arith.mulf %1157, %1115 : vector<16x128xf32>
    %1159 = arith.addf %1113, %1158 : vector<16x128xf32>
    %c29_i32 = arith.constant 29 : i32
    %1160 = tpu.dynamic_rotate %1033 by %c29_i32 dim 0 : vector<32x128xf32>, i32 -> vector<32x128xf32>
    %1161 = vector.extract_strided_slice %1160 {offsets = [0, 0], sizes = [16, 128], strides = [1, 1]} : vector<32x128xf32> to vector<16x128xf32>
    %c33_105 = arith.constant 33 : index
    %1162 = memref.load %arg5[%c33_105] : memref<121xf32, #tpu.memory_space<smem>>
    %1163 = vector.broadcast %1162 : f32 to vector<16x128xf32>
    %1164 = arith.mulf %1163, %1161 : vector<16x128xf32>
    %1165 = arith.addf %1119, %1164 : vector<16x128xf32>
    %c34_106 = arith.constant 34 : index
    %1166 = memref.load %arg5[%c34_106] : memref<121xf32, #tpu.memory_space<smem>>
    %1167 = vector.broadcast %1166 : f32 to vector<16x128xf32>
    %1168 = arith.mulf %1167, %1161 : vector<16x128xf32>
    %1169 = arith.addf %1123, %1168 : vector<16x128xf32>
    %c35_107 = arith.constant 35 : index
    %1170 = memref.load %arg5[%c35_107] : memref<121xf32, #tpu.memory_space<smem>>
    %1171 = vector.broadcast %1170 : f32 to vector<16x128xf32>
    %1172 = arith.mulf %1171, %1161 : vector<16x128xf32>
    %1173 = arith.addf %1127, %1172 : vector<16x128xf32>
    %c36_108 = arith.constant 36 : index
    %1174 = memref.load %arg5[%c36_108] : memref<121xf32, #tpu.memory_space<smem>>
    %1175 = vector.broadcast %1174 : f32 to vector<16x128xf32>
    %1176 = arith.mulf %1175, %1161 : vector<16x128xf32>
    %1177 = arith.addf %1131, %1176 : vector<16x128xf32>
    %c37_109 = arith.constant 37 : index
    %1178 = memref.load %arg5[%c37_109] : memref<121xf32, #tpu.memory_space<smem>>
    %1179 = vector.broadcast %1178 : f32 to vector<16x128xf32>
    %1180 = arith.mulf %1179, %1161 : vector<16x128xf32>
    %1181 = arith.addf %1135, %1180 : vector<16x128xf32>
    %c38_110 = arith.constant 38 : index
    %1182 = memref.load %arg5[%c38_110] : memref<121xf32, #tpu.memory_space<smem>>
    %1183 = vector.broadcast %1182 : f32 to vector<16x128xf32>
    %1184 = arith.mulf %1183, %1161 : vector<16x128xf32>
    %1185 = arith.addf %1139, %1184 : vector<16x128xf32>
    %c39_111 = arith.constant 39 : index
    %1186 = memref.load %arg5[%c39_111] : memref<121xf32, #tpu.memory_space<smem>>
    %1187 = vector.broadcast %1186 : f32 to vector<16x128xf32>
    %1188 = arith.mulf %1187, %1161 : vector<16x128xf32>
    %1189 = arith.addf %1143, %1188 : vector<16x128xf32>
    %c40_112 = arith.constant 40 : index
    %1190 = memref.load %arg5[%c40_112] : memref<121xf32, #tpu.memory_space<smem>>
    %1191 = vector.broadcast %1190 : f32 to vector<16x128xf32>
    %1192 = arith.mulf %1191, %1161 : vector<16x128xf32>
    %1193 = arith.addf %1147, %1192 : vector<16x128xf32>
    %c41_113 = arith.constant 41 : index
    %1194 = memref.load %arg5[%c41_113] : memref<121xf32, #tpu.memory_space<smem>>
    %1195 = vector.broadcast %1194 : f32 to vector<16x128xf32>
    %1196 = arith.mulf %1195, %1161 : vector<16x128xf32>
    %1197 = arith.addf %1151, %1196 : vector<16x128xf32>
    %c42_114 = arith.constant 42 : index
    %1198 = memref.load %arg5[%c42_114] : memref<121xf32, #tpu.memory_space<smem>>
    %1199 = vector.broadcast %1198 : f32 to vector<16x128xf32>
    %1200 = arith.mulf %1199, %1161 : vector<16x128xf32>
    %1201 = arith.addf %1155, %1200 : vector<16x128xf32>
    %c43_115 = arith.constant 43 : index
    %1202 = memref.load %arg5[%c43_115] : memref<121xf32, #tpu.memory_space<smem>>
    %1203 = vector.broadcast %1202 : f32 to vector<16x128xf32>
    %1204 = arith.mulf %1203, %1161 : vector<16x128xf32>
    %1205 = arith.addf %1159, %1204 : vector<16x128xf32>
    %c28_i32 = arith.constant 28 : i32
    %1206 = tpu.dynamic_rotate %1033 by %c28_i32 dim 0 : vector<32x128xf32>, i32 -> vector<32x128xf32>
    %1207 = vector.extract_strided_slice %1206 {offsets = [0, 0], sizes = [16, 128], strides = [1, 1]} : vector<32x128xf32> to vector<16x128xf32>
    %c44_116 = arith.constant 44 : index
    %1208 = memref.load %arg5[%c44_116] : memref<121xf32, #tpu.memory_space<smem>>
    %1209 = vector.broadcast %1208 : f32 to vector<16x128xf32>
    %1210 = arith.mulf %1209, %1207 : vector<16x128xf32>
    %1211 = arith.addf %1165, %1210 : vector<16x128xf32>
    %c45_117 = arith.constant 45 : index
    %1212 = memref.load %arg5[%c45_117] : memref<121xf32, #tpu.memory_space<smem>>
    %1213 = vector.broadcast %1212 : f32 to vector<16x128xf32>
    %1214 = arith.mulf %1213, %1207 : vector<16x128xf32>
    %1215 = arith.addf %1169, %1214 : vector<16x128xf32>
    %c46_118 = arith.constant 46 : index
    %1216 = memref.load %arg5[%c46_118] : memref<121xf32, #tpu.memory_space<smem>>
    %1217 = vector.broadcast %1216 : f32 to vector<16x128xf32>
    %1218 = arith.mulf %1217, %1207 : vector<16x128xf32>
    %1219 = arith.addf %1173, %1218 : vector<16x128xf32>
    %c47_119 = arith.constant 47 : index
    %1220 = memref.load %arg5[%c47_119] : memref<121xf32, #tpu.memory_space<smem>>
    %1221 = vector.broadcast %1220 : f32 to vector<16x128xf32>
    %1222 = arith.mulf %1221, %1207 : vector<16x128xf32>
    %1223 = arith.addf %1177, %1222 : vector<16x128xf32>
    %c48_120 = arith.constant 48 : index
    %1224 = memref.load %arg5[%c48_120] : memref<121xf32, #tpu.memory_space<smem>>
    %1225 = vector.broadcast %1224 : f32 to vector<16x128xf32>
    %1226 = arith.mulf %1225, %1207 : vector<16x128xf32>
    %1227 = arith.addf %1181, %1226 : vector<16x128xf32>
    %c49_121 = arith.constant 49 : index
    %1228 = memref.load %arg5[%c49_121] : memref<121xf32, #tpu.memory_space<smem>>
    %1229 = vector.broadcast %1228 : f32 to vector<16x128xf32>
    %1230 = arith.mulf %1229, %1207 : vector<16x128xf32>
    %1231 = arith.addf %1185, %1230 : vector<16x128xf32>
    %c50_122 = arith.constant 50 : index
    %1232 = memref.load %arg5[%c50_122] : memref<121xf32, #tpu.memory_space<smem>>
    %1233 = vector.broadcast %1232 : f32 to vector<16x128xf32>
    %1234 = arith.mulf %1233, %1207 : vector<16x128xf32>
    %1235 = arith.addf %1189, %1234 : vector<16x128xf32>
    %c51_123 = arith.constant 51 : index
    %1236 = memref.load %arg5[%c51_123] : memref<121xf32, #tpu.memory_space<smem>>
    %1237 = vector.broadcast %1236 : f32 to vector<16x128xf32>
    %1238 = arith.mulf %1237, %1207 : vector<16x128xf32>
    %1239 = arith.addf %1193, %1238 : vector<16x128xf32>
    %c52_124 = arith.constant 52 : index
    %1240 = memref.load %arg5[%c52_124] : memref<121xf32, #tpu.memory_space<smem>>
    %1241 = vector.broadcast %1240 : f32 to vector<16x128xf32>
    %1242 = arith.mulf %1241, %1207 : vector<16x128xf32>
    %1243 = arith.addf %1197, %1242 : vector<16x128xf32>
    %c53_125 = arith.constant 53 : index
    %1244 = memref.load %arg5[%c53_125] : memref<121xf32, #tpu.memory_space<smem>>
    %1245 = vector.broadcast %1244 : f32 to vector<16x128xf32>
    %1246 = arith.mulf %1245, %1207 : vector<16x128xf32>
    %1247 = arith.addf %1201, %1246 : vector<16x128xf32>
    %c54_126 = arith.constant 54 : index
    %1248 = memref.load %arg5[%c54_126] : memref<121xf32, #tpu.memory_space<smem>>
    %1249 = vector.broadcast %1248 : f32 to vector<16x128xf32>
    %1250 = arith.mulf %1249, %1207 : vector<16x128xf32>
    %1251 = arith.addf %1205, %1250 : vector<16x128xf32>
    %c27_i32 = arith.constant 27 : i32
    %1252 = tpu.dynamic_rotate %1033 by %c27_i32 dim 0 : vector<32x128xf32>, i32 -> vector<32x128xf32>
    %1253 = vector.extract_strided_slice %1252 {offsets = [0, 0], sizes = [16, 128], strides = [1, 1]} : vector<32x128xf32> to vector<16x128xf32>
    %c55_127 = arith.constant 55 : index
    %1254 = memref.load %arg5[%c55_127] : memref<121xf32, #tpu.memory_space<smem>>
    %1255 = vector.broadcast %1254 : f32 to vector<16x128xf32>
    %1256 = arith.mulf %1255, %1253 : vector<16x128xf32>
    %1257 = arith.addf %1211, %1256 : vector<16x128xf32>
    %c56_128 = arith.constant 56 : index
    %1258 = memref.load %arg5[%c56_128] : memref<121xf32, #tpu.memory_space<smem>>
    %1259 = vector.broadcast %1258 : f32 to vector<16x128xf32>
    %1260 = arith.mulf %1259, %1253 : vector<16x128xf32>
    %1261 = arith.addf %1215, %1260 : vector<16x128xf32>
    %c57_129 = arith.constant 57 : index
    %1262 = memref.load %arg5[%c57_129] : memref<121xf32, #tpu.memory_space<smem>>
    %1263 = vector.broadcast %1262 : f32 to vector<16x128xf32>
    %1264 = arith.mulf %1263, %1253 : vector<16x128xf32>
    %1265 = arith.addf %1219, %1264 : vector<16x128xf32>
    %c58_130 = arith.constant 58 : index
    %1266 = memref.load %arg5[%c58_130] : memref<121xf32, #tpu.memory_space<smem>>
    %1267 = vector.broadcast %1266 : f32 to vector<16x128xf32>
    %1268 = arith.mulf %1267, %1253 : vector<16x128xf32>
    %1269 = arith.addf %1223, %1268 : vector<16x128xf32>
    %c59_131 = arith.constant 59 : index
    %1270 = memref.load %arg5[%c59_131] : memref<121xf32, #tpu.memory_space<smem>>
    %1271 = vector.broadcast %1270 : f32 to vector<16x128xf32>
    %1272 = arith.mulf %1271, %1253 : vector<16x128xf32>
    %1273 = arith.addf %1227, %1272 : vector<16x128xf32>
    %c60_132 = arith.constant 60 : index
    %1274 = memref.load %arg5[%c60_132] : memref<121xf32, #tpu.memory_space<smem>>
    %1275 = vector.broadcast %1274 : f32 to vector<16x128xf32>
    %1276 = arith.mulf %1275, %1253 : vector<16x128xf32>
    %1277 = arith.addf %1231, %1276 : vector<16x128xf32>
    %c61_133 = arith.constant 61 : index
    %1278 = memref.load %arg5[%c61_133] : memref<121xf32, #tpu.memory_space<smem>>
    %1279 = vector.broadcast %1278 : f32 to vector<16x128xf32>
    %1280 = arith.mulf %1279, %1253 : vector<16x128xf32>
    %1281 = arith.addf %1235, %1280 : vector<16x128xf32>
    %c62_134 = arith.constant 62 : index
    %1282 = memref.load %arg5[%c62_134] : memref<121xf32, #tpu.memory_space<smem>>
    %1283 = vector.broadcast %1282 : f32 to vector<16x128xf32>
    %1284 = arith.mulf %1283, %1253 : vector<16x128xf32>
    %1285 = arith.addf %1239, %1284 : vector<16x128xf32>
    %c63_135 = arith.constant 63 : index
    %1286 = memref.load %arg5[%c63_135] : memref<121xf32, #tpu.memory_space<smem>>
    %1287 = vector.broadcast %1286 : f32 to vector<16x128xf32>
    %1288 = arith.mulf %1287, %1253 : vector<16x128xf32>
    %1289 = arith.addf %1243, %1288 : vector<16x128xf32>
    %c64_136 = arith.constant 64 : index
    %1290 = memref.load %arg5[%c64_136] : memref<121xf32, #tpu.memory_space<smem>>
    %1291 = vector.broadcast %1290 : f32 to vector<16x128xf32>
    %1292 = arith.mulf %1291, %1253 : vector<16x128xf32>
    %1293 = arith.addf %1247, %1292 : vector<16x128xf32>
    %c65_137 = arith.constant 65 : index
    %1294 = memref.load %arg5[%c65_137] : memref<121xf32, #tpu.memory_space<smem>>
    %1295 = vector.broadcast %1294 : f32 to vector<16x128xf32>
    %1296 = arith.mulf %1295, %1253 : vector<16x128xf32>
    %1297 = arith.addf %1251, %1296 : vector<16x128xf32>
    %c26_i32 = arith.constant 26 : i32
    %1298 = tpu.dynamic_rotate %1033 by %c26_i32 dim 0 : vector<32x128xf32>, i32 -> vector<32x128xf32>
    %1299 = vector.extract_strided_slice %1298 {offsets = [0, 0], sizes = [16, 128], strides = [1, 1]} : vector<32x128xf32> to vector<16x128xf32>
    %c66_138 = arith.constant 66 : index
    %1300 = memref.load %arg5[%c66_138] : memref<121xf32, #tpu.memory_space<smem>>
    %1301 = vector.broadcast %1300 : f32 to vector<16x128xf32>
    %1302 = arith.mulf %1301, %1299 : vector<16x128xf32>
    %1303 = arith.addf %1257, %1302 : vector<16x128xf32>
    %c67_139 = arith.constant 67 : index
    %1304 = memref.load %arg5[%c67_139] : memref<121xf32, #tpu.memory_space<smem>>
    %1305 = vector.broadcast %1304 : f32 to vector<16x128xf32>
    %1306 = arith.mulf %1305, %1299 : vector<16x128xf32>
    %1307 = arith.addf %1261, %1306 : vector<16x128xf32>
    %c68_140 = arith.constant 68 : index
    %1308 = memref.load %arg5[%c68_140] : memref<121xf32, #tpu.memory_space<smem>>
    %1309 = vector.broadcast %1308 : f32 to vector<16x128xf32>
    %1310 = arith.mulf %1309, %1299 : vector<16x128xf32>
    %1311 = arith.addf %1265, %1310 : vector<16x128xf32>
    %c69_141 = arith.constant 69 : index
    %1312 = memref.load %arg5[%c69_141] : memref<121xf32, #tpu.memory_space<smem>>
    %1313 = vector.broadcast %1312 : f32 to vector<16x128xf32>
    %1314 = arith.mulf %1313, %1299 : vector<16x128xf32>
    %1315 = arith.addf %1269, %1314 : vector<16x128xf32>
    %c70_142 = arith.constant 70 : index
    %1316 = memref.load %arg5[%c70_142] : memref<121xf32, #tpu.memory_space<smem>>
    %1317 = vector.broadcast %1316 : f32 to vector<16x128xf32>
    %1318 = arith.mulf %1317, %1299 : vector<16x128xf32>
    %1319 = arith.addf %1273, %1318 : vector<16x128xf32>
    %c71_143 = arith.constant 71 : index
    %1320 = memref.load %arg5[%c71_143] : memref<121xf32, #tpu.memory_space<smem>>
    %1321 = vector.broadcast %1320 : f32 to vector<16x128xf32>
    %1322 = arith.mulf %1321, %1299 : vector<16x128xf32>
    %1323 = arith.addf %1277, %1322 : vector<16x128xf32>
    %c72_144 = arith.constant 72 : index
    %1324 = memref.load %arg5[%c72_144] : memref<121xf32, #tpu.memory_space<smem>>
    %1325 = vector.broadcast %1324 : f32 to vector<16x128xf32>
    %1326 = arith.mulf %1325, %1299 : vector<16x128xf32>
    %1327 = arith.addf %1281, %1326 : vector<16x128xf32>
    %c73_145 = arith.constant 73 : index
    %1328 = memref.load %arg5[%c73_145] : memref<121xf32, #tpu.memory_space<smem>>
    %1329 = vector.broadcast %1328 : f32 to vector<16x128xf32>
    %1330 = arith.mulf %1329, %1299 : vector<16x128xf32>
    %1331 = arith.addf %1285, %1330 : vector<16x128xf32>
    %c74_146 = arith.constant 74 : index
    %1332 = memref.load %arg5[%c74_146] : memref<121xf32, #tpu.memory_space<smem>>
    %1333 = vector.broadcast %1332 : f32 to vector<16x128xf32>
    %1334 = arith.mulf %1333, %1299 : vector<16x128xf32>
    %1335 = arith.addf %1289, %1334 : vector<16x128xf32>
    %c75_147 = arith.constant 75 : index
    %1336 = memref.load %arg5[%c75_147] : memref<121xf32, #tpu.memory_space<smem>>
    %1337 = vector.broadcast %1336 : f32 to vector<16x128xf32>
    %1338 = arith.mulf %1337, %1299 : vector<16x128xf32>
    %1339 = arith.addf %1293, %1338 : vector<16x128xf32>
    %c76_148 = arith.constant 76 : index
    %1340 = memref.load %arg5[%c76_148] : memref<121xf32, #tpu.memory_space<smem>>
    %1341 = vector.broadcast %1340 : f32 to vector<16x128xf32>
    %1342 = arith.mulf %1341, %1299 : vector<16x128xf32>
    %1343 = arith.addf %1297, %1342 : vector<16x128xf32>
    %c25_i32 = arith.constant 25 : i32
    %1344 = tpu.dynamic_rotate %1033 by %c25_i32 dim 0 : vector<32x128xf32>, i32 -> vector<32x128xf32>
    %1345 = vector.extract_strided_slice %1344 {offsets = [0, 0], sizes = [16, 128], strides = [1, 1]} : vector<32x128xf32> to vector<16x128xf32>
    %c77_149 = arith.constant 77 : index
    %1346 = memref.load %arg5[%c77_149] : memref<121xf32, #tpu.memory_space<smem>>
    %1347 = vector.broadcast %1346 : f32 to vector<16x128xf32>
    %1348 = arith.mulf %1347, %1345 : vector<16x128xf32>
    %1349 = arith.addf %1303, %1348 : vector<16x128xf32>
    %c78_150 = arith.constant 78 : index
    %1350 = memref.load %arg5[%c78_150] : memref<121xf32, #tpu.memory_space<smem>>
    %1351 = vector.broadcast %1350 : f32 to vector<16x128xf32>
    %1352 = arith.mulf %1351, %1345 : vector<16x128xf32>
    %1353 = arith.addf %1307, %1352 : vector<16x128xf32>
    %c79_151 = arith.constant 79 : index
    %1354 = memref.load %arg5[%c79_151] : memref<121xf32, #tpu.memory_space<smem>>
    %1355 = vector.broadcast %1354 : f32 to vector<16x128xf32>
    %1356 = arith.mulf %1355, %1345 : vector<16x128xf32>
    %1357 = arith.addf %1311, %1356 : vector<16x128xf32>
    %c80_152 = arith.constant 80 : index
    %1358 = memref.load %arg5[%c80_152] : memref<121xf32, #tpu.memory_space<smem>>
    %1359 = vector.broadcast %1358 : f32 to vector<16x128xf32>
    %1360 = arith.mulf %1359, %1345 : vector<16x128xf32>
    %1361 = arith.addf %1315, %1360 : vector<16x128xf32>
    %c81_153 = arith.constant 81 : index
    %1362 = memref.load %arg5[%c81_153] : memref<121xf32, #tpu.memory_space<smem>>
    %1363 = vector.broadcast %1362 : f32 to vector<16x128xf32>
    %1364 = arith.mulf %1363, %1345 : vector<16x128xf32>
    %1365 = arith.addf %1319, %1364 : vector<16x128xf32>
    %c82_154 = arith.constant 82 : index
    %1366 = memref.load %arg5[%c82_154] : memref<121xf32, #tpu.memory_space<smem>>
    %1367 = vector.broadcast %1366 : f32 to vector<16x128xf32>
    %1368 = arith.mulf %1367, %1345 : vector<16x128xf32>
    %1369 = arith.addf %1323, %1368 : vector<16x128xf32>
    %c83_155 = arith.constant 83 : index
    %1370 = memref.load %arg5[%c83_155] : memref<121xf32, #tpu.memory_space<smem>>
    %1371 = vector.broadcast %1370 : f32 to vector<16x128xf32>
    %1372 = arith.mulf %1371, %1345 : vector<16x128xf32>
    %1373 = arith.addf %1327, %1372 : vector<16x128xf32>
    %c84_156 = arith.constant 84 : index
    %1374 = memref.load %arg5[%c84_156] : memref<121xf32, #tpu.memory_space<smem>>
    %1375 = vector.broadcast %1374 : f32 to vector<16x128xf32>
    %1376 = arith.mulf %1375, %1345 : vector<16x128xf32>
    %1377 = arith.addf %1331, %1376 : vector<16x128xf32>
    %c85_157 = arith.constant 85 : index
    %1378 = memref.load %arg5[%c85_157] : memref<121xf32, #tpu.memory_space<smem>>
    %1379 = vector.broadcast %1378 : f32 to vector<16x128xf32>
    %1380 = arith.mulf %1379, %1345 : vector<16x128xf32>
    %1381 = arith.addf %1335, %1380 : vector<16x128xf32>
    %c86_158 = arith.constant 86 : index
    %1382 = memref.load %arg5[%c86_158] : memref<121xf32, #tpu.memory_space<smem>>
    %1383 = vector.broadcast %1382 : f32 to vector<16x128xf32>
    %1384 = arith.mulf %1383, %1345 : vector<16x128xf32>
    %1385 = arith.addf %1339, %1384 : vector<16x128xf32>
    %c87_159 = arith.constant 87 : index
    %1386 = memref.load %arg5[%c87_159] : memref<121xf32, #tpu.memory_space<smem>>
    %1387 = vector.broadcast %1386 : f32 to vector<16x128xf32>
    %1388 = arith.mulf %1387, %1345 : vector<16x128xf32>
    %1389 = arith.addf %1343, %1388 : vector<16x128xf32>
    %c24_i32 = arith.constant 24 : i32
    %1390 = tpu.dynamic_rotate %1033 by %c24_i32 dim 0 : vector<32x128xf32>, i32 -> vector<32x128xf32>
    %1391 = vector.extract_strided_slice %1390 {offsets = [0, 0], sizes = [16, 128], strides = [1, 1]} : vector<32x128xf32> to vector<16x128xf32>
    %c88_160 = arith.constant 88 : index
    %1392 = memref.load %arg5[%c88_160] : memref<121xf32, #tpu.memory_space<smem>>
    %1393 = vector.broadcast %1392 : f32 to vector<16x128xf32>
    %1394 = arith.mulf %1393, %1391 : vector<16x128xf32>
    %1395 = arith.addf %1349, %1394 : vector<16x128xf32>
    %c89_161 = arith.constant 89 : index
    %1396 = memref.load %arg5[%c89_161] : memref<121xf32, #tpu.memory_space<smem>>
    %1397 = vector.broadcast %1396 : f32 to vector<16x128xf32>
    %1398 = arith.mulf %1397, %1391 : vector<16x128xf32>
    %1399 = arith.addf %1353, %1398 : vector<16x128xf32>
    %c90_162 = arith.constant 90 : index
    %1400 = memref.load %arg5[%c90_162] : memref<121xf32, #tpu.memory_space<smem>>
    %1401 = vector.broadcast %1400 : f32 to vector<16x128xf32>
    %1402 = arith.mulf %1401, %1391 : vector<16x128xf32>
    %1403 = arith.addf %1357, %1402 : vector<16x128xf32>
    %c91_163 = arith.constant 91 : index
    %1404 = memref.load %arg5[%c91_163] : memref<121xf32, #tpu.memory_space<smem>>
    %1405 = vector.broadcast %1404 : f32 to vector<16x128xf32>
    %1406 = arith.mulf %1405, %1391 : vector<16x128xf32>
    %1407 = arith.addf %1361, %1406 : vector<16x128xf32>
    %c92_164 = arith.constant 92 : index
    %1408 = memref.load %arg5[%c92_164] : memref<121xf32, #tpu.memory_space<smem>>
    %1409 = vector.broadcast %1408 : f32 to vector<16x128xf32>
    %1410 = arith.mulf %1409, %1391 : vector<16x128xf32>
    %1411 = arith.addf %1365, %1410 : vector<16x128xf32>
    %c93_165 = arith.constant 93 : index
    %1412 = memref.load %arg5[%c93_165] : memref<121xf32, #tpu.memory_space<smem>>
    %1413 = vector.broadcast %1412 : f32 to vector<16x128xf32>
    %1414 = arith.mulf %1413, %1391 : vector<16x128xf32>
    %1415 = arith.addf %1369, %1414 : vector<16x128xf32>
    %c94_166 = arith.constant 94 : index
    %1416 = memref.load %arg5[%c94_166] : memref<121xf32, #tpu.memory_space<smem>>
    %1417 = vector.broadcast %1416 : f32 to vector<16x128xf32>
    %1418 = arith.mulf %1417, %1391 : vector<16x128xf32>
    %1419 = arith.addf %1373, %1418 : vector<16x128xf32>
    %c95_167 = arith.constant 95 : index
    %1420 = memref.load %arg5[%c95_167] : memref<121xf32, #tpu.memory_space<smem>>
    %1421 = vector.broadcast %1420 : f32 to vector<16x128xf32>
    %1422 = arith.mulf %1421, %1391 : vector<16x128xf32>
    %1423 = arith.addf %1377, %1422 : vector<16x128xf32>
    %c96_168 = arith.constant 96 : index
    %1424 = memref.load %arg5[%c96_168] : memref<121xf32, #tpu.memory_space<smem>>
    %1425 = vector.broadcast %1424 : f32 to vector<16x128xf32>
    %1426 = arith.mulf %1425, %1391 : vector<16x128xf32>
    %1427 = arith.addf %1381, %1426 : vector<16x128xf32>
    %c97_169 = arith.constant 97 : index
    %1428 = memref.load %arg5[%c97_169] : memref<121xf32, #tpu.memory_space<smem>>
    %1429 = vector.broadcast %1428 : f32 to vector<16x128xf32>
    %1430 = arith.mulf %1429, %1391 : vector<16x128xf32>
    %1431 = arith.addf %1385, %1430 : vector<16x128xf32>
    %c98_170 = arith.constant 98 : index
    %1432 = memref.load %arg5[%c98_170] : memref<121xf32, #tpu.memory_space<smem>>
    %1433 = vector.broadcast %1432 : f32 to vector<16x128xf32>
    %1434 = arith.mulf %1433, %1391 : vector<16x128xf32>
    %1435 = arith.addf %1389, %1434 : vector<16x128xf32>
    %c23_i32 = arith.constant 23 : i32
    %1436 = tpu.dynamic_rotate %1033 by %c23_i32 dim 0 : vector<32x128xf32>, i32 -> vector<32x128xf32>
    %1437 = vector.extract_strided_slice %1436 {offsets = [0, 0], sizes = [16, 128], strides = [1, 1]} : vector<32x128xf32> to vector<16x128xf32>
    %c99_171 = arith.constant 99 : index
    %1438 = memref.load %arg5[%c99_171] : memref<121xf32, #tpu.memory_space<smem>>
    %1439 = vector.broadcast %1438 : f32 to vector<16x128xf32>
    %1440 = arith.mulf %1439, %1437 : vector<16x128xf32>
    %1441 = arith.addf %1395, %1440 : vector<16x128xf32>
    %c100_172 = arith.constant 100 : index
    %1442 = memref.load %arg5[%c100_172] : memref<121xf32, #tpu.memory_space<smem>>
    %1443 = vector.broadcast %1442 : f32 to vector<16x128xf32>
    %1444 = arith.mulf %1443, %1437 : vector<16x128xf32>
    %1445 = arith.addf %1399, %1444 : vector<16x128xf32>
    %c101_173 = arith.constant 101 : index
    %1446 = memref.load %arg5[%c101_173] : memref<121xf32, #tpu.memory_space<smem>>
    %1447 = vector.broadcast %1446 : f32 to vector<16x128xf32>
    %1448 = arith.mulf %1447, %1437 : vector<16x128xf32>
    %1449 = arith.addf %1403, %1448 : vector<16x128xf32>
    %c102_174 = arith.constant 102 : index
    %1450 = memref.load %arg5[%c102_174] : memref<121xf32, #tpu.memory_space<smem>>
    %1451 = vector.broadcast %1450 : f32 to vector<16x128xf32>
    %1452 = arith.mulf %1451, %1437 : vector<16x128xf32>
    %1453 = arith.addf %1407, %1452 : vector<16x128xf32>
    %c103_175 = arith.constant 103 : index
    %1454 = memref.load %arg5[%c103_175] : memref<121xf32, #tpu.memory_space<smem>>
    %1455 = vector.broadcast %1454 : f32 to vector<16x128xf32>
    %1456 = arith.mulf %1455, %1437 : vector<16x128xf32>
    %1457 = arith.addf %1411, %1456 : vector<16x128xf32>
    %c104_176 = arith.constant 104 : index
    %1458 = memref.load %arg5[%c104_176] : memref<121xf32, #tpu.memory_space<smem>>
    %1459 = vector.broadcast %1458 : f32 to vector<16x128xf32>
    %1460 = arith.mulf %1459, %1437 : vector<16x128xf32>
    %1461 = arith.addf %1415, %1460 : vector<16x128xf32>
    %c105_177 = arith.constant 105 : index
    %1462 = memref.load %arg5[%c105_177] : memref<121xf32, #tpu.memory_space<smem>>
    %1463 = vector.broadcast %1462 : f32 to vector<16x128xf32>
    %1464 = arith.mulf %1463, %1437 : vector<16x128xf32>
    %1465 = arith.addf %1419, %1464 : vector<16x128xf32>
    %c106_178 = arith.constant 106 : index
    %1466 = memref.load %arg5[%c106_178] : memref<121xf32, #tpu.memory_space<smem>>
    %1467 = vector.broadcast %1466 : f32 to vector<16x128xf32>
    %1468 = arith.mulf %1467, %1437 : vector<16x128xf32>
    %1469 = arith.addf %1423, %1468 : vector<16x128xf32>
    %c107_179 = arith.constant 107 : index
    %1470 = memref.load %arg5[%c107_179] : memref<121xf32, #tpu.memory_space<smem>>
    %1471 = vector.broadcast %1470 : f32 to vector<16x128xf32>
    %1472 = arith.mulf %1471, %1437 : vector<16x128xf32>
    %1473 = arith.addf %1427, %1472 : vector<16x128xf32>
    %c108_180 = arith.constant 108 : index
    %1474 = memref.load %arg5[%c108_180] : memref<121xf32, #tpu.memory_space<smem>>
    %1475 = vector.broadcast %1474 : f32 to vector<16x128xf32>
    %1476 = arith.mulf %1475, %1437 : vector<16x128xf32>
    %1477 = arith.addf %1431, %1476 : vector<16x128xf32>
    %c109_181 = arith.constant 109 : index
    %1478 = memref.load %arg5[%c109_181] : memref<121xf32, #tpu.memory_space<smem>>
    %1479 = vector.broadcast %1478 : f32 to vector<16x128xf32>
    %1480 = arith.mulf %1479, %1437 : vector<16x128xf32>
    %1481 = arith.addf %1435, %1480 : vector<16x128xf32>
    %c22_i32 = arith.constant 22 : i32
    %1482 = tpu.dynamic_rotate %1033 by %c22_i32 dim 0 : vector<32x128xf32>, i32 -> vector<32x128xf32>
    %1483 = vector.extract_strided_slice %1482 {offsets = [0, 0], sizes = [16, 128], strides = [1, 1]} : vector<32x128xf32> to vector<16x128xf32>
    %c110_182 = arith.constant 110 : index
    %1484 = memref.load %arg5[%c110_182] : memref<121xf32, #tpu.memory_space<smem>>
    %1485 = vector.broadcast %1484 : f32 to vector<16x128xf32>
    %1486 = arith.mulf %1485, %1483 : vector<16x128xf32>
    %1487 = arith.addf %1441, %1486 : vector<16x128xf32>
    %c111_183 = arith.constant 111 : index
    %1488 = memref.load %arg5[%c111_183] : memref<121xf32, #tpu.memory_space<smem>>
    %1489 = vector.broadcast %1488 : f32 to vector<16x128xf32>
    %1490 = arith.mulf %1489, %1483 : vector<16x128xf32>
    %1491 = arith.addf %1445, %1490 : vector<16x128xf32>
    %c112_184 = arith.constant 112 : index
    %1492 = memref.load %arg5[%c112_184] : memref<121xf32, #tpu.memory_space<smem>>
    %1493 = vector.broadcast %1492 : f32 to vector<16x128xf32>
    %1494 = arith.mulf %1493, %1483 : vector<16x128xf32>
    %1495 = arith.addf %1449, %1494 : vector<16x128xf32>
    %c113_185 = arith.constant 113 : index
    %1496 = memref.load %arg5[%c113_185] : memref<121xf32, #tpu.memory_space<smem>>
    %1497 = vector.broadcast %1496 : f32 to vector<16x128xf32>
    %1498 = arith.mulf %1497, %1483 : vector<16x128xf32>
    %1499 = arith.addf %1453, %1498 : vector<16x128xf32>
    %c114_186 = arith.constant 114 : index
    %1500 = memref.load %arg5[%c114_186] : memref<121xf32, #tpu.memory_space<smem>>
    %1501 = vector.broadcast %1500 : f32 to vector<16x128xf32>
    %1502 = arith.mulf %1501, %1483 : vector<16x128xf32>
    %1503 = arith.addf %1457, %1502 : vector<16x128xf32>
    %c115_187 = arith.constant 115 : index
    %1504 = memref.load %arg5[%c115_187] : memref<121xf32, #tpu.memory_space<smem>>
    %1505 = vector.broadcast %1504 : f32 to vector<16x128xf32>
    %1506 = arith.mulf %1505, %1483 : vector<16x128xf32>
    %1507 = arith.addf %1461, %1506 : vector<16x128xf32>
    %c116_188 = arith.constant 116 : index
    %1508 = memref.load %arg5[%c116_188] : memref<121xf32, #tpu.memory_space<smem>>
    %1509 = vector.broadcast %1508 : f32 to vector<16x128xf32>
    %1510 = arith.mulf %1509, %1483 : vector<16x128xf32>
    %1511 = arith.addf %1465, %1510 : vector<16x128xf32>
    %c117_189 = arith.constant 117 : index
    %1512 = memref.load %arg5[%c117_189] : memref<121xf32, #tpu.memory_space<smem>>
    %1513 = vector.broadcast %1512 : f32 to vector<16x128xf32>
    %1514 = arith.mulf %1513, %1483 : vector<16x128xf32>
    %1515 = arith.addf %1469, %1514 : vector<16x128xf32>
    %c118_190 = arith.constant 118 : index
    %1516 = memref.load %arg5[%c118_190] : memref<121xf32, #tpu.memory_space<smem>>
    %1517 = vector.broadcast %1516 : f32 to vector<16x128xf32>
    %1518 = arith.mulf %1517, %1483 : vector<16x128xf32>
    %1519 = arith.addf %1473, %1518 : vector<16x128xf32>
    %c119_191 = arith.constant 119 : index
    %1520 = memref.load %arg5[%c119_191] : memref<121xf32, #tpu.memory_space<smem>>
    %1521 = vector.broadcast %1520 : f32 to vector<16x128xf32>
    %1522 = arith.mulf %1521, %1483 : vector<16x128xf32>
    %1523 = arith.addf %1477, %1522 : vector<16x128xf32>
    %c120_192 = arith.constant 120 : index
    %1524 = memref.load %arg5[%c120_192] : memref<121xf32, #tpu.memory_space<smem>>
    %1525 = vector.broadcast %1524 : f32 to vector<16x128xf32>
    %1526 = arith.mulf %1525, %1483 : vector<16x128xf32>
    %1527 = arith.addf %1481, %1526 : vector<16x128xf32>
    %c5_i32_193 = arith.constant 5 : i32
    %1528 = tpu.dynamic_rotate %1487 by %c5_i32_193 dim 1 : vector<16x128xf32>, i32 -> vector<16x128xf32>
    %c4_i32_194 = arith.constant 4 : i32
    %1529 = tpu.dynamic_rotate %1491 by %c4_i32_194 dim 1 : vector<16x128xf32>, i32 -> vector<16x128xf32>
    %c3_i32_195 = arith.constant 3 : i32
    %1530 = tpu.dynamic_rotate %1495 by %c3_i32_195 dim 1 : vector<16x128xf32>, i32 -> vector<16x128xf32>
    %c2_i32_196 = arith.constant 2 : i32
    %1531 = tpu.dynamic_rotate %1499 by %c2_i32_196 dim 1 : vector<16x128xf32>, i32 -> vector<16x128xf32>
    %c1_i32_197 = arith.constant 1 : i32
    %1532 = tpu.dynamic_rotate %1503 by %c1_i32_197 dim 1 : vector<16x128xf32>, i32 -> vector<16x128xf32>
    %c127_i32_198 = arith.constant 127 : i32
    %1533 = tpu.dynamic_rotate %1511 by %c127_i32_198 dim 1 : vector<16x128xf32>, i32 -> vector<16x128xf32>
    %c126_i32_199 = arith.constant 126 : i32
    %1534 = tpu.dynamic_rotate %1515 by %c126_i32_199 dim 1 : vector<16x128xf32>, i32 -> vector<16x128xf32>
    %c125_i32_200 = arith.constant 125 : i32
    %1535 = tpu.dynamic_rotate %1519 by %c125_i32_200 dim 1 : vector<16x128xf32>, i32 -> vector<16x128xf32>
    %c124_i32_201 = arith.constant 124 : i32
    %1536 = tpu.dynamic_rotate %1523 by %c124_i32_201 dim 1 : vector<16x128xf32>, i32 -> vector<16x128xf32>
    %c123_i32_202 = arith.constant 123 : i32
    %1537 = tpu.dynamic_rotate %1527 by %c123_i32_202 dim 1 : vector<16x128xf32>, i32 -> vector<16x128xf32>
    %1538 = arith.addf %1528, %1529 : vector<16x128xf32>
    %1539 = arith.addf %1530, %1531 : vector<16x128xf32>
    %1540 = arith.addf %1532, %1507 : vector<16x128xf32>
    %1541 = arith.addf %1533, %1534 : vector<16x128xf32>
    %1542 = arith.addf %1535, %1536 : vector<16x128xf32>
    %1543 = arith.addf %1538, %1539 : vector<16x128xf32>
    %1544 = arith.addf %1540, %1541 : vector<16x128xf32>
    %1545 = arith.addf %1542, %1537 : vector<16x128xf32>
    %1546 = arith.addf %1543, %1544 : vector<16x128xf32>
    %1547 = arith.addf %1546, %1545 : vector<16x128xf32>
    %c0_203 = arith.constant 0 : index
    %1548 = memref.load %arg6[%c0_203] : memref<1xf32, #tpu.memory_space<smem>>
    %1549 = vector.broadcast %1548 : f32 to vector<16x128xf32>
    %1550 = arith.addf %1547, %1549 : vector<16x128xf32>
    %cst_204 = arith.constant 0.000000e+00 : f32
    %1551 = vector.broadcast %cst_204 : f32 to vector<16x128xf32>
    %1552 = arith.cmpf oge, %1550, %1551 : vector<16x128xf32>
    %cst_205 = arith.constant 2.000000e-01 : f32
    %1553 = vector.broadcast %cst_205 : f32 to vector<16x128xf32>
    %1554 = arith.mulf %1553, %1550 : vector<16x128xf32>
    %1555 = arith.select %1552, %1550, %1554 : vector<16x128xi1>, vector<16x128xf32>
    %c0_206 = arith.constant 0 : index
    %c0_207 = arith.constant 0 : index
    %1556 = vector.load %arg7[%c0_206, %c0_207] : memref<16x128xf32, #tpu.memory_space<vmem>>, vector<16x128xf32>
    tpu.vector_store %arg7[%c0_206, %c0_207], %1555 {strides = array<i32>} : memref<16x128xf32, #tpu.memory_space<vmem>>, vector<16x128xf32>,
    return
  }
  func.func @transform_0(%arg0: i32) -> (i32, i32, i32) {
    %c0_i32 = arith.constant 0 : i32
    %c0_i32_0 = arith.constant 0 : i32
    %c0_i32_1 = arith.constant 0 : i32
    %c0_i32_2 = arith.constant 0 : i32
    return %c0_i32, %c0_i32_0, %c0_i32_1 : i32, i32, i32
  }
  func.func @transform_1(%arg0: i32) -> (i32, i32) {
    %c0_i32 = arith.constant 0 : i32
    %c0_i32_0 = arith.constant 0 : i32
    %c0_i32_1 = arith.constant 0 : i32
    return %c0_i32, %c0_i32_0 : i32, i32
  }
  func.func @transform_2(%arg0: i32) -> i32 {
    %c0_i32 = arith.constant 0 : i32
    %c0_i32_0 = arith.constant 0 : i32
    return %c0_i32 : i32
  }
  func.func @transform_3(%arg0: i32) -> i32 {
    %c0_i32 = arith.constant 0 : i32
    %c0_i32_0 = arith.constant 0 : i32
    return %c0_i32 : i32
  }
  func.func @transform_4(%arg0: i32) -> i32 {
    %c0_i32 = arith.constant 0 : i32
    %c0_i32_0 = arith.constant 0 : i32
    return %c0_i32 : i32
  }
  func.func @transform_5(%arg0: i32) -> i32 {
    %c0_i32 = arith.constant 0 : i32
    %c0_i32_0 = arith.constant 0 : i32
    return %c0_i32 : i32
  }
  func.func @transform_6(%arg0: i32) -> (i32, i32) {
    %c0_i32 = arith.constant 0 : i32
    %c0_i32_0 = arith.constant 0 : i32
    %c0_i32_1 = arith.constant 0 : i32
    return %c0_i32, %c0_i32_0 : i32, i32
  }
}

</mosaic_0001>

<bundles_post_ra>
// kernel: tpu_custom_call.1
= control target key start
LH: loop header
LB: loop body
LE: loop exit
PB: predicated region body
PF: predicated region fallthrough
CT: control target
= control target key end

     0   :  { %s6763_s0 = inlined_call_operand.hbm [shape: f32[2,32,128], index: 0, kind: input, shape index: {}]   ;;  %s6764_s1 = inlined_call_operand.hbm [shape: f32[16,128], index: 1, kind: input, shape index: {}]   ;;  %s6765_s2 = inlined_call_operand.vmem [shape: f32[242], index: 2, kind: input, shape index: {}]   ;;  %s6766_s3 = inlined_call_operand.<no memory space> [shape: f32[1], index: 3, kind: input, shape index: {}]   ;;  %s6767_s4 = inlined_call_operand.vmem [shape: f32[121], index: 4, kind: input, shape index: {}]   ;;  %s6768_s5 = inlined_call_operand.<no memory space> [shape: f32[1], index: 5, kind: input, shape index: {}]   ;;  %s6769_s6 = inlined_call_operand.hbm [shape: f32[16,128], index: 6, kind: output, shape index: {}]  }
   0x1   :  { %7088 = sst [smem:[#allocation157_spill]] %s6766_s3 }
   0x2   :  { %7089 = sst [smem:[#allocation158_spill]] %s6768_s5 }
   0x3   :  { %7090 = sst [smem:[#allocation159_spill]] %s6769_s6 }
   0x4   :  { %13 = vsyncpa [#allocation5], 0 }
   0x5   :  { %14 = vsyncpa [#allocation9], 0 }
   0x6   :  { %15 = vsyncpa [#allocation7], 0 }
   0x7   :  { %16 = vsyncpa [#allocation12], 0 }
   0x8   :  { %17 = vsyncpa [#allocation6], 0  ;;  %s3035_s21 = smov [#allocation4]   ;;  %s2935_s25 = scalar_lea.hbm %s6763_s0, 1024 }
   0x9   :  { %s23_s22 = sshll.u32 %s3035_s21, 4  ;;  %p2936_p0 = scmp.ne.s32.totalorder %s6763_s0, %s2935_s25  ;;  %s24_s22 = int_to_ptr.vmem [resolvable:$true] %s23_s22 }
   0xa   :  { %p2939_p1 = scmp.lt.u32.totalorder %s2935_s25, %s6763_s0 }
   0xc   :  { %p2941_p2 = pnand %p2939_p1, %p2936_p0 }
   0xe   :  { %2944 = shalt.err (!%p2941_p2)
}
   0xf   :  { %s2945_s30 = scalar_lea.vmem %s24_s22, 1024  ;;  %p2950_p4 = scmp.lt.s32.totalorder %s24_s22, %s24_s22 }
  0x10   :  { %p2946_p3 = scmp.ne.s32.totalorder %s24_s22, %s2945_s30  ;;  %p2951_p5 = scmp.lt.s32.totalorder %s2945_s30, %s2945_s30 }
  0x12   :  { %p2952_p6 = por %p2951_p5, %p2950_p4 }
  0x14   :  { %p2953_p7 = pnand %p2952_p6, %p2946_p3 }
  0x16   :  { %2956 = shalt.err (!%p2953_p7)
}
  0x17   :  { %s6817_s7 = smov 128   ;;  %s6818_s8 = smov 8  }
  0x18   :  { %29 = dma.hbm_to_vmem [thread:$0]  %s6763_s0, 1024, %s24_s22, [#allocation5], %s6817_s7, %s6817_s7, %s6818_s8  }
  0x19   :  { %s3038_s11 = smov [#allocation8]   ;;  %s48_s15 = sshll.u32 %s6765_s2, 4  ;;  %s49_s15 = int_to_ptr.vmem [resolvable:$true] %s48_s15 }
  0x1a   :  { %s35_s12 = sshll.u32 %s3038_s11, 4  ;;  %s2957_s18 = scalar_lea.hbm %s6764_s1, 256  ;;  %s36_s12 = int_to_ptr.vmem [resolvable:$true] %s35_s12 }
  0x1b   :  { %p2958_p8 = scmp.ne.s32.totalorder %s6764_s1, %s2957_s18  ;;  %p2961_p9 = scmp.lt.u32.totalorder %s2957_s18, %s6764_s1 }
  0x1d   :  { %p2963_p10 = pnand %p2961_p9, %p2958_p8 }
  0x1f   :  { %2966 = shalt.err (!%p2963_p10)
}
  0x20   :  { %s2967_s0 = scalar_lea.vmem %s36_s12, 256  ;;  %p2972_p12 = scmp.lt.s32.totalorder %s36_s12, %s36_s12 }
  0x21   :  { %p2968_p11 = scmp.ne.s32.totalorder %s36_s12, %s2967_s0  ;;  %p2973_p13 = scmp.lt.s32.totalorder %s2967_s0, %s2967_s0 }
  0x23   :  { %p2974_p0 = por %p2973_p13, %p2972_p12 }
  0x25   :  { %p2975_p1 = pnand %p2974_p0, %p2968_p11 }
  0x27   :  { %2978 = shalt.err (!%p2975_p1)
}
  0x28   :  { %41 = dma.hbm_to_vmem [thread:$0]  %s6764_s1, 256, %s36_s12, [#allocation9], %s6817_s7, %s6817_s7, %s6818_s8  }
  0x29   :  { %s60_s26 = sshll.u32 %s6767_s4, 4  ;;  %s2979_s27 = scalar_lea.vmem %s49_s15, 32  ;;  %s61_s26 = int_to_ptr.vmem [resolvable:$true] %s60_s26 }
  0x2a   :  { %p2980_p2 = scmp.ne.s32.totalorder %s49_s15, %s2979_s27  ;;  %p2984_p3 = scmp.lt.s32.totalorder %s49_s15, %s49_s15 }
  0x2b   :  { %p2985_p4 = scmp.lt.s32.totalorder %s2979_s27, %s2979_s27 }
  0x2d   :  { %p2986_p5 = por %p2985_p4, %p2984_p3 }
  0x2f   :  { %p2987_p6 = pnand %p2986_p5, %p2980_p2 }
  0x31   :  { %2990 = shalt.err (!%p2987_p6)
}
  0x32   :  { %s3039_s28 = smov [#allocation10]   ;;  %s2991_s29 = scalar_lea.vmem %s61_s26, 16 }
  0x33   :  { %51 = dma.vmem_to_smem %s49_s15, 32, %s3039_s28, [#allocation7]  }
  0x34   :  { %p2992_p7 = scmp.ne.s32.totalorder %s61_s26, %s2991_s29  ;;  %p2996_p8 = scmp.lt.s32.totalorder %s61_s26, %s61_s26 }
  0x35   :  { %p2997_p9 = scmp.lt.s32.totalorder %s2991_s29, %s2991_s29 }
  0x37   :  { %p2998_p10 = por %p2997_p9, %p2996_p8 }
  0x39   :  { %p2999_p11 = pnand %p2998_p10, %p2992_p7 }
  0x3b   :  { %3002 = shalt.err (!%p2999_p11)
}
  0x3c   :  { %s3040_s1 = smov [#allocation11]  }
  0x3d   :  { %63 = dma.vmem_to_smem %s61_s26, 16, %s3040_s1, [#allocation12]  }
  0x3e   :  { %3025 = dma.done.wait [#allocation5], 1024  }
  0x3f   :  { %3026 = vsyncadd [#allocation5], 4294966272 }
  0x40   :  { %3027 = dma.done.wait [#allocation9], 256  }
  0x41   :  { %3028 = vsyncadd [#allocation9], 4294967040 }
  0x42   :  { %3029 = dma.done.wait [#allocation7], 32  }
  0x43   :  { %3030 = vsyncadd [#allocation7], 4294967264 }
  0x44   :  { %3031 = dma.done.wait [#allocation12], 16  }
  0x45   :  { %3032 = vsyncadd [#allocation12], 4294967280 }
  0x46   :  { %78 = sfence }
  0x47   :  { %s2481_s4 = sld [smem:[#allocation10 + $0x1]]  ;;  %s2492_s30 = sld [smem:[#allocation10 + $0xc]]  ;;  %v3129_v0 = vld [vmem:[#allocation4] sm:$0xff]  ;;  %v3146_v7 = vld [vmem:[#allocation4 + $0x8] sm:$0xff]  ;;  %v3210_v38 = vld [vmem:[#allocation4 + $0x10] sm:$0xff]  ;;  %vm1630_vm1 = vcmask 1044480  }
  0x48   :  { %s3123_s9 = sld [smem:[#allocation10 + $0x17]]  ;;  %s3125_s10 = sld [smem:[#allocation10 + $0x22]]  ;;  %7091 = vst [vmem:[#allocation19_spill] sm:$0xff] %v3129_v0  ;;  %v3133_v1 = vld [vmem:[#allocation4 + $0x1] sm:$0xff]  ;;  %v3148_v8 = vld [vmem:[#allocation4 + $0x9] sm:$0xff]  ;;  %v3216_v43 = vld [vmem:[#allocation4 + $0x11] sm:$0xff] }
  0x49   :  { %s3127_s11 = sld [smem:[#allocation10 + $0x2d]]  ;;  %s3131_s12 = sld [smem:[#allocation10 + $0x38]]  ;;  %7092 = vst [vmem:[#allocation20_spill] sm:$0xff] %v3133_v1  ;;  %v3137_v3 = vld [vmem:[#allocation4 + $0x2] sm:$0xff]  ;;  %v3166_v19 = vld [vmem:[#allocation4 + $0xa] sm:$0xff]  ;;  %v3219_v45 = vld [vmem:[#allocation4 + $0x12] sm:$0xff] }
  0x4a   :  { %s3135_s13 = sld [smem:[#allocation10 + $0x43]]  ;;  %7093 = vst [vmem:[#allocation21_spill] sm:$0xff] %v3137_v3  ;;  %s3139_s14 = sld [smem:[#allocation10 + $0x4e]]  ;;  %v3142_v6 = vld [vmem:[#allocation4 + $0x3] sm:$0xff]  ;;  %v3173_v23 = vld [vmem:[#allocation4 + $0xb] sm:$0xff]  ;;  %7100 = vst [vmem:[#allocation28_spill] sm:$0xff] %v3219_v45 }
  0x4b   :  { %7094 = vst [vmem:[#allocation22_spill] sm:$0xff] %v3142_v6  ;;  %s3144_s15 = sld [smem:[#allocation10 + $0x59]]  ;;  %s3153_s16 = sld [smem:[#allocation10 + $0x64]]  ;;  %v3158_v13 = vld [vmem:[#allocation4 + $0x4] sm:$0xff]  ;;  %v3175_v24 = vld [vmem:[#allocation4 + $0xc] sm:$0xff] }
  0x4c   :  { %s3155_s17 = sld [smem:[#allocation10 + $0x6f]]  ;;  %7095 = vst [vmem:[#allocation23_spill] sm:$0xff] %v3158_v13  ;;  %s3162_s18 = sld [smem:[#allocation10 + $0x7a]]  ;;  %v3168_v20 = vld [vmem:[#allocation4 + $0x5] sm:$0xff]  ;;  %v3182_v26 = vld [vmem:[#allocation4 + $0xd] sm:$0xff] }
  0x4d   :  { %v86_v2 = vstv %s2481_s4  ;;  %v134_v5 = vstv %s2492_s30  ;;  %7096 = vst [vmem:[#allocation24_spill] sm:$0xff] %v3168_v20  ;;  %s3171_s19 = sld [smem:[#allocation10 + $0x85]]  ;;  %s3178_s20 = sld [smem:[#allocation10 + $0x90]]  ;;  %v3184_v27 = vld [vmem:[#allocation4 + $0x6] sm:$0xff]  ;;  %v3195_v32 = vld [vmem:[#allocation4 + $0xe] sm:$0xff] }
  0x4e   :  { %v87_v4 = vmul.f32 %v86_v2, %v3129_v0  ;;  %v135_v9 = vmul.f32 %v134_v5, %v3133_v1  ;;  %v202_v10 = vstv %s3123_s9  ;;  %v270_v11 = vstv %s3125_s10  ;;  %s3180_s21 = sld [smem:[#allocation10 + $0x9b]]  ;;  %7097 = vst [vmem:[#allocation25_spill] sm:$0xff] %v3184_v27  ;;  %s3187_s23 = sld [smem:[#allocation10 + $0xa6]]  ;;  %v3197_v33 = vld [vmem:[#allocation4 + $0x7] sm:$0xff]  ;;  %v3199_v34 = vld [vmem:[#allocation4 + $0xf] sm:$0xff] }
  0x4f   :  { %v203_v12 = vmul.f32 %v202_v10, %v3137_v3  ;;  %v271_v15 = vmul.f32 %v270_v11, %v3142_v6  ;;  %v338_v16 = vstv %s3127_s11  ;;  %v88_v17 = vmul.f32 %v86_v2, %v3146_v7  ;;  %s3189_s0 = sld [smem:[#allocation10 + $0xb1]]  ;;  %7098 = vst [vmem:[#allocation26_spill] sm:$0xff] %v3197_v33  ;;  %s3202_s2 = sld [smem:[#allocation10 + $0xbc]]  ;;  %v3232_v51 = vld [vmem:[#allocation4 + $0x20] sm:$0xff]  ;;  %v3234_v52 = vld [vmem:[#allocation4 + $0x28] sm:$0xff] }
  0x50   :  { %v137_v14 = vadd.f32 %v135_v9, %v87_v4  ;;  %v136_v18 = vmul.f32 %v134_v5, %v3148_v8  ;;  %v406_v21 = vstv %s3131_s12  ;;  %v339_v25 = vmul.f32 %v338_v16, %v3158_v13  ;;  %s3236_s22 = sld [smem:[#allocation10 + $0xc7]]  ;;  %s3238_s24 = sld [smem:[#allocation10]]  ;;  %v3245_v57 = vld [vmem:[#allocation4 + $0x21] sm:$0xff]  ;;  %v3247_v58 = vld [vmem:[#allocation4 + $0x29] sm:$0xff] }
  0x51   :  { %v474_v28 = vstv %s3135_s13  ;;  %v3192_v29 = vmul.f32 %v202_v10, %v3166_v19  ;;  %v407_v31 = vmul.f32 %v406_v21, %v3168_v20  ;;  %v542_v35 = vstv %s3139_s14  ;;  %s3249_s25 = sld [smem:[#allocation10 + $0xd2]]  ;;  %s3251_s26 = sld [smem:[#allocation10 + $0xb]]  ;;  %v3259_v63 = vld [vmem:[#allocation4 + $0x22] sm:$0xff]  ;;  %v3261_v2 = vld [vmem:[#allocation4 + $0x2a] sm:$0xff] }
  0x52   :  { %v205_v22 = vadd.f32 %v203_v12, %v137_v14  ;;  %v3205_v36 = vmul.f32 %v270_v11, %v3173_v23  ;;  %v3208_v37 = vmul.f32 %v338_v16, %v3175_v24  ;;  %v610_v39 = vstv %s3144_s15  ;;  %s3263_s27 = sld [smem:[#allocation10 + $0x16]]  ;;  %s3265_s28 = sld [smem:[#allocation10 + $0x21]]  ;;  %v3271_v10 = vld [vmem:[#allocation4 + $0x23] sm:$0xff]  ;;  %v3273_v11 = vld [vmem:[#allocation4 + $0x2b] sm:$0xff] }
  0x53   :  { %v3213_v40 = vadd.f32 %v136_v18, %v88_v17  ;;  %v475_v42 = vmul.f32 %v474_v28, %v3184_v27  ;;  %v678_v44 = vstv %s3153_s16  ;;  %v746_v46 = vstv %s3155_s17  ;;  %v3276_v14 = vld [vmem:[#allocation4 + $0x24] sm:$0xff]  ;;  %s3278_s29 = sld [smem:[#allocation10 + $0xdd]]  ;;  %v3284_v17 = vld [vmem:[#allocation4 + $0x2c] sm:$0xff]  ;;  %s3290_s1 = sld [smem:[#allocation10 + $0xe8]] }
  0x54   :  { %v273_v30 = vadd.f32 %v271_v15, %v205_v22  ;;  %7099 = vst [vmem:[#allocation27_spill] sm:$0xff] %v3208_v37  ;;  %v3223_v47 = vmul.f32 %v406_v21, %v3182_v26  ;;  %v3226_v48 = vmul.f32 %v474_v28, %v3195_v32  ;;  %v543_v49 = vmul.f32 %v542_v35, %v3197_v33  ;;  %v3287_v21 = vld [vmem:[#allocation4 + $0x25] sm:$0xff]  ;;  %s3292_s4 = sld [smem:[#allocation10 + $0x2c]]  ;;  %s3303_s30 = sld [smem:[#allocation10 + $0x37]] }
  0x55   :  { %v3230_v50 = vmul.f32 %v542_v35, %v3199_v34  ;;  %v611_v54 = vmul.f32 %v610_v39, %v3146_v7  ;;  %v3242_v55 = vmul.f32 %v610_v39, %v3210_v38  ;;  %v815_v56 = vstv %s3162_s18  ;;  %7107 = vst [vmem:[#allocation35_spill] sm:$0xff] %v3276_v14  ;;  %v3300_v35 = vld [vmem:[#allocation4 + $0x26] sm:$0xff]  ;;  %s3326_s9 = sld [smem:[#allocation10 + $0x42]]  ;;  %s3343_s10 = sld [smem:[#allocation10 + $0x4d]] }
  0x56   :  { %v341_v41 = vadd.f32 %v339_v25, %v273_v30  ;;  %7101 = vst [vmem:[#allocation29_spill] sm:$0xff] %v3223_v47  ;;  %7102 = vst [vmem:[#allocation30_spill] sm:$0xff] %v3226_v48  ;;  %v679_v59 = vmul.f32 %v678_v44, %v3148_v8  ;;  %v3255_v60 = vmul.f32 %v678_v44, %v3216_v43  ;;  %v883_v62 = vstv %s3171_s19  ;;  %s3351_s11 = sld [smem:[#allocation10 + $0x58]]  ;;  %s3360_s12 = sld [smem:[#allocation10 + $0x63]] }
  0x57   :  { %7103 = vst [vmem:[#allocation31_spill] sm:$0xff] %v3230_v50  ;;  %7104 = vst [vmem:[#allocation32_spill] sm:$0xff] %v3242_v55  ;;  %v747_v61 = vmul.f32 %v746_v46, %v3166_v19  ;;  %v3268_v5 = vmul.f32 %v746_v46, %v3219_v45  ;;  %v951_v9 = vstv %s3178_s20  ;;  %v1019_v12 = vstv %s3180_s21  ;;  %v3362_v55 = vld [vmem:[#allocation4 + $0x31] sm:$0xff]  ;;  %s3367_s13 = sld [smem:[#allocation10 + $0x6e]]  ;;  %s3378_s14 = sld [smem:[#allocation10 + $0x79]] }
  0x58   :  { %v409_v53 = vadd.f32 %v407_v31, %v341_v41  ;;  %7105 = vst [vmem:[#allocation33_spill] sm:$0xff] %v3255_v60  ;;  %v816_v15 = vmul.f32 %v815_v56, %v3232_v51  ;;  %v3282_v16 = vmul.f32 %v815_v56, %v3234_v52  ;;  %v1087_v18 = vstv %s3187_s23  ;;  %v3298_v31 = vld [vmem:[#allocation4 + $0x2d] sm:$0xff]  ;;  %7110 = vst [vmem:[#allocation38_spill] sm:$0xff] %v3300_v35  ;;  %s3387_s15 = sld [smem:[#allocation10 + $0x84]]  ;;  %s3403_s16 = sld [smem:[#allocation10 + $0x8f]] }
  0x59   :  { %7106 = vst [vmem:[#allocation34_spill] sm:$0xff] %v3268_v5  ;;  %v1155_v22 = vstv %s3189_s0  ;;  %v884_v28 = vmul.f32 %v883_v62, %v3245_v57  ;;  %v3296_v30 = vmul.f32 %v883_v62, %v3247_v58  ;;  %v1223_v39 = vstv %s3202_s2  ;;  %7119 = vst [vmem:[#allocation47_spill] sm:$0xff] %v3362_v55  ;;  %s3405_s17 = sld [smem:[#allocation10 + $0x9a]]  ;;  %s3414_s18 = sld [smem:[#allocation10 + $0xa5]] }
  0x5a   :  { %v477_v4 = vadd.f32 %v475_v42, %v409_v53  ;;  %7108 = vst [vmem:[#allocation36_spill] sm:$0xff] %v3282_v16  ;;  %v952_v41 = vmul.f32 %v951_v9, %v3259_v63  ;;  %v3307_v42 = vmul.f32 %v951_v9, %v3261_v2  ;;  %v3310_v44 = vmul.f32 %v1019_v12, %v3271_v10  ;;  %s3421_s19 = sld [smem:[#allocation10 + $0xb0]]  ;;  %s3423_s20 = sld [smem:[#allocation10 + $0xbb]] }
  0x5b   :  { %7109 = vst [vmem:[#allocation37_spill] sm:$0xff] %v3296_v30  ;;  %v3313_v46 = vmul.f32 %v1019_v12, %v3273_v11  ;;  %v3318_v56 = vmul.f32 %v1087_v18, %v3276_v14  ;;  %v3321_v62 = vmul.f32 %v1087_v18, %v3284_v17  ;;  %v3329_v9 = vmul.f32 %v1155_v22, %v3298_v31  ;;  %s3449_s21 = sld [smem:[#allocation10 + $0x2]]  ;;  %s3459_s23 = sld [smem:[#allocation10 + $0xd]] }
  0x5c   :  { %v545_v25 = vadd.f32 %v543_v49, %v477_v4  ;;  %7111 = vst [vmem:[#allocation39_spill] sm:$0xff] %v3307_v42  ;;  %v3315_v49 = vld [vmem:[#allocation4 + $0x2e] sm:$0xff]  ;;  %v3324_v4 = vmul.f32 %v1155_v22, %v3287_v21  ;;  %v3332_v12 = vmul.f32 %v1223_v39, %v3300_v35  ;;  %v128_v30 = vstv %s3251_s26  ;;  %s3461_s0 = sld [smem:[#allocation10 + $0x18]]  ;;  %s3472_s2 = sld [smem:[#allocation10 + $0x23]] }
  0x5d   :  { %7112 = vst [vmem:[#allocation40_spill] sm:$0xff] %v3313_v46  ;;  %7113 = vst [vmem:[#allocation41_spill] sm:$0xff] %v3321_v62  ;;  %v82_v46 = vstv %s3238_s24  ;;  %v3339_v62 = vmul.f32 %v1223_v39, %v3315_v49  ;;  %v3345_v22 = vld [vmem:[#allocation4 + $0x2f] sm:$0xff]  ;;  %v129_v16 = vmul.f32 %v128_v30, %v3133_v1  ;;  %v196_v5 = vstv %s3263_s27  ;;  %s3487_s24 = sld [smem:[#allocation10 + $0xd1]]  ;;  %s3517_s27 = sld [smem:[#allocation10 + $0x44]] }
  0x5e   :  { %v613_v53 = vadd.f32 %v611_v54, %v545_v25  ;;  %7114 = vst [vmem:[#allocation42_spill] sm:$0xff] %v3329_v9  ;;  %v3334_v54 = vld [vmem:[#allocation4 + $0x27] sm:$0xff]  ;;  %v1291_v25 = vstv %s3236_s22  ;;  %v83_v42 = vmul.f32 %v82_v46, %v3129_v0  ;;  %7117 = vst [vmem:[#allocation45_spill] sm:$0xff] %v3345_v22  ;;  %v1359_v9 = vstv %s3249_s25  ;;  %s3479_s22 = sld [smem:[#allocation10 + $0xc6]]  ;;  %s3498_s26 = sld [smem:[#allocation10 + $0x39]] }
  0x5f   :  { %7115 = vst [vmem:[#allocation43_spill] sm:$0xff] %v3334_v54  ;;  %7116 = vst [vmem:[#allocation44_spill] sm:$0xff] %v3339_v62  ;;  %v264_v60 = vstv %s3265_s28  ;;  %v3354_v39 = vmul.f32 %v1291_v25, %v3334_v54  ;;  %v1427_v62 = vstv %s3278_s29  ;;  %v197_v0 = vmul.f32 %v196_v5, %v3137_v3  ;;  %v3375_v3 = vld [vmem:[#allocation4 + $0x32] sm:$0xff]  ;;  %s3489_s25 = sld [smem:[#allocation10 + $0x2e]]  ;;  %s3520_s28 = sld [smem:[#allocation10 + $0xdc]] }
  0x60   :  { %v681_v18 = vadd.f32 %v679_v59, %v613_v53  ;;  %v3356_v53 = vld [vmem:[#allocation4 + $0x30] sm:$0xff]  ;;  %v1495_v50 = vstv %s3290_s1  ;;  %v131_v1 = vadd.f32 %v129_v16, %v83_v42  ;;  %v265_v48 = vmul.f32 %v264_v60, %v3142_v6  ;;  %s3530_s29 = sld [smem:[#allocation10 + $0x4f]]  ;;  %s3819_s7 = sld [smem:[#allocation10 + $0xb3]] }
  0x61   :  { %7118 = vst [vmem:[#allocation46_spill] sm:$0xff] %v3356_v53  ;;  %v332_v47 = vstv %s3292_s4  ;;  %v3373_v54 = vmul.f32 %v1359_v9, %v3234_v52  ;;  %v400_v37 = vstv %s3303_s30  ;;  %v3381_v16 = vmul.f32 %v1359_v9, %v3356_v53  ;;  %s3533_s1 = sld [smem:[#allocation10 + $0xe7]]  ;;  %s3545_s4 = sld [smem:[#allocation10 + $0x5a]] }
  0x62   :  { %v749_v59 = vadd.f32 %v747_v61, %v681_v18  ;;  %v3370_v18 = vmul.f32 %v1291_v25, %v3345_v22  ;;  %v3384_v42 = vmul.f32 %v1427_v62, %v3247_v58  ;;  %v199_v6 = vadd.f32 %v197_v0, %v131_v1  ;;  %s6819_s30 = smov 4   ;;  %s6891_s8 = smov 3  }
  0x63   :  { %7121 = vst [vmem:[#allocation49_spill] sm:$0xff] %v3381_v16  ;;  %v468_v22 = vstv %s3326_s9  ;;  %v3397_v9 = vmul.f32 %v1495_v50, %v3375_v3  ;;  %v3400_v16 = vmul.f32 %v82_v46, %v3146_v7  ;;  %v401_v1 = vmul.f32 %v400_v37, %v3168_v20  ;;  %s3556_s9 = sld [smem:[#allocation10 + $0x65]]  ;;  %s5487_s6 = sld [smem:[#allocation11 + $0x18]] }
  0x64   :  { %v818_v61 = vadd.f32 %v816_v15, %v749_v59  ;;  %7120 = vst [vmem:[#allocation48_spill] sm:$0xff] %v3370_v18  ;;  %v333_v15 = vmul.f32 %v332_v47, %v3158_v13  ;;  %v3390_v59 = vmul.f32 %v1427_v62, %v3362_v55  ;;  %v3393_v18 = vmul.f32 %v1495_v50, %v3261_v2  ;;  %s5489_s5 = sld [smem:[#allocation11 + $0x23]] }
  0x65   :  { %7123 = vst [vmem:[#allocation51_spill] sm:$0xff] %v3397_v9  ;;  %v267_v0 = vadd.f32 %v265_v48, %v199_v6  ;;  %v3408_v62 = vmul.f32 %v128_v30, %v3148_v8  ;;  %v536_v50 = vstv %s3343_s10  ;;  %v3417_v6 = vmul.f32 %v264_v60, %v3173_v23  ;;  %s3565_s10 = sld [smem:[#allocation10 + $0x70]] }
  0x66   :  { %v886_v25 = vadd.f32 %v884_v28, %v818_v61  ;;  %7122 = vst [vmem:[#allocation50_spill] sm:$0xff] %v3390_v59  ;;  %v3411_v61 = vmul.f32 %v196_v5, %v3166_v19  ;;  %v469_v46 = vmul.f32 %v468_v22, %v3184_v27  ;;  %v604_v9 = vstv %s3351_s11  ;;  %s3570_s11 = sld [smem:[#allocation10 + $0x7b]] }
  0x67   :  { %v335_v48 = vadd.f32 %v333_v15, %v267_v0  ;;  %v3427_v30 = vmul.f32 %v332_v47, %v3175_v24  ;;  %v672_v60 = vstv %s3360_s12  ;;  %v3434_v15 = vmul.f32 %v468_v22, %v3195_v32  ;;  %s3577_s12 = sld [smem:[#allocation10 + $0x86]] }
  0x68   :  { %v954_v28 = vadd.f32 %v952_v41, %v886_v25  ;;  %v3430_v41 = vmul.f32 %v400_v37, %v3182_v26  ;;  %v537_v0 = vmul.f32 %v536_v50, %v3197_v33  ;;  %v740_v59 = vstv %s3367_s13  ;;  %s3582_s13 = sld [smem:[#allocation10 + $0x91]] }
  0x69   :  { %v403_v25 = vadd.f32 %v401_v1, %v335_v48  ;;  %v3440_v20 = vmul.f32 %v536_v50, %v3199_v34  ;;  %v605_v47 = vmul.f32 %v604_v9, %v3146_v7  ;;  %v673_v22 = vmul.f32 %v672_v60, %v3148_v8  ;;  %7277 = sst [smem:[#allocation78_spill]] %s5487_s6  ;;  %s5508_s6 = sld [smem:[#allocation11 + $0x5b]] }
  0x6a   :  { %v1022_v5 = vadd.f32 %v3310_v44, %v954_v28  ;;  %v809_v44 = vstv %s3378_s14  ;;  %v3445_v28 = vmul.f32 %v604_v9, %v3210_v38  ;;  %v877_v1 = vstv %s3387_s15  ;;  %s3591_s14 = sld [smem:[#allocation10 + $0x9c]]  ;;  %s3604_s15 = sld [smem:[#allocation10 + $0xa7]] }
  0x6b   :  { %v471_v37 = vadd.f32 %v469_v46, %v403_v25  ;;  %v3453_v50 = vmul.f32 %v672_v60, %v3216_v43  ;;  %v741_v48 = vmul.f32 %v740_v59, %v3166_v19  ;;  %v3457_v46 = vmul.f32 %v740_v59, %v3219_v45  ;;  %7278 = sst [smem:[#allocation79_spill]] %s5489_s5  ;;  %s5506_s5 = sld [smem:[#allocation11 + $0x70]] }
  0x6c   :  { %v1090_v27 = vadd.f32 %v3318_v56, %v1022_v5  ;;  %v810_v5 = vmul.f32 %v809_v44, %v3232_v51  ;;  %v945_v25 = vstv %s3403_s16  ;;  %v1013_v33 = vstv %s3405_s17  ;;  %s3615_s16 = sld [smem:[#allocation10 + $0xb2]]  ;;  %s3620_s17 = sld [smem:[#allocation10 + $0xbd]] }
  0x6d   :  { %7124 = vst [vmem:[#allocation52_spill] sm:$0xff] %v3457_v46  ;;  %v539_v9 = vadd.f32 %v537_v0, %v471_v37  ;;  %v878_v60 = vmul.f32 %v877_v1, %v3245_v57  ;;  %v1081_v13 = vstv %s3414_s18  ;;  %v3475_v45 = vmul.f32 %v877_v1, %v3247_v58  ;;  %s3629_s18 = sld [smem:[#allocation10 + $0xc8]] }
  0x6e   :  { %v1158_v56 = vadd.f32 %v3324_v4, %v1090_v27  ;;  %v3468_v4 = vmul.f32 %v809_v44, %v3234_v52  ;;  %v1149_v46 = vstv %s3421_s19  ;;  %v1217_v0 = vstv %s3423_s20  ;;  %s3634_s19 = sld [smem:[#allocation10 + $0xd3]]  ;;  %s3643_s20 = sld [smem:[#allocation10 + $0xde]] }
  0x6f   :  { %v607_v59 = vadd.f32 %v605_v47, %v539_v9  ;;  %v3484_v44 = vmul.f32 %v945_v25, %v3261_v2  ;;  %v3492_v1 = vmul.f32 %v1013_v33, %v3273_v11  ;;  %v1082_v9 = vmul.f32 %v1081_v13, %v3276_v14  ;;  %7287 = sst [smem:[#allocation87_spill]] %s5508_s6  ;;  %s5527_s6 = sld [smem:[#allocation11 + $0x50]] }
  0x70   :  { %v1226_v27 = vadd.f32 %v3332_v12, %v1158_v56  ;;  %v946_v12 = vmul.f32 %v945_v25, %v3259_v63  ;;  %v1014_v56 = vmul.f32 %v1013_v33, %v3271_v10  ;;  %v3508_v33 = vmul.f32 %v1217_v0, %v3300_v35 }
  0x71   :  { %v675_v47 = vadd.f32 %v673_v22, %v607_v59  ;;  %v3505_v22 = vmul.f32 %v1149_v46, %v3298_v31  ;;  %v3511_v14 = vmul.f32 %v1217_v0, %v3315_v49  ;;  %v6796_v0 = vstv %s3461_s0  ;;  %7286 = sst [smem:[#allocation86_spill]] %s5506_s5  ;;  %s5524_s5 = sld [smem:[#allocation11 + $0x45]] }
  0x72   :  { %v1294_v37 = vadd.f32 %v3354_v39, %v1226_v27  ;;  %v3496_v39 = vmul.f32 %v1081_v13, %v3284_v17  ;;  %v3502_v27 = vmul.f32 %v1149_v46, %v3287_v21  ;;  %v206_v13 = vadd.f32 %v3192_v29, %v3213_v40 }
  0x73   :  { %v743_v59 = vadd.f32 %v741_v48, %v675_v47  ;;  %v6798_v48 = vstv %s3449_s21 }
  0x74   :  { %v1362_v25 = vadd.f32 %v3373_v54, %v1294_v37  ;;  %v132_v54 = vadd.f32 %v3408_v62, %v3400_v16  ;;  %v6797_v37 = vstv %s3459_s23  ;;  %v274_v35 = vadd.f32 %v3205_v36, %v206_v13 }
  0x75   :  { %v812_v47 = vadd.f32 %v810_v5, %v743_v59  ;;  %v92_v40 = vmul.f32 %v6798_v48, %v3146_v7  ;;  %v210_v36 = vmul.f32 %v6796_v0, %v3166_v19  ;;  %v276_v62 = vstv %s3472_s2  ;;  %s3696_s2 = sld [smem:[#allocation10 + $0x19]] }
  0x76   :  { %v1430_v46 = vadd.f32 %v3384_v42, %v1362_v25  ;;  %v200_v29 = vadd.f32 %v3411_v61, %v132_v54  ;;  %v142_v42 = vmul.f32 %v6797_v37, %v3148_v8  ;;  %v1285_v5 = vstv %s3479_s22  ;;  %v7125_v25 = vld [vmem:[#allocation27_spill] sm:$0xff]  ;;  %s3662_s22 = sld [smem:[#allocation10 + $0xe9]] }
  0x77   :  { %v880_v61 = vadd.f32 %v878_v60, %v812_v47  ;;  %v342_v59 = vadd.f32 %v7125_v25, %v274_v35  ;;  %v6799_v0 = vstv %s3489_s25  ;;  %v7126_v60 = vld [vmem:[#allocation29_spill] sm:$0xff]  ;;  %7293 = sst [smem:[#allocation93_spill]] %s5524_s5  ;;  %s5540_s5 = sld [smem:[#allocation11 + $0x5c]] }
  0x78   :  { %v1498_v16 = vadd.f32 %v3393_v18, %v1430_v46  ;;  %v268_v13 = vadd.f32 %v3417_v6, %v200_v29  ;;  %v1353_v18 = vstv %s3487_s24  ;;  %v144_v54 = vadd.f32 %v142_v42, %v92_v40  ;;  %v7127_v29 = vld [vmem:[#allocation43_spill] sm:$0xff]  ;;  %s3706_s24 = sld [smem:[#allocation10 + $0x24]]  ;;  %7294 = sst [smem:[#allocation94_spill]] %s5527_s6 }
  0x79   :  { %v278_v46 = vmul.f32 %v276_v62, %v3173_v23  ;;  %v948_v37 = vadd.f32 %v946_v12, %v880_v61  ;;  %v410_v47 = vadd.f32 %v7126_v60, %v342_v59  ;;  %v6806_v6 = vstv %s3498_s26  ;;  %v7129_v61 = vld [vmem:[#allocation30_spill] sm:$0xff]  ;;  %s5544_s6 = sld [smem:[#allocation11 + $0x25]] }
  0x7a   :  { %1558 = vrot.lane.b32.xlu1 %v1498_v16, %s6819_s30  ;;  %v336_v35 = vadd.f32 %v3427_v30, %v268_v13  ;;  %v1286_v25 = vmul.f32 %v1285_v5, %v7127_v29  ;;  %v7128_v16 = vld [vmem:[#allocation45_spill] sm:$0xff]  ;;  %v212_v40 = vadd.f32 %v210_v36, %v144_v54  ;;  %v346_v42 = vmul.f32 %v6799_v0, %v3175_v24 }
  0x7b   :  { %v3560_v48 = vmul.f32 %v1285_v5, %v7128_v16  ;;  %v1016_v12 = vadd.f32 %v1014_v56, %v948_v37  ;;  %v478_v30 = vadd.f32 %v7129_v61, %v410_v47  ;;  %v6801_v13 = vstv %s3517_s27  ;;  %v7130_v37 = vld [vmem:[#allocation31_spill] sm:$0xff] }
  0x7c   :  { %v404_v59 = vadd.f32 %v3430_v41, %v336_v35  ;;  %v1354_v5 = vmul.f32 %v1353_v18, %v3234_v52  ;;  %v1421_v60 = vstv %s3520_s28  ;;  %v280_v36 = vadd.f32 %v278_v46, %v212_v40  ;;  %s3722_s28 = sld [smem:[#allocation10 + $0x3a]] }
  0x7d   :  { %v414_v54 = vmul.f32 %v6806_v6, %v3182_v26  ;;  %v1084_v56 = vadd.f32 %v1082_v9, %v1016_v12  ;;  %v546_v0 = vadd.f32 %v7130_v37, %v478_v30  ;;  %v6800_v47 = vstv %s3530_s29  ;;  %v7131_v12 = vld [vmem:[#allocation32_spill] sm:$0xff]  ;;  %7299 = sst [smem:[#allocation99_spill]] %s5540_s5 }
  0x7e   :  { %v472_v41 = vadd.f32 %v3434_v15, %v404_v59  ;;  %v3585_v35 = vmul.f32 %v1353_v18, %v3356_v53  ;;  %v1489_v61 = vstv %s3533_s1  ;;  %v348_v46 = vadd.f32 %v346_v42, %v280_v36  ;;  %s3771_s1 = sld [smem:[#allocation10 + $0x66]] }
  0x7f   :  { %v482_v40 = vmul.f32 %v6801_v13, %v3195_v32  ;;  %v1152_v9 = vadd.f32 %v3502_v27, %v1084_v56  ;;  %v614_v15 = vadd.f32 %v7131_v12, %v546_v0  ;;  %v6805_v59 = vstv %s3545_s4  ;;  %v7132_v56 = vld [vmem:[#allocation33_spill] sm:$0xff]  ;;  %v7133_v13 = vld [vmem:[#allocation34_spill] sm:$0xff]  ;;  %7301 = sst [smem:[#allocation101_spill]] %s5544_s6  ;;  %s5555_s6 = sld [smem:[#allocation11 + $0x46]] }
  0x80   :  { %v540_v30 = vadd.f32 %v3440_v20, %v472_v41  ;;  %v1422_v18 = vmul.f32 %v1421_v60, %v3247_v58  ;;  %v3599_v37 = vmul.f32 %v1421_v60, %v3362_v55  ;;  %v416_v42 = vadd.f32 %v414_v54, %v348_v46  ;;  %s5561_s5 = sld [smem:[#allocation11 + $0x6]] }
  0x81   :  { %v550_v36 = vmul.f32 %v6800_v47, %v3199_v34  ;;  %v1220_v27 = vadd.f32 %v3508_v33, %v1152_v9  ;;  %v682_v0 = vadd.f32 %v7132_v56, %v614_v15  ;;  %v6802_v41 = vstv %s3556_s9 }
  0x82   :  { %v608_v20 = vadd.f32 %v3445_v28, %v540_v30  ;;  %v1490_v12 = vmul.f32 %v1489_v61, %v3261_v2  ;;  %v484_v60 = vadd.f32 %v482_v40, %v416_v42  ;;  %v618_v54 = vmul.f32 %v6805_v59, %v3210_v38 }
  0x83   :  { %v6804_v46 = vstv %s3565_s10  ;;  %v1288_v47 = vadd.f32 %v1286_v25, %v1220_v27  ;;  %v750_v33 = vadd.f32 %v7133_v13, %v682_v0  ;;  %v6803_v28 = vstv %s3570_s11  ;;  %v7134_v13 = vld [vmem:[#allocation36_spill] sm:$0xff] }
  0x84   :  { %v676_v9 = vadd.f32 %v3453_v50, %v608_v20  ;;  %v3623_v40 = vmul.f32 %v1489_v61, %v3375_v3  ;;  %v552_v15 = vadd.f32 %v550_v36, %v484_v60  ;;  %v686_v30 = vmul.f32 %v6802_v41, %v3216_v43  ;;  %v7135_v27 = vld [vmem:[#allocation52_spill] sm:$0xff] }
  0x85   :  { %v6808_v42 = vstv %s3577_s12  ;;  %v1356_v25 = vadd.f32 %v1354_v5, %v1288_v47  ;;  %v819_v50 = vadd.f32 %v7134_v13, %v750_v33  ;;  %v6807_v0 = vstv %s3582_s13  ;;  %v7136_v36 = vld [vmem:[#allocation28_spill] sm:$0xff]  ;;  %v7137_v47 = vld [vmem:[#allocation37_spill] sm:$0xff]  ;;  %7304 = sst [smem:[#allocation104_spill]] %s5555_s6  ;;  %s5569_s6 = sld [smem:[#allocation11 + $0x72]] }
  0x86   :  { %v744_v56 = vadd.f32 %v7135_v27, %v676_v9  ;;  %v620_v61 = vadd.f32 %v618_v54, %v552_v15  ;;  %v754_v20 = vmul.f32 %v6804_v46, %v7136_v36  ;;  %v823_v60 = vmul.f32 %v6803_v28, %v3234_v52  ;;  %v7138_v28 = vld [vmem:[#allocation19_spill] sm:$0xff]  ;;  %7307 = sst [smem:[#allocation107_spill]] %s5561_s5  ;;  %s5577_s5 = sld [smem:[#allocation11 + $0x11]] }
  0x87   :  { %v6809_v41 = vstv %s3591_s14  ;;  %v1424_v5 = vadd.f32 %v1422_v18, %v1356_v25  ;;  %v887_v33 = vadd.f32 %v7137_v47, %v819_v50  ;;  %v891_v54 = vmul.f32 %v6808_v42, %v3247_v58  ;;  %v7140_v18 = vld [vmem:[#allocation39_spill] sm:$0xff]  ;;  %v7143_v42 = vld [vmem:[#allocation21_spill] sm:$0xff] }
  0x88   :  { %v813_v9 = vadd.f32 %v3468_v4, %v744_v56  ;;  %v688_v15 = vadd.f32 %v686_v30, %v620_v61  ;;  %v959_v13 = vmul.f32 %v6807_v0, %v3261_v2  ;;  %v6810_v27 = vstv %s3604_s15  ;;  %v7141_v61 = vld [vmem:[#allocation20_spill] sm:$0xff] }
  0x89   :  { %v7139_v46 = vstv %s3449_s21  ;;  %v1492_v6 = vadd.f32 %v1490_v12, %v1424_v5  ;;  %v955_v25 = vadd.f32 %v7140_v18, %v887_v33  ;;  %v1027_v4 = vmul.f32 %v6809_v41, %v3273_v11  ;;  %s6893_s21 = smov 5   ;;  %v7146_v41 = vld [vmem:[#allocation22_spill] sm:$0xff] }
  0x8a   :  { %v91_v59 = vmul.f32 %v7139_v46, %v7138_v28  ;;  %v881_v50 = vadd.f32 %v3475_v45, %v813_v9  ;;  %v756_v30 = vadd.f32 %v754_v20, %v688_v15  ;;  %v7142_v47 = vstv %s3459_s23  ;;  %v7145_v45 = vld [vmem:[#allocation40_spill] sm:$0xff]  ;;  %s3682_s23 = sld [smem:[#allocation10 + $0x3]] }
  0x8b   :  { %v141_v0 = vmul.f32 %v7142_v47, %v7141_v61  ;;  %v7144_v46 = vstv %s3461_s0  ;;  %1554 = vrot.lane.b32.xlu0 %v1492_v6, %s6893_s21  ;;  %v1023_v5 = vadd.f32 %v7145_v45, %v955_v25  ;;  %v1095_v20 = vmul.f32 %v6810_v27, %v3284_v17  ;;  %v7147_v6 = vld [vmem:[#allocation41_spill] sm:$0xff]  ;;  %s3690_s0 = sld [smem:[#allocation10 + $0xe]]  ;;  %7308 = sst [smem:[#allocation108_spill]] %s5569_s6 }
  0x8c   :  { %v209_v12 = vmul.f32 %v7144_v46, %v7143_v42  ;;  %v949_v33 = vadd.f32 %v3484_v44, %v881_v50  ;;  %v6812_v9 = vstv %s3620_s17  ;;  %v825_v15 = vadd.f32 %v823_v60, %v756_v30  ;;  %7310 = sst [smem:[#allocation110_spill]] %s5577_s5  ;;  %s5726_s5 = sld [smem:[#allocation11 + $0x4b]] }
  0x8d   :  { %v6811_v18 = vstv %s3629_s18  ;;  %v143_v47 = vadd.f32 %v141_v0, %v91_v59  ;;  %v277_v46 = vmul.f32 %v276_v62, %v7146_v41  ;;  %v1091_v56 = vadd.f32 %v7147_v6, %v1023_v5  ;;  %v7149_v62 = vld [vmem:[#allocation23_spill] sm:$0xff]  ;;  %v7151_v5 = vld [vmem:[#allocation42_spill] sm:$0xff] }
  0x8e   :  { %v1017_v44 = vadd.f32 %v3492_v1, %v949_v33  ;;  %v7148_v25 = vstv %s3615_s16  ;;  %v6813_v45 = vstv %s3634_s19  ;;  %v893_v60 = vadd.f32 %v891_v54, %v825_v15 }
  0x8f   :  { %v1163_v50 = vmul.f32 %v7148_v25, %v3298_v31  ;;  %v6814_v59 = vstv %s3643_s20  ;;  %v211_v0 = vadd.f32 %v209_v12, %v143_v47  ;;  %v7150_v30 = vstv %s3489_s25  ;;  %s3720_s25 = sld [smem:[#allocation10 + $0x2f]] }
  0x90   :  { %v345_v27 = vmul.f32 %v7150_v30, %v7149_v62  ;;  %v1159_v6 = vadd.f32 %v7151_v5, %v1091_v56  ;;  %v1085_v1 = vadd.f32 %v3496_v39, %v1017_v44  ;;  %v1231_v33 = vmul.f32 %v6812_v9, %v3315_v49  ;;  %v7152_v56 = vld [vmem:[#allocation24_spill] sm:$0xff] }
  0x91   :  { %v1299_v54 = vmul.f32 %v6811_v18, %v7128_v16  ;;  %v961_v12 = vadd.f32 %v959_v13, %v893_v60  ;;  %v1367_v15 = vmul.f32 %v6813_v45, %v3356_v53  ;;  %v279_v47 = vadd.f32 %v277_v46, %v211_v0  ;;  %v7154_v44 = vld [vmem:[#allocation44_spill] sm:$0xff]  ;;  %v7155_v60 = vld [vmem:[#allocation25_spill] sm:$0xff] }
  0x92   :  { %v7153_v25 = vstv %s3498_s26  ;;  %v1227_v30 = vadd.f32 %v7154_v44, %v1159_v6  ;;  %v1153_v5 = vadd.f32 %v3505_v22, %v1085_v1  ;;  %v1435_v18 = vmul.f32 %v6814_v59, %v3362_v55  ;;  %v7157_v6 = vld [vmem:[#allocation26_spill] sm:$0xff]  ;;  %v7159_v1 = vld [vmem:[#allocation48_spill] sm:$0xff]  ;;  %s3738_s26 = sld [smem:[#allocation10 + $0x45]]  ;;  %7384 = sst [smem:[#allocation144_spill]] %s5726_s5 }
  0x93   :  { %v413_v39 = vmul.f32 %v7153_v25, %v7152_v56  ;;  %v1029_v13 = vadd.f32 %v1027_v4, %v961_v12  ;;  %v347_v46 = vadd.f32 %v345_v27, %v279_v47  ;;  %v7156_v0 = vstv %s3517_s27  ;;  %s3750_s27 = sld [smem:[#allocation10 + $0x50]]  ;;  %s5774_s5 = sld [smem:[#allocation11 + $0x4c]] }
  0x94   :  { %v481_v25 = vmul.f32 %v7156_v0, %v7155_v60  ;;  %v7158_v44 = vstv %s3530_s29  ;;  %v1295_v45 = vadd.f32 %v7159_v1, %v1227_v30  ;;  %v1221_v59 = vadd.f32 %v3511_v14, %v1153_v5  ;;  %s3762_s29 = sld [smem:[#allocation10 + $0x5b]] }
  0x95   :  { %v549_v22 = vmul.f32 %v7158_v44, %v7157_v6  ;;  %v7160_v9 = vstv %s3545_s4  ;;  %v7161_v53 = vstv %s3556_s9  ;;  %v1097_v27 = vadd.f32 %v1095_v20, %v1029_v13  ;;  %v7163_v44 = vld [vmem:[#allocation49_spill] sm:$0xff]  ;;  %s3785_s4 = sld [smem:[#allocation10 + $0x71]]  ;;  %s3787_s9 = sld [smem:[#allocation10 + $0x7c]] }
  0x96   :  { %v617_v55 = vmul.f32 %v7160_v9, %v3146_v7  ;;  %v685_v4 = vmul.f32 %v7161_v53, %v3148_v8  ;;  %v415_v12 = vadd.f32 %v413_v39, %v347_v46  ;;  %v7162_v47 = vstv %s3565_s10  ;;  %v7164_v46 = vld [vmem:[#allocation50_spill] sm:$0xff]  ;;  %s3792_s10 = sld [smem:[#allocation10 + $0x87]] }
  0x97   :  { %v753_v0 = vmul.f32 %v7162_v47, %v3166_v19  ;;  %v94_v30 = vstv %s3682_s23  ;;  %v1363_v1 = vadd.f32 %v7163_v44, %v1295_v45  ;;  %v1289_v14 = vadd.f32 %v3560_v48, %v1221_v59  ;;  %s3916_s23 = sld [smem:[#allocation10 + $0xea]] }
  0x98   :  { %v96_v9 = vmul.f32 %v94_v30, %v3146_v7  ;;  %v146_v5 = vstv %s3690_s0  ;;  %v1165_v53 = vadd.f32 %v1163_v50, %v1097_v27  ;;  %v483_v20 = vadd.f32 %v481_v25, %v415_v12  ;;  %v7165_v27 = vld [vmem:[#allocation51_spill] sm:$0xff]  ;;  %s3918_s0 = sld [smem:[#allocation10 + $0x3b]] }
  0x99   :  { %v148_v39 = vmul.f32 %v146_v5, %v3148_v8  ;;  %v214_v13 = vstv %s3696_s2  ;;  %v1431_v47 = vadd.f32 %v7164_v46, %v1363_v1  ;;  %v1357_v45 = vadd.f32 %v3585_v35, %v1289_v14  ;;  %s3933_s2 = sld [smem:[#allocation10 + $0x46]] }
  0x9a   :  { %v216_v48 = vmul.f32 %v214_v13, %v3166_v19  ;;  %v282_v7 = vstv %s3706_s24  ;;  %v1233_v59 = vadd.f32 %v1231_v33, %v1165_v53  ;;  %v551_v50 = vadd.f32 %v549_v22, %v483_v20  ;;  %s3948_s24 = sld [smem:[#allocation10 + $0x51]]  ;;  %7405 = sst [smem:[#allocation155_spill]] %s5774_s5 }
  0x9b   :  { %v150_v25 = vadd.f32 %v148_v39, %v96_v9  ;;  %v284_v8 = vmul.f32 %v282_v7, %v3173_v23  ;;  %v1499_v12 = vadd.f32 %v7165_v27, %v1431_v47  ;;  %v1425_v35 = vadd.f32 %v3599_v37, %v1357_v45  ;;  %s7421_s5 = sld [smem:[#allocation86_spill]] }
  0x9c   :  { %v350_v44 = vstv %s3720_s25  ;;  %v418_v1 = vstv %s3722_s28  ;;  %v1301_v14 = vadd.f32 %v1299_v54, %v1233_v59  ;;  %v619_v46 = vadd.f32 %v617_v55, %v551_v50  ;;  %s3964_s25 = sld [smem:[#allocation10 + $0x5c]]  ;;  %s3973_s28 = sld [smem:[#allocation10 + $0x67]] }
  0x9d   :  { %v218_v33 = vadd.f32 %v216_v48, %v150_v25  ;;  %v352_v22 = vmul.f32 %v350_v44, %v3175_v24  ;;  %1560 = vrot.lane.b32.xlu1 %v1499_v12, %s6819_s30  ;;  %v1493_v9 = vadd.f32 %v3623_v40, %v1425_v35  ;;  %v7166_v53 = vstv %s3662_s22  ;;  %s3830_s30 = sld [smem:[#allocation10 + $0xc9]] }
  0x9e   :  { %v1503_v37 = vmul.f32 %v7166_v53, %v3375_v3  ;;  %v7167_v20 = vstv %s3570_s11  ;;  %v486_v54 = vstv %s3738_s26  ;;  %v1369_v55 = vadd.f32 %v1367_v15, %v1301_v14  ;;  %s3809_s11 = sld [smem:[#allocation10 + $0x92]] }
  0x9f   :  { %v822_v39 = vmul.f32 %v7167_v20, %v3232_v51  ;;  %v687_v24 = vadd.f32 %v685_v4, %v619_v46  ;;  %v286_v47 = vadd.f32 %v284_v8, %v218_v33  ;;  %v420_v40 = vmul.f32 %v418_v1, %v3182_v26  ;;  %1556 = vrot.lane.b32.xlu0 %v1493_v9, %s6893_s21  ;;  %v7171_v33 = vld [vmem:[#allocation35_spill] sm:$0xff]  ;;  %s3983_s26 = sld [smem:[#allocation10 + $0x72]] }
  0xa0   :  { %v7168_v45 = vstv %s3577_s12  ;;  %v554_v59 = vstv %s3750_s27  ;;  %v1437_v50 = vadd.f32 %v1435_v18, %v1369_v55  ;;  %v488_v15 = vmul.f32 %v486_v54, %v3195_v32  ;;  %s3811_s12 = sld [smem:[#allocation10 + $0x9d]]  ;;  %v7174_v55 = vld [vmem:[#allocation38_spill] sm:$0xff]  ;;  %s5484_s21 = sld [smem:[#allocation11 + $0x5a]] }
  0xa1   :  { %v890_v48 = vmul.f32 %v7168_v45, %v3245_v57  ;;  %v755_v25 = vadd.f32 %v753_v0, %v687_v24  ;;  %v354_v27 = vadd.f32 %v352_v22, %v286_v47  ;;  %v7169_v4 = vstv %s3582_s13  ;;  %s3817_s13 = sld [smem:[#allocation10 + $0xa8]]  ;;  %s3993_s27 = sld [smem:[#allocation10 + $0x7d]] }
  0xa2   :  { %v958_v26 = vmul.f32 %v7169_v4, %v3259_v63  ;;  %v622_v8 = vstv %s3762_s29  ;;  %v1505_v12 = vadd.f32 %v1503_v37, %v1437_v50  ;;  %v556_v46 = vmul.f32 %v554_v59, %v3199_v34  ;;  %s4012_s29 = sld [smem:[#allocation10 + $0x88]] }
  0xa3   :  { %v824_v35 = vadd.f32 %v822_v39, %v755_v25  ;;  %v422_v14 = vadd.f32 %v420_v40, %v354_v27  ;;  %v7170_v32 = vstv %s3591_s14  ;;  %v690_v0 = vstv %s3771_s1  ;;  %s3828_s14 = sld [smem:[#allocation10 + $0xbe]]  ;;  %s4022_s1 = sld [smem:[#allocation10 + $0x93]] }
  0xa4   :  { %v1026_v18 = vmul.f32 %v7170_v32, %v3271_v10  ;;  %1564 = vrot.lane.b32.xlu1 %v1505_v12, %s6891_s8  ;;  %v7172_v22 = vstv %s3604_s15  ;;  %v624_v37 = vmul.f32 %v622_v8, %v3210_v38  ;;  %v7173_v20 = vstv %s3615_s16  ;;  %s3866_s15 = sld [smem:[#allocation10 + $0xd4]]  ;;  %s3868_s16 = sld [smem:[#allocation10 + $0xdf]] }
  0xa5   :  { %v892_v34 = vadd.f32 %v890_v48, %v824_v35  ;;  %v1094_v9 = vmul.f32 %v7172_v22, %v7171_v33  ;;  %v490_v53 = vadd.f32 %v488_v15, %v422_v14  ;;  %v1162_v39 = vmul.f32 %v7173_v20, %v3287_v21 }
  0xa6   :  { %v7175_v24 = vstv %s3620_s17  ;;  %v758_v40 = vstv %s3785_s4  ;;  %v827_v45 = vstv %s3787_s9  ;;  %v692_v38 = vmul.f32 %v690_v0, %v3216_v43  ;;  %s3882_s17 = sld [smem:[#allocation10 + $0x4]]  ;;  %s4032_s4 = sld [smem:[#allocation10 + $0x9e]] }
  0xa7   :  { %v1230_v47 = vmul.f32 %v7175_v24, %v7174_v55  ;;  %v960_v48 = vadd.f32 %v958_v26, %v892_v34  ;;  %v558_v50 = vadd.f32 %v556_v46, %v490_v53  ;;  %v895_v25 = vstv %s3792_s10  ;;  %s4044_s9 = sld [smem:[#allocation10 + $0xa9]]  ;;  %s4057_s10 = sld [smem:[#allocation10 + $0xb4]] }
  0xa8   :  { %v7176_v27 = vstv %s3629_s18  ;;  %v7177_v4 = vstv %s3634_s19  ;;  %v7178_v35 = vstv %s3643_s20  ;;  %v7179_v26 = vstv %s3662_s22  ;;  %s3886_s18 = sld [smem:[#allocation10 + $0xf]]  ;;  %s3893_s19 = sld [smem:[#allocation10 + $0x1a]] }
  0xa9   :  { %v1298_v15 = vmul.f32 %v7176_v27, %v7127_v29  ;;  %v1366_v12 = vmul.f32 %v7177_v4, %v3234_v52  ;;  %v3853_v14 = vmul.f32 %v7178_v35, %v3247_v58  ;;  %v3858_v46 = vmul.f32 %v7179_v26, %v3261_v2  ;;  %s3895_s20 = sld [smem:[#allocation10 + $0x25]]  ;;  %s3908_s22 = sld [smem:[#allocation10 + $0x30]] }
  0xaa   :  { %v1028_v32 = vadd.f32 %v1026_v18, %v960_v48  ;;  %v626_v43 = vadd.f32 %v624_v37, %v558_v50  ;;  %v760_v34 = vmul.f32 %v758_v40, %v7136_v36  ;;  %v829_v22 = vmul.f32 %v827_v45, %v3234_v52  ;;  %7276 = sst [smem:[#allocation77_spill]] %s5484_s21  ;;  %s5499_s21 = sld [smem:[#allocation11 + $0x4f]] }
  0xab   :  { %v897_v53 = vmul.f32 %v895_v25, %v3247_v58  ;;  %v95_v18 = vmul.f32 %v94_v30, %v7138_v28  ;;  %v147_v37 = vmul.f32 %v146_v5, %v7141_v61  ;;  %v215_v36 = vmul.f32 %v214_v13, %v7143_v42 }
  0xac   :  { %v1096_v52 = vadd.f32 %v1094_v9, %v1028_v32  ;;  %v694_v20 = vadd.f32 %v692_v38, %v626_v43  ;;  %v963_v24 = vstv %s3809_s11  ;;  %v1031_v58 = vstv %s3811_s12  ;;  %s4067_s11 = sld [smem:[#allocation10 + $0xca]]  ;;  %s4113_s12 = sld [smem:[#allocation10 + $0xe0]] }
  0xad   :  { %v1099_v28 = vstv %s3817_s13  ;;  %v1167_v30 = vstv %s3819_s7  ;;  %v149_v61 = vadd.f32 %v147_v37, %v95_v18  ;;  %v283_v42 = vmul.f32 %v282_v7, %v7146_v41  ;;  %s4065_s7 = sld [smem:[#allocation10 + $0xbf]]  ;;  %s6825_s13 = smov 2  }
  0xae   :  { %v1164_v5 = vadd.f32 %v1162_v39, %v1096_v52  ;;  %v762_v13 = vadd.f32 %v760_v34, %v694_v20  ;;  %v1235_v9 = vstv %s3828_s14  ;;  %v1303_v48 = vstv %s3830_s30  ;;  %s4094_s30 = sld [smem:[#allocation10 + $0xd5]]  ;;  %s4132_s14 = sld [smem:[#allocation10 + $0x6]] }
  0xaf   :  { %v965_v50 = vmul.f32 %v963_v24, %v3261_v2  ;;  %v1033_v38 = vmul.f32 %v1031_v58, %v3273_v11  ;;  %v217_v27 = vadd.f32 %v215_v36, %v149_v61  ;;  %v351_v41 = vmul.f32 %v350_v44, %v7149_v62 }
  0xb0   :  { %v1232_v7 = vadd.f32 %v1230_v47, %v1164_v5  ;;  %v831_v39 = vadd.f32 %v829_v22, %v762_v13  ;;  %v1101_v4 = vmul.f32 %v1099_v28, %v3284_v17  ;;  %v1169_v2 = vmul.f32 %v1167_v30, %v3298_v31  ;;  %7283 = sst [smem:[#allocation83_spill]] %s5499_s21  ;;  %s5516_s21 = sld [smem:[#allocation11 + $0x24]] }
  0xb1   :  { %v1237_v11 = vmul.f32 %v1235_v9, %v3315_v49  ;;  %v3926_v62 = vmul.f32 %v1303_v48, %v7128_v16  ;;  %v285_v44 = vadd.f32 %v283_v42, %v217_v27  ;;  %v419_v17 = vmul.f32 %v418_v1, %v7152_v56  ;;  %v3978_v27 = vld [vmem:[#allocation4 + $0xc] sm:$0xff] }
  0xb2   :  { %v1300_v47 = vadd.f32 %v1298_v15, %v1232_v7  ;;  %v899_v35 = vadd.f32 %v897_v53, %v831_v39  ;;  %v1371_v31 = vstv %s3866_s15  ;;  %v1439_v26 = vstv %s3868_s16  ;;  %v3942_v15 = vld [vmem:[#allocation4 + $0x8] sm:$0xff]  ;;  %v7181_v39 = vld [vmem:[#allocation47_spill] sm:$0xff]  ;;  %s4134_s15 = sld [smem:[#allocation10 + $0x11]]  ;;  %s4140_s16 = sld [smem:[#allocation10 + $0x1c]] }
  0xb3   :  { %v353_v49 = vadd.f32 %v351_v41, %v285_v44  ;;  %v487_v32 = vmul.f32 %v486_v54, %v7155_v60  ;;  %v555_v16 = vmul.f32 %v554_v59, %v7157_v6  ;;  %v98_v43 = vstv %s3882_s17  ;;  %v3950_v60 = vld [vmem:[#allocation4 + $0x9] sm:$0xff]  ;;  %v7180_v41 = vld [vmem:[#allocation46_spill] sm:$0xff]  ;;  %s4151_s17 = sld [smem:[#allocation10 + $0x27]] }
  0xb4   :  { %v1368_v56 = vadd.f32 %v1366_v12, %v1300_v47  ;;  %v967_v1 = vadd.f32 %v965_v50, %v899_v35  ;;  %v100_v34 = vmul.f32 %v3942_v15, %v98_v43  ;;  %v152_v22 = vstv %s3886_s18  ;;  %s4153_s18 = sld [smem:[#allocation10 + $0x32]] }
  0xb5   :  { %v421_v53 = vadd.f32 %v419_v17, %v353_v49  ;;  %v154_v6 = vmul.f32 %v3950_v60, %v152_v22  ;;  %v220_v54 = vstv %s3893_s19  ;;  %v288_v59 = vstv %s3895_s20  ;;  %v3995_v17 = vld [vmem:[#allocation4 + $0xa] sm:$0xff]  ;;  %s4173_s19 = sld [smem:[#allocation10 + $0x3d]]  ;;  %s4194_s20 = sld [smem:[#allocation10 + $0xeb]] }
  0xb6   :  { %v1436_v12 = vadd.f32 %v3853_v14, %v1368_v56  ;;  %v1035_v18 = vadd.f32 %v1033_v38, %v967_v1  ;;  %v623_v37 = vmul.f32 %v3942_v15, %v622_v8  ;;  %v222_v36 = vmul.f32 %v220_v54, %v3166_v19  ;;  %7290 = sst [smem:[#allocation90_spill]] %s5516_s21  ;;  %s5534_s21 = sld [smem:[#allocation11 + $0x71]] }
  0xb7   :  { %v489_v52 = vadd.f32 %v487_v32, %v421_v53  ;;  %v156_v20 = vadd.f32 %v154_v6, %v100_v34  ;;  %v290_v61 = vmul.f32 %v288_v59, %v3173_v23  ;;  %v356_v42 = vstv %s3908_s22  ;;  %v4017_v6 = vld [vmem:[#allocation4 + $0xe] sm:$0xff]  ;;  %s4201_s22 = sld [smem:[#allocation10 + $0x48]] }
  0xb8   :  { %v1504_v14 = vadd.f32 %v3858_v46, %v1436_v12  ;;  %v1103_v5 = vadd.f32 %v1101_v4, %v1035_v18  ;;  %v1507_v13 = vstv %s3916_s23  ;;  %v424_v8 = vstv %s3918_s0  ;;  %s4217_s23 = sld [smem:[#allocation10 + $0x53]]  ;;  %s4229_s0 = sld [smem:[#allocation10 + $0x5e]] }
  0xb9   :  { %v557_v19 = vadd.f32 %v555_v16, %v489_v52  ;;  %v691_v50 = vmul.f32 %v3950_v60, %v690_v0  ;;  %v224_v38 = vadd.f32 %v222_v36, %v156_v20  ;;  %v358_v23 = vmul.f32 %v3978_v27, %v356_v42  ;;  %v4059_v36 = vld [vmem:[#allocation4 + $0x10] sm:$0xff] }
  0xba   :  { %1562 = vrot.lane.b32.xlu0 %v1504_v14, %s6891_s8  ;;  %v1171_v46 = vadd.f32 %v1169_v2, %v1103_v5  ;;  %v1373_v7 = vmul.f32 %v1371_v31, %v7180_v41  ;;  %v1441_v0 = vmul.f32 %v1439_v26, %v7181_v39  ;;  %v492_v4 = vstv %s3933_s2  ;;  %v4000_v2 = vld [vmem:[#allocation4 + $0xd] sm:$0xff]  ;;  %s4244_s2 = sld [smem:[#allocation10 + $0x69]]  ;;  %s5482_s8 = sld [smem:[#allocation11 + $0xd]] }
  0xbb   :  { %v625_v44 = vadd.f32 %v623_v37, %v557_v19  ;;  %v759_v47 = vmul.f32 %v3995_v17, %v758_v40  ;;  %v292_v35 = vadd.f32 %v290_v61, %v224_v38  ;;  %v426_v49 = vmul.f32 %v4000_v2, %v424_v8  ;;  %v4039_v37 = vld [vmem:[#allocation4 + $0xf] sm:$0xff] }
  0xbc   :  { %v1239_v32 = vadd.f32 %v1237_v11, %v1171_v46  ;;  %v1509_v16 = vmul.f32 %v1507_v13, %v3375_v3  ;;  %v828_v56 = vmul.f32 %v827_v45, %v3232_v51  ;;  %v560_v1 = vstv %s3948_s24  ;;  %v4082_v5 = vld [vmem:[#allocation4 + $0x29] sm:$0xff]  ;;  %s4255_s24 = sld [smem:[#allocation10 + $0x74]] }
  0xbd   :  { %v693_v40 = vadd.f32 %v691_v50, %v625_v44  ;;  %v896_v34 = vmul.f32 %v895_v25, %v3245_v57  ;;  %v360_v53 = vadd.f32 %v358_v23, %v292_v35  ;;  %v494_v3 = vmul.f32 %v4017_v6, %v492_v4  ;;  %v4096_v38 = vld [vmem:[#allocation4 + $0x2a] sm:$0xff]  ;;  %7297 = sst [smem:[#allocation97_spill]] %s5534_s21  ;;  %s5549_s21 = sld [smem:[#allocation11 + $0x30]] }
  0xbe   :  { %v1307_v51 = vadd.f32 %v3926_v62, %v1239_v32  ;;  %v964_v45 = vmul.f32 %v963_v24, %v3259_v63  ;;  %v1032_v11 = vmul.f32 %v1031_v58, %v3271_v10  ;;  %v628_v57 = vstv %s3964_s25  ;;  %7182 = vst [vmem:[#allocation27_spill] sm:$0xff] %v4096_v38  ;;  %s4261_s25 = sld [smem:[#allocation10 + $0x7f]] }
  0xbf   :  { %v761_v25 = vadd.f32 %v759_v47, %v693_v40  ;;  %v4037_v12 = vmul.f32 %v1099_v28, %v7171_v33  ;;  %v428_v18 = vadd.f32 %v426_v49, %v360_v53  ;;  %v562_v63 = vmul.f32 %v4039_v37, %v560_v1  ;;  %v4117_v47 = vld [vmem:[#allocation4] sm:$0xff] }
  0xc0   :  { %v1375_v10 = vadd.f32 %v1373_v7, %v1307_v51  ;;  %v4049_v24 = vmul.f32 %v1167_v30, %v3287_v21  ;;  %v4054_v33 = vmul.f32 %v1235_v9, %v7174_v55  ;;  %v696_v58 = vstv %s3973_s28  ;;  %v4074_v30 = vld [vmem:[#allocation4 + $0x28] sm:$0xff]  ;;  %s4281_s28 = sld [smem:[#allocation10 + $0x8a]]  ;;  %7275 = sst [smem:[#allocation76_spill]] %s5482_s8 }
  0xc1   :  { %v830_v28 = vadd.f32 %v828_v56, %v761_v25  ;;  %v496_v62 = vadd.f32 %v494_v3, %v428_v18  ;;  %v630_v52 = vmul.f32 %v4059_v36, %v628_v57  ;;  %v764_v20 = vstv %s3983_s26  ;;  %v4122_v49 = vld [vmem:[#allocation4 + $0x1] sm:$0xff]  ;;  %s4294_s26 = sld [smem:[#allocation10 + $0x95]]  ;;  %s5497_s8 = sld [smem:[#allocation11 + $0x44]] }
  0xc2   :  { %v1443_v21 = vadd.f32 %v1441_v0, %v1375_v10  ;;  %v4072_v55 = vmul.f32 %v1303_v48, %v7127_v29  ;;  %v4079_v9 = vmul.f32 %v4074_v30, %v1371_v31  ;;  %v833_v61 = vstv %s3993_s27  ;;  %v4089_v29 = vld [vmem:[#allocation4 + $0x11] sm:$0xff]  ;;  %v4146_v51 = vld [vmem:[#allocation4 + $0x3] sm:$0xff]  ;;  %s4318_s27 = sld [smem:[#allocation10 + $0xab]] }
  0xc3   :  { %v898_v14 = vadd.f32 %v896_v34, %v830_v28  ;;  %v4087_v19 = vmul.f32 %v4082_v5, %v1439_v26  ;;  %v564_v50 = vadd.f32 %v562_v63, %v496_v62  ;;  %v698_v48 = vmul.f32 %v4089_v29, %v696_v58  ;;  %v4103_v26 = vld [vmem:[#allocation4 + $0x12] sm:$0xff]  ;;  %7302 = sst [smem:[#allocation102_spill]] %s5549_s21  ;;  %s5585_s21 = sld [smem:[#allocation11 + $0x27]] }
  0xc4   :  { %v1511_v31 = vadd.f32 %v1509_v16, %v1443_v21  ;;  %v4101_v23 = vmul.f32 %v4096_v38, %v1507_v13  ;;  %v766_v46 = vmul.f32 %v4103_v26, %v764_v20  ;;  %v901_v41 = vstv %s4012_s29  ;;  %v4127_v16 = vld [vmem:[#allocation4 + $0x2] sm:$0xff]  ;;  %v4158_v10 = vld [vmem:[#allocation4 + $0x2b] sm:$0xff]  ;;  %s4320_s29 = sld [smem:[#allocation10 + $0xb6]] }
  0xc5   :  { %v966_v7 = vadd.f32 %v964_v45, %v898_v14  ;;  %v632_v39 = vadd.f32 %v630_v52, %v564_v50  ;;  %v835_v0 = vmul.f32 %v4074_v30, %v833_v61  ;;  %v969_v44 = vstv %s4022_s1  ;;  %7183 = vst [vmem:[#allocation29_spill] sm:$0xff] %v4158_v10  ;;  %v4163_v62 = vld [vmem:[#allocation4 + $0x2c] sm:$0xff]  ;;  %v4168_v21 = vld [vmem:[#allocation4 + $0x4] sm:$0xff]  ;;  %s4330_s1 = sld [smem:[#allocation10 + $0xc1]] }
  0xc6   :  { %1568 = vrot.lane.b32.xlu1 %v1511_v31, %s6825_s13  ;;  %v1037_v13 = vstv %s4032_s4  ;;  %v99_v35 = vmul.f32 %v4117_v47, %v98_v43  ;;  %v153_v32 = vmul.f32 %v4122_v49, %v152_v22  ;;  %v221_v56 = vmul.f32 %v4127_v16, %v220_v54  ;;  %s4347_s4 = sld [smem:[#allocation10 + $0xcc]] }
  0xc7   :  { %v1034_v40 = vadd.f32 %v1032_v11, %v966_v7  ;;  %v700_v34 = vadd.f32 %v698_v48, %v632_v39  ;;  %v903_v43 = vmul.f32 %v4082_v5, %v901_v41  ;;  %v1105_v53 = vstv %s4044_s9  ;;  %v4176_v48 = vld [vmem:[#allocation4 + $0x2d] sm:$0xff]  ;;  %s4368_s9 = sld [smem:[#allocation10 + $0xd7]]  ;;  %7282 = sst [smem:[#allocation82_spill]] %s5497_s8 }
  0xc8   :  { %v971_v22 = vmul.f32 %v4096_v38, %v969_v44  ;;  %v1173_v54 = vstv %s4057_s10  ;;  %v155_v3 = vadd.f32 %v153_v32, %v99_v35  ;;  %v289_v45 = vmul.f32 %v4146_v51, %v288_v59  ;;  %v4182_v7 = vld [vmem:[#allocation4 + $0x2e] sm:$0xff]  ;;  %v4196_v35 = vld [vmem:[#allocation4 + $0x5] sm:$0xff]  ;;  %s4374_s10 = sld [smem:[#allocation10 + $0xe2]]  ;;  %s5657_s8 = sld [smem:[#allocation11 + $0x13]] }
  0xc9   :  { %v1102_v11 = vadd.f32 %v4037_v12, %v1034_v40  ;;  %v768_v25 = vadd.f32 %v766_v46, %v700_v34  ;;  %v6822_v18 = vstv %s4065_s7  ;;  %v6821_v63 = vstv %s4067_s11  ;;  %7312 = sst [smem:[#allocation112_spill]] %s5585_s21 }
  0xca   :  { %v1039_v28 = vmul.f32 %v4158_v10, %v1037_v13  ;;  %v1107_v59 = vmul.f32 %v4163_v62, %v1105_v53  ;;  %v223_v52 = vadd.f32 %v221_v56, %v155_v3  ;;  %v357_v12 = vmul.f32 %v4168_v21, %v356_v42  ;;  %v4187_v42 = vld [vmem:[#allocation4 + $0x2f] sm:$0xff]  ;;  %v4205_v3 = vld [vmem:[#allocation4 + $0x6] sm:$0xff] }
  0xcb   :  { %v1170_v14 = vadd.f32 %v4049_v24, %v1102_v11  ;;  %v837_v50 = vadd.f32 %v835_v0, %v768_v25  ;;  %v1175_v31 = vmul.f32 %v4176_v48, %v1173_v54  ;;  %v1377_v46 = vstv %s4094_s30  ;;  %7184 = vst [vmem:[#allocation43_spill] sm:$0xff] %v4187_v42  ;;  %v4210_v25 = vld [vmem:[#allocation4 + $0x7] sm:$0xff]  ;;  %s4394_s30 = sld [smem:[#allocation10 + $0x12]] }
  0xcc   :  { %v1243_v39 = vmul.f32 %v4182_v7, %v6822_v18  ;;  %v4192_v24 = vmul.f32 %v4187_v42, %v6821_v63  ;;  %v291_v0 = vadd.f32 %v289_v45, %v223_v52  ;;  %v425_v32 = vmul.f32 %v4196_v35, %v424_v8 }
  0xcd   :  { %v1238_v56 = vadd.f32 %v4054_v33, %v1170_v14  ;;  %v905_v40 = vadd.f32 %v903_v43, %v837_v50  ;;  %v1445_v34 = vstv %s4113_s12  ;;  %v493_v45 = vmul.f32 %v4205_v3, %v492_v4  ;;  %s4396_s12 = sld [smem:[#allocation10 + $0x1d]] }
  0xce   :  { %v359_v11 = vadd.f32 %v357_v12, %v291_v0  ;;  %v561_v8 = vmul.f32 %v4210_v25, %v560_v1  ;;  %v6824_v52 = vstv %s4132_s14  ;;  %v6823_v63 = vstv %s4134_s15  ;;  %7349 = sst [smem:[#allocation130_spill]] %s5657_s8  ;;  %s7413_s8 = sld [smem:[#allocation77_spill]] }
  0xcf   :  { %v1306_v33 = vadd.f32 %v4072_v55, %v1238_v56  ;;  %v973_v43 = vadd.f32 %v971_v22, %v905_v40  ;;  %v108_v4 = vmul.f32 %v3942_v15, %v6824_v52  ;;  %v166_v12 = vmul.f32 %v3950_v60, %v6823_v63 }
  0xd0   :  { %v427_v14 = vadd.f32 %v425_v32, %v359_v11  ;;  %v232_v50 = vstv %s4140_s16  ;;  %v6833_v1 = vstv %s4151_s17  ;;  %v6831_v0 = vstv %s4153_s18  ;;  %v4238_v11 = vld [vmem:[#allocation4 + $0xb] sm:$0xff]  ;;  %s4428_s16 = sld [smem:[#allocation10 + $0x3e]] }
  0xd1   :  { %v1374_v18 = vadd.f32 %v4079_v9, %v1306_v33  ;;  %v1041_v55 = vadd.f32 %v1039_v28, %v973_v43  ;;  %v168_v22 = vadd.f32 %v166_v12, %v108_v4  ;;  %v234_v56 = vmul.f32 %v3995_v17, %v232_v50 }
  0xd2   :  { %v495_v40 = vadd.f32 %v493_v45, %v427_v14  ;;  %v629_v32 = vmul.f32 %v3942_v15, %v628_v57  ;;  %v302_v63 = vmul.f32 %v4238_v11, %v6833_v1  ;;  %v6829_v52 = vstv %s4173_s19 }
  0xd3   :  { %v1442_v9 = vadd.f32 %v4087_v19, %v1374_v18  ;;  %v1109_v28 = vadd.f32 %v1107_v59, %v1041_v55  ;;  %v236_v33 = vadd.f32 %v234_v56, %v168_v22  ;;  %v370_v45 = vmul.f32 %v3978_v27, %v6831_v0  ;;  %v4263_v55 = vld [vmem:[#allocation4 + $0x30] sm:$0xff]  ;;  %v4349_v0 = vld [vmem:[#allocation4 + $0x27] sm:$0xff] }
  0xd4   :  { %v6832_v57 = vstv %s4194_s20  ;;  %v563_v43 = vadd.f32 %v561_v8, %v495_v40  ;;  %v697_v4 = vmul.f32 %v3950_v60, %v696_v58  ;;  %v6828_v12 = vstv %s4201_s22 }
  0xd5   :  { %v1510_v14 = vadd.f32 %v4101_v23, %v1442_v9  ;;  %v1177_v19 = vadd.f32 %v1175_v31, %v1109_v28  ;;  %v304_v18 = vadd.f32 %v302_v63, %v236_v33  ;;  %v438_v59 = vmul.f32 %v4000_v2, %v6829_v52  ;;  %v4273_v31 = vld [vmem:[#allocation4 + $0x31] sm:$0xff]  ;;  %v4288_v28 = vld [vmem:[#allocation4 + $0x20] sm:$0xff] }
  0xd6   :  { %v1379_v58 = vmul.f32 %v4263_v55, %v1377_v46  ;;  %v631_v8 = vadd.f32 %v629_v32, %v563_v43  ;;  %v765_v22 = vmul.f32 %v3995_v17, %v764_v20  ;;  %v6827_v23 = vstv %s4217_s23  ;;  %v4283_v32 = vld [vmem:[#allocation4 + $0x32] sm:$0xff] }
  0xd7   :  { %1566 = vrot.lane.b32.xlu0 %v1510_v14, %s6825_s13  ;;  %v1245_v63 = vadd.f32 %v1243_v39, %v1177_v19  ;;  %v1447_v56 = vmul.f32 %v4273_v31, %v1445_v34  ;;  %v372_v40 = vadd.f32 %v370_v45, %v304_v18  ;;  %v506_v9 = vmul.f32 %v4017_v6, %v6828_v12  ;;  %v4297_v14 = vld [vmem:[#allocation4 + $0x21] sm:$0xff]  ;;  %s4305_s13 = sld [smem:[#allocation10 + $0xa0]] }
  0xd8   :  { %v1515_v20 = vmul.f32 %v4283_v32, %v6832_v57  ;;  %v699_v39 = vadd.f32 %v697_v4, %v631_v8  ;;  %v834_v33 = vmul.f32 %v4288_v28, %v833_v61  ;;  %v6830_v45 = vstv %s4229_s0  ;;  %v4307_v61 = vld [vmem:[#allocation4 + $0x22] sm:$0xff] }
  0xd9   :  { %v1313_v43 = vadd.f32 %v4192_v24, %v1245_v63  ;;  %v902_v19 = vmul.f32 %v4297_v14, %v901_v41  ;;  %v440_v18 = vadd.f32 %v438_v59, %v372_v40  ;;  %v574_v4 = vmul.f32 %v4039_v37, %v6827_v23  ;;  %v4312_v63 = vld [vmem:[#allocation4 + $0x23] sm:$0xff] }
  0xda   :  { %v767_v8 = vadd.f32 %v765_v22, %v699_v39  ;;  %v970_v24 = vmul.f32 %v4307_v61, %v969_v44  ;;  %v1038_v41 = vmul.f32 %v4312_v63, %v1037_v13  ;;  %v6836_v59 = vstv %s4244_s2  ;;  %v4322_v40 = vld [vmem:[#allocation4 + $0x24] sm:$0xff] }
  0xdb   :  { %v1381_v22 = vadd.f32 %v1379_v58, %v1313_v43  ;;  %v1106_v44 = vmul.f32 %v4322_v40, %v1105_v53  ;;  %v508_v39 = vadd.f32 %v506_v9, %v440_v18  ;;  %v642_v23 = vmul.f32 %v4059_v36, %v6830_v45  ;;  %v4332_v12 = vld [vmem:[#allocation4 + $0x25] sm:$0xff] }
  0xdc   :  { %v836_v13 = vadd.f32 %v834_v33, %v767_v8  ;;  %v1174_v58 = vmul.f32 %v4332_v12, %v1173_v54  ;;  %v4337_v43 = vld [vmem:[#allocation4 + $0x26] sm:$0xff]  ;;  %v7185_v52 = vstv %s4065_s7  ;;  %v6835_v9 = vstv %s4255_s24  ;;  %s6866_s7 = smov 1  }
  0xdd   :  { %v1242_v53 = vmul.f32 %v4337_v43, %v7185_v52  ;;  %v1449_v18 = vadd.f32 %v1447_v56, %v1381_v22  ;;  %v576_v45 = vadd.f32 %v574_v4, %v508_v39  ;;  %v710_v33 = vmul.f32 %v4089_v29, %v6836_v59 }
  0xde   :  { %v6834_v8 = vstv %s4261_s25  ;;  %v904_v54 = vadd.f32 %v902_v19, %v836_v13  ;;  %v7186_v57 = vstv %s4067_s11  ;;  %v4357_v52 = vmul.f32 %v4074_v30, %v1377_v46  ;;  %s4387_s11 = sld [smem:[#allocation10 + $0x7]] }
  0xdf   :  { %v1310_v1 = vmul.f32 %v4349_v0, %v7186_v57  ;;  %v4362_v56 = vmul.f32 %v4082_v5, %v1445_v34  ;;  %v1517_v4 = vadd.f32 %v1515_v20, %v1449_v18  ;;  %v644_v22 = vadd.f32 %v642_v23, %v576_v45 }
  0xe0   :  { %v778_v19 = vmul.f32 %v4103_v26, %v6835_v9  ;;  %v6837_v39 = vstv %s4281_s28  ;;  %v972_v57 = vadd.f32 %v970_v24, %v904_v54  ;;  %v847_v46 = vmul.f32 %v4074_v30, %v6834_v8 }
  0xe1   :  { %v6838_v13 = vstv %s4294_s26  ;;  %v7187_v34 = vstv %s4132_s14  ;;  %1572 = vrot.lane.b32.xlu1 %v1517_v4, %s6866_s7  ;;  %v712_v20 = vadd.f32 %v710_v33, %v644_v22  ;;  %v6839_v45 = vstv %s4305_s13  ;;  %s4411_s14 = sld [smem:[#allocation10 + $0x28]] }
  0xe2   :  { %v107_v23 = vmul.f32 %v4117_v47, %v7187_v34  ;;  %v7188_v18 = vstv %s4134_s15  ;;  %v233_v54 = vmul.f32 %v4127_v16, %v232_v50  ;;  %v1040_v8 = vadd.f32 %v1038_v41, %v972_v57  ;;  %s4413_s15 = sld [smem:[#allocation10 + $0x33]] }
  0xe3   :  { %v165_v24 = vmul.f32 %v4122_v49, %v7188_v18  ;;  %v915_v34 = vmul.f32 %v4082_v5, %v6837_v39  ;;  %v780_v33 = vadd.f32 %v778_v19, %v712_v20  ;;  %v6843_v22 = vstv %s4330_s1 }
  0xe4   :  { %v7189_v18 = vstv %s4151_s17  ;;  %v1108_v57 = vadd.f32 %v1106_v44, %v1040_v8  ;;  %v7190_v59 = vstv %s4194_s20  ;;  %v983_v4 = vmul.f32 %v4096_v38, %v6838_v13  ;;  %s4434_s17 = sld [smem:[#allocation10 + $0x49]]  ;;  %s4462_s20 = sld [smem:[#allocation10 + $0x5f]] }
  0xe5   :  { %v167_v50 = vadd.f32 %v165_v24, %v107_v23  ;;  %v301_v41 = vmul.f32 %v4146_v51, %v7189_v18  ;;  %v1514_v39 = vmul.f32 %v4096_v38, %v7190_v59  ;;  %v1051_v9 = vmul.f32 %v4158_v10, %v6839_v45 }
  0xe6   :  { %v849_v19 = vadd.f32 %v847_v46, %v780_v33  ;;  %v6842_v23 = vstv %s4347_s4  ;;  %v7191_v8 = vstv %s4153_s18  ;;  %v1176_v20 = vadd.f32 %v1174_v58, %v1108_v57  ;;  %s4440_s18 = sld [smem:[#allocation10 + $0xed]] }
  0xe7   :  { %v235_v44 = vadd.f32 %v233_v54, %v167_v50  ;;  %v369_v59 = vmul.f32 %v4168_v21, %v7191_v8  ;;  %v7192_v24 = vstv %s4318_s27  ;;  %v7193_v13 = vstv %s4320_s29 }
  0xe8   :  { %v1119_v18 = vmul.f32 %v4163_v62, %v7192_v24  ;;  %v1187_v45 = vmul.f32 %v4176_v48, %v7193_v13  ;;  %v1255_v10 = vmul.f32 %v4182_v7, %v6843_v22  ;;  %v917_v46 = vadd.f32 %v915_v34, %v849_v19 }
  0xe9   :  { %v1389_v54 = vstv %s4368_s9  ;;  %v303_v33 = vadd.f32 %v301_v41, %v235_v44  ;;  %v7194_v58 = vstv %s4173_s19  ;;  %v1244_v57 = vadd.f32 %v1242_v53, %v1176_v20  ;;  %s4454_s19 = sld [smem:[#allocation10 + $0x54]]  ;;  %s4596_s9 = sld [smem:[#allocation10 + $0x8]] }
  0xea   :  { %v437_v50 = vmul.f32 %v4196_v35, %v7194_v58  ;;  %v1323_v13 = vmul.f32 %v4187_v42, %v6842_v23  ;;  %v7195_v24 = vstv %s4201_s22  ;;  %v985_v19 = vadd.f32 %v983_v4, %v917_v46  ;;  %s4481_s22 = sld [smem:[#allocation10 + $0x6a]] }
  0xeb   :  { %v505_v34 = vmul.f32 %v4205_v3, %v7195_v24  ;;  %v371_v41 = vadd.f32 %v369_v59, %v303_v33  ;;  %v7196_v44 = vstv %s4217_s23  ;;  %v6844_v53 = vstv %s4387_s11  ;;  %s4484_s23 = sld [smem:[#allocation10 + $0x75]] }
  0xec   :  { %v573_v58 = vmul.f32 %v4210_v25, %v7196_v44  ;;  %v1312_v20 = vadd.f32 %v1310_v1, %v1244_v57  ;;  %v112_v23 = vmul.f32 %v3942_v15, %v6844_v53  ;;  %v6846_v22 = vstv %s4394_s30 }
  0xed   :  { %v6845_v8 = vstv %s4396_s12  ;;  %v1053_v24 = vadd.f32 %v1051_v9, %v985_v19  ;;  %v439_v4 = vadd.f32 %v437_v50, %v371_v41  ;;  %v172_v59 = vmul.f32 %v3950_v60, %v6846_v22 }
  0xee   :  { %v240_v46 = vmul.f32 %v3995_v17, %v6845_v8  ;;  %v1380_v1 = vadd.f32 %v4357_v52, %v1312_v20  ;;  %v7197_v33 = vstv %s4229_s0  ;;  %v6854_v44 = vstv %s4411_s14  ;;  %s4493_s0 = sld [smem:[#allocation10 + $0x80]] }
  0xef   :  { %v641_v57 = vmul.f32 %v3942_v15, %v7197_v33  ;;  %v6853_v53 = vstv %s4413_s15  ;;  %v1121_v9 = vadd.f32 %v1119_v18, %v1053_v24  ;;  %v507_v50 = vadd.f32 %v505_v34, %v439_v4 }
  0xf0   :  { %v174_v19 = vadd.f32 %v172_v59, %v112_v23  ;;  %v308_v41 = vmul.f32 %v4238_v11, %v6854_v44  ;;  %v1448_v8 = vadd.f32 %v4362_v56, %v1380_v1  ;;  %v7198_v22 = vstv %s4244_s2  ;;  %s4509_s2 = sld [smem:[#allocation10 + $0x8b]] }
  0xf1   :  { %v709_v52 = vmul.f32 %v3950_v60, %v7198_v22  ;;  %v376_v20 = vmul.f32 %v3978_v27, %v6853_v53  ;;  %v6848_v33 = vstv %s4428_s16  ;;  %v1189_v18 = vadd.f32 %v1187_v45, %v1121_v9 }
  0xf2   :  { %v575_v34 = vadd.f32 %v573_v58, %v507_v50  ;;  %v242_v23 = vadd.f32 %v240_v46, %v174_v19  ;;  %v6847_v24 = vstv %s4434_s17  ;;  %v1516_v56 = vadd.f32 %v1514_v39, %v1448_v8 }
  0xf3   :  { %v1391_v22 = vmul.f32 %v4263_v55, %v1389_v54  ;;  %v1525_v4 = vstv %s4440_s18  ;;  %v7199_v59 = vstv %s4255_s24  ;;  %v1257_v45 = vadd.f32 %v1255_v10, %v1189_v18  ;;  %s4512_s24 = sld [smem:[#allocation10 + $0x96]]  ;;  %s4645_s18 = sld [smem:[#allocation10 + $0x4a]] }
  0xf4   :  { %v777_v1 = vmul.f32 %v3995_v17, %v7199_v59  ;;  %v643_v58 = vadd.f32 %v641_v57, %v575_v34  ;;  %v310_v46 = vadd.f32 %v308_v41, %v242_v23  ;;  %v444_v9 = vmul.f32 %v4000_v2, %v6848_v33  ;;  %1570 = vrot.lane.b32.xlu0 %v1516_v56, %s6866_s7  ;;  %s4698_s7 = sld [smem:[#allocation10 + $0x81]] }
  0xf5   :  { %v7200_v39 = vstv %s4374_s10  ;;  %v7201_v50 = vstv %s4261_s25  ;;  %v512_v59 = vmul.f32 %v4017_v6, %v6847_v24  ;;  %v6849_v10 = vstv %s4454_s19  ;;  %s4524_s25 = sld [smem:[#allocation10 + $0xa1]] }
  0xf6   :  { %v1459_v8 = vmul.f32 %v4273_v31, %v7200_v39  ;;  %v846_v19 = vmul.f32 %v4288_v28, %v7201_v50  ;;  %v1325_v57 = vadd.f32 %v1323_v13, %v1257_v45  ;;  %v711_v41 = vadd.f32 %v709_v52, %v643_v58 }
  0xf7   :  { %v378_v18 = vadd.f32 %v376_v20, %v310_v46  ;;  %v6850_v34 = vstv %s4462_s20  ;;  %v1527_v23 = vmul.f32 %v4283_v32, %v1525_v4  ;;  %v7202_v56 = vstv %s4281_s28  ;;  %s4529_s28 = sld [smem:[#allocation10 + $0xac]] }
  0xf8   :  { %v914_v39 = vmul.f32 %v4297_v14, %v7202_v56  ;;  %v7203_v50 = vstv %s4294_s26  ;;  %v7204_v33 = vstv %s4305_s13  ;;  %v1393_v52 = vadd.f32 %v1391_v22, %v1325_v57  ;;  %s4541_s13 = sld [smem:[#allocation10 + $0xb7]]  ;;  %s4544_s26 = sld [smem:[#allocation10 + $0xc2]] }
  0xf9   :  { %v982_v24 = vmul.f32 %v4307_v61, %v7203_v50  ;;  %v1050_v13 = vmul.f32 %v4312_v63, %v7204_v33  ;;  %v779_v20 = vadd.f32 %v777_v1, %v711_v41  ;;  %v446_v45 = vadd.f32 %v444_v9, %v378_v18 }
  0xfa   :  { %v580_v58 = vmul.f32 %v4039_v37, %v6849_v10  ;;  %v7205_v46 = vstv %s4318_s27  ;;  %v7206_v50 = vstv %s4320_s29  ;;  %v648_v22 = vmul.f32 %v4059_v36, %v6850_v34  ;;  %s4546_s27 = sld [smem:[#allocation10 + $0xcd]]  ;;  %s4565_s29 = sld [smem:[#allocation10 + $0xd8]] }
  0xfb   :  { %v1118_v56 = vmul.f32 %v4322_v40, %v7205_v46  ;;  %v1186_v33 = vmul.f32 %v4332_v12, %v7206_v50  ;;  %v6852_v1 = vstv %s4481_s22  ;;  %v1461_v9 = vadd.f32 %v1459_v8, %v1393_v52 }
  0xfc   :  { %v848_v57 = vadd.f32 %v846_v19, %v779_v20  ;;  %v514_v41 = vadd.f32 %v512_v59, %v446_v45  ;;  %v6851_v18 = vstv %s4484_s23  ;;  %v7207_v46 = vstv %s4330_s1  ;;  %s6868_s1 = smov 127  }
  0xfd   :  { %v1254_v50 = vmul.f32 %v4337_v43, %v7207_v46  ;;  %v7208_v10 = vstv %s4347_s4  ;;  %v4559_v8 = vmul.f32 %v4074_v30, %v1389_v54  ;;  %v6855_v19 = vstv %s4493_s0  ;;  %s4584_s4 = sld [smem:[#allocation10 + $0xe3]] }
  0xfe   :  { %v4554_v34 = vmul.f32 %v4349_v0, %v7208_v10  ;;  %v1529_v59 = vadd.f32 %v1527_v23, %v1461_v9  ;;  %v916_v52 = vadd.f32 %v914_v39, %v848_v57  ;;  %v582_v20 = vadd.f32 %v580_v58, %v514_v41 }
  0xff   :  { %v716_v45 = vmul.f32 %v4089_v29, %v6852_v1  ;;  %v7209_v10 = vstv %s4374_s10  ;;  %v4573_v54 = vmul.f32 %v4096_v38, %v1525_v4  ;;  %v784_v23 = vmul.f32 %v4103_v26, %v6851_v18  ;;  %s4598_s10 = sld [smem:[#allocation10 + $0x13]] }
 0x100   :  { %v4570_v46 = vmul.f32 %v4082_v5, %v7209_v10  ;;  %v6856_v39 = vstv %s4509_s2  ;;  %1576 = vrot.lane.b32.xlu1 %v1529_v59, %s6868_s1  ;;  %v984_v58 = vadd.f32 %v982_v24, %v916_v52  ;;  %v650_v9 = vadd.f32 %v648_v22, %v582_v20 }
 0x101   :  { %v853_v57 = vmul.f32 %v4074_v30, %v6855_v19  ;;  %v6857_v41 = vstv %s4512_s24  ;;  %v7210_v10 = vstv %s4387_s11  ;;  %v7211_v1 = vstv %s4394_s30  ;;  %s4604_s11 = sld [smem:[#allocation10 + $0x1e]]  ;;  %s4613_s30 = sld [smem:[#allocation10 + $0x29]] }
 0x102   :  { %v111_v18 = vmul.f32 %v4117_v47, %v7210_v10  ;;  %v171_v53 = vmul.f32 %v4122_v49, %v7211_v1  ;;  %v7212_v44 = vstv %s4396_s12  ;;  %v1052_v22 = vadd.f32 %v1050_v13, %v984_v58  ;;  %s4615_s12 = sld [smem:[#allocation10 + $0x34]] }
 0x103   :  { %v239_v24 = vmul.f32 %v4127_v16, %v7212_v44  ;;  %v718_v59 = vadd.f32 %v716_v45, %v650_v9  ;;  %v921_v52 = vmul.f32 %v4082_v5, %v6856_v39  ;;  %v6860_v20 = vstv %s4529_s28 }
 0x104   :  { %v989_v44 = vmul.f32 %v4096_v38, %v6857_v41  ;;  %v173_v10 = vadd.f32 %v171_v53, %v111_v18  ;;  %v7213_v19 = vstv %s4411_s14  ;;  %v1120_v13 = vadd.f32 %v1118_v56, %v1052_v22  ;;  %v7215_v41 = vld [vmem:[#allocation29_spill] sm:$0xff]  ;;  %s4628_s14 = sld [smem:[#allocation10 + $0x3f]] }
 0x105   :  { %v307_v4 = vmul.f32 %v4146_v51, %v7213_v19  ;;  %v786_v45 = vadd.f32 %v784_v23, %v718_v59  ;;  %v6861_v58 = vstv %s4544_s26  ;;  %v6862_v9 = vstv %s4546_s27 }
 0x106   :  { %v7214_v39 = vstv %s4524_s25  ;;  %v1125_v53 = vmul.f32 %v4163_v62, %v6860_v20  ;;  %v241_v18 = vadd.f32 %v239_v24, %v173_v10  ;;  %v7216_v19 = vstv %s4413_s15  ;;  %s4640_s15 = sld [smem:[#allocation10 + $0xee]] }
 0x107   :  { %v1057_v1 = vmul.f32 %v7215_v41, %v7214_v39  ;;  %v375_v38 = vmul.f32 %v4168_v21, %v7216_v19  ;;  %v1188_v56 = vadd.f32 %v1186_v33, %v1120_v13  ;;  %v855_v23 = vadd.f32 %v853_v57, %v786_v45 }
 0x108   :  { %v7217_v22 = vstv %s4541_s13  ;;  %v1261_v20 = vmul.f32 %v4182_v7, %v6861_v58  ;;  %v1329_v24 = vmul.f32 %v4187_v42, %v6862_v9  ;;  %v309_v10 = vadd.f32 %v307_v4, %v241_v18 }
 0x109   :  { %v1193_v59 = vmul.f32 %v4176_v48, %v7217_v22  ;;  %v7218_v19 = vstv %s4428_s16  ;;  %v1256_v57 = vadd.f32 %v1254_v50, %v1188_v56  ;;  %v923_v13 = vadd.f32 %v921_v52, %v855_v23  ;;  %s4656_s16 = sld [smem:[#allocation10 + $0x55]] }
 0x10a   :  { %v443_v33 = vmul.f32 %v4196_v35, %v7218_v19  ;;  %v1463_v45 = vstv %s4584_s4  ;;  %v7219_v22 = vstv %s4434_s17  ;;  %v377_v9 = vadd.f32 %v375_v38, %v309_v10  ;;  %s4668_s17 = sld [smem:[#allocation10 + $0x60]]  ;;  %s4810_s4 = sld [smem:[#allocation10 + $0x1f]] }
 0x10b   :  { %v511_v58 = vmul.f32 %v4205_v3, %v7219_v22  ;;  %v7220_v39 = vstv %s4454_s19  ;;  %v6864_v4 = vstv %s4596_s9  ;;  %v6865_v18 = vstv %s4598_s10  ;;  %s4681_s19 = sld [smem:[#allocation10 + $0x6b]] }
 0x10c   :  { %v579_v42 = vmul.f32 %v4210_v25, %v7220_v39  ;;  %v1324_v19 = vadd.f32 %v4554_v34, %v1256_v57  ;;  %v991_v50 = vadd.f32 %v989_v44, %v923_v13  ;;  %v116_v52 = vmul.f32 %v3942_v15, %v6864_v4 }
 0x10d   :  { %v178_v38 = vmul.f32 %v3950_v60, %v6865_v18  ;;  %v445_v56 = vadd.f32 %v443_v33, %v377_v9  ;;  %v244_v23 = vstv %s4604_s11  ;;  %v312_v39 = vstv %s4613_s30  ;;  %s4842_s11 = sld [smem:[#allocation10 + $0x40]]  ;;  %s4852_s30 = sld [smem:[#allocation10 + $0xef]] }
 0x10e   :  { %v380_v10 = vstv %s4615_s12  ;;  %v1392_v22 = vadd.f32 %v4559_v8, %v1324_v19  ;;  %v1059_v34 = vadd.f32 %v1057_v1, %v991_v50  ;;  %v246_v57 = vmul.f32 %v3995_v17, %v244_v23  ;;  %s4857_s12 = sld [smem:[#allocation10 + $0x4b]] }
 0x10f   :  { %v180_v44 = vadd.f32 %v178_v38, %v116_v52  ;;  %v513_v13 = vadd.f32 %v511_v58, %v445_v56  ;;  %v7221_v4 = vstv %s4462_s20  ;;  %v314_v33 = vmul.f32 %v4238_v11, %v312_v39  ;;  %s4692_s20 = sld [smem:[#allocation10 + $0x76]] }
 0x110   :  { %v647_v9 = vmul.f32 %v3942_v15, %v7221_v4  ;;  %v448_v18 = vstv %s4628_s14  ;;  %v1460_v8 = vadd.f32 %v4570_v46, %v1392_v22  ;;  %v1127_v1 = vadd.f32 %v1125_v53, %v1059_v34  ;;  %s4870_s14 = sld [smem:[#allocation10 + $0x56]] }
 0x111   :  { %v248_v19 = vadd.f32 %v246_v57, %v180_v44  ;;  %v382_v58 = vmul.f32 %v3978_v27, %v380_v10  ;;  %v1531_v50 = vstv %s4640_s15  ;;  %v581_v15 = vadd.f32 %v579_v42, %v513_v13  ;;  %s4886_s15 = sld [smem:[#allocation10 + $0x61]] }
 0x112   :  { %v7222_v4 = vstv %s4481_s22  ;;  %v516_v38 = vstv %s4645_s18  ;;  %v1528_v46 = vadd.f32 %v4573_v54, %v1460_v8  ;;  %v1195_v56 = vadd.f32 %v1193_v59, %v1127_v1  ;;  %s4714_s22 = sld [smem:[#allocation10 + $0x8c]] }
 0x113   :  { %v715_v52 = vmul.f32 %v3950_v60, %v7222_v4  ;;  %v316_v53 = vadd.f32 %v314_v33, %v248_v19  ;;  %v450_v27 = vmul.f32 %v4000_v2, %v448_v18  ;;  %v7223_v42 = vstv %s4565_s29  ;;  %s4899_s18 = sld [smem:[#allocation10 + $0x6c]] }
 0x114   :  { %v1397_v22 = vmul.f32 %v4263_v55, %v7223_v42  ;;  %v649_v60 = vadd.f32 %v647_v9, %v581_v15  ;;  %v7224_v34 = vstv %s4484_s23  ;;  %v584_v57 = vstv %s4656_s16  ;;  %1574 = vrot.lane.b32.xlu0 %v1528_v46, %s6868_s1  ;;  %s4723_s23 = sld [smem:[#allocation10 + $0x97]]  ;;  %s4731_s1 = sld [smem:[#allocation10 + $0xa2]] }
 0x115   :  { %v783_v44 = vmul.f32 %v3995_v17, %v7224_v34  ;;  %v1263_v54 = vadd.f32 %v1261_v20, %v1195_v56  ;;  %v1465_v59 = vmul.f32 %v4273_v31, %v1463_v45  ;;  %v384_v2 = vadd.f32 %v382_v58, %v316_v53  ;;  %s4913_s16 = sld [smem:[#allocation10 + $0x77]] }
 0x116   :  { %v518_v13 = vmul.f32 %v4017_v6, %v516_v38  ;;  %v1533_v9 = vmul.f32 %v4283_v32, %v1531_v50  ;;  %v717_v33 = vadd.f32 %v715_v52, %v649_v60  ;;  %v7225_v8 = vstv %s4493_s0  ;;  %s4740_s0 = sld [smem:[#allocation10 + $0xad]] }
 0x117   :  { %v852_v20 = vmul.f32 %v4288_v28, %v7225_v8  ;;  %v652_v1 = vstv %s4668_s17  ;;  %v1331_v19 = vadd.f32 %v1329_v24, %v1263_v54  ;;  %v7226_v58 = vstv %s4509_s2  ;;  %s4742_s2 = sld [smem:[#allocation10 + $0xb8]]  ;;  %s4928_s17 = sld [smem:[#allocation10 + $0x82]] }
 0x118   :  { %v920_v15 = vmul.f32 %v4297_v14, %v7226_v58  ;;  %v452_v6 = vadd.f32 %v450_v27, %v384_v2  ;;  %v586_v4 = vmul.f32 %v4039_v37, %v584_v57  ;;  %v785_v52 = vadd.f32 %v783_v44, %v717_v33 }
 0x119   :  { %v7227_v46 = vstv %s4512_s24  ;;  %v7228_v53 = vstv %s4524_s25  ;;  %v720_v42 = vstv %s4681_s19  ;;  %v1399_v27 = vadd.f32 %v1397_v22, %v1331_v19  ;;  %s4750_s24 = sld [smem:[#allocation10 + $0xc3]]  ;;  %s4763_s25 = sld [smem:[#allocation10 + $0xce]] }
 0x11a   :  { %v988_v56 = vmul.f32 %v4307_v61, %v7227_v46  ;;  %v1056_v24 = vmul.f32 %v4312_v63, %v7228_v53  ;;  %v7229_v37 = vstv %s4529_s28  ;;  %v520_v34 = vadd.f32 %v518_v13, %v452_v6  ;;  %s4782_s28 = sld [smem:[#allocation10 + $0xd9]]  ;;  %s4935_s19 = sld [smem:[#allocation10 + $0x8d]] }
 0x11b   :  { %v1124_v60 = vmul.f32 %v4322_v40, %v7229_v37  ;;  %v654_v44 = vmul.f32 %v4059_v36, %v652_v1  ;;  %v854_v54 = vadd.f32 %v852_v20, %v785_v52  ;;  %v7230_v2 = vstv %s4541_s13  ;;  %s4788_s13 = sld [smem:[#allocation10 + $0xe4]] }
 0x11c   :  { %v1192_v33 = vmul.f32 %v4332_v12, %v7230_v2  ;;  %v7231_v8 = vstv %s4544_s26  ;;  %v788_v19 = vstv %s4692_s20  ;;  %v1467_v58 = vadd.f32 %v1465_v59, %v1399_v27  ;;  %s6889_s26 = smov 126   ;;  %s4949_s20 = sld [smem:[#allocation10 + $0xa3]] }
 0x11d   :  { %v1260_v22 = vmul.f32 %v4337_v43, %v7231_v8  ;;  %v588_v46 = vadd.f32 %v586_v4, %v520_v34  ;;  %v722_v13 = vmul.f32 %v4089_v29, %v720_v42  ;;  %v857_v36 = vstv %s4698_s7  ;;  %s4942_s7 = sld [smem:[#allocation10 + $0x98]] }
 0x11e   :  { %v922_v20 = vadd.f32 %v920_v15, %v854_v54  ;;  %v7232_v6 = vstv %s4546_s27  ;;  %v7233_v53 = vstv %s4565_s29  ;;  %v4776_v59 = vmul.f32 %v4082_v5, %v1463_v45  ;;  %s4801_s27 = sld [smem:[#allocation10 + $0x9]]  ;;  %s4808_s29 = sld [smem:[#allocation10 + $0x14]] }
 0x11f   :  { %v1328_v52 = vmul.f32 %v4349_v0, %v7232_v6  ;;  %v4771_v37 = vmul.f32 %v4074_v30, %v7233_v53  ;;  %v1535_v29 = vadd.f32 %v1533_v9, %v1467_v58  ;;  %v656_v4 = vadd.f32 %v654_v44, %v588_v46 }
 0x120   :  { %v790_v27 = vmul.f32 %v4103_v26, %v788_v19  ;;  %v925_v15 = vstv %s4714_s22  ;;  %v990_v34 = vadd.f32 %v988_v56, %v922_v20  ;;  %v859_v54 = vmul.f32 %v4074_v30, %v857_v36  ;;  %s4961_s22 = sld [smem:[#allocation10 + $0xae]] }
 0x121   :  { %v993_v2 = vstv %s4723_s23  ;;  %v7234_v45 = vstv %s4596_s9  ;;  %1580 = vrot.lane.b32.xlu1 %v1535_v29, %s6889_s26  ;;  %v724_v26 = vadd.f32 %v722_v13, %v656_v4  ;;  %v1061_v44 = vstv %s4731_s1  ;;  %s4825_s9 = sld [smem:[#allocation10 + $0x2a]]  ;;  %s4984_s1 = sld [smem:[#allocation10 + $0xc4]] }
 0x122   :  { %v115_v9 = vmul.f32 %v4117_v47, %v7234_v45  ;;  %v7235_v8 = vstv %s4598_s10  ;;  %v245_v30 = vmul.f32 %v4127_v16, %v244_v23  ;;  %v1058_v58 = vadd.f32 %v1056_v24, %v990_v34  ;;  %s4827_s10 = sld [smem:[#allocation10 + $0x35]]  ;;  %s5011_s23 = sld [smem:[#allocation10 + $0xcf]] }
 0x123   :  { %v177_v56 = vmul.f32 %v4122_v49, %v7235_v8  ;;  %v927_v47 = vmul.f32 %v4082_v5, %v925_v15  ;;  %v1129_v46 = vstv %s4740_s0  ;;  %v1197_v20 = vstv %s4742_s2  ;;  %v7236_v5 = vld [vmem:[#allocation27_spill] sm:$0xff]  ;;  %s5013_s0 = sld [smem:[#allocation10 + $0xda]]  ;;  %s6876_s2 = smov 125  }
 0x124   :  { %v792_v49 = vadd.f32 %v790_v27, %v724_v26  ;;  %v1265_v13 = vstv %s4750_s24  ;;  %v313_v23 = vmul.f32 %v4146_v51, %v312_v39  ;;  %v1126_v24 = vadd.f32 %v1124_v60, %v1058_v58  ;;  %s5038_s24 = sld [smem:[#allocation10 + $0xa]] }
 0x125   :  { %v179_v16 = vadd.f32 %v177_v56, %v115_v9  ;;  %v1532_v6 = vmul.f32 %v7236_v5, %v1531_v50  ;;  %v995_v53 = vmul.f32 %v7236_v5, %v993_v2  ;;  %v1063_v29 = vmul.f32 %v7215_v41, %v1061_v44  ;;  %v4863_v56 = vld [vmem:[#allocation4 + $0x8] sm:$0xff] }
 0x126   :  { %v861_v4 = vadd.f32 %v859_v54, %v792_v49  ;;  %v1333_v51 = vstv %s4763_s25  ;;  %v381_v50 = vmul.f32 %v4168_v21, %v380_v10  ;;  %v1194_v60 = vadd.f32 %v1192_v33, %v1126_v24  ;;  %v7237_v10 = vld [vmem:[#allocation43_spill] sm:$0xff]  ;;  %v4872_v49 = vld [vmem:[#allocation4 + $0x9] sm:$0xff]  ;;  %s5040_s25 = sld [smem:[#allocation10 + $0x15]] }
 0x127   :  { %v247_v39 = vadd.f32 %v245_v30, %v179_v16  ;;  %v1131_v27 = vmul.f32 %v4163_v62, %v1129_v46  ;;  %v1199_v41 = vmul.f32 %v4176_v48, %v1197_v20  ;;  %v1267_v34 = vmul.f32 %v4182_v7, %v1265_v13 }
 0x128   :  { %v929_v54 = vadd.f32 %v927_v47, %v861_v4  ;;  %v1401_v45 = vstv %s4782_s28  ;;  %v449_v21 = vmul.f32 %v4196_v35, %v448_v18  ;;  %v1262_v62 = vadd.f32 %v1260_v22, %v1194_v60  ;;  %s5046_s28 = sld [smem:[#allocation10 + $0x20]] }
 0x129   :  { %v315_v9 = vadd.f32 %v313_v23, %v247_v39  ;;  %v1335_v33 = vmul.f32 %v7237_v10, %v1333_v51  ;;  %v1469_v48 = vstv %s4788_s13  ;;  %v517_v7 = vmul.f32 %v4205_v3, %v516_v38  ;;  %s5055_s13 = sld [smem:[#allocation10 + $0x2b]] }
 0x12a   :  { %v997_v26 = vadd.f32 %v995_v53, %v929_v54  ;;  %v585_v35 = vmul.f32 %v4210_v25, %v584_v57  ;;  %v118_v18 = vstv %s4801_s27  ;;  %v1330_v22 = vadd.f32 %v1328_v52, %v1262_v62  ;;  %v4901_v54 = vld [vmem:[#allocation4 + $0xc] sm:$0xff]  ;;  %s5057_s27 = sld [smem:[#allocation10 + $0x36]] }
 0x12b   :  { %v383_v8 = vadd.f32 %v381_v50, %v315_v9  ;;  %v120_v30 = vmul.f32 %v4863_v56, %v118_v18  ;;  %v182_v58 = vstv %s4808_s29  ;;  %v250_v3 = vstv %s4810_s4  ;;  %v4907_v9 = vld [vmem:[#allocation4 + $0xa] sm:$0xff]  ;;  %s5076_s29 = sld [smem:[#allocation10 + $0x41]]  ;;  %s5095_s4 = sld [smem:[#allocation10 + $0x4c]] }
 0x12c   :  { %v1065_v38 = vadd.f32 %v1063_v29, %v997_v26  ;;  %v184_v25 = vmul.f32 %v4872_v49, %v182_v58  ;;  %v252_v57 = vmul.f32 %v3995_v17, %v250_v3  ;;  %v1398_v52 = vadd.f32 %v4771_v37, %v1330_v22 }
 0x12d   :  { %v451_v47 = vadd.f32 %v449_v21, %v383_v8  ;;  %v653_v16 = vmul.f32 %v4863_v56, %v652_v1  ;;  %v318_v23 = vstv %s4825_s9  ;;  %v386_v24 = vstv %s4827_s10  ;;  %s5108_s9 = sld [smem:[#allocation10 + $0xe5]]  ;;  %s5117_s10 = sld [smem:[#allocation10 + $0x57]] }
 0x12e   :  { %v1133_v5 = vadd.f32 %v1131_v27, %v1065_v38  ;;  %v186_v29 = vadd.f32 %v184_v25, %v120_v30  ;;  %v320_v4 = vmul.f32 %v4238_v11, %v318_v23  ;;  %v1466_v17 = vadd.f32 %v4776_v59, %v1398_v52  ;;  %v4930_v30 = vld [vmem:[#allocation4 + $0xe] sm:$0xff] }
 0x12f   :  { %v519_v53 = vadd.f32 %v517_v7, %v451_v47  ;;  %v1403_v37 = vmul.f32 %v4263_v55, %v1401_v45  ;;  %v721_v1 = vmul.f32 %v4872_v49, %v720_v42  ;;  %v454_v39 = vstv %s4842_s11  ;;  %v4915_v7 = vld [vmem:[#allocation4 + $0xd] sm:$0xff]  ;;  %s5126_s11 = sld [smem:[#allocation10 + $0xf0]] }
 0x130   :  { %v1201_v50 = vadd.f32 %v1199_v41, %v1133_v5  ;;  %v254_v27 = vadd.f32 %v252_v57, %v186_v29  ;;  %v388_v11 = vmul.f32 %v4901_v54, %v386_v24  ;;  %v1534_v59 = vadd.f32 %v1532_v6, %v1466_v17  ;;  %v4944_v57 = vld [vmem:[#allocation4 + $0xf] sm:$0xff] }
 0x131   :  { %v587_v60 = vadd.f32 %v585_v35, %v519_v53  ;;  %v1537_v55 = vstv %s4852_s30  ;;  %v789_v42 = vmul.f32 %v4907_v9, %v788_v19  ;;  %v522_v21 = vstv %s4857_s12  ;;  %s4963_s30 = sld [smem:[#allocation10 + $0xb9]]  ;;  %s5131_s12 = sld [smem:[#allocation10 + $0x62]] }
 0x132   :  { %v1269_v41 = vadd.f32 %v1267_v34, %v1201_v50  ;;  %v322_v10 = vadd.f32 %v320_v4, %v254_v27  ;;  %v456_v6 = vmul.f32 %v4915_v7, %v454_v39  ;;  %1578 = vrot.lane.b32.xlu0 %v1534_v59, %s6889_s26  ;;  %v1471_v26 = vmul.f32 %v4273_v31, %v1469_v48  ;;  %v4965_v4 = vld [vmem:[#allocation4 + $0x10] sm:$0xff]  ;;  %s5480_s26 = sld [smem:[#allocation11 + $0x6f]] }
 0x133   :  { %v655_v62 = vadd.f32 %v653_v16, %v587_v60  ;;  %v858_v19 = vmul.f32 %v4288_v28, %v857_v36  ;;  %v590_v8 = vstv %s4870_s14  ;;  %v524_v38 = vmul.f32 %v4930_v30, %v522_v21  ;;  %s5146_s14 = sld [smem:[#allocation10 + $0x6d]] }
 0x134   :  { %v1337_v34 = vadd.f32 %v1335_v33, %v1269_v41  ;;  %v390_v22 = vadd.f32 %v388_v11, %v322_v10  ;;  %v1539_v31 = vmul.f32 %v4283_v32, %v1537_v55  ;;  %v926_v28 = vmul.f32 %v4297_v14, %v925_v15 }
 0x135   :  { %v723_v35 = vadd.f32 %v721_v1, %v655_v62  ;;  %v658_v36 = vstv %s4886_s15  ;;  %v592_v52 = vmul.f32 %v4944_v57, %v590_v8  ;;  %v994_v32 = vmul.f32 %v4307_v61, %v993_v2  ;;  %v4986_v1 = vld [vmem:[#allocation4 + $0x11] sm:$0xff]  ;;  %v5028_v62 = vld [vmem:[#allocation4 + $0x1] sm:$0xff]  ;;  %s5161_s15 = sld [smem:[#allocation10 + $0x78]] }
 0x136   :  { %v1405_v33 = vadd.f32 %v1403_v37, %v1337_v34  ;;  %v458_v25 = vadd.f32 %v456_v6, %v390_v22  ;;  %v1062_v14 = vmul.f32 %v4312_v63, %v1061_v44  ;;  %v1130_v15 = vmul.f32 %v4322_v40, %v1129_v46  ;;  %v5033_v6 = vld [vmem:[#allocation4 + $0x2] sm:$0xff] }
 0x137   :  { %v791_v47 = vadd.f32 %v789_v42, %v723_v35  ;;  %v726_v16 = vstv %s4899_s18  ;;  %v660_v61 = vmul.f32 %v4965_v4, %v658_v36  ;;  %v1198_v63 = vmul.f32 %v4332_v12, %v1197_v20  ;;  %v4991_v20 = vld [vmem:[#allocation4 + $0x28] sm:$0xff]  ;;  %v5023_v42 = vld [vmem:[#allocation4] sm:$0xff]  ;;  %s5172_s18 = sld [smem:[#allocation10 + $0x83]] }
 0x138   :  { %v1473_v5 = vadd.f32 %v1471_v26, %v1405_v33  ;;  %v526_v29 = vadd.f32 %v524_v38, %v458_v25  ;;  %v4976_v40 = vmul.f32 %v4337_v43, %v1265_v13  ;;  %v4981_v2 = vmul.f32 %v4349_v0, %v1333_v51  ;;  %v4998_v43 = vld [vmem:[#allocation4 + $0x29] sm:$0xff]  ;;  %7274 = sst [smem:[#allocation75_spill]] %s5480_s26  ;;  %s5494_s26 = sld [smem:[#allocation11 + $0x39]] }
 0x139   :  { %v860_v53 = vadd.f32 %v858_v19, %v791_v47  ;;  %v794_v44 = vstv %s4913_s16  ;;  %v728_v12 = vmul.f32 %v4986_v1, %v726_v16  ;;  %v4996_v0 = vmul.f32 %v4991_v20, %v1401_v45  ;;  %v5005_v51 = vld [vmem:[#allocation4 + $0x2a] sm:$0xff]  ;;  %s5190_s16 = sld [smem:[#allocation10 + $0x8e]] }
 0x13a   :  { %v1541_v46 = vadd.f32 %v1539_v31, %v1473_v5  ;;  %v594_v37 = vadd.f32 %v592_v52, %v526_v29  ;;  %v5003_v13 = vmul.f32 %v4998_v43, %v1469_v48  ;;  %v5008_v50 = vmul.f32 %v5005_v51, %v1537_v55  ;;  %v5016_v48 = vld [vmem:[#allocation4 + $0x12] sm:$0xff]  ;;  %v5050_v38 = vld [vmem:[#allocation4 + $0x3] sm:$0xff] }
 0x13b   :  { %v928_v17 = vadd.f32 %v926_v28, %v860_v53  ;;  %v863_v60 = vstv %s4928_s17  ;;  %v796_v11 = vmul.f32 %v5016_v48, %v794_v44  ;;  %v931_v59 = vstv %s4935_s19  ;;  %v5065_v52 = vld [vmem:[#allocation4 + $0x2b] sm:$0xff]  ;;  %s5206_s17 = sld [smem:[#allocation10 + $0x99]]  ;;  %s5222_s19 = sld [smem:[#allocation10 + $0xa4]] }
 0x13c   :  { %1584 = vrot.lane.b32.xlu1 %v1541_v46, %s6876_s2  ;;  %v662_v27 = vadd.f32 %v660_v61, %v594_v37  ;;  %v999_v55 = vstv %s4942_s7  ;;  %v119_v41 = vmul.f32 %v5023_v42, %v118_v18  ;;  %v183_v10 = vmul.f32 %v5028_v62, %v182_v58  ;;  %v5071_v5 = vld [vmem:[#allocation4 + $0x4] sm:$0xff]  ;;  %v5078_v61 = vld [vmem:[#allocation4 + $0x2c] sm:$0xff]  ;;  %s5233_s7 = sld [smem:[#allocation10 + $0xaf]] }
 0x13d   :  { %v996_v45 = vadd.f32 %v994_v32, %v928_v17  ;;  %v251_v26 = vmul.f32 %v5033_v6, %v250_v3  ;;  %v865_v18 = vmul.f32 %v4991_v20, %v863_v60  ;;  %v1067_v35 = vstv %s4949_s20  ;;  %v5083_v17 = vld [vmem:[#allocation4 + $0x2d] sm:$0xff]  ;;  %s5244_s20 = sld [smem:[#allocation10 + $0xba]] }
 0x13e   :  { %v730_v34 = vadd.f32 %v728_v12, %v662_v27  ;;  %v1135_v58 = vstv %s4961_s22  ;;  %v1203_v22 = vstv %s4963_s30  ;;  %v185_v3 = vadd.f32 %v183_v10, %v119_v41  ;;  %v5090_v27 = vld [vmem:[#allocation4 + $0x5] sm:$0xff]  ;;  %v5098_v10 = vld [vmem:[#allocation4 + $0x2e] sm:$0xff]  ;;  %s5265_s22 = sld [smem:[#allocation10 + $0xc5]]  ;;  %s5279_s30 = sld [smem:[#allocation10 + $0xd0]] }
 0x13f   :  { %v1064_v19 = vadd.f32 %v1062_v14, %v996_v45  ;;  %v319_v31 = vmul.f32 %v5050_v38, %v318_v23  ;;  %v933_v47 = vmul.f32 %v4998_v43, %v931_v59  ;;  %v1001_v25 = vmul.f32 %v5005_v51, %v999_v55  ;;  %7238 = vst [vmem:[#allocation45_spill] sm:$0xff] %v5098_v10  ;;  %7281 = sst [smem:[#allocation81_spill]] %s5494_s26  ;;  %s5511_s26 = sld [smem:[#allocation11 + $0xe]] }
 0x140   :  { %v798_v33 = vadd.f32 %v796_v11, %v730_v34  ;;  %v1069_v23 = vmul.f32 %v5065_v52, %v1067_v35  ;;  %v6870_v32 = vstv %s4984_s1  ;;  %v253_v14 = vadd.f32 %v251_v26, %v185_v3 }
 0x141   :  { %v1132_v28 = vadd.f32 %v1130_v15, %v1064_v19  ;;  %v387_v15 = vmul.f32 %v5071_v5, %v386_v24  ;;  %v1137_v46 = vmul.f32 %v5078_v61, %v1135_v58  ;;  %v1205_v37 = vmul.f32 %v5083_v17, %v1203_v22  ;;  %v5103_v19 = vld [vmem:[#allocation4 + $0x6] sm:$0xff] }
 0x142   :  { %v867_v29 = vadd.f32 %v865_v18, %v798_v33  ;;  %v1339_v12 = vstv %s5011_s23  ;;  %v1407_v24 = vstv %s5013_s0  ;;  %v321_v45 = vadd.f32 %v319_v31, %v253_v14  ;;  %v5110_v18 = vld [vmem:[#allocation4 + $0x7] sm:$0xff]  ;;  %s5305_s23 = sld [smem:[#allocation10 + $0xe6]]  ;;  %s5315_s0 = sld [smem:[#allocation10 + $0xf1]] }
 0x143   :  { %v1200_v53 = vadd.f32 %v1198_v63, %v1132_v28  ;;  %v455_v63 = vmul.f32 %v5090_v27, %v454_v39  ;;  %v1273_v26 = vmul.f32 %v5098_v10, %v6870_v32  ;;  %v523_v34 = vmul.f32 %v5103_v19, %v522_v21 }
 0x144   :  { %v935_v41 = vadd.f32 %v933_v47, %v867_v29  ;;  %v389_v39 = vadd.f32 %v387_v15, %v321_v45  ;;  %v122_v3 = vstv %s5038_s24  ;;  %v188_v31 = vstv %s5040_s25  ;;  %s6885_s24 = smov 123   ;;  %s2485_s25 = sld [smem:[#allocation10 + $0x5]] }
 0x145   :  { %v1268_v11 = vadd.f32 %v4976_v40, %v1200_v53  ;;  %v591_v40 = vmul.f32 %v5110_v18, %v590_v8  ;;  %v124_v21 = vmul.f32 %v4863_v56, %v122_v3  ;;  %v190_v47 = vmul.f32 %v4872_v49, %v188_v31  ;;  %7288 = sst [smem:[#allocation88_spill]] %s5511_s26  ;;  %s5529_s26 = sld [smem:[#allocation11 + $0x4]] }
 0x146   :  { %v1003_v33 = vadd.f32 %v1001_v25, %v935_v41  ;;  %v457_v8 = vadd.f32 %v455_v63, %v389_v39  ;;  %v256_v14 = vstv %s5046_s28  ;;  %v324_v15 = vstv %s5055_s13  ;;  %v5140_v41 = vld [vmem:[#allocation4 + $0xb] sm:$0xff]  ;;  %s2496_s28 = sld [smem:[#allocation10 + $0x10]]  ;;  %s2507_s13 = sld [smem:[#allocation10 + $0x1b]] }
 0x147   :  { %v1336_v28 = vadd.f32 %v4981_v2, %v1268_v11  ;;  %v392_v53 = vstv %s5057_s27  ;;  %v192_v29 = vadd.f32 %v190_v47, %v124_v21  ;;  %v258_v45 = vmul.f32 %v4907_v9, %v256_v14  ;;  %s2518_s27 = sld [smem:[#allocation10 + $0x26]] }
 0x148   :  { %v1071_v25 = vadd.f32 %v1069_v23, %v1003_v33  ;;  %v525_v11 = vadd.f32 %v523_v34, %v457_v8  ;;  %v659_v63 = vmul.f32 %v4863_v56, %v658_v36  ;;  %v326_v39 = vmul.f32 %v5140_v41, %v324_v15  ;;  %v5152_v36 = vld [vmem:[#allocation4 + $0x2f] sm:$0xff] }
 0x149   :  { %v1404_v2 = vadd.f32 %v4996_v0, %v1336_v28  ;;  %v460_v32 = vstv %s5076_s29  ;;  %v260_v28 = vadd.f32 %v258_v45, %v192_v29  ;;  %v394_v34 = vmul.f32 %v4901_v54, %v392_v53  ;;  %s2529_s29 = sld [smem:[#allocation10 + $0x31]] }
 0x14a   :  { %v1139_v23 = vadd.f32 %v1137_v46, %v1071_v25  ;;  %v1341_v33 = vmul.f32 %v5152_v36, %v1339_v12  ;;  %v593_v21 = vadd.f32 %v591_v40, %v525_v11  ;;  %v727_v47 = vmul.f32 %v4872_v49, %v726_v16 }
 0x14b   :  { %v1472_v0 = vadd.f32 %v5003_v13, %v1404_v2  ;;  %v6871_v8 = vstv %s5095_s4  ;;  %v328_v2 = vadd.f32 %v326_v39, %v260_v28  ;;  %v462_v25 = vmul.f32 %v4915_v7, %v460_v32  ;;  %7295 = sst [smem:[#allocation95_spill]] %s5529_s26  ;;  %s5690_s26 = sld [smem:[#allocation11 + $0x9]] }
 0x14c   :  { %v1207_v46 = vadd.f32 %v1205_v37, %v1139_v23  ;;  %v6873_v29 = vstv %s5108_s9  ;;  %v661_v40 = vadd.f32 %v659_v63, %v593_v21  ;;  %v795_v45 = vmul.f32 %v4907_v9, %v794_v44  ;;  %v5175_v37 = vld [vmem:[#allocation4 + $0x30] sm:$0xff]  ;;  %v5184_v23 = vld [vmem:[#allocation4 + $0x20] sm:$0xff] }
 0x14d   :  { %v1540_v13 = vadd.f32 %v5008_v50, %v1472_v0  ;;  %v6872_v16 = vstv %s5117_s10  ;;  %7239 = vst [vmem:[#allocation30_spill] sm:$0xff] %v5175_v37  ;;  %v1409_v11 = vmul.f32 %v5175_v37, %v1407_v24  ;;  %v396_v39 = vadd.f32 %v394_v34, %v328_v2 }
 0x14e   :  { %v1275_v50 = vadd.f32 %v1273_v26, %v1207_v46  ;;  %v530_v63 = vmul.f32 %v4930_v30, %v6871_v8  ;;  %v6875_v44 = vstv %s5126_s11  ;;  %v729_v0 = vadd.f32 %v727_v47, %v661_v40  ;;  %v5200_v40 = vld [vmem:[#allocation4 + $0x21] sm:$0xff] }
 0x14f   :  { %1582 = vrot.lane.b32.xlu0 %v1540_v13, %s6876_s2  ;;  %v864_v28 = vmul.f32 %v5184_v23, %v863_v60  ;;  %v6874_v26 = vstv %s5131_s12  ;;  %v5192_v13 = vld [vmem:[#allocation4 + $0x31] sm:$0xff]  ;;  %v464_v46 = vadd.f32 %v462_v25, %v396_v39  ;;  %v598_v47 = vmul.f32 %v4944_v57, %v6872_v16  ;;  %v5216_v16 = vld [vmem:[#allocation4 + $0x22] sm:$0xff]  ;;  %s6887_s2 = smov 124  }
 0x150   :  { %v1343_v21 = vadd.f32 %v1341_v33, %v1275_v50  ;;  %v1477_v34 = vmul.f32 %v5192_v13, %v6873_v29  ;;  %v797_v2 = vadd.f32 %v795_v45, %v729_v0  ;;  %v932_v60 = vmul.f32 %v5200_v40, %v931_v59  ;;  %v5208_v50 = vld [vmem:[#allocation4 + $0x32] sm:$0xff] }
 0x151   :  { %v732_v8 = vstv %s5146_s14  ;;  %v1545_v25 = vmul.f32 %v5208_v50, %v6875_v44  ;;  %v532_v39 = vadd.f32 %v530_v63, %v464_v46  ;;  %v666_v45 = vmul.f32 %v4965_v4, %v6874_v26  ;;  %v5227_v26 = vld [vmem:[#allocation4 + $0x23] sm:$0xff]  ;;  %s2595_s14 = sld [smem:[#allocation10 + $0x73]]  ;;  %7366 = sst [smem:[#allocation137_spill]] %s5690_s26 }
 0x152   :  { %v1411_v33 = vadd.f32 %v1409_v11, %v1343_v21  ;;  %v866_v0 = vadd.f32 %v864_v28, %v797_v2  ;;  %v1000_v59 = vmul.f32 %v5216_v16, %v999_v55  ;;  %v6882_v29 = vstv %s5161_s15 }
 0x153   :  { %v600_v21 = vadd.f32 %v598_v47, %v532_v39  ;;  %v734_v63 = vmul.f32 %v4986_v1, %v732_v8  ;;  %v1068_v28 = vmul.f32 %v5227_v26, %v1067_v35  ;;  %v6881_v55 = vstv %s5172_s18 }
 0x154   :  { %v1479_v11 = vadd.f32 %v1477_v34, %v1411_v33  ;;  %v934_v46 = vadd.f32 %v932_v60, %v866_v0  ;;  %v802_v34 = vmul.f32 %v5016_v48, %v6882_v29  ;;  %v5238_v60 = vld [vmem:[#allocation4 + $0x24] sm:$0xff]  ;;  %v6880_v35 = vstv %s5190_s16 }
 0x155   :  { %v668_v44 = vadd.f32 %v666_v45, %v600_v21  ;;  %v1136_v33 = vmul.f32 %v5238_v60, %v1135_v58  ;;  %v871_v45 = vmul.f32 %v4991_v20, %v6881_v55  ;;  %v189_v58 = vmul.f32 %v5028_v62, %v188_v31 }
 0x156   :  { %v1547_v2 = vadd.f32 %v1545_v25, %v1479_v11  ;;  %v1002_v47 = vadd.f32 %v1000_v59, %v934_v46  ;;  %v123_v25 = vmul.f32 %v5023_v42, %v122_v3  ;;  %v257_v0 = vmul.f32 %v5033_v6, %v256_v14  ;;  %v5259_v11 = vld [vmem:[#allocation4 + $0x25] sm:$0xff] }
 0x157   :  { %v736_v39 = vadd.f32 %v734_v63, %v668_v44  ;;  %v1204_v3 = vmul.f32 %v5259_v11, %v1203_v22  ;;  %v6878_v21 = vstv %s5206_s17  ;;  %v939_v31 = vmul.f32 %v4998_v43, %v6880_v35 }
 0x158   :  { %1588 = vrot.lane.b32.xlu1 %v1547_v2, %s6887_s2  ;;  %v1070_v59 = vadd.f32 %v1068_v28, %v1002_v47  ;;  %v191_v63 = vadd.f32 %v189_v58, %v123_v25  ;;  %v325_v14 = vmul.f32 %v5050_v38, %v324_v15  ;;  %v5273_v28 = vld [vmem:[#allocation4 + $0x26] sm:$0xff]  ;;  %v7240_v2 = vstv %s4984_s1  ;;  %s5293_s1 = sld [smem:[#allocation10 + $0xdb]] }
 0x159   :  { %v804_v44 = vadd.f32 %v802_v34, %v736_v39  ;;  %v1272_v22 = vmul.f32 %v5273_v28, %v7240_v2  ;;  %v6879_v47 = vstv %s5222_s19  ;;  %v1007_v25 = vmul.f32 %v5005_v51, %v6878_v21  ;;  %v5287_v58 = vld [vmem:[#allocation4 + $0x27] sm:$0xff] }
 0x15a   :  { %v1138_v46 = vadd.f32 %v1136_v33, %v1070_v59  ;;  %v259_v39 = vadd.f32 %v257_v0, %v191_v63  ;;  %v393_v15 = vmul.f32 %v5071_v5, %v392_v53  ;;  %v1340_v59 = vmul.f32 %v5287_v58, %v1339_v12 }
 0x15b   :  { %v873_v34 = vadd.f32 %v871_v45, %v804_v44  ;;  %v1141_v2 = vstv %s5233_s7  ;;  %v1075_v44 = vmul.f32 %v5065_v52, %v6879_v47  ;;  %v461_v53 = vmul.f32 %v5090_v27, %v460_v32  ;;  %s5399_s7 = sld [smem:[#allocation10 + $0xb5]] }
 0x15c   :  { %v1206_v33 = vadd.f32 %v1204_v3, %v1138_v46  ;;  %v327_v0 = vadd.f32 %v325_v14, %v259_v39  ;;  %v1408_v63 = vmul.f32 %v4991_v20, %v1407_v24  ;;  %v1209_v12 = vstv %s5244_s20  ;;  %s5406_s20 = sld [smem:[#allocation10 + $0xc0]] }
 0x15d   :  { %v941_v45 = vadd.f32 %v939_v31, %v873_v34  ;;  %v1143_v31 = vmul.f32 %v5078_v61, %v1141_v2  ;;  %v7241_v21 = vstv %s5095_s4  ;;  %v7242_v32 = vstv %s5108_s9  ;;  %s2540_s4 = sld [smem:[#allocation10 + $0x3c]]  ;;  %s2551_s9 = sld [smem:[#allocation10 + $0x47]] }
 0x15e   :  { %v1274_v3 = vadd.f32 %v1272_v22, %v1206_v33  ;;  %v395_v34 = vadd.f32 %v393_v15, %v327_v0  ;;  %v529_v14 = vmul.f32 %v5103_v19, %v7241_v21  ;;  %v1476_v22 = vmul.f32 %v4998_v43, %v7242_v32 }
 0x15f   :  { %v1009_v46 = vadd.f32 %v1007_v25, %v941_v45  ;;  %v1277_v33 = vstv %s5265_s22  ;;  %v1211_v47 = vmul.f32 %v5083_v17, %v1209_v12  ;;  %v7243_v45 = vstv %s5117_s10  ;;  %s2562_s10 = sld [smem:[#allocation10 + $0x52]]  ;;  %s5412_s22 = sld [smem:[#allocation10 + $0xcb]] }
 0x160   :  { %v1342_v39 = vadd.f32 %v1340_v59, %v1274_v3  ;;  %v463_v25 = vadd.f32 %v461_v53, %v395_v34  ;;  %v597_v15 = vmul.f32 %v5110_v18, %v7243_v45  ;;  %v7244_v35 = vstv %s5126_s11  ;;  %s2573_s11 = sld [smem:[#allocation10 + $0x5d]] }
 0x161   :  { %v1077_v24 = vadd.f32 %v1075_v44, %v1009_v46  ;;  %v1544_v21 = vmul.f32 %v5005_v51, %v7244_v35  ;;  %v1345_v59 = vstv %s5279_s30  ;;  %v1279_v32 = vmul.f32 %v5098_v10, %v1277_v33  ;;  %s5415_s30 = sld [smem:[#allocation10 + $0xd6]] }
 0x162   :  { %v1410_v0 = vadd.f32 %v1408_v63, %v1342_v39  ;;  %v531_v55 = vadd.f32 %v529_v14, %v463_v25  ;;  %v7245_v44 = vstv %s5131_s12  ;;  %v1413_v53 = vstv %s5293_s1  ;;  %s2584_s12 = sld [smem:[#allocation10 + $0x68]]  ;;  %s5417_s1 = sld [smem:[#allocation10 + $0xe1]] }
 0x163   :  { %v1145_v3 = vadd.f32 %v1143_v31, %v1077_v24  ;;  %v665_v46 = vmul.f32 %v4863_v56, %v7245_v44  ;;  %v1347_v45 = vmul.f32 %v5152_v36, %v1345_v59  ;;  %v733_v35 = vmul.f32 %v4872_v49, %v732_v8 }
 0x164   :  { %v1478_v29 = vadd.f32 %v1476_v22, %v1410_v0  ;;  %v599_v63 = vadd.f32 %v597_v15, %v531_v55  ;;  %v1481_v31 = vstv %s5305_s23  ;;  %v1415_v14 = vmul.f32 %v5175_v37, %v1413_v53  ;;  %s5419_s23 = sld [smem:[#allocation10 + $0xec]] }
 0x165   :  { %v1213_v34 = vadd.f32 %v1211_v47, %v1145_v3  ;;  %v7246_v10 = vstv %s5161_s15  ;;  %v1549_v47 = vstv %s5315_s0  ;;  %v1483_v55 = vmul.f32 %v5192_v13, %v1481_v31  ;;  %s2606_s15 = sld [smem:[#allocation10 + $0x7e]]  ;;  %s5421_s0 = sld [smem:[#allocation11]] }
 0x166   :  { %v1546_v39 = vadd.f32 %v1544_v21, %v1478_v29  ;;  %v667_v25 = vadd.f32 %v665_v46, %v599_v63  ;;  %v801_v22 = vmul.f32 %v4907_v9, %v7246_v10  ;;  %v7247_v8 = vstv %s5172_s18  ;;  %s2617_s18 = sld [smem:[#allocation10 + $0x89]] }
 0x167   :  { %v1281_v24 = vadd.f32 %v1279_v32, %v1213_v34  ;;  %v870_v29 = vmul.f32 %v5184_v23, %v7247_v8  ;;  %v1551_v3 = vmul.f32 %v5208_v50, %v1549_v47  ;;  %v7248_v44 = vstv %s5190_s16  ;;  %s2628_s16 = sld [smem:[#allocation10 + $0x94]] }
 0x168   :  { %1586 = vrot.lane.b32.xlu0 %v1546_v39, %s6887_s2  ;;  %v735_v15 = vadd.f32 %v733_v35, %v667_v25  ;;  %v938_v46 = vmul.f32 %v5200_v40, %v7248_v44  ;;  %v7249_v63 = vstv %s5206_s17  ;;  %v1142_v25 = vmul.f32 %v5238_v60, %v1141_v2  ;;  %s5388_s17 = sld [smem:[#allocation10 + $0x9f]]  ;;  %s5478_s2 = sld [smem:[#allocation11 + $0x64]] }
 0x169   :  { %v1349_v0 = vadd.f32 %v1347_v45, %v1281_v24  ;;  %v1006_v39 = vmul.f32 %v5216_v16, %v7249_v63  ;;  %v7250_v24 = vstv %s5222_s19  ;;  %v1550_v2 = vmul.f32 %v5005_v51, %v1549_v47  ;;  %s5392_s19 = sld [smem:[#allocation10 + $0xaa]] }
 0x16a   :  { %v803_v32 = vadd.f32 %v801_v22, %v735_v15  ;;  %v1074_v35 = vmul.f32 %v5227_v26, %v7250_v24 }
 0x16b   :  { %v1417_v21 = vadd.f32 %v1415_v14, %v1349_v0  ;;  %v1210_v0 = vmul.f32 %v5259_v11, %v1209_v12  ;;  %7251 = sst [smem:[#allocation53_spill]] %s5421_s0 }
 0x16c   :  { %v872_v10 = vadd.f32 %v870_v29, %v803_v32  ;;  %v1346_v29 = vmul.f32 %v5287_v58, %v1345_v59 }
 0x16d   :  { %v1485_v34 = vadd.f32 %v1483_v55, %v1417_v21  ;;  %v1278_v55 = vmul.f32 %v5273_v28, %v1277_v33 }
 0x16e   :  { %v940_v45 = vadd.f32 %v938_v46, %v872_v10  ;;  %v158_v10 = vstv %s2496_s28  ;;  %s5428_s28 = sld [smem:[#allocation11 + $0x16]]  ;;  %7273 = sst [smem:[#allocation74_spill]] %s5478_s2 }
 0x16f   :  { %v1553_v37 = vadd.f32 %v1551_v3, %v1485_v34  ;;  %v1414_v3 = vmul.f32 %v4991_v20, %v1413_v53  ;;  %v102_v34 = vstv %s2485_s25  ;;  %v160_v59 = vmul.f32 %v4872_v49, %v158_v10  ;;  %s5426_s25 = sld [smem:[#allocation11 + $0xb]] }
 0x170   :  { %v1008_v14 = vadd.f32 %v1006_v39, %v940_v45  ;;  %v104_v33 = vmul.f32 %v4863_v56, %v102_v34  ;;  %v226_v53 = vstv %s2507_s13  ;;  %v294_v39 = vstv %s2518_s27  ;;  %s5433_s13 = sld [smem:[#allocation11 + $0x21]]  ;;  %s5435_s27 = sld [smem:[#allocation11 + $0x2c]] }
 0x171   :  { %1592 = vrot.lane.b32.xlu1 %v1553_v37, %s6885_s24  ;;  %v1482_v37 = vmul.f32 %v4998_v43, %v1481_v31  ;;  %v228_v31 = vmul.f32 %v4907_v9, %v226_v53  ;;  %v103_v47 = vmul.f32 %v5023_v42, %v102_v34  ;;  %v159_v45 = vmul.f32 %v5028_v62, %v158_v10  ;;  %s5503_s2 = sld [smem:[#allocation11 + $0x3]] }
 0x172   :  { %v1076_v22 = vadd.f32 %v1074_v35, %v1008_v14  ;;  %v162_v63 = vadd.f32 %v160_v59, %v104_v33  ;;  %v296_v35 = vmul.f32 %v5140_v41, %v294_v39  ;;  %v362_v14 = vstv %s2529_s29  ;;  %s5438_s29 = sld [smem:[#allocation11 + $0x37]] }
 0x173   :  { %v498_v62 = vstv %s2551_s9  ;;  %v363_v41 = vmul.f32 %v5071_v5, %v362_v14  ;;  %v702_v5 = vstv %s2584_s12  ;;  %s5442_s9 = sld [smem:[#allocation11 + $0x42]]  ;;  %s5449_s12 = sld [smem:[#allocation11 + $0x6e]] }
 0x174   :  { %v1144_v15 = vadd.f32 %v1142_v25, %v1076_v22  ;;  %v230_v24 = vadd.f32 %v228_v31, %v162_v63  ;;  %v161_v25 = vadd.f32 %v159_v45, %v103_v47  ;;  %v227_v22 = vmul.f32 %v5033_v6, %v226_v53  ;;  %7253 = sst [smem:[#allocation55_spill]] %s5428_s28 }
 0x175   :  { %v566_v6 = vstv %s2562_s10  ;;  %v704_v53 = vmul.f32 %v4986_v1, %v702_v5  ;;  %7252 = sst [smem:[#allocation54_spill]] %s5426_s25  ;;  %s5444_s10 = sld [smem:[#allocation11 + $0x4d]] }
 0x176   :  { %v1212_v8 = vadd.f32 %v1210_v0, %v1144_v15  ;;  %v298_v0 = vadd.f32 %v296_v35, %v230_v24  ;;  %v364_v15 = vmul.f32 %v4901_v54, %v362_v14  ;;  %v907_v35 = vstv %s2617_s18  ;;  %7254 = sst [smem:[#allocation56_spill]] %s5433_s13  ;;  %s5459_s18 = sld [smem:[#allocation11 + $0xc]] }
 0x177   :  { %7255 = sst [smem:[#allocation57_spill]] %s5435_s27 }
 0x178   :  { %v1280_v21 = vadd.f32 %v1278_v55, %v1212_v8  ;;  %v430_v55 = vstv %s2540_s4  ;;  %v229_v8 = vadd.f32 %v227_v22, %v161_v25  ;;  %v975_v25 = vstv %s2628_s16  ;;  %7256 = sst [smem:[#allocation58_spill]] %s5438_s29  ;;  %s5440_s4 = sld [smem:[#allocation11 + $0x58]] }
 0x179   :  { %v432_v42 = vmul.f32 %v4915_v7, %v430_v55  ;;  %v431_v54 = vmul.f32 %v5090_v27, %v430_v55  ;;  %v499_v7 = vmul.f32 %v5103_v19, %v498_v62  ;;  %v770_v27 = vstv %s2595_s14  ;;  %7258 = sst [smem:[#allocation60_spill]] %s5442_s9  ;;  %s5452_s14 = sld [smem:[#allocation11 + $0x1]] }
 0x17a   :  { %v1348_v32 = vadd.f32 %v1346_v29, %v1280_v21  ;;  %v295_v29 = vmul.f32 %v5050_v38, %v294_v39  ;;  %v366_v21 = vadd.f32 %v364_v15, %v298_v0  ;;  %v634_v38 = vstv %s2573_s11  ;;  %s5447_s11 = sld [smem:[#allocation11 + $0x63]]  ;;  %7261 = sst [smem:[#allocation63_spill]] %s5449_s12 }
 0x17b   :  { %v636_v10 = vmul.f32 %v4965_v4, %v634_v38  ;;  %v772_v39 = vmul.f32 %v5016_v48, %v770_v27  ;;  %v839_v19 = vstv %s2606_s15  ;;  %v703_v4 = vmul.f32 %v4872_v49, %v702_v5  ;;  %7259 = sst [smem:[#allocation61_spill]] %s5444_s10  ;;  %s5454_s15 = sld [smem:[#allocation11 + $0x59]] }
 0x17c   :  { %v1416_v44 = vadd.f32 %v1414_v3, %v1348_v32  ;;  %v297_v3 = vadd.f32 %v295_v29, %v229_v8  ;;  %v434_v32 = vadd.f32 %v432_v42, %v366_v21  ;;  %v841_v24 = vmul.f32 %v4991_v20, %v839_v19  ;;  %7265 = sst [smem:[#allocation66_spill]] %s5459_s18  ;;  %s5461_s16 = sld [smem:[#allocation11 + $0x17]] }
 0x17d   :  { %v909_v48 = vmul.f32 %v4998_v43, %v907_v35  ;;  %v840_v0 = vmul.f32 %v5184_v23, %v839_v19  ;;  %v977_v55 = vmul.f32 %v5005_v51, %v975_v25  ;;  %v1043_v8 = vstv %s5388_s17  ;;  %s5463_s17 = sld [smem:[#allocation11 + $0x22]]  ;;  %7285 = sst [smem:[#allocation85_spill]] %s5503_s2 }
 0x17e   :  { %v1484_v46 = vadd.f32 %v1482_v37, %v1416_v44  ;;  %v500_v37 = vmul.f32 %v4930_v30, %v498_v62  ;;  %v365_v44 = vadd.f32 %v363_v41, %v297_v3  ;;  %v567_v30 = vmul.f32 %v5110_v18, %v566_v6  ;;  %v5386_v18 = vpop.permute.xlu1 %1558  ;;  %v5408_v41 = vpop.permute.xlu0 %1554  ;;  %7257 = sst [smem:[#allocation59_spill]] %s5440_s4  ;;  %s5522_s2 = sld [smem:[#allocation11 + $0x3a]] }
 0x17f   :  { %v908_v29 = vmul.f32 %v5200_v40, %v907_v35  ;;  %v1045_v42 = vmul.f32 %v5065_v52, %v1043_v8  ;;  %v1111_v3 = vstv %s5392_s19  ;;  %v1179_v40 = vstv %s5399_s7  ;;  %7263 = sst [smem:[#allocation64_spill]] %s5452_s14  ;;  %s5465_s19 = sld [smem:[#allocation11 + $0x2d]] }
 0x180   :  { %v1552_v12 = vadd.f32 %v1550_v2, %v1484_v46  ;;  %v502_v2 = vadd.f32 %v500_v37, %v434_v32  ;;  %v568_v46 = vmul.f32 %v4944_v57, %v566_v6  ;;  %v635_v57 = vmul.f32 %v4863_v56, %v634_v38  ;;  %7260 = sst [smem:[#allocation62_spill]] %s5447_s11  ;;  %s5468_s7 = sld [smem:[#allocation11 + $0x38]] }
 0x181   :  { %v771_v56 = vmul.f32 %v4907_v9, %v770_v27  ;;  %v976_v32 = vmul.f32 %v5216_v16, %v975_v25  ;;  %v1113_v6 = vmul.f32 %v5078_v61, %v1111_v3  ;;  %v1044_v16 = vmul.f32 %v5227_v26, %v1043_v8  ;;  %7264 = sst [smem:[#allocation65_spill]] %s5454_s15  ;;  %s5615_s14 = sld [smem:[#allocation11 + $0x12]] }
 0x182   :  { %1590 = vrot.lane.b32.xlu0 %v1552_v12, %s6885_s24  ;;  %v433_v12 = vadd.f32 %v431_v54, %v365_v44  ;;  %v570_v34 = vadd.f32 %v568_v46, %v502_v2  ;;  %v5394_v49 = vpop.permute.xlu1 %1560  ;;  %v5430_v61 = vpop.permute.xlu0 %1556  ;;  %v1181_v2 = vmul.f32 %v5083_v17, %v1179_v40  ;;  %v1247_v46 = vstv %s5406_s20  ;;  %7266 = sst [smem:[#allocation67_spill]] %s5461_s16  ;;  %s5470_s20 = sld [smem:[#allocation11 + $0x43]] }
 0x183   :  { %v1112_v38 = vmul.f32 %v5238_v60, %v1111_v3  ;;  %7267 = sst [smem:[#allocation68_spill]] %s5463_s17  ;;  %s5475_s24 = sld [smem:[#allocation11 + $0x2]]  ;;  %v1248_v27 = vmul.f32 %v5273_v28, %v1247_v46  ;;  %v1451_v19 = vstv %s5417_s1 }
 0x184   :  { %v501_v33 = vadd.f32 %v499_v7, %v433_v12  ;;  %v638_v59 = vadd.f32 %v636_v10, %v570_v34  ;;  %v7262_v12 = vld [vmem:[#allocation45_spill] sm:$0xff]  ;;  %v1315_v34 = vstv %s5412_s22  ;;  %s5473_s22 = sld [smem:[#allocation11 + $0x4e]]  ;;  %s5513_s1 = sld [smem:[#allocation11 + $0x19]] }
 0x185   :  { %v1249_v7 = vmul.f32 %v7262_v12, %v1247_v46  ;;  %7268 = sst [smem:[#allocation69_spill]] %s5465_s19  ;;  %v7064_v46 = vstv %s5449_s12  ;;  %s5622_s16 = sld [smem:[#allocation11 + $0x1d]] }
 0x186   :  { %v569_v63 = vadd.f32 %v567_v30, %v501_v33  ;;  %v706_v31 = vadd.f32 %v704_v53, %v638_v59  ;;  %v5403_v62 = vpop.permute.xlu1 %1564  ;;  %v1563_v60 = vpop.permute.xlu0 %1562  ;;  %v1180_v33 = vmul.f32 %v5259_v11, %v1179_v40  ;;  %7269 = sst [smem:[#allocation70_spill]] %s5468_s7  ;;  %v1317_v59 = vmul.f32 %v5152_v36, %v1315_v34  ;;  %s5630_s19 = sld [smem:[#allocation11 + $0x3e]] }
 0x187   :  { %v1383_v53 = vstv %s5415_s30  ;;  %s5492_s30 = sld [smem:[#allocation11 + $0x2e]]  ;;  %7292 = sst [smem:[#allocation92_spill]] %s5522_s2  ;;  %v1980_v40 = vstv %s5438_s29 }
 0x188   :  { %v637_v47 = vadd.f32 %v635_v57, %v569_v63  ;;  %v774_v45 = vadd.f32 %v772_v39, %v706_v31  ;;  %7270 = sst [smem:[#allocation71_spill]] %s5470_s20  ;;  %v7279_v31 = vld [vmem:[#allocation30_spill] sm:$0xff]  ;;  %s5538_s2 = sld [smem:[#allocation11 + $0xf]] }
 0x189   :  { %7272 = sst [smem:[#allocation73_spill]] %s5475_s24  ;;  %v1385_v39 = vmul.f32 %v7279_v31, %v1383_v53  ;;  %s5501_s24 = sld [smem:[#allocation11 + $0x65]] }
 0x18a   :  { %v705_v1 = vadd.f32 %v703_v4, %v637_v47  ;;  %v843_v14 = vadd.f32 %v841_v24, %v774_v45  ;;  %v5423_v52 = vpop.permute.xlu1 %1568  ;;  %7271 = sst [smem:[#allocation72_spill]] %s5473_s22  ;;  %v1567_v36 = vpop.permute.xlu0 %1566  ;;  %v1316_v47 = vmul.f32 %v5287_v58, %v1315_v34  ;;  %v1453_v45 = vmul.f32 %v5192_v13, %v1451_v19  ;;  %s7317_s29 = sld [smem:[#allocation74_spill]] }
 0x18b   :  { %7289 = sst [smem:[#allocation89_spill]] %s5513_s1  ;;  %v1519_v24 = vstv %s5419_s23  ;;  %s5532_s23 = sld [smem:[#allocation11 + $0x66]]  ;;  %v1596_v25 = vadd.f32 %v1567_v36, %v1563_v60 }
 0x18c   :  { %v773_v22 = vadd.f32 %v771_v56, %v705_v1  ;;  %v911_v15 = vadd.f32 %v909_v48, %v843_v14  ;;  %v1384_v56 = vmul.f32 %v4991_v20, %v1383_v53  ;;  %v1521_v14 = vmul.f32 %v5208_v50, %v1519_v24  ;;  %7323 = sst [smem:[#allocation119_spill]] %s5615_s14  ;;  %s5628_s20 = sld [smem:[#allocation11 + $0x33]] }
 0x18d   :  { %7280 = sst [smem:[#allocation80_spill]] %s5492_s30  ;;  %v1597_v48 = vadd.f32 %v5423_v52, %v5403_v62  ;;  %v1595_v20 = vadd.f32 %v5394_v49, %v5430_v61  ;;  %v1640_v62 = vstv %s5421_s0  ;;  %v7081_v52 = vstv %s5442_s9  ;;  %s5602_s9 = sld [smem:[#allocation11 + $0x69]] }
 0x18e   :  { %v842_v9 = vadd.f32 %v840_v0, %v773_v22  ;;  %v979_v21 = vadd.f32 %v977_v55, %v911_v15  ;;  %v5457_v10 = vpop.permute.xlu1 %1572  ;;  %v5520_v1 = vpop.permute.xlu0 %1570  ;;  %7298 = sst [smem:[#allocation98_spill]] %s5538_s2  ;;  %v1452_v22 = vmul.f32 %v4998_v43, %v1451_v19  ;;  %v1686_v15 = vlaneseq  ;;  %s5559_s2 = sld [smem:[#allocation11 + $0x67]] }
 0x18f   :  { %7284 = sst [smem:[#allocation84_spill]] %s5501_s24  ;;  %v1594_v55 = vadd.f32 %v5386_v18, %v5408_v41  ;;  %v1605_v49 = vadd.f32 %v1597_v48, %v1595_v20  ;;  %v1692_v41 = vstv %s5426_s25  ;;  %s5593_s25 = sld [smem:[#allocation11 + $0x3d]] }
 0x190   :  { %v910_v23 = vadd.f32 %v908_v29, %v842_v9  ;;  %v1047_v37 = vadd.f32 %v1045_v42, %v979_v21  ;;  %s5518_s24 = sld [smem:[#allocation11 + $0x2f]]  ;;  %v1520_v29 = vmul.f32 %v5005_v51, %v1519_v24  ;;  %v1615_v21 = vstv %s6766_s3  ;;  %s7320_s0 = sld [smem:[#allocation75_spill]] }
 0x191   :  { %7296 = sst [smem:[#allocation96_spill]] %s5532_s23  ;;  %v5563_v43 = vadd.f32 %v1596_v25, %v1594_v55  ;;  %v5574_v3 = vshrl.u32 %v1686_v15, 7  ;;  %s7334_s22 = sld [smem:[#allocation84_spill]] }
 0x192   :  { %v978_v44 = vadd.f32 %v976_v32, %v910_v23  ;;  %v1115_v54 = vadd.f32 %v1113_v6, %v1047_v37  ;;  %v1577_v63 = vpop.permute.xlu1 %1576  ;;  %s5551_s23 = sld [smem:[#allocation11 + $0x3b]]  ;;  %v1575_v9 = vpop.permute.xlu0 %1574  ;;  %v1764_v23 = vstv %s5428_s28  ;;  %v1836_v32 = vstv %s5433_s13  ;;  %s5595_s28 = sld [smem:[#allocation11 + $0x48]] }
 0x193   :  { %v1908_v37 = vstv %s5435_s27  ;;  %s5600_s27 = sld [smem:[#allocation11 + $0x53]]  ;;  %7318 = sst [smem:[#allocation117_spill]] %s5602_s9  ;;  %vm1688_vm2 = vcmp.lt.s32.totalorder %v5574_v3, 7  ;;  %vm1760_vm3 = vcmp.lt.s32.totalorder %v5574_v3, 6  ;;  %vm1832_vm5 = vcmp.lt.s32.totalorder %v5574_v3, 5 }
 0x194   :  { %v1046_v26 = vadd.f32 %v1044_v16, %v978_v44  ;;  %v1183_v17 = vadd.f32 %v1181_v2, %v1115_v54  ;;  %7306 = sst [smem:[#allocation106_spill]] %s5559_s2  ;;  %s5579_s2 = sld [smem:[#allocation11 + $0x1c]]  ;;  %v7067_v16 = vstv %s5440_s4  ;;  %v7066_v2 = vstv %s5447_s11 }
 0x195   :  { %7314 = sst [smem:[#allocation114_spill]] %s5593_s25  ;;  %s5607_s13 = sld [smem:[#allocation11 + $0x74]]  ;;  %vm1904_vm6 = vcmp.lt.s32.totalorder %v5574_v3, 4  ;;  %vm1976_vm7 = vcmp.lt.s32.totalorder %v5574_v3, 3  ;;  %vm2048_vm8 = vcmp.lt.s32.totalorder %v5574_v3, 2  ;;  %vm2120_vm9 = vcmp.lt.s32.totalorder %v5574_v3, 1 }
 0x196   :  { %v1114_v5 = vadd.f32 %v1112_v38, %v1046_v26  ;;  %v1251_v30 = vadd.f32 %v1249_v7, %v1183_v17  ;;  %v1581_v35 = vpop.permute.xlu1 %1580  ;;  %7291 = sst [smem:[#allocation91_spill]] %s5518_s24  ;;  %s5542_s24 = sld [smem:[#allocation11 + $0x1a]]  ;;  %v7044_v7 = vstv %s5454_s15 }
 0x197   :  { %v1601_v18 = vadd.f32 %v1581_v35, %v1577_v63  ;;  %s5609_s4 = sld [smem:[#allocation11 + $0x7]]  ;;  %7328 = sst [smem:[#allocation121_spill]] %s5622_s16  ;;  %v7055_v63 = vstv %s7320_s0 }
 0x198   :  { %v1182_v11 = vadd.f32 %v1180_v33, %v1114_v5  ;;  %v1319_v57 = vadd.f32 %v1317_v59, %v1251_v30  ;;  %7303 = sst [smem:[#allocation103_spill]] %s5551_s23  ;;  %s5617_s11 = sld [smem:[#allocation11 + $0x5f]]  ;;  %v7045_v59 = vstv %s7317_s29 }
 0x199   :  { %s5587_s23 = sld [smem:[#allocation11 + $0x32]]  ;;  %7315 = sst [smem:[#allocation115_spill]] %s5595_s28 }
 0x19a   :  { %v1250_v28 = vadd.f32 %v1248_v27, %v1182_v11  ;;  %v1387_v4 = vadd.f32 %v1385_v39, %v1319_v57  ;;  %7311 = sst [smem:[#allocation111_spill]] %s5579_s2  ;;  %s7322_s28 = sld [smem:[#allocation77_spill]] }
 0x19b   :  { %7316 = sst [smem:[#allocation116_spill]] %s5600_s27  ;;  %s5624_s15 = sld [smem:[#allocation11 + $0x28]] }
 0x19c   :  { %v1318_v58 = vadd.f32 %v1316_v47, %v1250_v28  ;;  %v1455_v13 = vadd.f32 %v1453_v45, %v1387_v4  ;;  %7300 = sst [smem:[#allocation100_spill]] %s5542_s24  ;;  %s5557_s24 = sld [smem:[#allocation11 + $0x51]] }
 0x19d   :  { %7321 = sst [smem:[#allocation118_spill]] %s5609_s4  ;;  %s5638_s16 = sld [smem:[#allocation11 + $0x54]] }
 0x19e   :  { %v1386_v50 = vadd.f32 %v1384_v56, %v1318_v58  ;;  %v1523_v8 = vadd.f32 %v1521_v14, %v1455_v13  ;;  %7325 = sst [smem:[#allocation120_spill]] %s5617_s11  ;;  %s7336_s29 = sld [smem:[#allocation86_spill]]  ;;  %v7046_v58 = vstv %s7334_s22  ;;  %v1624_v56 = vld [vmem:[#allocation8] sm:$0xff] }
 0x19f   :  { %7313 = sst [smem:[#allocation113_spill]] %s5587_s23  ;;  %s7340_s0 = sld [smem:[#allocation87_spill]] }
 0x1a0   :  { %v1454_v42 = vadd.f32 %v1452_v22, %v1386_v50  ;;  %v1599_v51 = vadd.f32 %v5457_v10, %v1523_v8  ;;  %v7043_v36 = vstv %s7322_s28  ;;  %7331 = sst [smem:[#allocation123_spill]] %s5628_s20  ;;  %s5645_s14 = sld [smem:[#allocation11 + $0x75]] }
 0x1a1   :  { %7329 = sst [smem:[#allocation122_spill]] %s5624_s15  ;;  %s5636_s15 = sld [smem:[#allocation11 + $0x49]] }
 0x1a2   :  { %7305 = sst [smem:[#allocation105_spill]] %s5557_s24  ;;  %s5571_s24 = sld [smem:[#allocation11 + $0x5e]]  ;;  %v1607_v61 = vadd.f32 %v1601_v18, %v1599_v51  ;;  %v1522_v38 = vadd.f32 %v1520_v29, %v1454_v42 }
 0x1a3   :  { %7333 = sst [smem:[#allocation124_spill]] %s5630_s19  ;;  %s5643_s19 = sld [smem:[#allocation11 + $0x6a]] }
 0x1a4   :  { %v1579_v54 = vpop.permute.xlu0 %1578  ;;  %v1611_v27 = vadd.f32 %v1607_v61, %v1605_v49  ;;  %v1598_v57 = vadd.f32 %v5520_v1, %v1522_v38  ;;  %7339 = sst [smem:[#allocation126_spill]] %s5638_s16  ;;  %s5650_s12 = sld [smem:[#allocation11 + $0x8]]  ;;  %v7047_v14 = vstv %s7336_s29  ;;  %v7063_v61 = vstv %s5607_s13 }
 0x1a5   :  { %v1600_v33 = vadd.f32 %v1579_v54, %v1575_v9  ;;  %v7048_v25 = vstv %s7340_s0  ;;  %s7350_s17 = sld [smem:[#allocation96_spill]]  ;;  %s5659_s30 = sld [smem:[#allocation11 + $0x1e]] }
 0x1a6   :  { %7343 = sst [smem:[#allocation127_spill]] %s5645_s14  ;;  %s7352_s14 = sld [smem:[#allocation97_spill]] }
 0x1a7   :  { %7337 = sst [smem:[#allocation125_spill]] %s5636_s15  ;;  %v1606_v35 = vadd.f32 %v1600_v33, %v1598_v57  ;;  %s7353_s7 = sld [smem:[#allocation99_spill]] }
 0x1a8   :  { %7309 = sst [smem:[#allocation109_spill]] %s5571_s24  ;;  %s5665_s10 = sld [smem:[#allocation11 + $0x29]]  ;;  %v7059_v33 = vstv %s5571_s24 }
 0x1a9   :  { %s5652_s15 = sld [smem:[#allocation11 + $0x60]]  ;;  %s5667_s22 = sld [smem:[#allocation11 + $0x34]]  ;;  %v5683_v29 = vadd.f32 %v1606_v35, %v5563_v43  ;;  %v1625_v43 = vld [vmem:[#allocation8 + $0x8] sm:$0xff]  ;;  %v7070_v38 = vstv %s5643_s19 }
 0x1aa   :  { %7346 = sst [smem:[#allocation128_spill]] %s5650_s12  ;;  %s5676_s29 = sld [smem:[#allocation11 + $0x3f]] }
 0x1ab   :  { %7351 = sst [smem:[#allocation131_spill]] %s5659_s30  ;;  %s5678_s28 = sld [smem:[#allocation11 + $0x4a]]  ;;  %v7049_v18 = vstv %s7350_s17 }
 0x1ac   :  { %v7054_v42 = vstv %s7352_s14  ;;  %s7367_s18 = sld [smem:[#allocation106_spill]]  ;;  %s5702_s14 = sld [smem:[#allocation11 + $0x61]] }
 0x1ad   :  { %v7052_v51 = vstv %s7353_s7  ;;  %s5700_s7 = sld [smem:[#allocation11 + $0x76]]  ;;  %s5707_s11 = sld [smem:[#allocation11 + $0x14]] }
 0x1ae   :  { %v1585_v0 = vpop.permute.xlu1 %1584  ;;  %7354 = sst [smem:[#allocation132_spill]] %s5665_s10  ;;  %s7375_s9 = sld [smem:[#allocation117_spill]] }
 0x1af   :  { %7348 = sst [smem:[#allocation129_spill]] %s5652_s15  ;;  %s5688_s15 = sld [smem:[#allocation11 + $0x55]] }
 0x1b0   :  { %7355 = sst [smem:[#allocation133_spill]] %s5667_s22  ;;  %s5709_s17 = sld [smem:[#allocation11 + $0x1f]] }
 0x1b1   :  { %7358 = sst [smem:[#allocation134_spill]] %s5676_s29  ;;  %s5715_s12 = sld [smem:[#allocation11 + $0x2a]] }
 0x1b2   :  { %7360 = sst [smem:[#allocation135_spill]] %s5678_s28  ;;  %s5694_s28 = sld [smem:[#allocation11 + $0x6b]] }
 0x1b3   :  { %7370 = sst [smem:[#allocation139_spill]] %s5700_s7  ;;  %s5717_s1 = sld [smem:[#allocation11 + $0x35]]  ;;  %v7079_v22 = vstv %s5700_s7 }
 0x1b4   :  { %7371 = sst [smem:[#allocation140_spill]] %s5702_s14  ;;  %s7380_s3 = sld [smem:[#allocation120_spill]]  ;;  %v7060_v54 = vstv %s7375_s9 }
 0x1b5   :  { %7364 = sst [smem:[#allocation136_spill]] %s5688_s15  ;;  %s7390_s25 = sld [smem:[#allocation127_spill]] }
 0x1b6   :  { %7373 = sst [smem:[#allocation141_spill]] %s5707_s11  ;;  %s5740_s23 = sld [smem:[#allocation11 + $0x6c]] }
 0x1b7   :  { %7374 = sst [smem:[#allocation142_spill]] %s5709_s17  ;;  %s5724_s17 = sld [smem:[#allocation11 + $0x40]] }
 0x1b8   :  { %7369 = sst [smem:[#allocation138_spill]] %s5694_s28  ;;  %s7394_s27 = sld [smem:[#allocation129_spill]]  ;;  %v7077_v50 = vstv %s5694_s28 }
 0x1b9   :  { %7376 = sst [smem:[#allocation117_spill]] %s5715_s12  ;;  %s5734_s12 = sld [smem:[#allocation11 + $0xa]] }
 0x1ba   :  { %7378 = sst [smem:[#allocation143_spill]] %s5717_s1  ;;  %s5732_s1 = sld [smem:[#allocation11 + $0x56]]  ;;  %v7065_v35 = vstv %s7380_s3 }
 0x1bb   :  { %s5748_s0 = sld [smem:[#allocation11 + $0x15]]  ;;  %s5750_s4 = sld [smem:[#allocation11 + $0x62]] }
 0x1bc   :  { %7391 = sst [smem:[#allocation147_spill]] %s5740_s23  ;;  %s5760_s24 = sld [smem:[#allocation11 + $0x2b]] }
 0x1bd   :  { %7382 = sst [smem:[#allocation120_spill]] %s5724_s17  ;;  %s5742_s17 = sld [smem:[#allocation11 + $0x77]] }
 0x1be   :  { %v7080_v8 = vstv %s7394_s27  ;;  %s5766_s2 = sld [smem:[#allocation11 + $0x36]]  ;;  %s5768_s16 = sld [smem:[#allocation11 + $0x41]] }
 0x1bf   :  { %7388 = sst [smem:[#allocation146_spill]] %s5734_s12  ;;  %s5776_s30 = sld [smem:[#allocation11 + $0x57]] }
 0x1c0   :  { %7387 = sst [smem:[#allocation145_spill]] %s5732_s1  ;;  %s7411_s1 = sld [smem:[#allocation59_spill]] }
 0x1c1   :  { %v5680_v49 = vpop.permute.xlu0 %1582  ;;  %7395 = sst [smem:[#allocation149_spill]] %s5748_s0  ;;  %s7412_s27 = sld [smem:[#allocation65_spill]] }
 0x1c2   :  { %7396 = sst [smem:[#allocation150_spill]] %s5750_s4  ;;  %s7415_s21 = sld [smem:[#allocation63_spill]] }
 0x1c3   :  { %7393 = sst [smem:[#allocation148_spill]] %s5742_s17  ;;  %s7414_s14 = sld [smem:[#allocation62_spill]] }
 0x1c4   :  { %7399 = sst [smem:[#allocation152_spill]] %s5760_s24  ;;  %s7416_s15 = sld [smem:[#allocation74_spill]] }
 0x1c5   :  { %7400 = sst [smem:[#allocation153_spill]] %s5766_s2  ;;  %s7418_s4 = sld [smem:[#allocation75_spill]] }
 0x1c6   :  { %7401 = sst [smem:[#allocation154_spill]] %s5768_s16  ;;  %s7422_s16 = sld [smem:[#allocation87_spill]] }
 0x1c7   :  { %7407 = sst [smem:[#allocation156_spill]] %s5776_s30  ;;  %s7423_s17 = sld [smem:[#allocation96_spill]] }
 0x1c8   :  { %s7420_s30 = sld [smem:[#allocation84_spill]]  ;;  %s7424_s2 = sld [smem:[#allocation97_spill]] }
 0x1c9   :  { %s7425_s24 = sld [smem:[#allocation99_spill]]  ;;  %s7426_s23 = sld [smem:[#allocation106_spill]] }
 0x1ca   :  { %v1589_v6 = vpop.permute.xlu1 %1588  ;;  %s7428_s0 = sld [smem:[#allocation109_spill]]  ;;  %s7431_s20 = sld [smem:[#allocation127_spill]] }
 0x1cb   :  { %v1603_v11 = vadd.f32 %v1589_v6, %v1585_v0  ;;  %s7437_s10 = sld [smem:[#allocation60_spill]]  ;;  %s7442_s28 = sld [smem:[#allocation66_spill]] }
 0x1cc   :  { %s7443_s7 = sld [smem:[#allocation61_spill]]  ;;  %s7449_s26 = sld [smem:[#allocation68_spill]] }
 0x1cd   :  { %s7451_s11 = sld [smem:[#allocation69_spill]]  ;;  %s7453_s12 = sld [smem:[#allocation70_spill]] }
 0x1ce   :  { %s7460_s29 = sld [smem:[#allocation73_spill]]  ;;  %s7488_s22 = sld [smem:[#allocation83_spill]] }
 0x1e3   :  { %v1593_v31 = vpop.permute.xlu1 %1592 }
 0x1e4   :  { %v1609_v47 = vadd.f32 %v1603_v11, %v1593_v31  ;;  %v1587_v11 = vpop.permute.xlu0 %1586 }
 0x1e6   :  { %v1613_v13 = vadd.f32 %v1611_v27, %v1609_v47  ;;  %v7053_v47 = vstv %s7367_s18  ;;  %s5758_s18 = sld [smem:[#allocation11 + $0x20]] }
 0x1e8   :  { %v1617_v15 = vadd.f32 %v1615_v21, %v1613_v13  ;;  %v7056_v13 = vstv %s5569_s6  ;;  %s7441_s6 = sld [smem:[#allocation64_spill]] }
 0x1ea   :  { %vm1619_vm0 = vcmp.ge.f32.partialorder %v1617_v15, 0.0  ;;  %v1621_v6 = vmul.f32 0.2, %v1617_v15 }
 0x1ec   :  { %v1623_v57 = vsel %vm1619_vm0, %v1617_v15, %v1621_v6  ;;  %7398 = sst [smem:[#allocation151_spill]] %s5758_s18  ;;  %s7427_s18 = sld [smem:[#allocation108_spill]] }
 0x1ed   :  { %v5719_v15 = vmul.f32 %v1625_v43, %v1623_v57  ;;  %v7075_v43 = vstv %s7390_s25  ;;  %v1602_v57 = vadd.f32 %v1587_v11, %v5680_v49  ;;  %s7444_s25 = sld [smem:[#allocation67_spill]] }
 0x1ef   :  { %v1632_v31 = vrot.slane %v5719_v15, 3 }
 0x1f1   :  { %v5785_v49 = vsel %vm1630_vm1, %v1632_v31, 0.0 }
 0x1f2   :  { %7409 = vst [vmem:[#allocation31_spill] sm:$0xff] %v5785_v49  ;;  %v1975_v24 = vrot.slane %v5785_v49, 5  ;;  %v2047_v6 = vrot.slane %v5785_v49, 6  ;;  %v5883_v39 = vmul.f32 %v7048_v25, %v5785_v49  ;;  %v5949_v60 = vmul.f32 %v7065_v35, %v5785_v49 }
 0x1f4   :  { %v1591_v27 = vpop.permute.xlu0 %1590 }
 0x1f5   :  { %v1608_v11 = vadd.f32 %v1602_v57, %v1591_v27  ;;  %v1685_v27 = vrot.slane %v5785_v49, 1  ;;  %v1759_v57 = vrot.slane %v5785_v49, 2 }
 0x1f7   :  { %v1612_v20 = vadd.f32 %v5683_v29, %v1608_v11  ;;  %v5821_v45 = vsel %vm1688_vm2, %v1685_v27, 0.0  ;;  %v5827_v55 = vsel %vm1760_vm3, %v1759_v57, 0.0  ;;  %v5836_v29 = vmul.f32 %v7067_v16, %v5785_v49 }
 0x1f8   :  { %7417 = vst [vmem:[#allocation32_spill] sm:$0xff] %v5821_v45  ;;  %7419 = vst [vmem:[#allocation33_spill] sm:$0xff] %v5827_v55  ;;  %v5863_v48 = vmul.f32 %v7045_v59, %v5821_v45  ;;  %v5873_v19 = vmul.f32 %v7046_v58, %v5821_v45  ;;  %v5888_v59 = vmul.f32 %v7049_v18, %v5821_v45 }
 0x1f9   :  { %v1616_v9 = vadd.f32 %v1615_v21, %v1612_v20  ;;  %v1831_v21 = vrot.slane %v5785_v49, 3  ;;  %v1903_v20 = vrot.slane %v5785_v49, 4  ;;  %v5898_v58 = vmul.f32 %v7052_v51, %v5785_v49 }
 0x1fa   :  { %v5917_v51 = vmul.f32 %v7056_v13, %v5827_v55  ;;  %v5938_v53 = vmul.f32 %v7063_v61, %v5827_v55  ;;  %v5970_v12 = vmul.f32 %v7070_v38, %v5821_v45 }
 0x1fb   :  { %vm1618_vm4 = vcmp.ge.f32.partialorder %v1616_v9, 0.0  ;;  %v1620_v4 = vmul.f32 0.2, %v1616_v9 }
 0x1fd   :  { %v1622_v0 = vsel %vm1618_vm4, %v1616_v9, %v1620_v4  ;;  %v5841_v4 = vmul.f32 %v7044_v7, %v5785_v49  ;;  %v5846_v9 = vmul.f32 %v7043_v36, %v5785_v49  ;;  %v5868_v36 = vmul.f32 %v7055_v63, %v5827_v55 }
 0x1fe   :  { %v1626_v11 = vmul.f32 %v1624_v56, %v1622_v0  ;;  %v5853_v56 = vmul.f32 %v7066_v2, %v5821_v45  ;;  %v5858_v0 = vmul.f32 %v7064_v46, %v5827_v55  ;;  %v5878_v7 = vmul.f32 %v7047_v14, %v5827_v55 }
 0x1ff   :  { %v5903_v14 = vmul.f32 %v7053_v47, %v5821_v45  ;;  %v5922_v47 = vmul.f32 %v7059_v33, %v5785_v49  ;;  %v5975_v2 = vmul.f32 %v7075_v43, %v5827_v55 }
 0x200   :  { %v1631_v28 = vrot.slane %v1626_v11, 3  ;;  %v5893_v11 = vmul.f32 %v7054_v42, %v5827_v55 }
 0x202   :  { %v5908_v25 = vsel %vm1630_vm1, %v1631_v28, %v1632_v31  ;;  %v5911_v18 = vsel %vm1630_vm1, 0.0, %v1631_v28  ;;  %v5930_v28 = vmul.f32 %v7060_v54, %v5821_v45 }
 0x203   :  { %v1683_v15 = vrot.slane %v5911_v18, 1  ;;  %v1684_v31 = vrot.slane %v5908_v25, 1  ;;  %v1757_v42 = vrot.slane %v5911_v18, 2  ;;  %v1758_v63 = vrot.slane %v5908_v25, 2 }
 0x204   :  { %v1829_v13 = vrot.slane %v5911_v18, 3  ;;  %v1830_v33 = vrot.slane %v5908_v25, 3  ;;  %v1901_v5 = vrot.slane %v5911_v18, 4  ;;  %v1902_v54 = vrot.slane %v5908_v25, 4 }
 0x205   :  { %v5942_v30 = vsel %vm1688_vm2, %v1683_v15, %v1684_v31  ;;  %v1641_v10 = vmul.f32 %v1640_v62, %v5911_v18  ;;  %v5959_v61 = vsel %vm1760_vm3, %v1757_v42, %v1758_v63  ;;  %v1973_v15 = vrot.slane %v5911_v18, 5 }
 0x206   :  { %v1693_v34 = vmul.f32 %v1692_v41, %v5942_v30  ;;  %v5964_v46 = vsel %vm1832_vm5, %v1829_v13, %v1830_v33  ;;  %v1974_v35 = vrot.slane %v5908_v25, 5  ;;  %v1765_v16 = vmul.f32 %v1764_v23, %v5959_v61 }
 0x207   :  { %v2045_v13 = vrot.slane %v5911_v18, 6  ;;  %v2046_v44 = vrot.slane %v5908_v25, 6  ;;  %v5986_v38 = vsel %vm1688_vm2, %v1684_v31, %v1685_v27  ;;  %v2118_v43 = vrot.slane %v5908_v25, 7 }
 0x208   :  { %v1695_v42 = vadd.f32 %v1693_v34, %v1641_v10  ;;  %v5990_v34 = vsel %vm1904_vm6, %v1901_v5, %v1902_v54  ;;  %v2117_v10 = vrot.slane %v5911_v18, 7  ;;  %v1837_v26 = vmul.f32 %v1836_v32, %v5964_v46 }
 0x209   :  { %v5999_v1 = vsel %vm1976_vm7, %v1973_v15, %v1974_v35  ;;  %v6003_v27 = vsel %vm2048_vm8, %v2045_v13, %v2046_v44  ;;  %v6009_v5 = vsel %vm1760_vm3, %v1758_v63, %v1759_v57  ;;  %v6019_v31 = vmul.f32 %v7077_v50, %v5821_v45 }
 0x20a   :  { %v1767_v17 = vadd.f32 %v1765_v16, %v1695_v42  ;;  %v6014_v16 = vmul.f32 %v7080_v8, %v5785_v49  ;;  %v6024_v15 = vmul.f32 %v7079_v22, %v5827_v55  ;;  %v1909_v13 = vmul.f32 %v1908_v37, %v5990_v34 }
 0x20b   :  { %7439 = vst [vmem:[#allocation36_spill] sm:$0xff] %v6019_v31  ;;  %v1642_v63 = vmul.f32 %v1640_v62, %v5908_v25  ;;  %v1694_v57 = vmul.f32 %v1692_v41, %v5986_v38  ;;  %v1981_v50 = vmul.f32 %v1980_v40, %v5999_v1  ;;  %v2053_v22 = vmul.f32 %v7081_v52, %v6003_v27 }
 0x20c   :  { %7438 = vst [vmem:[#allocation34_spill] sm:$0xff] %v6014_v16  ;;  %7440 = vst [vmem:[#allocation52_spill] sm:$0xff] %v6024_v15  ;;  %v1839_v42 = vadd.f32 %v1837_v26, %v1767_v17  ;;  %v6043_v26 = vsel %vm2120_vm9, %v2117_v10, %v2118_v43  ;;  %v6049_v62 = vsel %vm1832_vm5, %v1830_v33, %v1831_v21  ;;  %v7471_v31 = vstv %s7460_s29 }
 0x20d   :  { %v1696_v17 = vadd.f32 %v1694_v57, %v1642_v63  ;;  %v1766_v8 = vmul.f32 %v1764_v23, %v6009_v5  ;;  %v6058_v52 = vsel %vm1904_vm6, %v1902_v54, %v1903_v20  ;;  %v1838_v10 = vmul.f32 %v1836_v32, %v6049_v62 }
 0x20e   :  { %v1911_v41 = vadd.f32 %v1909_v13, %v1839_v42  ;;  %v6067_v33 = vsel %vm1976_vm7, %v1974_v35, %v1975_v24  ;;  %v6073_v23 = vsel %vm2048_vm8, %v2046_v44, %v2047_v6  ;;  %v7445_v54 = vrot.slane %v5785_v49, 7 }
 0x20f   :  { %v1768_v20 = vadd.f32 %v1766_v8, %v1696_v17  ;;  %v7446_v24 = vstv %s7441_s6  ;;  %v7447_v42 = vstv %s7442_s28  ;;  %v7448_v63 = vstv %s7443_s7 }
 0x210   :  { %v6079_v32 = vsel %vm2120_vm9, %v2118_v43, %v7445_v54  ;;  %v1983_v21 = vadd.f32 %v1981_v50, %v1911_v41  ;;  %v1645_v35 = vmul.f32 %v7446_v24, %v5911_v18  ;;  %v1699_v13 = vmul.f32 %v7447_v42, %v5942_v30 }
 0x211   :  { %v2125_v44 = vmul.f32 %v7448_v63, %v6043_v26  ;;  %v7450_v6 = vstv %s7411_s1  ;;  %v7452_v43 = vstv %s7414_s14  ;;  %v1910_v50 = vmul.f32 %v1908_v37, %v6058_v52  ;;  %s7456_s1 = sld [smem:[#allocation71_spill]]  ;;  %s7457_s14 = sld [smem:[#allocation72_spill]] }
 0x212   :  { %v2191_v3 = vmul.f32 %v7450_v6, %v5908_v25  ;;  %v2258_v57 = vmul.f32 %v7452_v43, %v5986_v38  ;;  %v2055_v8 = vadd.f32 %v2053_v22, %v1983_v21  ;;  %v1840_v41 = vadd.f32 %v1838_v10, %v1768_v20 }
 0x213   :  { %v1701_v17 = vadd.f32 %v1699_v13, %v1645_v35  ;;  %v7454_v54 = vstv %s7444_s25  ;;  %v7455_v42 = vstv %s7415_s21  ;;  %v1982_v6 = vmul.f32 %v1980_v40, %v6067_v33  ;;  %s7463_s21 = sld [smem:[#allocation76_spill]] }
 0x214   :  { %v1771_v24 = vmul.f32 %v7454_v54, %v5959_v61  ;;  %v2325_v63 = vmul.f32 %v7455_v42, %v6009_v5  ;;  %v7458_v43 = vstv %s7437_s10  ;;  %v7459_v37 = vstv %s7443_s7  ;;  %s7467_s10 = sld [smem:[#allocation78_spill]]  ;;  %s7482_s7 = sld [smem:[#allocation81_spill]] }
 0x215   :  { %v2054_v55 = vmul.f32 %v7458_v43, %v6073_v23  ;;  %v2126_v22 = vmul.f32 %v7459_v37, %v6079_v32  ;;  %v2127_v10 = vadd.f32 %v2125_v44, %v2055_v8  ;;  %v1912_v21 = vadd.f32 %v1910_v50, %v1840_v41 }
 0x216   :  { %v1773_v20 = vadd.f32 %v1771_v24, %v1701_v17  ;;  %v7461_v35 = vstv %s7449_s26  ;;  %v7462_v54 = vstv %s7451_s11  ;;  %v7464_v40 = vstv %s7453_s12 }
 0x217   :  { %v1843_v13 = vmul.f32 %v7461_v35, %v5964_v46  ;;  %v1915_v42 = vmul.f32 %v7462_v54, %v5990_v34  ;;  %v1987_v45 = vmul.f32 %v7464_v40, %v5999_v1  ;;  %v7465_v43 = vstv %s7441_s6  ;;  %s7474_s6 = sld [smem:[#allocation79_spill]] }
 0x218   :  { %v1646_v49 = vmul.f32 %v7465_v43, %v5908_v25  ;;  %v7466_v37 = vstv %s7442_s28  ;;  %v2193_v50 = vadd.f32 %v2191_v3, %v2127_v10  ;;  %v1984_v8 = vadd.f32 %v1982_v6, %v1912_v21  ;;  %s7477_s28 = sld [smem:[#allocation80_spill]] }
 0x219   :  { %v1700_v44 = vmul.f32 %v7466_v37, %v5986_v38  ;;  %v1845_v41 = vadd.f32 %v1843_v13, %v1773_v20  ;;  %v7468_v17 = vstv %s7456_s1  ;;  %v7469_v35 = vstv %s7457_s14 }
 0x21a   :  { %v2059_v24 = vmul.f32 %v7468_v17, %v6003_v27  ;;  %v2131_v54 = vmul.f32 %v7469_v35, %v6043_v26  ;;  %v7470_v40 = vstv %s7444_s25  ;;  %v1649_v16 = vmul.f32 %v7471_v31, %v5911_v18  ;;  %s7494_s25 = sld [smem:[#allocation88_spill]] }
 0x21b   :  { %v1702_v15 = vadd.f32 %v1700_v44, %v1646_v49  ;;  %v1772_v43 = vmul.f32 %v7470_v40, %v6009_v5  ;;  %v2260_v37 = vadd.f32 %v2258_v57, %v2193_v50  ;;  %v2056_v3 = vadd.f32 %v2054_v55, %v1984_v8 }
 0x21c   :  { %v1917_v6 = vadd.f32 %v1915_v42, %v1845_v41  ;;  %v7472_v10 = vstv %s7463_s21  ;;  %v7473_v20 = vstv %s7412_s27  ;;  %v7475_v49 = vstv %s7449_s26  ;;  %s7481_s27 = smov 5   ;;  %s7498_s26 = sld [smem:[#allocation89_spill]] }
 0x21d   :  { %v1705_v21 = vmul.f32 %v7472_v10, %v5942_v30  ;;  %v2197_v13 = vmul.f32 %v7473_v20, %v5908_v25  ;;  %v1774_v17 = vadd.f32 %v1772_v43, %v1702_v15  ;;  %v1844_v44 = vmul.f32 %v7475_v49, %v6049_v62 }
 0x21e   :  { %v7476_v35 = vstv %s7467_s10  ;;  %v2327_v31 = vadd.f32 %v2325_v63, %v2260_v37  ;;  %v2128_v55 = vadd.f32 %v2126_v22, %v2056_v3  ;;  %v1989_v57 = vadd.f32 %v1987_v45, %v1917_v6 }
 0x21f   :  { %v1777_v40 = vmul.f32 %v7476_v35, %v5959_v61  ;;  %v1707_v42 = vadd.f32 %v1705_v21, %v1649_v16  ;;  %v7478_v50 = vstv %s7416_s15  ;;  %v7479_v41 = vstv %s7418_s4  ;;  %s7487_s4 = sld [smem:[#allocation82_spill]]  ;;  %s7493_s15 = sld [smem:[#allocation85_spill]] }
 0x220   :  { %v2264_v8 = vmul.f32 %v7478_v50, %v5986_v38  ;;  %v2331_v15 = vmul.f32 %v7479_v41, %v6009_v5  ;;  %v1846_v43 = vadd.f32 %v1844_v44, %v1774_v17  ;;  %v7480_v10 = vstv %s7451_s11  ;;  %2389 = vrot.lane.b32.xlu0 %v2327_v31, %s7481_s27  ;;  %s7503_s11 = sld [smem:[#allocation90_spill]] }
 0x221   :  { %v1916_v20 = vmul.f32 %v7480_v10, %v6058_v52  ;;  %v2194_v63 = vadd.f32 %v5836_v29, %v2128_v55  ;;  %v2061_v45 = vadd.f32 %v2059_v24, %v1989_v57  ;;  %v1779_v16 = vadd.f32 %v1777_v40, %v1707_v42 }
 0x222   :  { %v7483_v22 = vstv %s7474_s6  ;;  %v7484_v6 = vstv %s7453_s12  ;;  %v7485_v17 = vstv %s7477_s28  ;;  %v7486_v44 = vstv %s7460_s29  ;;  %s7508_s12 = sld [smem:[#allocation91_spill]]  ;;  %s7521_s29 = sld [smem:[#allocation98_spill]] }
 0x223   :  { %v1849_v37 = vmul.f32 %v7483_v22, %v5964_v46  ;;  %v1918_v3 = vadd.f32 %v1916_v20, %v1846_v43  ;;  %v1988_v21 = vmul.f32 %v7484_v6, %v6067_v33  ;;  %v1921_v49 = vmul.f32 %v7485_v17, %v5990_v34 }
 0x224   :  { %v1650_v35 = vmul.f32 %v7486_v44, %v5908_v25  ;;  %v2261_v29 = vadd.f32 %v5853_v56, %v2194_v63  ;;  %v2133_v24 = vadd.f32 %v2131_v54, %v2061_v45  ;;  %v7489_v31 = vstv %s7463_s21  ;;  %s7526_s21 = sld [smem:[#allocation100_spill]] }
 0x225   :  { %v1851_v40 = vadd.f32 %v1849_v37, %v1779_v16  ;;  %v1706_v55 = vmul.f32 %v7489_v31, %v5986_v38  ;;  %v1990_v57 = vadd.f32 %v1988_v21, %v1918_v3  ;;  %v7490_v42 = vstv %s7456_s1  ;;  %s7514_s1 = sld [smem:[#allocation93_spill]] }
 0x226   :  { %v2060_v50 = vmul.f32 %v7490_v42, %v6073_v23  ;;  %v7491_v41 = vstv %s7482_s7  ;;  %v7492_v10 = vstv %s7467_s10  ;;  %v2328_v56 = vadd.f32 %v5858_v0, %v2261_v29  ;;  %s7531_s10 = smov 3  }
 0x227   :  { %v1993_v43 = vmul.f32 %v7491_v41, %v5999_v1  ;;  %v1778_v20 = vmul.f32 %v7492_v10, %v6009_v5  ;;  %v2199_v54 = vadd.f32 %v2197_v13, %v2133_v24  ;;  %v1923_v63 = vadd.f32 %v1921_v49, %v1851_v40 }
 0x228   :  { %v1708_v45 = vadd.f32 %v1706_v55, %v1650_v35  ;;  %v2062_v16 = vadd.f32 %v2060_v50, %v1990_v57  ;;  %v7495_v22 = vstv %s7457_s14  ;;  %v7496_v3 = vstv %s7487_s4  ;;  %2391 = vrot.lane.b32.xlu1 %v2328_v56, %s7481_s27  ;;  %s7515_s14 = sld [smem:[#allocation94_spill]]  ;;  %s7547_s27 = sld [smem:[#allocation107_spill]] }
 0x229   :  { %v2132_v37 = vmul.f32 %v7495_v22, %v6079_v32  ;;  %v2065_v6 = vmul.f32 %v7496_v3, %v6003_v27  ;;  %v7497_v21 = vstv %s7488_s22  ;;  %v2266_v0 = vadd.f32 %v2264_v8, %v2199_v54 }
 0x22a   :  { %v2137_v17 = vmul.f32 %v7497_v21, %v6043_v26  ;;  %v1995_v44 = vadd.f32 %v1993_v43, %v1923_v63  ;;  %v1780_v13 = vadd.f32 %v1778_v20, %v1708_v45  ;;  %v7499_v49 = vstv %s7474_s6  ;;  %s7532_s6 = sld [smem:[#allocation101_spill]] }
 0x22b   :  { %v1850_v35 = vmul.f32 %v7499_v49, %v6049_v62  ;;  %v2134_v29 = vadd.f32 %v2132_v37, %v2062_v16  ;;  %v7500_v24 = vstv %s7413_s8  ;;  %v7501_v31 = vstv %s7493_s15  ;;  %s7507_s8 = smov 4   ;;  %s7562_s15 = smov 2  }
 0x22c   :  { %v2203_v40 = vmul.f32 %v7500_v24, %v5908_v25  ;;  %v1653_v55 = vmul.f32 %v7501_v31, %v5911_v18  ;;  %v7502_v57 = vstv %s7494_s25  ;;  %v2333_v50 = vadd.f32 %v2331_v15, %v2266_v0  ;;  %s7563_s25 = sld [smem:[#allocation113_spill]] }
 0x22d   :  { %v1711_v42 = vmul.f32 %v7502_v57, %v5942_v30  ;;  %v2067_v8 = vadd.f32 %v2065_v6, %v1995_v44  ;;  %v1852_v41 = vadd.f32 %v1850_v35, %v1780_v13  ;;  %v7504_v43 = vstv %s7477_s28  ;;  %s7538_s28 = sld [smem:[#allocation103_spill]] }
 0x22e   :  { %v1922_v10 = vmul.f32 %v7504_v43, %v6058_v52  ;;  %v2200_v20 = vadd.f32 %v5841_v4, %v2134_v29  ;;  %v7505_v56 = vstv %s7420_s30  ;;  %v7506_v45 = vstv %s7498_s26  ;;  %2393 = vrot.lane.b32.xlu0 %v2333_v50, %s7507_s8  ;;  %s7513_s30 = sld [smem:[#allocation92_spill]]  ;;  %s7574_s26 = sld [smem:[#allocation118_spill]] }
 0x22f   :  { %v2270_v54 = vmul.f32 %v7505_v56, %v5986_v38  ;;  %v1713_v63 = vadd.f32 %v1711_v42, %v1653_v55  ;;  %v1783_v16 = vmul.f32 %v7506_v45, %v5959_v61  ;;  %v2139_v15 = vadd.f32 %v2137_v17, %v2067_v8 }
 0x230   :  { %v7509_v22 = vstv %s7421_s5  ;;  %v1924_v3 = vadd.f32 %v1922_v10, %v1852_v41  ;;  %v7510_v6 = vstv %s7482_s7  ;;  %v2267_v21 = vadd.f32 %v5863_v48, %v2200_v20  ;;  %s7520_s5 = sld [smem:[#allocation95_spill]]  ;;  %s7548_s7 = sld [smem:[#allocation110_spill]] }
 0x231   :  { %v2337_v37 = vmul.f32 %v7509_v22, %v6009_v5  ;;  %v1994_v4 = vmul.f32 %v7510_v6, %v6067_v33  ;;  %v7511_v0 = vstv %s7487_s4  ;;  %v1785_v13 = vadd.f32 %v1783_v16, %v1713_v63  ;;  %s7553_s4 = sld [smem:[#allocation111_spill]] }
 0x232   :  { %v2066_v44 = vmul.f32 %v7511_v0, %v6073_v23  ;;  %v7512_v49 = vstv %s7503_s11  ;;  %v2205_v17 = vadd.f32 %v2203_v40, %v2139_v15  ;;  %v7516_v24 = vmov %v7501_v31  ;;  %s7576_s11 = sld [smem:[#allocation119_spill]] }
 0x233   :  { %v1855_v35 = vmul.f32 %v7512_v49, %v5964_v46  ;;  %v1996_v29 = vadd.f32 %v1994_v4, %v1924_v3  ;;  %v1654_v31 = vmul.f32 %v7516_v24, %v5908_v25  ;;  %v7517_v55 = vmov %v7502_v57 }
 0x234   :  { %v1712_v57 = vmul.f32 %v7517_v55, %v5986_v38  ;;  %v2334_v48 = vadd.f32 %v5868_v36, %v2267_v21  ;;  %v7518_v42 = vstv %s7488_s22  ;;  %v7519_v41 = vstv %s7508_s12  ;;  %s7558_s22 = sld [smem:[#allocation112_spill]]  ;;  %s7586_s12 = sld [smem:[#allocation122_spill]] }
 0x235   :  { %v2138_v50 = vmul.f32 %v7518_v42, %v6079_v32  ;;  %v1857_v8 = vadd.f32 %v1855_v35, %v1785_v13  ;;  %v1927_v43 = vmul.f32 %v7519_v41, %v5990_v34  ;;  %v2272_v40 = vadd.f32 %v2270_v54, %v2205_v17 }
 0x236   :  { %v2068_v10 = vadd.f32 %v2066_v44, %v1996_v29  ;;  %v1714_v20 = vadd.f32 %v1712_v57, %v1654_v31  ;;  %v7522_v56 = vmov %v7506_v45  ;;  %2395 = vrot.lane.b32.xlu1 %v2334_v48, %s7507_s8  ;;  %v7523_v45 = vstv %s7513_s30  ;;  %s7580_s8 = sld [smem:[#allocation121_spill]]  ;;  %s7589_s30 = smov 1  }
 0x237   :  { %v1784_v63 = vmul.f32 %v7522_v56, %v6009_v5  ;;  %v1929_v36 = vadd.f32 %v1927_v43, %v1857_v8  ;;  %v1999_v16 = vmul.f32 %v7523_v45, %v5999_v1  ;;  %v7524_v15 = vstv %s7514_s1  ;;  %s7595_s1 = sld [smem:[#allocation124_spill]] }
 0x238   :  { %v2071_v22 = vmul.f32 %v7524_v15, %v6003_v27  ;;  %v7525_v3 = vstv %s7515_s14  ;;  %v2339_v6 = vadd.f32 %v2337_v37, %v2272_v40  ;;  %v2140_v4 = vadd.f32 %v2138_v50, %v2068_v10  ;;  %s7602_s14 = sld [smem:[#allocation128_spill]] }
 0x239   :  { %v2143_v54 = vmul.f32 %v7525_v3, %v6043_v26  ;;  %v1786_v21 = vadd.f32 %v1784_v63, %v1714_v20  ;;  %v7527_v0 = vmov %v7512_v49  ;;  %v2001_v13 = vadd.f32 %v1999_v16, %v1929_v36 }
 0x23a   :  { %v1856_v44 = vmul.f32 %v7527_v0, %v6049_v62  ;;  %v7528_v49 = vstv %s7422_s16  ;;  %v7529_v17 = vstv %s7520_s5  ;;  %v7530_v24 = vstv %s7521_s29  ;;  %2397 = vrot.lane.b32.xlu0 %v2339_v6, %s7531_s10  ;;  %s7537_s16 = sld [smem:[#allocation102_spill]]  ;;  %s7604_s5 = sld [smem:[#allocation130_spill]] }
 0x23b   :  { %v2209_v35 = vmul.f32 %v7528_v49, %v5908_v25  ;;  %v1657_v29 = vmul.f32 %v7529_v17, %v5911_v18  ;;  %v1717_v31 = vmul.f32 %v7530_v24, %v5942_v30  ;;  %v2206_v37 = vadd.f32 %v5846_v9, %v2140_v4  ;;  %s7609_s29 = sld [smem:[#allocation131_spill]] }
 0x23c   :  { %v7533_v55 = vstv %s7423_s17  ;;  %v1858_v48 = vadd.f32 %v1856_v44, %v1786_v21  ;;  %v7534_v42 = vmov %v7519_v41  ;;  %v2073_v8 = vadd.f32 %v2071_v22, %v2001_v13  ;;  %s7541_s17 = sld [smem:[#allocation104_spill]] }
 0x23d   :  { %v2276_v57 = vmul.f32 %v7533_v55, %v5986_v38  ;;  %v1928_v50 = vmul.f32 %v7534_v42, %v6058_v52  ;;  %v7535_v41 = vstv %s7424_s2  ;;  %v1719_v40 = vadd.f32 %v1717_v31, %v1657_v29  ;;  %s7544_s2 = sld [smem:[#allocation105_spill]] }
 0x23e   :  { %v2343_v43 = vmul.f32 %v7535_v41, %v6009_v5  ;;  %v7536_v10 = vstv %s7526_s21  ;;  %v2273_v9 = vadd.f32 %v5873_v19, %v2206_v37  ;;  %v7539_v63 = vmov %v7523_v45  ;;  %s7614_s21 = sld [smem:[#allocation132_spill]] }
 0x23f   :  { %v1789_v20 = vmul.f32 %v7536_v10, %v5959_v61  ;;  %v1930_v56 = vadd.f32 %v1928_v50, %v1858_v48  ;;  %v2000_v36 = vmul.f32 %v7539_v63, %v6067_v33  ;;  %v7540_v45 = vmov %v7524_v15 }
 0x240   :  { %v2072_v16 = vmul.f32 %v7540_v45, %v6073_v23  ;;  %v2145_v15 = vadd.f32 %v2143_v54, %v2073_v8  ;;  %v7542_v22 = vmov %v7525_v3  ;;  %v7543_v4 = vstv %s7532_s6  ;;  %s7622_s6 = sld [smem:[#allocation134_spill]] }
 0x241   :  { %v2144_v3 = vmul.f32 %v7542_v22, %v6079_v32  ;;  %v1791_v6 = vadd.f32 %v1789_v20, %v1719_v40  ;;  %v1861_v21 = vmul.f32 %v7543_v4, %v5964_v46  ;;  %v2340_v19 = vadd.f32 %v5878_v7, %v2273_v9 }
 0x242   :  { %v2002_v0 = vadd.f32 %v2000_v36, %v1930_v56  ;;  %v7545_v44 = vmov %v7529_v17  ;;  %v7546_v49 = vmov %v7530_v24  ;;  %v2211_v54 = vadd.f32 %v2209_v35, %v2145_v15 }
 0x243   :  { %v1658_v13 = vmul.f32 %v7545_v44, %v5908_v25  ;;  %v1718_v17 = vmul.f32 %v7546_v49, %v5986_v38  ;;  %v1863_v29 = vadd.f32 %v1861_v21, %v1791_v6  ;;  %v7549_v24 = vstv %s7537_s16  ;;  %2399 = vrot.lane.b32.xlu1 %v2340_v19, %s7531_s10  ;;  %s7616_s10 = smov 127   ;;  %s7630_s16 = sld [smem:[#allocation141_spill]] }
 0x244   :  { %v1933_v31 = vmul.f32 %v7549_v24, %v5990_v34  ;;  %v7550_v37 = vstv %s7538_s28  ;;  %v2074_v7 = vadd.f32 %v2072_v16, %v2002_v0  ;;  %v7551_v48 = vstv %s7541_s17  ;;  %s7632_s28 = sld [smem:[#allocation136_spill]] }
 0x245   :  { %v2005_v55 = vmul.f32 %v7550_v37, %v5999_v1  ;;  %v2077_v42 = vmul.f32 %v7551_v48, %v6003_v27  ;;  %v1720_v50 = vadd.f32 %v1718_v17, %v1658_v13  ;;  %v7552_v8 = vmov %v7536_v10 }
 0x246   :  { %v1790_v35 = vmul.f32 %v7552_v8, %v6009_v5  ;;  %v2278_v41 = vadd.f32 %v2276_v57, %v2211_v54  ;;  %v1935_v40 = vadd.f32 %v1933_v31, %v1863_v29  ;;  %v7554_v10 = vstv %s7544_s2 }
 0x247   :  { %v2149_v20 = vmul.f32 %v7554_v10, %v6043_v26  ;;  %v7555_v9 = vmov %v7543_v4  ;;  %v2146_v63 = vadd.f32 %v2144_v3, %v2074_v7  ;;  %v7556_v45 = vstv %s7547_s27  ;;  %s7639_s27 = sld [smem:[#allocation138_spill]] }
 0x248   :  { %v1862_v56 = vmul.f32 %v7555_v9, %v6049_v62  ;;  %v1792_v36 = vadd.f32 %v1790_v35, %v1720_v50  ;;  %v1665_v16 = vmul.f32 %v7556_v45, %v5911_v18  ;;  %v7557_v15 = vstv %s7548_s7  ;;  %s7642_s7 = sld [smem:[#allocation117_spill]] }
 0x249   :  { %v1729_v22 = vmul.f32 %v7557_v15, %v5942_v30  ;;  %v2345_v6 = vadd.f32 %v2343_v43, %v2278_v41  ;;  %v2007_v57 = vadd.f32 %v2005_v55, %v1935_v40  ;;  %v7559_v4 = vstv %s7425_s24  ;;  %s7567_s24 = sld [smem:[#allocation114_spill]] }
 0x24a   :  { %v2215_v21 = vmul.f32 %v7559_v4, %v5908_v25  ;;  %v7560_v19 = vmov %v7549_v24  ;;  %v2212_v3 = vadd.f32 %v5883_v39, %v2146_v63  ;;  %v1864_v44 = vadd.f32 %v1862_v56, %v1792_v36 }
 0x24b   :  { %v1934_v0 = vmul.f32 %v7560_v19, %v6058_v52  ;;  %v1731_v13 = vadd.f32 %v1729_v22, %v1665_v16  ;;  %v7561_v49 = vstv %s7553_s4  ;;  %2401 = vrot.lane.b32.xlu0 %v2345_v6, %s7562_s15  ;;  %v2079_v43 = vadd.f32 %v2077_v42, %v2007_v57  ;;  %s7645_s4 = sld [smem:[#allocation143_spill]] }
 0x24c   :  { %v1801_v17 = vmul.f32 %v7561_v49, %v5959_v61  ;;  %v7564_v54 = vstv %s7426_s23  ;;  %v7565_v24 = vstv %s7427_s18  ;;  %v2006_v39 = vmul.f32 %v7550_v37, %v6067_v33  ;;  %s7569_s23 = sld [smem:[#allocation115_spill]]  ;;  %s7572_s18 = sld [smem:[#allocation116_spill]] }
 0x24d   :  { %v2282_v29 = vmul.f32 %v7564_v54, %v5986_v38  ;;  %v2349_v31 = vmul.f32 %v7565_v24, %v6009_v5  ;;  %v2279_v55 = vadd.f32 %v5888_v59, %v2212_v3  ;;  %v1936_v7 = vadd.f32 %v1934_v0, %v1864_v44 }
 0x24e   :  { %v1803_v48 = vadd.f32 %v1801_v17, %v1731_v13  ;;  %v7566_v50 = vstv %s7558_s22  ;;  %v2151_v42 = vadd.f32 %v2149_v20, %v2079_v43  ;;  %v7568_v35 = vstv %s7541_s17  ;;  %s7635_s17 = sld [smem:[#allocation142_spill]]  ;;  %s7647_s22 = smov 126  }
 0x24f   :  { %v1873_v8 = vmul.f32 %v7566_v50, %v5964_v46  ;;  %v2078_v41 = vmul.f32 %v7568_v35, %v6073_v23  ;;  %v7570_v40 = vmov %v7556_v45  ;;  %v7571_v9 = vmov %v7557_v15 }
 0x250   :  { %v1666_v10 = vmul.f32 %v7570_v40, %v5908_v25  ;;  %v1730_v56 = vmul.f32 %v7571_v9, %v5986_v38  ;;  %v2346_v59 = vadd.f32 %v5893_v11, %v2279_v55  ;;  %v2008_v63 = vadd.f32 %v2006_v39, %v1936_v7 }
 0x251   :  { %v1875_v36 = vadd.f32 %v1873_v8, %v1803_v48  ;;  %v7573_v45 = vstv %s7563_s25  ;;  %v2217_v20 = vadd.f32 %v2215_v21, %v2151_v42  ;;  %v7575_v15 = vstv %s7544_s2  ;;  %s7638_s2 = sld [smem:[#allocation129_spill]]  ;;  %s7652_s25 = sld [smem:[#allocation120_spill]] }
 0x252   :  { %v1945_v16 = vmul.f32 %v7573_v45, %v5990_v34  ;;  %v2150_v22 = vmul.f32 %v7575_v15, %v6079_v32  ;;  %v1732_v6 = vadd.f32 %v1730_v56, %v1666_v10  ;;  %v7577_v57 = vmov %v7561_v49  ;;  %2403 = vrot.lane.b32.xlu1 %v2346_v59, %s7562_s15  ;;  %s7650_s15 = sld [smem:[#allocation139_spill]] }
 0x253   :  { %v1802_v4 = vmul.f32 %v7577_v57, %v6009_v5  ;;  %v2080_v11 = vadd.f32 %v2078_v41, %v2008_v63  ;;  %v7578_v0 = vstv %s7567_s24  ;;  %v7579_v44 = vstv %s7569_s23  ;;  %s7657_s24 = sld [smem:[#allocation144_spill]]  ;;  %s7658_s23 = sld [smem:[#allocation146_spill]] }
 0x254   :  { %v1947_v19 = vadd.f32 %v1945_v16, %v1875_v36  ;;  %v2017_v3 = vmul.f32 %v7578_v0, %v5999_v1  ;;  %v2089_v21 = vmul.f32 %v7579_v44, %v6003_v27  ;;  %v2284_v13 = vadd.f32 %v2282_v29, %v2217_v20 }
 0x255   :  { %v7581_v49 = vstv %s7572_s18  ;;  %v1804_v43 = vadd.f32 %v1802_v4, %v1732_v6  ;;  %v7582_v54 = vmov %v7566_v50  ;;  %v2152_v37 = vadd.f32 %v2150_v22, %v2080_v11 }
 0x256   :  { %v2161_v17 = vmul.f32 %v7581_v49, %v6043_v26  ;;  %v1874_v24 = vmul.f32 %v7582_v54, %v6049_v62  ;;  %v2019_v39 = vadd.f32 %v2017_v3, %v1947_v19  ;;  %v7583_v55 = vstv %s7574_s26  ;;  %s7664_s26 = sld [smem:[#allocation145_spill]] }
 0x257   :  { %v1669_v7 = vmul.f32 %v7583_v55, %v5911_v18  ;;  %v7584_v48 = vstv %s7576_s11  ;;  %v2351_v8 = vadd.f32 %v2349_v31, %v2284_v13  ;;  %v7585_v29 = vstv %s7428_s0  ;;  %s7591_s0 = sld [smem:[#allocation123_spill]]  ;;  %s7665_s11 = sld [smem:[#allocation151_spill]] }
 0x258   :  { %v1735_v50 = vmul.f32 %v7584_v48, %v5942_v30  ;;  %v2227_v42 = vmul.f32 %v7585_v29, %v5908_v25  ;;  %v1876_v35 = vadd.f32 %v1874_v24, %v1804_v43  ;;  %v7587_v41 = vmov %v7573_v45 }
 0x259   :  { %v1946_v40 = vmul.f32 %v7587_v41, %v6058_v52  ;;  %v2218_v10 = vadd.f32 %v5898_v58, %v2152_v37  ;;  %v2091_v9 = vadd.f32 %v2089_v21, %v2019_v39  ;;  %v7588_v59 = vstv %s7580_s8  ;;  %2405 = vrot.lane.b32.xlu0 %v2351_v8, %s7589_s30  ;;  %s7670_s8 = sld [smem:[#allocation140_spill]] }
 0x25a   :  { %v1737_v56 = vadd.f32 %v1735_v50, %v1669_v7  ;;  %v1807_v63 = vmul.f32 %v7588_v59, %v5959_v61  ;;  %v7590_v31 = vstv %s7375_s9  ;;  %v7592_v45 = vstv %s5607_s13  ;;  %s7597_s9 = sld [smem:[#allocation125_spill]]  ;;  %s7600_s13 = sld [smem:[#allocation126_spill]] }
 0x25b   :  { %v2294_v36 = vmul.f32 %v7590_v31, %v5986_v38  ;;  %v2361_v16 = vmul.f32 %v7592_v45, %v6009_v5  ;;  %v1948_v20 = vadd.f32 %v1946_v40, %v1876_v35  ;;  %v7593_v15 = vmov %v7578_v0 }
 0x25c   :  { %v2018_v58 = vmul.f32 %v7593_v15, %v6067_v33  ;;  %v2285_v22 = vadd.f32 %v5903_v14, %v2218_v10  ;;  %v2163_v6 = vadd.f32 %v2161_v17, %v2091_v9  ;;  %v1809_v57 = vadd.f32 %v1807_v63, %v1737_v56 }
 0x25d   :  { %v7594_v4 = vstv %s7586_s12  ;;  %v7596_v0 = vmov %v7579_v44  ;;  %v7598_v44 = vmov %v7583_v55  ;;  %v7599_v13 = vmov %v7584_v48  ;;  %s7671_s12 = sld [smem:[#allocation147_spill]] }
 0x25e   :  { %v1879_v11 = vmul.f32 %v7594_v4, %v5964_v46  ;;  %v2020_v19 = vadd.f32 %v2018_v58, %v1948_v20  ;;  %v2090_v3 = vmul.f32 %v7596_v0, %v6073_v23  ;;  %v1670_v21 = vmul.f32 %v7598_v44, %v5908_v25 }
 0x25f   :  { %v1736_v49 = vmul.f32 %v7599_v13, %v5986_v38  ;;  %v2352_v14 = vadd.f32 %v5917_v51, %v2285_v22  ;;  %v2229_v17 = vadd.f32 %v2227_v42, %v2163_v6  ;;  %v7601_v54 = vstv %s7591_s0  ;;  %s6587_s0 = sld [smem:[#allocation11 + $0x6d]] }
 0x260   :  { %v1881_v43 = vadd.f32 %v1879_v11, %v1809_v57  ;;  %v1951_v24 = vmul.f32 %v7601_v54, %v5990_v34  ;;  %v2092_v37 = vadd.f32 %v2090_v3, %v2020_v19  ;;  %v7603_v39 = vstv %s7572_s18  ;;  %s7661_s18 = sld [smem:[#allocation149_spill]] }
 0x261   :  { %v2162_v55 = vmul.f32 %v7603_v39, %v6079_v32  ;;  %v1738_v7 = vadd.f32 %v1736_v49, %v1670_v21  ;;  %v7605_v48 = vmov %v7588_v59  ;;  %2407 = vrot.lane.b32.xlu1 %v2352_v14, %s7589_s30  ;;  %v2296_v51 = vadd.f32 %v2294_v36, %v2229_v17  ;;  %s7672_s30 = sld [smem:[#allocation152_spill]] }
 0x262   :  { %v1808_v50 = vmul.f32 %v7605_v48, %v6009_v5  ;;  %v1953_v8 = vadd.f32 %v1951_v24, %v1881_v43  ;;  %v7606_v29 = vstv %s7595_s1  ;;  %v7607_v35 = vstv %s7597_s9  ;;  %s7678_s1 = sld [smem:[#allocation153_spill]]  ;;  %s7679_s9 = smov 125  }
 0x263   :  { %v2023_v42 = vmul.f32 %v7606_v29, %v5999_v1  ;;  %v2095_v41 = vmul.f32 %v7607_v35, %v6003_v27  ;;  %v2164_v40 = vadd.f32 %v2162_v55, %v2092_v37  ;;  %v7608_v10 = vstv %s7600_s13  ;;  %s6603_s13 = sld [smem:[#allocation11 + $0x5]] }
 0x264   :  { %v2167_v9 = vmul.f32 %v7608_v10, %v6043_v26  ;;  %v1810_v56 = vadd.f32 %v1808_v50, %v1738_v7  ;;  %v7610_v59 = vmov %v7594_v4  ;;  %v2363_v31 = vadd.f32 %v2361_v16, %v2296_v51 }
 0x265   :  { %v1880_v63 = vmul.f32 %v7610_v59, %v6049_v62  ;;  %v2025_v36 = vadd.f32 %v2023_v42, %v1953_v8  ;;  %v7611_v45 = vstv %s7602_s14  ;;  %v7612_v15 = vstv %s7604_s5  ;;  %s7684_s14 = sld [smem:[#allocation148_spill]]  ;;  %s6605_s5 = sld [smem:[#allocation11 + $0x10]] }
 0x266   :  { %v1673_v20 = vmul.f32 %v7611_v45, %v5911_v18  ;;  %v1741_v58 = vmul.f32 %v7612_v15, %v5942_v30  ;;  %v2230_v22 = vadd.f32 %v5922_v47, %v2164_v40  ;;  %v7613_v6 = vstv %s7380_s3  ;;  %2409 = vrot.lane.b32.xlu0 %v2363_v31, %s7616_s10  ;;  %s7619_s3 = sld [smem:[#allocation133_spill]] }
 0x267   :  { %v2233_v57 = vmul.f32 %v7613_v6, %v5908_v25  ;;  %v1882_v4 = vadd.f32 %v1880_v63, %v1810_v56  ;;  %v7615_v11 = vmov %v7601_v54  ;;  %v2097_v16 = vadd.f32 %v2095_v41, %v2025_v36 }
 0x268   :  { %v1952_v19 = vmul.f32 %v7615_v11, %v6058_v52  ;;  %v7617_v0 = vstv %s5643_s19  ;;  %v1743_v44 = vadd.f32 %v1741_v58, %v1673_v20  ;;  %v7618_v47 = vstv %s7609_s29  ;;  %s7625_s19 = sld [smem:[#allocation135_spill]]  ;;  %s6614_s29 = sld [smem:[#allocation11 + $0x78]] }
 0x269   :  { %v2300_v3 = vmul.f32 %v7617_v0, %v5986_v38  ;;  %v1813_v21 = vmul.f32 %v7618_v47, %v5959_v61  ;;  %v2297_v13 = vadd.f32 %v5930_v28, %v2230_v22  ;;  %v7620_v49 = vstv %s7431_s20  ;;  %s7628_s20 = sld [smem:[#allocation137_spill]] }
 0x26a   :  { %v2367_v14 = vmul.f32 %v7620_v49, %v6009_v5  ;;  %v1954_v17 = vadd.f32 %v1952_v19, %v1882_v4  ;;  %v7621_v43 = vmov %v7606_v29  ;;  %v2169_v24 = vadd.f32 %v2167_v9, %v2097_v16 }
 0x26b   :  { %v2024_v54 = vmul.f32 %v7621_v43, %v6067_v33  ;;  %v7623_v37 = vmov %v7607_v35  ;;  %v1815_v55 = vadd.f32 %v1813_v21, %v1743_v44  ;;  %v7624_v7 = vstv %s7614_s21  ;;  %s7689_s21 = sld [smem:[#allocation154_spill]] }
 0x26c   :  { %v2096_v39 = vmul.f32 %v7623_v37, %v6073_v23  ;;  %v1885_v48 = vmul.f32 %v7624_v7, %v5964_v46  ;;  %v2364_v28 = vadd.f32 %v5938_v53, %v2297_v13  ;;  %v7626_v51 = vmov %v7611_v45 }
 0x26d   :  { %v2026_v50 = vadd.f32 %v2024_v54, %v1954_v17  ;;  %v1674_v8 = vmul.f32 %v7626_v51, %v5908_v25  ;;  %v7627_v29 = vmov %v7612_v15  ;;  %v2235_v35 = vadd.f32 %v2233_v57, %v2169_v24 }
 0x26e   :  { %v1742_v42 = vmul.f32 %v7627_v29, %v5986_v38  ;;  %v7629_v41 = vmov %v7608_v10  ;;  %v1887_v10 = vadd.f32 %v1885_v48, %v1815_v55  ;;  %v7631_v9 = vstv %s7619_s3  ;;  %2411 = vrot.lane.b32.xlu1 %v2364_v28, %s7616_s10  ;;  %s6622_s10 = sld [smem:[#allocation11 + $0x1b]]  ;;  %s7694_s3 = sld [smem:[#allocation155_spill]] }
 0x26f   :  { %v2168_v40 = vmul.f32 %v7629_v41, %v6079_v32  ;;  %v1957_v56 = vmul.f32 %v7631_v9, %v5990_v34  ;;  %v2098_v53 = vadd.f32 %v2096_v39, %v2026_v50  ;;  %v7633_v59 = vstv %s7622_s6  ;;  %s6638_s6 = sld [smem:[#allocation11 + $0x26]] }
 0x270   :  { %v2029_v63 = vmul.f32 %v7633_v59, %v5999_v1  ;;  %v1744_v31 = vadd.f32 %v1742_v42, %v1674_v8  ;;  %v7634_v36 = vmov %v7618_v47  ;;  %v2302_v20 = vadd.f32 %v2300_v3, %v2235_v35 }
 0x271   :  { %v1814_v45 = vmul.f32 %v7634_v36, %v6009_v5  ;;  %v1959_v15 = vadd.f32 %v1957_v56, %v1887_v10  ;;  %v7636_v58 = vstv %s7625_s19  ;;  %v7637_v6 = vmov %v7624_v7  ;;  %s7699_s19 = sld [smem:[#allocation156_spill]] }
 0x272   :  { %v2101_v22 = vmul.f32 %v7636_v58, %v6003_v27  ;;  %v1886_v57 = vmul.f32 %v7637_v6, %v6049_v62  ;;  %v2170_v4 = vadd.f32 %v2168_v40, %v2098_v53  ;;  %v7640_v19 = vstv %s7628_s20  ;;  %s6650_s20 = sld [smem:[#allocation11 + $0x31]] }
 0x273   :  { %v1816_v11 = vadd.f32 %v1814_v45, %v1744_v31  ;;  %v1677_v16 = vmul.f32 %v7640_v19, %v5911_v18  ;;  %v7641_v0 = vstv %s7630_s16  ;;  %v2369_v47 = vadd.f32 %v2367_v14, %v2302_v20  ;;  %s7703_s16 = sld [smem:[#allocation150_spill]] }
 0x274   :  { %v1747_v44 = vmul.f32 %v7641_v0, %v5942_v30  ;;  %v2031_v3 = vadd.f32 %v2029_v63, %v1959_v15  ;;  %v7643_v21 = vstv %s7632_s28  ;;  %v7644_v49 = vmov %v7631_v9  ;;  %s7704_s28 = smov 124  }
 0x275   :  { %v2173_v13 = vmul.f32 %v7643_v21, %v6043_v26  ;;  %v1958_v17 = vmul.f32 %v7644_v49, %v6058_v52  ;;  %v2236_v43 = vadd.f32 %v5949_v60, %v2170_v4  ;;  %v1888_v54 = vadd.f32 %v1886_v57, %v1816_v11  ;;  %2413 = vrot.lane.b32.xlu0 %v2369_v47, %s7647_s22 }
 0x276   :  { %v1749_v24 = vadd.f32 %v1747_v44, %v1677_v16  ;;  %v7646_v37 = vstv %s7635_s17  ;;  %v2103_v14 = vadd.f32 %v2101_v22, %v2031_v3  ;;  %v7648_v55 = vstv %s7638_s2  ;;  %s6664_s17 = sld [smem:[#allocation11 + $0x3c]]  ;;  %s6677_s2 = sld [smem:[#allocation11 + $0x47]] }
 0x277   :  { %v1819_v39 = vmul.f32 %v7646_v37, %v5959_v61  ;;  %v2239_v7 = vmul.f32 %v7648_v55, %v5908_v25  ;;  %v7649_v48 = vstv %s7639_s27  ;;  %v7651_v50 = vmov %v7633_v59  ;;  %s6690_s27 = sld [smem:[#allocation11 + $0x52]] }
 0x278   :  { %v2306_v28 = vmul.f32 %v7649_v48, %v5986_v38  ;;  %v2030_v60 = vmul.f32 %v7651_v50, %v6067_v33  ;;  %v2303_v51 = vadd.f32 %v5970_v12, %v2236_v43  ;;  %v1960_v8 = vadd.f32 %v1958_v17, %v1888_v54 }
 0x279   :  { %v1821_v29 = vadd.f32 %v1819_v39, %v1749_v24  ;;  %v7653_v42 = vstv %s7642_s7  ;;  %v2175_v41 = vadd.f32 %v2173_v13, %v2103_v14  ;;  %v7654_v40 = vmov %v7636_v58  ;;  %s6701_s7 = sld [smem:[#allocation11 + $0x5d]] }
 0x27a   :  { %v1891_v35 = vmul.f32 %v7653_v42, %v5964_v46  ;;  %v2102_v10 = vmul.f32 %v7654_v40, %v6073_v23  ;;  %v7655_v9 = vstv %s7645_s4  ;;  %v7656_v53 = vmov %v7640_v19  ;;  %s6708_s4 = sld [smem:[#allocation11 + $0x68]] }
 0x27b   :  { %v1963_v56 = vmul.f32 %v7655_v9, %v5990_v34  ;;  %v1678_v59 = vmul.f32 %v7656_v53, %v5908_v25  ;;  %v2370_v12 = vadd.f32 %v5975_v2, %v2303_v51  ;;  %v2032_v63 = vadd.f32 %v2030_v60, %v1960_v8  ;;  %v7677_v51 = vld [vmem:[#allocation34_spill] sm:$0xff] }
 0x27c   :  { %v1893_v31 = vadd.f32 %v1891_v35, %v1821_v29  ;;  %v7659_v36 = vmov %v7641_v0  ;;  %v2241_v20 = vadd.f32 %v2239_v7, %v2175_v41  ;;  %v7660_v15 = vstv %s7650_s15  ;;  %s6714_s15 = sld [smem:[#allocation11 + $0x73]] }
 0x27d   :  { %v1748_v45 = vmul.f32 %v7659_v36, %v5986_v38  ;;  %v2373_v58 = vmul.f32 %v7660_v15, %v6009_v5  ;;  %v7662_v22 = vmov %v7643_v21  ;;  %v7663_v57 = vstv %s7652_s25  ;;  %2415 = vrot.lane.b32.xlu1 %v2370_v12, %s7647_s22  ;;  %s7715_s22 = smov 123  }
 0x27e   :  { %v2174_v6 = vmul.f32 %v7662_v22, %v6079_v32  ;;  %v2035_v4 = vmul.f32 %v7663_v57, %v5999_v1  ;;  %v2104_v2 = vadd.f32 %v2102_v10, %v2032_v63  ;;  %v1965_v11 = vadd.f32 %v1963_v56, %v1893_v31  ;;  %v7685_v63 = vld [vmem:[#allocation36_spill] sm:$0xff] }
 0x27f   :  { %v1750_v19 = vadd.f32 %v1748_v45, %v1678_v59  ;;  %v7666_v16 = vmov %v7646_v37  ;;  %v2308_v44 = vadd.f32 %v2306_v28, %v2241_v20  ;;  %v7667_v47 = vstv %s7657_s24 }
 0x280   :  { %v1820_v0 = vmul.f32 %v7666_v16, %v6009_v5  ;;  %v2107_v3 = vmul.f32 %v7667_v47, %v6003_v27  ;;  %v7668_v21 = vmov %v7653_v42  ;;  %v7669_v49 = vstv %s7658_s23  ;;  %s7716_s23 = sld [smem:[#allocation158_spill]] }
 0x281   :  { %v1892_v13 = vmul.f32 %v7668_v21, %v6049_v62  ;;  %v1681_v17 = vmul.f32 %v7669_v49, %v5911_v18  ;;  %v2176_v43 = vadd.f32 %v2174_v6, %v2104_v2  ;;  %v2037_v54 = vadd.f32 %v2035_v4, %v1965_v11 }
 0x282   :  { %v1822_v24 = vadd.f32 %v1820_v0, %v1750_v19  ;;  %v7673_v37 = vstv %s7661_s18  ;;  %v2375_v14 = vadd.f32 %v2373_v58, %v2308_v44  ;;  %v7674_v55 = vstv %s7664_s26  ;;  %v7691_v19 = vld [vmem:[#allocation52_spill] sm:$0xff]  ;;  %s3051_s18 = smov [#allocation13]  }
 0x283   :  { %v1753_v39 = vmul.f32 %v7673_v37, %v5942_v30  ;;  %v2179_v7 = vmul.f32 %v7674_v55, %v6043_v26  ;;  %v7675_v48 = vmov %v7655_v9  ;;  %v7676_v50 = vstv %s7665_s11  ;;  %s2466_s26 = sshll.u32 %s3051_s18, 4  ;;  %s2467_s26 = int_to_ptr.vmem [resolvable:$true] %s2466_s26 }
 0x284   :  { %v1964_v28 = vmul.f32 %v7675_v48, %v6058_v52  ;;  %v1825_v60 = vmul.f32 %v7676_v50, %v5959_v61  ;;  %v2242_v8 = vadd.f32 %v7677_v51, %v2176_v43  ;;  %v2109_v29 = vadd.f32 %v2107_v3, %v2037_v54  ;;  %2417 = vrot.lane.b32.xlu0 %v2375_v14, %s7679_s9  ;;  %s3003_s11 = scalar_lea.vmem %s2467_s26, 256  ;;  %p3008_p13 = scmp.lt.s32.totalorder %s2467_s26, %s2467_s26 }
 0x285   :  { %v1894_v42 = vadd.f32 %v1892_v13, %v1822_v24  ;;  %v1755_v35 = vadd.f32 %v1753_v39, %v1681_v17  ;;  %v7680_v41 = vstv %s7670_s8  ;;  %v7681_v10 = vstv %s7671_s12  ;;  %p3004_p12 = scmp.ne.s32.totalorder %s2467_s26, %s3003_s11  ;;  %p3009_p0 = scmp.lt.s32.totalorder %s3003_s11, %s3003_s11 }
 0x286   :  { %v2245_v40 = vmul.f32 %v7680_v41, %v5908_v25  ;;  %v2312_v9 = vmul.f32 %v7681_v10, %v5986_v38  ;;  %v7682_v56 = vmov %v7663_v57  ;;  %v7683_v59 = vstv %s7672_s30 }
 0x287   :  { %v2036_v53 = vmul.f32 %v7682_v56, %v6067_v33  ;;  %v1897_v12 = vmul.f32 %v7683_v59, %v5964_v46  ;;  %v2309_v31 = vadd.f32 %v7685_v63, %v2242_v8  ;;  %v2181_v36 = vadd.f32 %v2179_v7, %v2109_v29  ;;  %v7697_v7 = vld [vmem:[#allocation31_spill] sm:$0xff]  ;;  %v7705_v63 = vld [vmem:[#allocation32_spill] sm:$0xff]  ;;  %p3010_p1 = por %p3009_p0, %p3008_p13 }
 0x288   :  { %v1966_v45 = vadd.f32 %v1964_v28, %v1894_v42  ;;  %v1827_v20 = vadd.f32 %v1825_v60, %v1755_v35  ;;  %v7686_v15 = vmov %v7667_v47  ;;  %v7687_v22 = vstv %s7678_s1 }
 0x289   :  { %v2108_v58 = vmul.f32 %v7686_v15, %v6073_v23  ;;  %v1969_v6 = vmul.f32 %v7687_v22, %v5990_v34  ;;  %v7688_v57 = vmov %v7669_v49  ;;  %v7690_v2 = vmov %v7673_v37  ;;  %p3011_p2 = pnand %p3010_p1, %p3004_p12 }
 0x28a   :  { %v1682_v4 = vmul.f32 %v7688_v57, %v5908_v25  ;;  %v1754_v11 = vmul.f32 %v7690_v2, %v5986_v38  ;;  %v2376_v16 = vadd.f32 %v7691_v19, %v2309_v31  ;;  %v2247_v0 = vadd.f32 %v2245_v40, %v2181_v36 }
 0x28b   :  { %v2038_v44 = vadd.f32 %v2036_v53, %v1966_v45  ;;  %v1899_v47 = vadd.f32 %v1897_v12, %v1827_v20  ;;  %v7692_v3 = vstv %s7684_s14  ;;  %v7693_v13 = vmov %v7674_v55 }
 0x28c   :  { %v2379_v21 = vmul.f32 %v7692_v3, %v6009_v5  ;;  %v2180_v49 = vmul.f32 %v7693_v13, %v6079_v32  ;;  %v1756_v17 = vadd.f32 %v1754_v11, %v1682_v4  ;;  %v7695_v43 = vmov %v7676_v50  ;;  %2419 = vrot.lane.b32.xlu1 %v2376_v16, %s7679_s9  ;;  %v7709_v11 = vld [vmem:[#allocation33_spill] sm:$0xff] }
 0x28d   :  { %v1826_v54 = vmul.f32 %v7695_v43, %v6009_v5  ;;  %v2314_v24 = vadd.f32 %v2312_v9, %v2247_v0  ;;  %v2110_v37 = vadd.f32 %v2108_v58, %v2038_v44  ;;  %v1971_v39 = vadd.f32 %v1969_v6, %v1899_v47 }
 0x28e   :  { %v7696_v14 = vstv %s7689_s21  ;;  %v7698_v48 = vmov %v7680_v41  ;;  %v2317_v50 = vstv %s6587_s0  ;;  %v7700_v51 = vmov %v7683_v59 }
 0x28f   :  { %v2041_v55 = vmul.f32 %v7696_v14, %v5999_v1  ;;  %v2246_v28 = vmul.f32 %v7698_v48, %v7697_v7  ;;  %v1828_v60 = vadd.f32 %v1826_v54, %v1756_v17  ;;  %v1898_v8 = vmul.f32 %v7700_v51, %v6049_v62 }
 0x290   :  { %v2381_v29 = vadd.f32 %v2379_v21, %v2314_v24  ;;  %v2182_v42 = vadd.f32 %v2180_v49, %v2110_v37  ;;  %v7701_v41 = vstv %s7694_s3  ;;  %v7702_v9 = vmov %v7687_v22 }
 0x291   :  { %v2043_v35 = vadd.f32 %v2041_v55, %v1971_v39  ;;  %v2113_v40 = vmul.f32 %v7701_v41, %v6003_v27  ;;  %v1900_v10 = vadd.f32 %v1898_v8, %v1828_v60  ;;  %v1970_v56 = vmul.f32 %v7702_v9, %v6058_v52 }
 0x292   :  { %v1660_v53 = vstv %s6603_s13  ;;  %v1722_v59 = vstv %s6605_s5  ;;  %2421 = vrot.lane.b32.xlu0 %v2381_v29, %s7704_s28  ;;  %v2248_v12 = vadd.f32 %v2246_v28, %v2182_v42  ;;  %v7706_v31 = vstv %s7671_s12 }
 0x293   :  { %v2313_v36 = vmul.f32 %v7706_v31, %v7705_v63  ;;  %v2115_v45 = vadd.f32 %v2113_v40, %v2043_v35  ;;  %v7707_v20 = vstv %s7699_s19  ;;  %v2384_v58 = vstv %s6614_s29 }
 0x294   :  { %v2185_v15 = vmul.f32 %v7707_v20, %v6043_v26  ;;  %v1972_v22 = vadd.f32 %v1970_v56, %v1900_v10  ;;  %v7708_v6 = vmov %v7696_v14  ;;  %v1794_v4 = vstv %s6622_s10 }
 0x295   :  { %v2042_v57 = vmul.f32 %v7708_v6, %v6067_v33  ;;  %v2315_v2 = vadd.f32 %v2313_v36, %v2248_v12  ;;  %v7710_v19 = vmov %v7692_v3  ;;  %v7711_v44 = vstv %s7703_s16 }
 0x296   :  { %v2380_v16 = vmul.f32 %v7710_v19, %v7709_v11  ;;  %v2187_v0 = vadd.f32 %v2185_v15, %v2115_v45  ;;  %v2251_v47 = vmul.f32 %v7711_v44, %v5908_v25  ;;  %v7712_v21 = vmov %v7701_v41 }
 0x297   :  { %v2044_v3 = vadd.f32 %v2042_v57, %v1972_v22  ;;  %v2114_v13 = vmul.f32 %v7712_v21, %v6073_v23  ;;  %v1662_v49 = vmul.f32 %v1660_v53, %v5908_v25  ;;  %v1724_v17 = vmul.f32 %v1722_v59, %v5986_v38 }
 0x298   :  { %v2382_v43 = vadd.f32 %v2380_v16, %v2315_v2  ;;  %v2253_v54 = vadd.f32 %v2251_v47, %v2187_v0  ;;  %v2318_v24 = vmul.f32 %v2317_v50, %v5986_v38  ;;  %v1866_v37 = vstv %s6638_s6 }
 0x299   :  { %v2116_v39 = vadd.f32 %v2114_v13, %v2044_v3  ;;  %v7713_v14 = vmov %v7707_v20  ;;  %v1726_v48 = vadd.f32 %v1724_v17, %v1662_v49  ;;  %v1796_v28 = vmul.f32 %v1794_v4, %v6009_v5  ;;  %v2390_v49 = vpop.permute.xlu0 %2389 }
 0x29a   :  { %v2186_v55 = vmul.f32 %v7713_v14, %v6079_v32  ;;  %2423 = vrot.lane.b32.xlu1 %v2382_v43, %s7704_s28  ;;  %v2320_v60 = vadd.f32 %v2318_v24, %v2253_v54  ;;  %v2385_v51 = vmul.f32 %v2384_v58, %v6009_v5  ;;  %v1938_v8 = vstv %s6650_s20  ;;  %v2392_v17 = vpop.permute.xlu1 %2391 }
 0x29b   :  { %v7714_v42 = vmov %v7711_v44  ;;  %v1798_v41 = vadd.f32 %v1796_v28, %v1726_v48  ;;  %v1868_v40 = vmul.f32 %v1866_v37, %v6049_v62  ;;  %v2010_v9 = vstv %s6664_s17 }
 0x29c   :  { %v2188_v29 = vadd.f32 %v2186_v55, %v2116_v39  ;;  %v2252_v35 = vmul.f32 %v7714_v42, %v7697_v7  ;;  %v2387_v10 = vadd.f32 %v2385_v51, %v2320_v60  ;;  %v2319_v12 = vmul.f32 %v2317_v50, %v7705_v63 }
 0x29d   :  { %v1870_v31 = vadd.f32 %v1868_v40, %v1798_v41  ;;  %v1940_v36 = vmul.f32 %v1938_v8, %v6058_v52  ;;  %v2082_v45 = vstv %s6677_s2  ;;  %v2386_v62 = vmul.f32 %v2384_v58, %v7709_v11 }
 0x29e   :  { %v2254_v56 = vadd.f32 %v2252_v35, %v2188_v29  ;;  %2425 = vrot.lane.b32.xlu0 %v2387_v10, %s7715_s22  ;;  %v2012_v22 = vmul.f32 %v2010_v9, %v6067_v33  ;;  %v2154_v6 = vstv %s6690_s27  ;;  %v2084_v50 = vmul.f32 %v2082_v45, %v6073_v23 }
 0x29f   :  { %v1942_v15 = vadd.f32 %v1940_v36, %v1870_v31  ;;  %v2220_v19 = vstv %s6701_s7  ;;  %v2156_v16 = vmul.f32 %v2154_v6, %v6079_v32  ;;  %v2287_v0 = vstv %s6708_s4 }
 0x2a0   :  { %v2321_v20 = vadd.f32 %v2319_v12, %v2254_v56  ;;  %v2222_v58 = vmul.f32 %v2220_v19, %v7697_v7  ;;  %v2354_v47 = vstv %s6714_s15  ;;  %v2289_v3 = vmul.f32 %v2287_v0, %v7705_v63  ;;  %v2394_v43 = vpop.permute.xlu0 %2393 }
 0x2a1   :  { %v2014_v2 = vadd.f32 %v2012_v22, %v1942_v15  ;;  %v2356_v23 = vmul.f32 %v2354_v47, %v7709_v11  ;;  %v1723_v54 = vmul.f32 %v1722_v59, %v5942_v30  ;;  %v1661_v32 = vmul.f32 %v1660_v53, %v5911_v18 }
 0x2a2   :  { %v2388_v57 = vadd.f32 %v2386_v62, %v2321_v20  ;;  %v1795_v14 = vmul.f32 %v1794_v4, %v5959_v61  ;;  %v1867_v11 = vmul.f32 %v1866_v37, %v5964_v46  ;;  %v1939_v60 = vmul.f32 %v1938_v8, %v5990_v34 }
 0x2a3   :  { %v2086_v52 = vadd.f32 %v2084_v50, %v2014_v2  ;;  %v1725_v39 = vadd.f32 %v1723_v54, %v1661_v32  ;;  %v2011_v59 = vmul.f32 %v2010_v9, %v5999_v1  ;;  %v2083_v53 = vmul.f32 %v2082_v45, %v6003_v27 }
 0x2a4   :  { %2427 = vrot.lane.b32.xlu1 %v2388_v57, %s7715_s22  ;;  %v2155_v61 = vmul.f32 %v2154_v6, %v6043_v26  ;;  %v2221_v37 = vmul.f32 %v2220_v19, %v5908_v25  ;;  %v2288_v34 = vmul.f32 %v2287_v0, %v5986_v38  ;;  %v2355_v1 = vmul.f32 %v2354_v47, %v6009_v5 }
 0x2a5   :  { %v2158_v44 = vadd.f32 %v2156_v16, %v2086_v52  ;;  %v1797_v63 = vadd.f32 %v1795_v14, %v1725_v39  ;;  %v2429_v26 = vadd.f32 %v2394_v43, %v2390_v49  ;;  %v2450_v5 = vstv %s7716_s23 }
 0x2a7   :  { %v2224_v33 = vadd.f32 %v2222_v58, %v2158_v44  ;;  %v1869_v28 = vadd.f32 %v1867_v11, %v1797_v63 }
 0x2a8   :  { %v2396_v24 = vpop.permute.xlu1 %2395 }
 0x2a9   :  { %v2291_v21 = vadd.f32 %v2289_v3, %v2224_v33  ;;  %v1941_v29 = vadd.f32 %v1939_v60, %v1869_v28  ;;  %v2430_v52 = vadd.f32 %v2396_v24, %v2392_v17 }
 0x2ab   :  { %v2358_v13 = vadd.f32 %v2356_v23, %v2291_v21  ;;  %v2013_v18 = vadd.f32 %v2011_v59, %v1941_v29 }
 0x2ac   :  { %v2398_v7 = vpop.permute.xlu0 %2397 }
 0x2ad   :  { %v2085_v41 = vadd.f32 %v2083_v53, %v2013_v18 }
 0x2af   :  { %v2157_v4 = vadd.f32 %v2155_v61, %v2085_v41 }
 0x2b1   :  { %v2223_v10 = vadd.f32 %v2221_v37, %v2157_v4 }
 0x2b3   :  { %v2290_v12 = vadd.f32 %v2288_v34, %v2223_v10 }
 0x2b5   :  { %v2400_v55 = vpop.permute.xlu1 %2399  ;;  %v2357_v9 = vadd.f32 %v2355_v1, %v2290_v12 }
 0x2bd   :  { %v2402_v48 = vpop.permute.xlu0 %2401 }
 0x2be   :  { %v2431_v45 = vadd.f32 %v2402_v48, %v2398_v7 }
 0x2c0   :  { %v2439_v22 = vadd.f32 %v2431_v45, %v2429_v26 }
 0x2c4   :  { %v2404_v51 = vpop.permute.xlu1 %2403 }
 0x2c5   :  { %v2432_v57 = vadd.f32 %v2404_v51, %v2400_v55 }
 0x2c7   :  { %v2440_v44 = vadd.f32 %v2432_v57, %v2430_v52 }
 0x2cb   :  { %v2406_v30 = vpop.permute.xlu0 %2405 }
 0x2cc   :  { %v2433_v20 = vadd.f32 %v2406_v30, %v2357_v9 }
 0x2d3   :  { %v2408_v42 = vpop.permute.xlu1 %2407 }
 0x2d4   :  { %v2434_v2 = vadd.f32 %v2408_v42, %v2358_v13 }
 0x2d8   :  { %v2410_v35 = vpop.permute.xlu0 %2409 }
 0x2e0   :  { %v2412_v40 = vpop.permute.xlu1 %2411 }
 0x2e7   :  { %v2414_v46 = vpop.permute.xlu0 %2413 }
 0x2e8   :  { %v2435_v27 = vadd.f32 %v2414_v46, %v2410_v35 }
 0x2ea   :  { %v2441_v62 = vadd.f32 %v2435_v27, %v2433_v20 }
 0x2ec   :  { %v2445_v50 = vadd.f32 %v2441_v62, %v2439_v22 }
 0x2ef   :  { %v2416_v8 = vpop.permute.xlu1 %2415 }
 0x2f0   :  { %v2436_v15 = vadd.f32 %v2416_v8, %v2412_v40 }
 0x2f2   :  { %v2442_v16 = vadd.f32 %v2436_v15, %v2434_v2 }
 0x2f4   :  { %v2446_v3 = vadd.f32 %v2442_v16, %v2440_v44 }
 0x2f6   :  { %v2418_v56 = vpop.permute.xlu0 %2417 }
 0x2fe   :  { %v2420_v31 = vpop.permute.xlu1 %2419 }
 0x304   :  { %v2422_v36 = vpop.permute.xlu0 %2421 }
 0x305   :  { %v2437_v6 = vadd.f32 %v2422_v36, %v2418_v56 }
 0x30c   :  { %v2424_v25 = vpop.permute.xlu1 %2423 }
 0x30d   :  { %v2438_v58 = vadd.f32 %v2424_v25, %v2420_v31 }
 0x310   :  { %v2426_v38 = vpop.permute.xlu0 %2425 }
 0x311   :  { %v2443_v19 = vadd.f32 %v2437_v6, %v2426_v38 }
 0x313   :  { %v2447_v0 = vadd.f32 %v2445_v50, %v2443_v19 }
 0x315   :  { %v2451_v47 = vadd.f32 %v2450_v5, %v2447_v0 }
 0x316   :  { %v2428_v33 = vpop.permute.xlu1 %2427 }
 0x317   :  { %v2444_v21 = vadd.f32 %v2438_v58, %v2428_v33  ;;  %vm2453_vm10 = vcmp.ge.f32.partialorder %v2451_v47, 0.0  ;;  %v2455_v23 = vmul.f32 0.2, %v2451_v47 }
 0x319   :  { %v2448_v49 = vadd.f32 %v2446_v3, %v2444_v21  ;;  %v2457_v13 = vsel %vm2453_vm10, %v2451_v47, %v2455_v23 }
 0x31a   :  { %2459 = vst [vmem:[#allocation13] sm:$0xff] %v2457_v13 }
 0x31b   :  { %v2452_v43 = vadd.f32 %v2450_v5, %v2448_v49 }
 0x31d   :  { %vm2454_vm11 = vcmp.ge.f32.partialorder %v2452_v43, 0.0  ;;  %v2456_v17 = vmul.f32 0.2, %v2452_v43 }
 0x31f   :  { %v2458_v54 = vsel %vm2454_vm11, %v2452_v43, %v2456_v17 }
 0x320   :  { %2460 = vst [vmem:[#allocation13 + $0x8] sm:$0xff] %v2458_v54 }
 0x321   :  { %3014 = shalt.err (!%p3011_p2)
}
 0x322   :  { %s7717_s30 = sld [smem:[#allocation159_spill]] }
 0x328   :  { %s3015_s0 = scalar_lea.hbm %s7717_s30, 256 }
 0x329   :  { %p3016_p3 = scmp.ne.s32.totalorder %s7717_s30, %s3015_s0  ;;  %p3019_p4 = scmp.lt.u32.totalorder %s3015_s0, %s7717_s30 }
 0x32b   :  { %p3021_p5 = pnand %p3019_p4, %p3016_p3 }
 0x32d   :  { %3024 = shalt.err (!%p3021_p5)
}
 0x32e   :  { %s7718_s5 = smov 8   ;;  %s7719_s29 = smov 128  }
 0x32f   :  { %2472 = dma.vmem_to_hbm [thread:$0]  %s2467_s26, 256, %s7717_s30, [#allocation6], %s7719_s29, %s7719_s29, %s7718_s5  }
 0x330   :  { %3033 = dma.done.wait [#allocation6], 256  }
 0x331   :  { %3034 = vsyncadd [#allocation6], 4294967040 }
 0x332   :  { %2476 = vsyncpa [#allocation5], 1 }
 0x333   :  { %2477 = vsyncpa [#allocation9], 1 }
 0x334   :  { %2478 = vsyncpa [#allocation6], 1 }
 0x335   :  { %2479 = vsyncpa [#allocation7], 1 }
 0x336   :  { %2480 = vsyncpa [#allocation12], 1 }

</bundles_post_ra>
